<compile_context>
chip_gen: v7x
topology: tpu7x:2x2x1
jax: 0.10.0
libtpu: 0.0.40
codegen_flags: <defaults>
</compile_context>

<pallas_src>
import functools

import jax
import jax.numpy as jnp
from jax.experimental import pallas as pl
from jax.experimental.pallas import tpu as pltpu


# ----------------------------------------------------------------------------
# NeRF-style frequency embedder (identity + sin/cos at 2^k freqs) — reference.
# ----------------------------------------------------------------------------
def embed(x, multires):
    outs = [x]
    for i in range(multires):
        freq = 2.0 ** i
        outs.append(jnp.sin(x * freq))
        outs.append(jnp.cos(x * freq))
    return jnp.concatenate(outs, axis=-1)


def embed_dim(d, multires):
    return d * (1 + 2 * multires)


def _round_up(x, m):
    return ((x + m - 1) // m) * m


# ----------------------------------------------------------------------------
# Fused kernel (transposed layout: lanes = samples, sublanes = features).
#   in-VMEM embedding -> single fused fc1 matmul (bias folded) -> relu
#   -> fc2 + relu -> head.  All matmuls accumulate in f32.
# ----------------------------------------------------------------------------
def _radiance_kernel(pd_ref, feat_ref, w1f_ref, w2t_ref, b2t_ref, w3t_ref,
                     b3t_ref, o_ref, *, n_freq):
    f32 = jnp.float32
    cd = w1f_ref.dtype                      # compute dtype (bf16 or f32)

    pd = pd_ref[...]                        # (id_rows, tm) f32: [pos|dir|1|0]
    pieces = [pd.astype(cd)]
    if n_freq > 0:
        # Lane-dense frequency scaling: each piece is a full (id_rows, tm)
        # block; the concat is 8-aligned sublane stacking (cheap).
        scaled = jnp.concatenate([pd * (2.0 ** i) for i in range(n_freq)],
                                 axis=0)    # (id_rows*n_freq, tm) f32
        pieces.append(jnp.sin(scaled).astype(cd))
        pieces.append(jnp.cos(scaled).astype(cd))
    pieces.append(feat_ref[...])            # (feat_rows, tm) compute dtype

    # Single fused fc1 operand: [identity | sin | cos | feat] along sublanes.
    emb = jnp.concatenate(pieces, axis=0)   # (K, tm)

    # fc1 (b1 folded into w1f via the constant-1 identity row) + relu.
    h = jnp.dot(w1f_ref[...], emb, preferred_element_type=f32)   # (h1, tm)
    h = jnp.maximum(h, 0.0)

    # fc2 + relu.
    h = jnp.dot(w2t_ref[...], h.astype(cd),
                preferred_element_type=f32) + b2t_ref[...]       # (h2, tm)
    h = jnp.maximum(h, 0.0)

    # Head: (out_dim, tm) — lane-dense store.
    out = jnp.dot(w3t_ref[...], h.astype(cd),
                  preferred_element_type=f32) + b3t_ref[...]
    o_ref[...] = out.astype(o_ref.dtype)


def _radiance_mlp_call(pd_t, feat_t, w1f, w2t, b2t, w3t, b3t, *,
                       n_freq, tile_m):
    id_rows, n_pad = pd_t.shape
    feat_rows = feat_t.shape[0]
    h1, k = w1f.shape
    h2 = w2t.shape[0]
    out_dim = w3t.shape[0]
    n_tiles = n_pad // tile_m

    kernel = functools.partial(_radiance_kernel, n_freq=n_freq)

    def stream(rows):                       # per-tile sample stream
        return pl.BlockSpec((rows, tile_m), lambda i: (0, i))

    def resident(shape):                    # weights: same block every step
        return pl.BlockSpec(shape, lambda i: (0, 0))

    return pl.pallas_call(
        kernel,
        out_shape=jax.ShapeDtypeStruct((out_dim, n_pad), jnp.float32),
        grid_spec=pltpu.PrefetchScalarGridSpec(
            num_scalar_prefetch=0,
            grid=(n_tiles,),
            in_specs=[
                stream(id_rows),            # packed [pos|dir|1|0] stream, f32
                stream(feat_rows),          # feature stream, compute dtype
                resident((h1, k)),          # fused fc1 weight (b1 folded)
                resident((h2, h1)),         # fc2 weight (transposed)
                resident((h2, 1)),          # fc2 bias column
                resident((out_dim, h2)),    # head weight (transposed)
                resident((out_dim, 1)),     # head bias column
            ],
            out_specs=pl.BlockSpec((out_dim, tile_m), lambda i: (0, i)),
        ),
        compiler_params=pltpu.CompilerParams(
            dimension_semantics=("parallel",),
            vmem_limit_bytes=32 * 1024 * 1024),
    )(pd_t, feat_t, w1f, w2t, b2t, w3t, b3t)


# ----------------------------------------------------------------------------
# fc1 row permutation: canonical [embed(pos) | embed(dir) | feat] rows ->
# kernel K layout  [pos|dir|bias|pad] + per-freq sin blocks + per-freq cos
# blocks + feat rows.  Missing frequencies / padding slots get zero rows, so
# whatever the kernel puts in those emb rows contributes nothing.
# Returns the transposed (h1, K) weight with b1 folded in.
# ----------------------------------------------------------------------------
def _build_fused_fc1(w1, b1, pos_dim, dir_dim, mp, md, n_freq,
                     id_rows, feat_rows):
    h1 = w1.shape[1]
    pe = pos_dim * (1 + 2 * mp)
    de = dir_dim * (1 + 2 * md)
    zp = jnp.zeros((pos_dim, h1), w1.dtype)
    zd = jnp.zeros((dir_dim, h1), w1.dtype)
    zrow = jnp.zeros((1, h1), w1.dtype)

    def block(prow, drow, extra):
        rows = [prow, drow, extra]
        used = pos_dim + dir_dim + extra.shape[0]
        if used < id_rows:
            rows.append(jnp.zeros((id_rows - used, h1), w1.dtype))
        return rows

    rows = block(w1[0:pos_dim], w1[pe:pe + dir_dim], b1.reshape(1, h1))
    for trig in (0, 1):                               # 0 -> sin, 1 -> cos
        for i in range(n_freq):
            p = (w1[pos_dim * (1 + trig + 2 * i): pos_dim * (2 + trig + 2 * i)]
                 if i < mp else zp)
            d = (w1[pe + dir_dim * (1 + trig + 2 * i):
                    pe + dir_dim * (2 + trig + 2 * i)]
                 if i < md else zd)
            rows += block(p, d, zrow)
    f_actual = w1.shape[0] - pe - de
    rows.append(w1[pe + de:])
    if feat_rows > f_actual:
        rows.append(jnp.zeros((feat_rows - f_actual, h1), w1.dtype))
    return jnp.concatenate(rows, axis=0).T            # (h1, K)


# ----------------------------------------------------------------------------
# Public forward (matches RadianceNetwork.forward semantics).
# ----------------------------------------------------------------------------
@functools.partial(
    jax.jit,
    static_argnames=("multires_pos", "multires_dir", "tile_m", "compute_dtype"))
def radiance_network_forward(params, position, direction, features, *,
                             multires_pos, multires_dir,
                             tile_m=4096, compute_dtype=jnp.bfloat16):
    b, s, pos_dim = position.shape
    dir_dim = direction.shape[-1]
    feat_dim = features.shape[-1]
    n = b * s
    f32 = jnp.float32
    cd = compute_dtype

    # Tile sizing: clamp to the (128-rounded) problem size, but keep >= 2 grid
    # steps whenever possible so v7x's 2 TensorCores both get work.
    n128 = _round_up(max(n, 1), 128)
    tm = max(128, min(_round_up(tile_m, 128), n128))
    if n128 >= 256 and tm >= n128:          # grid would collapse to one step
        tm = max(128, _round_up((n128 + 1) // 2, 128))
    n_pad = _round_up(n, tm)

    n_freq = max(multires_pos, multires_dir)

    # Packed identity stream [pos | dir | 1 | 0-pad], transposed to (rows, N).
    pd_dim = pos_dim + dir_dim
    id_rows = _round_up(pd_dim + 1, 8)
    pd = jnp.concatenate(
        [position.reshape(n, pos_dim).astype(f32),
         direction.reshape(n, dir_dim).astype(f32),
         jnp.ones((n, 1), f32)], axis=1)
    pd = jnp.pad(pd, ((0, n_pad - n), (0, id_rows - (pd_dim + 1))))
    pd_t = pd.T                                           # (id_rows, n_pad)

    # Feature stream, transposed and cast to the compute dtype (documented
    # precision choice for the fast path; pass compute_dtype=float32 for full
    # precision).
    feat_rows = _round_up(max(feat_dim, 1), 8)
    feat = features.reshape(n, feat_dim).astype(cd)
    feat = jnp.pad(feat, ((0, n_pad - n), (0, feat_rows - feat_dim)))
    feat_t = feat.T                                       # (feat_rows, n_pad)

    # Fused, permuted fc1 weight (b1 folded in via the ones row).
    w1f = _build_fused_fc1(params["w1"], params["b1"], pos_dim, dir_dim,
                           multires_pos, multires_dir, n_freq,
                           id_rows, feat_rows)

    out_t = _radiance_mlp_call(
        pd_t, feat_t, w1f.astype(cd),
        params["w2"].T.astype(cd), params["b2"].T.astype(f32),
        params["w3"].T.astype(cd), params["b3"].T.astype(f32),
        n_freq=n_freq, tile_m=tm)

    out = out_t.T[:n]                       # (n, out_dim), drop column padding
    return out.reshape(b, s, -1)


# ----------------------------------------------------------------------------
# Parameter init + pure-JAX reference.
# ----------------------------------------------------------------------------
def init_params(key, input_dim, hidden_dim1, hidden_dim2, output_dim):
    ks = jax.random.split(key, 6)

    def linear(kw, kb, fan_in, fan_out):
        bound = 1.0 / jnp.sqrt(fan_in)
        w = jax.random.uniform(kw, (fan_in, fan_out), jnp.float32, -bound, bound)
        b = jax.random.uniform(kb, (1, fan_out), jnp.float32, -bound, bound)
        return w, b

    w1, b1 = linear(ks[0], ks[1], input_dim, hidden_dim1)
    w2, b2 = linear(ks[2], ks[3], hidden_dim1, hidden_dim2)
    w3, b3 = linear(ks[4], ks[5], hidden_dim2, output_dim)
    return dict(w1=w1, b1=b1, w2=w2, b2=b2, w3=w3, b3=b3)


def reference_forward(params, position, direction, features,
                      multires_pos, multires_dir, compute_dtype=jnp.float32):
    b, s, _ = position.shape
    f32 = jnp.float32
    cd = compute_dtype
    pos = position.reshape(-1, position.shape[-1])
    dirs = direction.reshape(-1, direction.shape[-1])
    feat = features.reshape(-1, features.shape[-1])
    x = jnp.concatenate(
        [embed(pos, multires_pos), embed(dirs, multires_dir), feat], axis=-1)
    h = jnp.maximum(jnp.dot(x.astype(cd), params["w1"].astype(cd),
                            preferred_element_type=f32) + params["b1"], 0.0)
    h = jnp.maximum(jnp.dot(h.astype(cd), params["w2"].astype(cd),
                            preferred_element_type=f32) + params["b2"], 0.0)
    out = jnp.dot(h.astype(cd), params["w3"].astype(cd),
                  preferred_element_type=f32) + params["b3"]
    return out.reshape(b, s, -1)


if __name__ == "__main__":
    # Small, module-consistent shapes (N = 2048 rows -> two 1024-row tiles).
    batch, n_samples = 2, 1024
    pos_dim, dir_dim = 3, 3
    feature_dim = 64
    hidden_dim1, hidden_dim2, output_dim = 64, 32, 1
    multires_pos, multires_dir = 4, 4

    input_dim = (embed_dim(pos_dim, multires_pos)
                 + embed_dim(dir_dim, multires_dir) + feature_dim)   # 118

    key = jax.random.PRNGKey(0)
    k_pos, k_dir, k_feat, k_par, k_par2 = jax.random.split(key, 5)
    position = jax.random.normal(k_pos, (batch, n_samples, pos_dim), jnp.float32)
    direction = jax.random.normal(k_dir, (batch, n_samples, dir_dim), jnp.float32)
    features = jax.random.normal(k_feat, (batch, n_samples, feature_dim),
                                 jnp.float32)
    params = init_params(k_par, input_dim, hidden_dim1, hidden_dim2, output_dim)

    # 1) f32 compute path: tight check against the pure-JAX reference.
    out_f32 = radiance_network_forward(
        params, position, direction, features,
        multires_pos=multires_pos, multires_dir=multires_dir,
        compute_dtype=jnp.float32)
    out_f32 = jax.block_until_ready(out_f32)
    ref_f32 = reference_forward(params, position, direction, features,
                                multires_pos, multires_dir, jnp.float32)
    assert out_f32.shape == (batch, n_samples, output_dim)
    assert jnp.allclose(out_f32, ref_f32, atol=1e-4, rtol=1e-4), "f32 mismatch"

    # 2) Default fast path (bf16 weights/features, f32 accumulation).
    out_bf16 = radiance_network_forward(
        params, position, direction, features,
        multires_pos=multires_pos, multires_dir=multires_dir)
    out_bf16 = jax.block_until_ready(out_bf16)
    ref_bf16 = reference_forward(params, position, direction, features,
                                 multires_pos, multires_dir, jnp.bfloat16)
    assert jnp.allclose(out_bf16, ref_bf16, atol=2e-2, rtol=2e-2), "bf16 mismatch"

    # 3) Ragged N (not a tile multiple) exercises column padding / clamping.
    out_rag = radiance_network_forward(
        params, position[:, :100], direction[:, :100], features[:, :100],
        multires_pos=multires_pos, multires_dir=multires_dir)
    out_rag = jax.block_until_ready(out_rag)
    assert out_rag.shape == (batch, 100, output_dim)
    assert jnp.allclose(out_rag, ref_bf16[:, :100], atol=2e-2, rtol=2e-2), \
        "ragged-N mismatch"

    # 4) Asymmetric multires (exercises the zero weight-row path), f32 compute.
    mp2, md2 = 4, 2
    input_dim2 = embed_dim(pos_dim, mp2) + embed_dim(dir_dim, md2) + feature_dim
    params2 = init_params(k_par2, input_dim2, hidden_dim1, hidden_dim2,
                          output_dim)
    out_asym = radiance_network_forward(
        params2, position, direction, features,
        multires_pos=mp2, multires_dir=md2, compute_dtype=jnp.float32)
    out_asym = jax.block_until_ready(out_asym)
    ref_asym = reference_forward(params2, position, direction, features,
                                 mp2, md2, jnp.float32)
    assert jnp.allclose(out_asym, ref_asym, atol=1e-4, rtol=1e-4), \
        "asymmetric-multires mismatch"

    print("KERNEL_OK")
</pallas_src>

<mosaic_0001>
module attributes {stable_mosaic.version = 11 : i64} {
  func.func @_radiance_kernel(%arg0: i32, %arg1: memref<8x1024xf32, #tpu.memory_space<vmem>>, %arg2: memref<64x1024xf32, #tpu.memory_space<vmem>>, %arg3: memref<64x136xf32, #tpu.memory_space<vmem>>, %arg4: memref<32x64xf32, #tpu.memory_space<vmem>>, %arg5: memref<32x1xf32, #tpu.memory_space<vmem>>, %arg6: memref<1x32xf32, #tpu.memory_space<vmem>>, %arg7: memref<1x1xf32, #tpu.memory_space<vmem>>, %arg8: memref<1x1024xf32, #tpu.memory_space<vmem>>) attributes {dimension_semantics = [#tpu.dimension_semantics<parallel>], iteration_bounds = array<i64: 2>, scalar_prefetch = 0 : i64, scratch_operands = 0 : i64, tpu.core_type = #tpu.core_type<tc>, window_params = [{transform_indices = @transform_0, window_bounds = array<i64: 8, 1024>}, {transform_indices = @transform_1, window_bounds = array<i64: 64, 1024>}, {pipeline_mode = #tpu.pipeline_mode<synchronous>, transform_indices = @transform_2, window_bounds = array<i64: 64, 136>}, {pipeline_mode = #tpu.pipeline_mode<synchronous>, transform_indices = @transform_3, window_bounds = array<i64: 32, 64>}, {pipeline_mode = #tpu.pipeline_mode<synchronous>, transform_indices = @transform_4, window_bounds = array<i64: 32, 1>}, {pipeline_mode = #tpu.pipeline_mode<synchronous>, transform_indices = @transform_5, window_bounds = array<i64: 1, 32>}, {pipeline_mode = #tpu.pipeline_mode<synchronous>, transform_indices = @transform_6, window_bounds = array<i64: 1, 1>}, {transform_indices = @transform_7, window_bounds = array<i64: 1, 1024>}]} {
    %c0 = arith.constant 0 : index
    %c0_0 = arith.constant 0 : index
    %0 = vector.load %arg1[%c0, %c0_0] : memref<8x1024xf32, #tpu.memory_space<vmem>>, vector<8x1024xf32>
    %cst = arith.constant 1.000000e+00 : f32
    %1 = vector.broadcast %cst : f32 to vector<8x1024xf32>
    %2 = arith.mulf %0, %1 : vector<8x1024xf32>
    %cst_1 = arith.constant 2.000000e+00 : f32
    %3 = vector.broadcast %cst_1 : f32 to vector<8x1024xf32>
    %4 = arith.mulf %0, %3 : vector<8x1024xf32>
    %cst_2 = arith.constant 4.000000e+00 : f32
    %5 = vector.broadcast %cst_2 : f32 to vector<8x1024xf32>
    %6 = arith.mulf %0, %5 : vector<8x1024xf32>
    %cst_3 = arith.constant 8.000000e+00 : f32
    %7 = vector.broadcast %cst_3 : f32 to vector<8x1024xf32>
    %8 = arith.mulf %0, %7 : vector<8x1024xf32>
    %9 = tpu.concatenate %2, %4, %6, %8 in 0 : vector<8x1024xf32>, vector<8x1024xf32>, vector<8x1024xf32>, vector<8x1024xf32> -> vector<32x1024xf32>
    %10 = math.sin %9 : vector<32x1024xf32>
    %11 = math.cos %9 : vector<32x1024xf32>
    %c0_4 = arith.constant 0 : index
    %c0_5 = arith.constant 0 : index
    %12 = vector.load %arg2[%c0_4, %c0_5] : memref<64x1024xf32, #tpu.memory_space<vmem>>, vector<64x1024xf32>
    %13 = tpu.concatenate %0, %10, %11, %12 in 0 : vector<8x1024xf32>, vector<32x1024xf32>, vector<32x1024xf32>, vector<64x1024xf32> -> vector<136x1024xf32>
    %c0_6 = arith.constant 0 : index
    %c0_7 = arith.constant 0 : index
    %14 = vector.load %arg3[%c0_6, %c0_7] : memref<64x136xf32, #tpu.memory_space<vmem>>, vector<64x136xf32>
    %cst_8 = arith.constant dense<0.000000e+00> : vector<64x1024xf32>
    %15 = tpu.matmul %14, %13, %cst_8 {dimension_numbers = #tpu.dot_dimension_numbers<[1], [0], [0], [1], [0, 0, 1, 1], [], []>} : vector<64x136xf32>, vector<136x1024xf32>, vector<64x1024xf32> -> vector<64x1024xf32>
    %cst_9 = arith.constant 0.000000e+00 : f32
    %16 = vector.broadcast %cst_9 : f32 to vector<64x1024xf32>
    %17 = arith.maximumf %15, %16 : vector<64x1024xf32>
    %c0_10 = arith.constant 0 : index
    %c0_11 = arith.constant 0 : index
    %18 = vector.load %arg4[%c0_10, %c0_11] : memref<32x64xf32, #tpu.memory_space<vmem>>, vector<32x64xf32>
    %cst_12 = arith.constant dense<0.000000e+00> : vector<32x1024xf32>
    %19 = tpu.matmul %18, %17, %cst_12 {dimension_numbers = #tpu.dot_dimension_numbers<[1], [0], [0], [1], [0, 0, 1, 1], [], []>} : vector<32x64xf32>, vector<64x1024xf32>, vector<32x1024xf32> -> vector<32x1024xf32>
    %c0_13 = arith.constant 0 : index
    %c0_14 = arith.constant 0 : index
    %20 = vector.load %arg5[%c0_13, %c0_14] : memref<32x1xf32, #tpu.memory_space<vmem>>, vector<32x1xf32>
    %21 = vector.broadcast %20 : vector<32x1xf32> to vector<32x1024xf32>
    %22 = arith.addf %19, %21 : vector<32x1024xf32>
    %cst_15 = arith.constant 0.000000e+00 : f32
    %23 = vector.broadcast %cst_15 : f32 to vector<32x1024xf32>
    %24 = arith.maximumf %22, %23 : vector<32x1024xf32>
    %c0_16 = arith.constant 0 : index
    %c0_17 = arith.constant 0 : index
    %25 = vector.load %arg6[%c0_16, %c0_17] : memref<1x32xf32, #tpu.memory_space<vmem>>, vector<1x32xf32>
    %cst_18 = arith.constant dense<0.000000e+00> : vector<1x1024xf32>
    %26 = tpu.matmul %25, %24, %cst_18 {dimension_numbers = #tpu.dot_dimension_numbers<[1], [0], [0], [1], [0, 0, 1, 1], [], []>} : vector<1x32xf32>, vector<32x1024xf32>, vector<1x1024xf32> -> vector<1x1024xf32>
    %c0_19 = arith.constant 0 : index
    %c0_20 = arith.constant 0 : index
    %27 = vector.load %arg7[%c0_19, %c0_20] : memref<1x1xf32, #tpu.memory_space<vmem>>, vector<1x1xf32>
    %28 = vector.broadcast %27 : vector<1x1xf32> to vector<1x1024xf32>
    %29 = arith.addf %26, %28 : vector<1x1024xf32>
    %c0_21 = arith.constant 0 : index
    %c0_22 = arith.constant 0 : index
    %30 = vector.load %arg8[%c0_21, %c0_22] : memref<1x1024xf32, #tpu.memory_space<vmem>>, vector<1x1024xf32>
    tpu.vector_store %arg8[%c0_21, %c0_22], %29 {strides = array<i32>} : memref<1x1024xf32, #tpu.memory_space<vmem>>, vector<1x1024xf32>,
    return
  }
  func.func @transform_0(%arg0: i32) -> (i32, i32) {
    %c0_i32 = arith.constant 0 : i32
    %c0_i32_0 = arith.constant 0 : i32
    return %c0_i32, %arg0 : i32, i32
  }
  func.func @transform_1(%arg0: i32) -> (i32, i32) {
    %c0_i32 = arith.constant 0 : i32
    %c0_i32_0 = arith.constant 0 : i32
    return %c0_i32, %arg0 : i32, i32
  }
  func.func @transform_2(%arg0: i32) -> (i32, i32) {
    %c0_i32 = arith.constant 0 : i32
    %c0_i32_0 = arith.constant 0 : i32
    %c0_i32_1 = arith.constant 0 : i32
    return %c0_i32, %c0_i32_0 : i32, i32
  }
  func.func @transform_3(%arg0: i32) -> (i32, i32) {
    %c0_i32 = arith.constant 0 : i32
    %c0_i32_0 = arith.constant 0 : i32
    %c0_i32_1 = arith.constant 0 : i32
    return %c0_i32, %c0_i32_0 : i32, i32
  }
  func.func @transform_4(%arg0: i32) -> (i32, i32) {
    %c0_i32 = arith.constant 0 : i32
    %c0_i32_0 = arith.constant 0 : i32
    %c0_i32_1 = arith.constant 0 : i32
    return %c0_i32, %c0_i32_0 : i32, i32
  }
  func.func @transform_5(%arg0: i32) -> (i32, i32) {
    %c0_i32 = arith.constant 0 : i32
    %c0_i32_0 = arith.constant 0 : i32
    %c0_i32_1 = arith.constant 0 : i32
    return %c0_i32, %c0_i32_0 : i32, i32
  }
  func.func @transform_6(%arg0: i32) -> (i32, i32) {
    %c0_i32 = arith.constant 0 : i32
    %c0_i32_0 = arith.constant 0 : i32
    %c0_i32_1 = arith.constant 0 : i32
    return %c0_i32, %c0_i32_0 : i32, i32
  }
  func.func @transform_7(%arg0: i32) -> (i32, i32) {
    %c0_i32 = arith.constant 0 : i32
    %c0_i32_0 = arith.constant 0 : i32
    return %c0_i32, %arg0 : i32, i32
  }
}

</mosaic_0001>

<bundles_post_ra>
// kernel: radiance_network_forward.1
= control target key start
LH: loop header
LB: loop body
LE: loop exit
PB: predicated region body
PF: predicated region fallthrough
CT: control target
= control target key end

     0   :  { %s13862_s0 = inlined_call_operand.vmem [shape: f32[8,2048], index: 0, kind: input, shape index: {}]   ;;  %s13863_s1 = inlined_call_operand.vmem [shape: f32[64,2048], index: 1, kind: input, shape index: {}]   ;;  %s13864_s2 = inlined_call_operand.vmem [shape: f32[64,136], index: 2, kind: input, shape index: {}]   ;;  %s13865_s3 = inlined_call_operand.vmem [shape: f32[32,64], index: 3, kind: input, shape index: {}]   ;;  %s13866_s4 = inlined_call_operand.vmem [shape: f32[32,1], index: 4, kind: input, shape index: {}]   ;;  %s13867_s5 = inlined_call_operand.vmem [shape: f32[1,32], index: 5, kind: input, shape index: {}]   ;;  %s13868_s6 = inlined_call_operand.<no memory space> [shape: f32[1,1], index: 6, kind: input, shape index: {}]   ;;  %s13869_s7 = inlined_call_operand.hbm [shape: f32[1,2048], index: 7, kind: output, shape index: {}]  }
   0x1   :  { %v12_v0 = vstv %s13868_s6 }
   0x2   :  { %13 = vst [vmem:[#allocation2] sm:$0x1] %v12_v0 }
   0x3   :  { %14 = vsyncpa [#allocation5], 0 }
   0x4   :  { %16 = vsyncpa [#allocation5 + $0x1], 0  ;;  %s9606_s26 = smov 0   ;;  %s9608_s27 = smov 0  }
   0x5   :  { %s9610_s28 = smov 0   ;;  %s9612_s29 = smov 0  }
   0x6 LB: > { %s9627_s6 = sadd.s32 4294967295, %s9551_s29   ;;  %s8605_s30 = sadd.s32 4294967294, %s9551_s29   ;;  %s9551_s29 = sphi %s9612_s29, %s14270_s29   ;;  %s9547_s28 = sphi %s9610_s28, %s14269_s28   ;;  %s9543_s27 = sphi %s9608_s27, %s14268_s27   ;;  %s9539_s26 = sphi %s9606_s26, %s14267_s26  }
   0x7   : > { %s9631_s8 = sadd.s32 1, %s9551_s29   ;;  %s55_s9 = sadd.s32 1, %s9547_s28 }
   0x8   : > { %s52_s10 = ssub.s32 %s9551_s29, %s9631_s8  ;;  %p62_p0 = scmp.ne.s32.totalorder %s9547_s28, %s9543_s27 }
   0x9   : > { %p53_p1 = scmp.eq.s32.totalorder %s52_s10, 0  ;;  %p63_p2 = scmp.eq.s32.totalorder %s9551_s29, 0 }
   0xa   : > { %p197_p3 = scmp.eq.s32.totalorder %s9627_s6, 1  ;;  %p202_p4 = scmp.ne.s32.totalorder %s9543_s27, %s9539_s26 }
   0xb   : > { %s9643_s11 = scalar_select %p53_p1, %s9547_s28, %s55_s9  }
   0xc   : > { %p64_p5 = por %p63_p2, %p62_p0  ;;  %p9645_p6 = por %p197_p3, %p62_p0 }
   0xd   : > { %p203_p7 = scmp.eq.s32.totalorder %s8605_s30, 1  ;;  %p8607_p9 = scmp.ge.s32.totalorder %s9551_s29, 2 }
   0xf   : > { %p9649_p8 = por %p203_p7, %p202_p4  ;;  %234 = sbr.rel (%p8607_p9) target bundleno = 58 (0x3a), region = 36 }
  0x16   : > { %246 = sbr.rel (!%p64_p5) target bundleno = 58 (0x3a), region = 44  ;;  %s248_s14 = sand.u32 (%p64_p5), 1, %s9547_s28  }
  0x17   : > { %s8929_s15 = sshll.u32 (%p64_p5), %s9551_s29, 6  ;;  %s8608_s16 = sshll.u32 (%p64_p5), %s248_s14, 9 }
  0x18   : > { %s9661_s19 = scalar_lea.vmem (%p64_p5), %s13863_s1, %s8929_s15  ;;  %s9666_s20 = scalar_lea.vmem (%p64_p5), [#allocation3], %s8608_s16 }
  0x19   : > { %v266_v1 = vld [vmem:[%s9661_s19] sm:$0xff] (%p64_p5)  ;;  %v268_v2 = vld [vmem:[%s9661_s19 + $0x8] sm:$0xff] (%p64_p5)  ;;  %v270_v3 = vld [vmem:[%s9661_s19 + $0x10] sm:$0xff] (%p64_p5) }
  0x1a   : > { %267 = vst [vmem:[%s9666_s20] sm:$0xff] (%p64_p5), %v266_v1  ;;  %269 = vst [vmem:[%s9666_s20 + $0x8] sm:$0xff] (%p64_p5), %v268_v2  ;;  %v272_v4 = vld [vmem:[%s9661_s19 + $0x18] sm:$0xff] (%p64_p5)  ;;  %v274_v5 = vld [vmem:[%s9661_s19 + $0x20] sm:$0xff] (%p64_p5) }
  0x1b   : > { %271 = vst [vmem:[%s9666_s20 + $0x10] sm:$0xff] (%p64_p5), %v270_v3  ;;  %v276_v6 = vld [vmem:[%s9661_s19 + $0x28] sm:$0xff] (%p64_p5)  ;;  %273 = vst [vmem:[%s9666_s20 + $0x18] sm:$0xff] (%p64_p5), %v272_v4  ;;  %v278_v7 = vld [vmem:[%s9661_s19 + $0x30] sm:$0xff] (%p64_p5) }
  0x1c   : > { %275 = vst [vmem:[%s9666_s20 + $0x20] sm:$0xff] (%p64_p5), %v274_v5  ;;  %277 = vst [vmem:[%s9666_s20 + $0x28] sm:$0xff] (%p64_p5), %v276_v6  ;;  %v280_v8 = vld [vmem:[%s9661_s19 + $0x38] sm:$0xff] (%p64_p5)  ;;  %v282_v9 = vld [vmem:[%s9661_s19 + $0x80] sm:$0xff] (%p64_p5) }
  0x1d   : > { %279 = vst [vmem:[%s9666_s20 + $0x30] sm:$0xff] %v278_v7  ;;  %281 = vst [vmem:[%s9666_s20 + $0x38] sm:$0xff] %v280_v8  ;;  %v284_v10 = vld [vmem:[%s9661_s19 + $0x88] sm:$0xff]  ;;  %v286_v11 = vld [vmem:[%s9661_s19 + $0x90] sm:$0xff] }
  0x1e   : > { %283 = vst [vmem:[%s9666_s20 + $0x40] sm:$0xff] %v282_v9  ;;  %v288_v12 = vld [vmem:[%s9661_s19 + $0x98] sm:$0xff]  ;;  %285 = vst [vmem:[%s9666_s20 + $0x48] sm:$0xff] %v284_v10  ;;  %v290_v13 = vld [vmem:[%s9661_s19 + $0xa0] sm:$0xff] }
  0x1f   : > { %287 = vst [vmem:[%s9666_s20 + $0x50] sm:$0xff] %v286_v11  ;;  %289 = vst [vmem:[%s9666_s20 + $0x58] sm:$0xff] %v288_v12  ;;  %v292_v14 = vld [vmem:[%s9661_s19 + $0xa8] sm:$0xff]  ;;  %v294_v15 = vld [vmem:[%s9661_s19 + $0xb0] sm:$0xff] }
  0x20   : > { %291 = vst [vmem:[%s9666_s20 + $0x60] sm:$0xff] %v290_v13  ;;  %293 = vst [vmem:[%s9666_s20 + $0x68] sm:$0xff] %v292_v14  ;;  %v296_v16 = vld [vmem:[%s9661_s19 + $0xb8] sm:$0xff]  ;;  %v298_v17 = vld [vmem:[%s9661_s19 + $0x100] sm:$0xff] }
  0x21   : > { %295 = vst [vmem:[%s9666_s20 + $0x70] sm:$0xff] %v294_v15  ;;  %v300_v18 = vld [vmem:[%s9661_s19 + $0x108] sm:$0xff]  ;;  %297 = vst [vmem:[%s9666_s20 + $0x78] sm:$0xff] %v296_v16  ;;  %v302_v19 = vld [vmem:[%s9661_s19 + $0x110] sm:$0xff] }
  0x22   : > { %299 = vst [vmem:[%s9666_s20 + $0x80] sm:$0xff] %v298_v17  ;;  %301 = vst [vmem:[%s9666_s20 + $0x88] sm:$0xff] %v300_v18  ;;  %v304_v20 = vld [vmem:[%s9661_s19 + $0x118] sm:$0xff]  ;;  %v306_v21 = vld [vmem:[%s9661_s19 + $0x120] sm:$0xff] }
  0x23   : > { %303 = vst [vmem:[%s9666_s20 + $0x90] sm:$0xff] %v302_v19  ;;  %305 = vst [vmem:[%s9666_s20 + $0x98] sm:$0xff] %v304_v20  ;;  %v308_v22 = vld [vmem:[%s9661_s19 + $0x128] sm:$0xff]  ;;  %v310_v23 = vld [vmem:[%s9661_s19 + $0x130] sm:$0xff] }
  0x24   : > { %307 = vst [vmem:[%s9666_s20 + $0xa0] sm:$0xff] %v306_v21  ;;  %v312_v24 = vld [vmem:[%s9661_s19 + $0x138] sm:$0xff]  ;;  %309 = vst [vmem:[%s9666_s20 + $0xa8] sm:$0xff] %v308_v22  ;;  %v314_v25 = vld [vmem:[%s9661_s19 + $0x180] sm:$0xff] }
  0x25   : > { %311 = vst [vmem:[%s9666_s20 + $0xb0] sm:$0xff] %v310_v23  ;;  %313 = vst [vmem:[%s9666_s20 + $0xb8] sm:$0xff] %v312_v24  ;;  %v316_v26 = vld [vmem:[%s9661_s19 + $0x188] sm:$0xff]  ;;  %v318_v27 = vld [vmem:[%s9661_s19 + $0x190] sm:$0xff] }
  0x26   : > { %315 = vst [vmem:[%s9666_s20 + $0xc0] sm:$0xff] %v314_v25  ;;  %317 = vst [vmem:[%s9666_s20 + $0xc8] sm:$0xff] %v316_v26  ;;  %v320_v28 = vld [vmem:[%s9661_s19 + $0x198] sm:$0xff]  ;;  %v322_v29 = vld [vmem:[%s9661_s19 + $0x1a0] sm:$0xff] }
  0x27   : > { %319 = vst [vmem:[%s9666_s20 + $0xd0] sm:$0xff] %v318_v27  ;;  %v324_v30 = vld [vmem:[%s9661_s19 + $0x1a8] sm:$0xff]  ;;  %321 = vst [vmem:[%s9666_s20 + $0xd8] sm:$0xff] %v320_v28  ;;  %v326_v31 = vld [vmem:[%s9661_s19 + $0x1b0] sm:$0xff] }
  0x28   : > { %323 = vst [vmem:[%s9666_s20 + $0xe0] sm:$0xff] %v322_v29  ;;  %325 = vst [vmem:[%s9666_s20 + $0xe8] sm:$0xff] %v324_v30  ;;  %v328_v32 = vld [vmem:[%s9661_s19 + $0x1b8] sm:$0xff]  ;;  %v330_v33 = vld [vmem:[%s9661_s19 + $0x200] sm:$0xff] }
  0x29   : > { %327 = vst [vmem:[%s9666_s20 + $0xf0] sm:$0xff] %v326_v31  ;;  %329 = vst [vmem:[%s9666_s20 + $0xf8] sm:$0xff] %v328_v32  ;;  %v332_v34 = vld [vmem:[%s9661_s19 + $0x208] sm:$0xff]  ;;  %v334_v35 = vld [vmem:[%s9661_s19 + $0x210] sm:$0xff] }
  0x2a   : > { %331 = vst [vmem:[%s9666_s20 + $0x100] sm:$0xff] %v330_v33  ;;  %v336_v36 = vld [vmem:[%s9661_s19 + $0x218] sm:$0xff]  ;;  %333 = vst [vmem:[%s9666_s20 + $0x108] sm:$0xff] %v332_v34  ;;  %v338_v37 = vld [vmem:[%s9661_s19 + $0x220] sm:$0xff] }
  0x2b   : > { %335 = vst [vmem:[%s9666_s20 + $0x110] sm:$0xff] %v334_v35  ;;  %337 = vst [vmem:[%s9666_s20 + $0x118] sm:$0xff] %v336_v36  ;;  %v340_v38 = vld [vmem:[%s9661_s19 + $0x228] sm:$0xff]  ;;  %v342_v39 = vld [vmem:[%s9661_s19 + $0x230] sm:$0xff] }
  0x2c   : > { %339 = vst [vmem:[%s9666_s20 + $0x120] sm:$0xff] %v338_v37  ;;  %341 = vst [vmem:[%s9666_s20 + $0x128] sm:$0xff] %v340_v38  ;;  %v344_v40 = vld [vmem:[%s9661_s19 + $0x238] sm:$0xff]  ;;  %v346_v41 = vld [vmem:[%s9661_s19 + $0x280] sm:$0xff] }
  0x2d   : > { %343 = vst [vmem:[%s9666_s20 + $0x130] sm:$0xff] %v342_v39  ;;  %v348_v42 = vld [vmem:[%s9661_s19 + $0x288] sm:$0xff]  ;;  %345 = vst [vmem:[%s9666_s20 + $0x138] sm:$0xff] %v344_v40  ;;  %v350_v43 = vld [vmem:[%s9661_s19 + $0x290] sm:$0xff] }
  0x2e   : > { %347 = vst [vmem:[%s9666_s20 + $0x140] sm:$0xff] %v346_v41  ;;  %349 = vst [vmem:[%s9666_s20 + $0x148] sm:$0xff] %v348_v42  ;;  %v352_v44 = vld [vmem:[%s9661_s19 + $0x298] sm:$0xff]  ;;  %v354_v45 = vld [vmem:[%s9661_s19 + $0x2a0] sm:$0xff] }
  0x2f   : > { %351 = vst [vmem:[%s9666_s20 + $0x150] sm:$0xff] %v350_v43  ;;  %353 = vst [vmem:[%s9666_s20 + $0x158] sm:$0xff] %v352_v44  ;;  %v356_v46 = vld [vmem:[%s9661_s19 + $0x2a8] sm:$0xff]  ;;  %v358_v47 = vld [vmem:[%s9661_s19 + $0x2b0] sm:$0xff] }
  0x30   : > { %355 = vst [vmem:[%s9666_s20 + $0x160] sm:$0xff] %v354_v45  ;;  %v360_v48 = vld [vmem:[%s9661_s19 + $0x2b8] sm:$0xff]  ;;  %357 = vst [vmem:[%s9666_s20 + $0x168] sm:$0xff] %v356_v46  ;;  %v362_v49 = vld [vmem:[%s9661_s19 + $0x300] sm:$0xff] }
  0x31   : > { %359 = vst [vmem:[%s9666_s20 + $0x170] sm:$0xff] %v358_v47  ;;  %361 = vst [vmem:[%s9666_s20 + $0x178] sm:$0xff] %v360_v48  ;;  %v364_v50 = vld [vmem:[%s9661_s19 + $0x308] sm:$0xff]  ;;  %v366_v51 = vld [vmem:[%s9661_s19 + $0x310] sm:$0xff] }
  0x32   : > { %363 = vst [vmem:[%s9666_s20 + $0x180] sm:$0xff] %v362_v49  ;;  %365 = vst [vmem:[%s9666_s20 + $0x188] sm:$0xff] %v364_v50  ;;  %v368_v52 = vld [vmem:[%s9661_s19 + $0x318] sm:$0xff]  ;;  %v370_v53 = vld [vmem:[%s9661_s19 + $0x320] sm:$0xff] }
  0x33   : > { %367 = vst [vmem:[%s9666_s20 + $0x190] sm:$0xff] %v366_v51  ;;  %v372_v54 = vld [vmem:[%s9661_s19 + $0x328] sm:$0xff]  ;;  %369 = vst [vmem:[%s9666_s20 + $0x198] sm:$0xff] %v368_v52  ;;  %v374_v55 = vld [vmem:[%s9661_s19 + $0x330] sm:$0xff] }
  0x34   : > { %371 = vst [vmem:[%s9666_s20 + $0x1a0] sm:$0xff] %v370_v53  ;;  %373 = vst [vmem:[%s9666_s20 + $0x1a8] sm:$0xff] %v372_v54  ;;  %v376_v56 = vld [vmem:[%s9661_s19 + $0x338] sm:$0xff]  ;;  %v378_v57 = vld [vmem:[%s9661_s19 + $0x380] sm:$0xff] }
  0x35   : > { %375 = vst [vmem:[%s9666_s20 + $0x1b0] sm:$0xff] %v374_v55  ;;  %377 = vst [vmem:[%s9666_s20 + $0x1b8] sm:$0xff] %v376_v56  ;;  %v380_v58 = vld [vmem:[%s9661_s19 + $0x388] sm:$0xff]  ;;  %v382_v59 = vld [vmem:[%s9661_s19 + $0x390] sm:$0xff] }
  0x36   : > { %379 = vst [vmem:[%s9666_s20 + $0x1c0] sm:$0xff] %v378_v57  ;;  %v384_v60 = vld [vmem:[%s9661_s19 + $0x398] sm:$0xff]  ;;  %381 = vst [vmem:[%s9666_s20 + $0x1c8] sm:$0xff] %v380_v58  ;;  %v386_v61 = vld [vmem:[%s9661_s19 + $0x3a0] sm:$0xff] }
  0x37   : > { %383 = vst [vmem:[%s9666_s20 + $0x1d0] sm:$0xff] %v382_v59  ;;  %385 = vst [vmem:[%s9666_s20 + $0x1d8] sm:$0xff] %v384_v60  ;;  %v388_v62 = vld [vmem:[%s9661_s19 + $0x3a8] sm:$0xff]  ;;  %v390_v63 = vld [vmem:[%s9661_s19 + $0x3b0] sm:$0xff] }
  0x38   : > { %387 = vst [vmem:[%s9666_s20 + $0x1e0] sm:$0xff] %v386_v61  ;;  %389 = vst [vmem:[%s9666_s20 + $0x1e8] sm:$0xff] %v388_v62  ;;  %v392_v0 = vld [vmem:[%s9661_s19 + $0x3b8] sm:$0xff] }
  0x39   : > { %391 = vst [vmem:[%s9666_s20 + $0x1f0] sm:$0xff] %v390_v63  ;;  %393 = vst [vmem:[%s9666_s20 + $0x1f8] sm:$0xff] %v392_v0 }
  0x3a PF: > { %p8611_p10 = scmp.ge.s32.totalorder %s9551_s29, 1  ;;  %p398_p11 = scmp.lt.s32.totalorder %s9551_s29, 3 }
  0x3c   : > { %p399_p12 = pnand %p8611_p10, %p398_p11 }
  0x3e   : > { %402 = sbr.rel (%p399_p12) target bundleno = 1721 (0x6b9), region = 67 }
  0x45   : > { %s8614_s21 = sshll.u32 %s9627_s6, 3  ;;  %v13884_v31 = vmov 683565275   ;;  %v13882_v33 = vmov 2475754826   ;;  %s11476_s30 = sand.u32 1, %s9543_s27  }
  0x46   : > { %p442_p13 = scmp.lt.s32.totalorder %s8614_s21, 15  ;;  %v13886_v35 = vmov 2131351028   ;;  %v13880_v37 = vmov 2102212464   ;;  %s8612_s9 = sshll.u32 %s11476_s30, 9 }
  0x47   : > { %v13896_v39 = vmov 920167782   ;;  %v13894_v47 = vmov 1326507024   ;;  %s11517_s10 = scalar_lea.vmem [#allocation3], %s8612_s9  ;;  %s8613_s16 = sshll.u32 %s11476_s30, 3 }
  0x48   : > { %s14272_s21 = smov (!%p442_p13, %s8614_s21), 15  ;;  %s8930_s17 = sshll.u32 %s9627_s6, 7 }
  0x49   : > { %s8615_s22 = sshll.u32 %s14272_s21, 3  ;;  %s440_s18 = scalar_lea.vmem [#allocation4], %s8613_s16 }
  0x4a   : > { %s9799_s25 = scalar_lea.vmem %s13862_s0, %s8615_s22  ;;  %s8528_s19 = sshll.u32 %s440_s18, 4  ;;  %s13820_s19 = int_to_ptr.vmem [resolvable:$true] %s8528_s19 }
  0x4b   : > { %v9802_v1 = vld [vmem:[%s9799_s25 + $0x8] sm:$0xff]  ;;  %v9805_v2 = vld [vmem:[%s9799_s25 + $0x18] sm:$0xff]  ;;  %v9810_v5 = vld [vmem:[%s9799_s25] sm:$0xff]  ;;  %s13818_s22 = scalar_lea.hbm %s13869_s7, %s8930_s17  ;;  %s8514_s23 = scalar_lea.sflag [#allocation5], %s11476_s30 }
  0x4c   : > { %v585_v3 = vand.u32 2147483647, %v9802_v1  ;;  %v588_v4 = vand.u32 2139095040, %v9802_v1  ;;  %v793_v6 = vand.u32 2147483647, %v9805_v2  ;;  %v796_v7 = vand.u32 2139095040, %v9805_v2 }
  0x4d   : > { %v484_v12 = vand.u32 2139095040, %v9810_v5  ;;  %v481_v25 = vand.u32 2147483647, %v9810_v5  ;;  %vm587_vm13 = vcmp.lt.s32.totalorder %v9802_v1, 0  ;;  %s9489_s24 = scalar_lea.vmem %s13820_s19, 128  ;;  %s9562_s6 = smov [#allocation4]  }
  0x4e   : > { %v589_v8 = vshrl.u32 %v588_v4, 23  ;;  %v592_v9 = vand.u32 8388607, %v585_v3  ;;  %v797_v10 = vshrl.u32 %v796_v7, 23  ;;  %v800_v11 = vand.u32 8388607, %v793_v6  ;;  %p9490_p0 = scmp.ne.s32.totalorder %s13820_s19, %s9489_s24 }
  0x4f   : > { %v485_v15 = vshrl.u32 %v484_v12, 23  ;;  %vm9924_vm14 = vcmp.le.f32.partialorder %v585_v3, 0.7853982  ;;  %s9493_s9 = sshll.u32 %s9562_s6, 4  ;;  %s9494_s9 = int_to_ptr.vmem [resolvable:$false] %s9493_s9 }
  0x50   : > { %v8620_v13 = vadd.s32 4294967169, %v589_v8  ;;  %v8628_v14 = vadd.s32 4294967169, %v797_v10  ;;  %v593_v17 = vor.u32 8388608, %v592_v9  ;;  %v801_v18 = vor.u32 8388608, %v800_v11  ;;  %p9491_p1 = pnand %p9490_p0, %p9645_p6  ;;  %p9496_p3 = scmp.lt.s32.totalorder %s13820_s19, %s9494_s9 }
  0x51   : > { %v8616_v20 = vadd.s32 4294967169, %v485_v15 }
  0x52   : > { %v595_v16 = vadd.s32 1, %v8620_v13  ;;  %v803_v19 = vadd.s32 1, %v8628_v14  ;;  %v9820_v26 = vshll.u32 %v593_v17, 8  ;;  %v9822_v28 = vshll.u32 %v801_v18, 8  ;;  %p9492_p2 = pneg %p9491_p1 }
  0x53   : > { %v9824_v29 = vadd.s32 1, %v8616_v20 }
  0x54   : > { %vm596_vm0 = vcmp.gt.s32.totalorder %v595_v16, 0  ;;  %vm804_vm1 = vcmp.gt.s32.totalorder %v803_v19, 0 }
  0x55   : > { %v597_v21 = vsel %vm596_vm0, %v595_v16, 0  ;;  %v805_v24 = vsel %vm804_vm1, %v803_v19, 0  ;;  %vm492_vm6 = vcmp.gt.s32.totalorder %v9824_v29, 0 }
  0x56   : > { %v598_v22 = vshrl.u32 %v597_v21, 5  ;;  %v599_v23 = vand.u32 31, %v597_v21  ;;  %v807_v27 = vand.u32 31, %v805_v24  ;;  %v9831_v41 = vshrl.u32 %v805_v24, 5 }
  0x58   : > { %v600_v30 = vsub.s32 32, %v599_v23  ;;  %v602_v32 = vshll.u32 %v13884_v31, %v599_v23  ;;  %v605_v34 = vshll.u32 %v13882_v33, %v599_v23  ;;  %v608_v36 = vshll.u32 %v13886_v35, %v599_v23 }
  0x59   : > { %v611_v38 = vshll.u32 %v13880_v37, %v599_v23  ;;  %v614_v40 = vshll.u32 %v13896_v39, %v599_v23  ;;  %vm617_vm2 = vcmp.lt.s32.totalorder %v598_v22, 1  ;;  %vm618_vm3 = vcmp.lt.s32.totalorder %v598_v22, 2 }
  0x5a   : > { %v601_v42 = vshrl.u32 %v13884_v31, %v600_v30  ;;  %v603_v43 = vshrl.u32 %v13882_v33, %v600_v30  ;;  %v606_v44 = vshrl.u32 %v13886_v35, %v600_v30  ;;  %v609_v45 = vshrl.u32 %v13880_v37, %v600_v30 }
  0x5b   : > { %v612_v46 = vshrl.u32 %v13896_v39, %v600_v30  ;;  %v615_v48 = vshrl.u32 %v13894_v47, %v600_v30  ;;  %vm620_vm4 = vcmp.lt.s32.totalorder %v598_v22, 4  ;;  %v808_v52 = vsub.s32 32, %v807_v27 }
  0x5c   : > { %v604_v49 = vor.u32 %v603_v43, %v602_v32  ;;  %v607_v50 = vor.u32 %v606_v44, %v605_v34  ;;  %v610_v51 = vor.u32 %v609_v45, %v608_v36  ;;  %vm619_vm5 = vcmp.lt.s32.totalorder %v598_v22, 3 }
  0x5d   : > { %v613_v53 = vor.u32 %v612_v46, %v611_v38  ;;  %v616_v54 = vor.u32 %v615_v48, %v614_v40  ;;  %v810_v55 = vshll.u32 %v13884_v31, %v807_v27  ;;  %v813_v63 = vshll.u32 %v13882_v33, %v807_v27 }
  0x5e   : > { %v621_v56 = vsel %vm617_vm2, %v601_v42, %v604_v49  ;;  %v622_v57 = vsel %vm620_vm4, %v610_v51, 2102212464  ;;  %v625_v58 = vsel %vm617_vm2, %v604_v49, %v607_v50  ;;  %v629_v59 = vsel %vm617_vm2, %v607_v50, %v610_v51 }
  0x5f   : > { %v623_v60 = vsel %vm619_vm5, %v607_v50, %v622_v57  ;;  %v626_v61 = vsel %vm620_vm4, %v613_v53, 920167782  ;;  %v630_v62 = vsel %vm620_vm4, %v616_v54, 1326507024  ;;  %v809_v7 = vshrl.u32 %v13884_v31, %v808_v52 }
  0x60   : > { %v627_v0 = vsel %vm619_vm5, %v610_v51, %v626_v61  ;;  %v631_v4 = vsel %vm619_vm5, %v613_v53, %v630_v62  ;;  %v811_v8 = vshrl.u32 %v13882_v33, %v808_v52  ;;  %v624_v9 = vsel %vm618_vm3, %v621_v56, %v623_v60 }
  0x61   : > { %v628_v10 = vsel %vm618_vm3, %v625_v58, %v627_v0  ;;  %v632_v11 = vsel %vm618_vm3, %v629_v59, %v631_v4  ;;  %v814_v12 = vshrl.u32 %v13886_v35, %v808_v52  ;;  %v816_v19 = vshll.u32 %v13886_v35, %v807_v27  ;;  %v9890_v58 = vld [vmem:[%s9799_s25 + $0x10] sm:$0xff] }
  0x62   : > { %v9852_v13 = vmul.u32.u64.low %v9820_v26, %v632_v11  ;;  %v9853_v14 = vmul.u32.u64.high %v9820_v26, %v632_v11, %v9852_v13  ;;  %v9856_v15 = vmul.u32.u64.low %v9820_v26, %v628_v10  ;;  %v9857_v16 = vmul.u32.u64.high %v9820_v26, %v628_v10, %v9856_v15 }
  0x63   : > { %v812_v17 = vor.u32 %v811_v8, %v810_v55  ;;  %v815_v18 = vor.u32 %v814_v12, %v813_v63  ;;  %v817_v20 = vshrl.u32 %v13880_v37, %v808_v52  ;;  %v819_v21 = vshll.u32 %v13880_v37, %v807_v27 }
  0x64   : > { %v820_v22 = vshrl.u32 %v13896_v39, %v808_v52  ;;  %v822_v23 = vshll.u32 %v13896_v39, %v807_v27  ;;  %v823_v24 = vshrl.u32 %v13894_v47, %v808_v52  ;;  %v640_v30 = vmul.u32 %v9820_v26, %v624_v9 }
  0x65   : > { %v818_v32 = vor.u32 %v817_v20, %v816_v19  ;;  %vm825_vm7 = vcmp.lt.s32.totalorder %v9831_v41, 1  ;;  %vm826_vm8 = vcmp.lt.s32.totalorder %v9831_v41, 2  ;;  %vm642_vm9 = vc.u32 %v9853_v14, %v9856_v15 }
  0x66   : > { %v643_v34 = vadd.s32 1, %v9857_v16  ;;  %v821_v36 = vor.u32 %v820_v22, %v819_v21  ;;  %vm827_vm10 = vcmp.lt.s32.totalorder %v9831_v41, 3  ;;  %v824_v38 = vor.u32 %v823_v24, %v822_v23 }
  0x67   : > { %vm828_vm11 = vcmp.lt.s32.totalorder %v9831_v41, 4  ;;  %v829_v27 = vsel %vm825_vm7, %v809_v7, %v812_v17  ;;  %v833_v40 = vsel %vm825_vm7, %v812_v17, %v815_v18  ;;  %v837_v44 = vsel %vm825_vm7, %v815_v18, %v818_v32 }
  0x68   : > { %v644_v26 = vsel %vm642_vm9, %v643_v34, %v9857_v16  ;;  %v830_v42 = vsel %vm828_vm11, %v818_v32, 2102212464  ;;  %v834_v43 = vsel %vm828_vm11, %v821_v36, 920167782  ;;  %v838_v49 = vsel %vm828_vm11, %v824_v38, 1326507024 }
  0x69   : > { %v645_v45 = vadd.s32 %v644_v26, %v640_v30  ;;  %v831_v46 = vsel %vm827_vm10, %v815_v18, %v830_v42  ;;  %v835_v48 = vsel %vm827_vm10, %v818_v32, %v834_v43  ;;  %v839_v52 = vsel %vm827_vm10, %v821_v36, %v838_v49 }
  0x6a   : > { %v832_v50 = vsel %vm826_vm8, %v829_v27, %v831_v46  ;;  %v836_v51 = vsel %vm826_vm8, %v833_v40, %v835_v48  ;;  %v493_v53 = vsel %vm492_vm6, %v9824_v29, 0  ;;  %v840_v55 = vsel %vm826_vm8, %v837_v44, %v839_v52 }
  0x6b   : > { %v646_v54 = vadd.s32 536870912, %v645_v45  ;;  %v9885_v56 = vmul.u32.u64.low %v9822_v28, %v836_v51  ;;  %v9886_v57 = vmul.u32.u64.high %v9822_v28, %v836_v51, %v9885_v56  ;;  %v488_v61 = vand.u32 8388607, %v481_v25 }
  0x6c   : > { %v9893_v59 = vmul.u32.u64.low %v9822_v28, %v840_v55  ;;  %v9894_v60 = vmul.u32.u64.high %v9822_v28, %v840_v55, %v9893_v59  ;;  %v495_v29 = vand.u32 31, %v493_v53  ;;  %v848_v63 = vmul.u32 %v9822_v28, %v832_v50 }
  0x6d   : > { %v647_v62 = vshrl.u32 %v646_v54, 30  ;;  %v692_v41 = vand.u32 2139095040, %v9890_v58  ;;  %v851_v4 = vadd.s32 1, %v9886_v57  ;;  %v489_v7 = vor.u32 8388608, %v488_v61 }
  0x6e   : > { %vm850_vm12 = vc.u32 %v9894_v60, %v9885_v56  ;;  %v689_v8 = vand.u32 2147483647, %v9890_v58  ;;  %v496_v11 = vsub.s32 32, %v495_v29  ;;  %v9906_v17 = vshrl.u32 %v493_v53, 5 }
  0x6f   : > { %v648_v0 = vshll.u32 %v647_v62, 30  ;;  %v852_v10 = vsel %vm850_vm12, %v851_v4, %v9886_v57  ;;  %v693_v13 = vshrl.u32 %v692_v41, 23  ;;  %v9908_v18 = vshll.u32 %v489_v7, 8 }
  0x70   : > { %v853_v12 = vadd.s32 %v852_v10, %v848_v63  ;;  %v9912_v19 = vand.u32 8388607, %v689_v8  ;;  %v641_v20 = vadd.s32 %v9856_v15, %v9853_v14  ;;  %v504_v22 = vshll.u32 %v13886_v35, %v495_v29 }
  0x71   : > { %v649_v9 = vsub.s32 %v645_v45, %v648_v0  ;;  %v505_v23 = vshrl.u32 %v13880_v37, %v496_v11  ;;  %v498_v30 = vshll.u32 %v13884_v31, %v495_v29  ;;  %v499_v32 = vshrl.u32 %v13882_v33, %v496_v11 }
  0x72   : > { %v854_v28 = vadd.s32 536870912, %v853_v12  ;;  %v8624_v34 = vadd.s32 4294967169, %v693_v13  ;;  %v501_v14 = vshll.u32 %v13882_v33, %v495_v29  ;;  %v502_v15 = vshrl.u32 %v13886_v35, %v496_v11 }
  0x73   : > { %v651_v16 = vsub.s32 0, %v649_v9  ;;  %v507_v27 = vshll.u32 %v13880_v37, %v495_v29  ;;  %v508_v26 = vshrl.u32 %v13896_v39, %v496_v11  ;;  %vm513_vm15 = vcmp.lt.s32.totalorder %v9906_v17, 1 }
  0x74   : > { %v9918_v24 = vshrl.u32 %v854_v28, 30  ;;  %vm516_vm0 = vcmp.lt.s32.totalorder %v9906_v17, 4  ;;  %v671_v3 = vsub.s32 4, %v647_v62  ;;  %v497_v43 = vshrl.u32 %v13884_v31, %v496_v11 }
  0x75   : > { %v8621_v21 = vmin.u32 %v651_v16, %v649_v9  ;;  %v506_v44 = vor.u32 %v505_v23, %v504_v22  ;;  %v500_v46 = vor.u32 %v499_v32, %v498_v30  ;;  %v510_v48 = vshll.u32 %v13896_v39, %v495_v29 }
  0x76   : > { %v856_v40 = vshll.u32 %v9918_v24, 30  ;;  %v511_v49 = vshrl.u32 %v13894_v47, %v496_v11  ;;  %v503_v50 = vor.u32 %v502_v15, %v501_v14  ;;  %v509_v51 = vor.u32 %v508_v26, %v507_v27 }
  0x77   : > { %v653_v38 = vclz %v8621_v21  ;;  %v518_v52 = vsel %vm516_vm0, %v506_v44, 2102212464  ;;  %vm514_vm2 = vcmp.lt.s32.totalorder %v9906_v17, 2  ;;  %vm515_vm3 = vcmp.lt.s32.totalorder %v9906_v17, 3 }
  0x78   : > { %v9936_v45 = vsub.s32 %v853_v12, %v856_v40  ;;  %v672_v61 = vsel %vm587_vm13, %v671_v3, %v647_v62  ;;  %vm795_vm4 = vcmp.lt.s32.totalorder %v9805_v2, 0  ;;  %v512_v63 = vor.u32 %v511_v49, %v510_v48 }
  0x79   : > { %v8622_v42 = vadd.s32 4294967294, %v653_v38  ;;  %v517_v41 = vsel %vm513_vm15, %v497_v43, %v500_v46  ;;  %v519_v0 = vsel %vm515_vm3, %v503_v50, %v518_v52  ;;  %v522_v10 = vsel %vm516_vm0, %v509_v51, 920167782 }
  0x7a   : > { %v859_v54 = vsub.s32 0, %v9936_v45  ;;  %v674_v62 = vsel %vm9924_vm14, 0, %v672_v61  ;;  %v849_v11 = vadd.s32 %v9885_v56, %v9894_v60  ;;  %v879_v13 = vsub.s32 4, %v9918_v24 }
  0x7b   : > { %vm8623_vm1 = vcmp.lt.s32.totalorder %v8622_v42, 0  ;;  %v525_v21 = vsel %vm513_vm15, %v503_v50, %v506_v44  ;;  %v520_v23 = vsel %vm514_vm2, %v517_v41, %v519_v0  ;;  %v526_v56 = vsel %vm516_vm0, %v512_v63, 1326507024 }
  0x7c   : > { %v656_v53 = vsel %vm8623_vm1, 0, %v8622_v42  ;;  %v8629_v29 = vmin.u32 %v859_v54, %v9936_v45  ;;  %v527_v38 = vsel %vm515_vm3, %v509_v51, %v526_v56  ;;  %v699_v14 = vadd.s32 1, %v8624_v34 }
  0x7d   : > { %v657_v55 = vsub.s32 32, %v656_v53  ;;  %v658_v57 = vshll.u32 %v649_v9, %v656_v53  ;;  %v661_v59 = vsub.s32 4294967266, %v656_v53  ;;  %v521_v9 = vsel %vm513_vm15, %v500_v46, %v503_v50 }
  0x7e   : > { %v861_v12 = vclz %v8629_v29  ;;  %v528_v15 = vsel %vm514_vm2, %v525_v21, %v527_v38  ;;  %vm700_vm6 = vcmp.gt.s32.totalorder %v699_v14, 0  ;;  %v880_v17 = vsel %vm795_vm4, %v879_v13, %v9918_v24 }
  0x7f   : > { %v659_v4 = vshrl.u32 %v641_v20, %v657_v55  ;;  %v662_v7 = vadd.s32 127, %v661_v59  ;;  %v523_v20 = vsel %vm515_vm3, %v506_v44, %v522_v10  ;;  %v536_v49 = vmul.u32 %v9908_v18, %v520_v23 }
  0x80   : > { %v8630_v22 = vadd.s32 4294967294, %v861_v12  ;;  %v524_v30 = vsel %vm514_vm2, %v521_v9, %v523_v20  ;;  %v9982_v3 = vmul.u32.u64.low %v9908_v18, %v528_v15  ;;  %v9983_v43 = vmul.u32.u64.high %v9908_v18, %v528_v15, %v9982_v3 }
  0x81   : > { %v660_v16 = vor.u32 %v659_v4, %v658_v57  ;;  %v663_v28 = vshll.u32 %v662_v7, 23  ;;  %v9977_v27 = vmul.u32.u64.low %v9908_v18, %v524_v30  ;;  %v9978_v40 = vmul.u32.u64.high %v9908_v18, %v524_v30, %v9977_v27 }
  0x82   : > { %vm8631_vm5 = vcmp.lt.s32.totalorder %v8630_v22, 0  ;;  %v701_v50 = vsel %vm700_vm6, %v699_v14, 0  ;;  %vm9992_vm7 = vcmp.le.f32.partialorder %v793_v6, 0.7853982  ;;  %v678_v55 = vadd.s32 3, %v674_v62 }
  0x83   : > { %v664_v60 = vor.u32 4788187, %v663_v28  ;;  %v667_v32 = vcvt.s32.f32 %v660_v16  ;;  %v864_v42 = vsel %vm8631_vm5, 0, %v8630_v22  ;;  %vm538_vm8 = vc.u32 %v9983_v43, %v9977_v27 }
  0x84   : > { %v865_v44 = vsub.s32 32, %v864_v42  ;;  %v866_v46 = vshll.u32 %v9936_v45, %v864_v42  ;;  %v869_v48 = vsub.s32 4294967266, %v864_v42  ;;  %v539_v45 = vadd.s32 1, %v9978_v40 }
  0x85   : > { %v665_v26 = vand.u32 2147483647, %v664_v60  ;;  %v703_v57 = vand.u32 31, %v701_v50  ;;  %v882_v18 = vsel %vm9992_vm7, 0, %v880_v17  ;;  %v697_v63 = vor.u32 8388608, %v9912_v19 }
  0x86   : > { %v867_v52 = vshrl.u32 %v849_v11, %v865_v44  ;;  %v870_v53 = vadd.s32 127, %v869_v48  ;;  %v540_v6 = vsel %vm538_vm8, %v539_v45, %v9978_v40  ;;  %v10008_v4 = vand.u32 3, %v674_v62 }
  0x87   : > { %v668_v34 = vmul.f32 %v667_v32, %v665_v26  ;;  %v541_v29 = vadd.s32 %v540_v6, %v536_v49  ;;  %v704_v41 = vsub.s32 32, %v703_v57  ;;  %v10010_v10 = vand.u32 3, %v678_v55 }
  0x88   : > { %v868_v24 = vor.u32 %v867_v52, %v866_v46  ;;  %v871_v59 = vshll.u32 %v870_v53, 23  ;;  %v886_v11 = vadd.s32 3, %v882_v18  ;;  %v706_v16 = vshll.u32 %v13884_v31, %v703_v57 }
  0x89   : > { %v669_v54 = vxor.u32 2147483648, %v668_v34  ;;  %v542_v12 = vadd.s32 536870912, %v541_v29  ;;  %v709_v19 = vshll.u32 %v13882_v33, %v703_v57  ;;  %v707_v36 = vshrl.u32 %v13882_v33, %v704_v41 }
  0x8a   : > { %v872_v7 = vor.u32 4788187, %v871_v59  ;;  %v875_v9 = vcvt.s32.f32 %v868_v24  ;;  %v710_v62 = vshrl.u32 %v13886_v35, %v704_v41  ;;  %v715_v20 = vshll.u32 %v13880_v37, %v703_v57 }
  0x8b   : > { %v670_v61 = vsel %vm587_vm13, %v669_v54, %v668_v34  ;;  %v10014_v28 = vshrl.u32 %v542_v12, 30  ;;  %vm4007_vm9 = vcmp.eq.s32.totalorder %v10008_v4, 0  ;;  %vm4010_vm10 = vcmp.eq.s32.totalorder %v10008_v4, 2 }
  0x8c   : > { %v673_v0 = vsel %vm9924_vm14, %v9802_v1, %v670_v61  ;;  %v873_v13 = vand.u32 2147483647, %v872_v7  ;;  %v10021_v22 = vshrl.u32 %v701_v50, 5  ;;  %v716_v23 = vshrl.u32 %v13896_v39, %v704_v41 }
  0x8d   : > { %9333 = vcosq.f32 %v673_v0  ;;  %vm680_vm11 = vcmp.lt.s32.totalorder %v10010_v10, 2  ;;  %vm681_vm12 = vcmp.eq.s32.totalorder %v10010_v10, 0  ;;  %vm684_vm13 = vcmp.eq.s32.totalorder %v10010_v10, 2 }
  0x8e   : > { %9335 = vsinq.f32 %v673_v0  ;;  %v876_v21 = vmul.f32 %v875_v9, %v873_v13  ;;  %vm4006_vm14 = vcmp.lt.s32.totalorder %v10008_v4, 2  ;;  %v10028_v30 = vand.u32 3, %v882_v18 }
  0x8f   : > { %v544_v56 = vshll.u32 %v10014_v28, 30  ;;  %vm677_vm15 = vweird.f32 %v9802_v1  ;;  %v10032_v32 = vand.u32 3, %v886_v11  ;;  %v712_v38 = vshll.u32 %v13886_v35, %v703_v57 }
  0x90   : > { %v877_v60 = vxor.u32 2147483648, %v876_v21  ;;  %v713_v14 = vshrl.u32 %v13880_v37, %v704_v41  ;;  %v708_v40 = vor.u32 %v707_v36, %v706_v16  ;;  %v711_v26 = vor.u32 %v710_v62, %v709_v19 }
  0x91   : > { %v10036_v15 = vsub.s32 %v541_v29, %v544_v56  ;;  %v717_v42 = vor.u32 %v716_v23, %v715_v20  ;;  %v718_v44 = vshll.u32 %v13896_v39, %v703_v57  ;;  %v719_v46 = vshrl.u32 %v13894_v47, %v704_v41 }
  0x92   : > { %v878_v3 = vsel %vm795_vm4, %v877_v60, %v876_v21  ;;  %vm724_vm0 = vcmp.lt.s32.totalorder %v10021_v22, 4  ;;  %v705_v17 = vshrl.u32 %v13884_v31, %v704_v41  ;;  %vm721_vm1 = vcmp.lt.s32.totalorder %v10021_v22, 1 }
  0x93   : > { %v881_v48 = vsel %vm9992_vm7, %v9805_v2, %v878_v3  ;;  %v547_v34 = vsub.s32 0, %v10036_v15  ;;  %v537_v49 = vadd.s32 %v9977_v27, %v9983_v43  ;;  %v714_v50 = vor.u32 %v713_v14, %v712_v38 }
  0x94   : > { %9337 = vcosq.f32 %v881_v48  ;;  %v10051_v52 = vshll.u32 %v697_v63, 8  ;;  %vm723_vm2 = vcmp.lt.s32.totalorder %v10021_v22, 3  ;;  %v730_v51 = vsel %vm724_vm0, %v717_v42, 920167782 }
  0x95   : > { %9339 = vsinq.f32 %v881_v48  ;;  %v8617_v45 = vmin.u32 %v547_v34, %v10036_v15  ;;  %vm892_vm3 = vcmp.eq.s32.totalorder %v10032_v32, 2  ;;  %v720_v57 = vor.u32 %v719_v46, %v718_v44 }
  0x96   : > { %vm722_vm5 = vcmp.lt.s32.totalorder %v10021_v22, 2  ;;  %v729_v27 = vsel %vm721_vm1, %v708_v40, %v711_v26  ;;  %vm889_vm6 = vcmp.eq.s32.totalorder %v10032_v32, 0  ;;  %vm483_vm8 = vcmp.lt.s32.totalorder %v9810_v5, 0 }
  0x97   : > { %v9334_v53 = vpop.eup %9333  ;;  %v549_v24 = vclz %v8617_v45  ;;  %v567_v59 = vsub.s32 4, %v10014_v28  ;;  %v725_v18 = vsel %vm721_vm1, %v705_v17, %v708_v40  ;;  %vm4212_vm4 = vcmp.lt.s32.totalorder %v10028_v30, 2 }
  0x98   : > { %v9336_v54 = vpop.eup %9335  ;;  %v685_v55 = vxor.u32 2147483648, %v9334_v53  ;;  %v726_v29 = vsel %vm724_vm0, %v714_v50, 2102212464  ;;  %v731_v63 = vsel %vm723_vm2, %v714_v50, %v730_v51  ;;  %vm885_vm7 = vweird.f32 %v9805_v2 }
  0x99   : > { %v682_v43 = vxor.u32 2147483648, %v9336_v54  ;;  %v8618_v7 = vadd.s32 4294967294, %v549_v24  ;;  %v732_v9 = vsel %vm722_vm5, %v729_v27, %v731_v63  ;;  %v733_v13 = vsel %vm721_vm1, %v711_v26, %v714_v50 }
  0x9a   : > { %v686_v6 = vsel %vm684_vm13, %v685_v55, %v9336_v54  ;;  %v4012_v61 = vsel %vm4010_vm10, %v685_v55, %v9336_v54  ;;  %v734_v16 = vsel %vm724_vm0, %v720_v57, 1326507024  ;;  %vm10103_vm10 = vcmp.le.f32.partialorder %v481_v25, 0.7853982 }
  0x9b   : > { %v683_v41 = vsel %vm681_vm12, %v9334_v53, %v682_v43  ;;  %v4009_v0 = vsel %vm4007_vm9, %v9334_v53, %v682_v43  ;;  %vm8619_vm9 = vcmp.lt.s32.totalorder %v8618_v7, 0  ;;  %v735_v10 = vsel %vm723_vm2, %v717_v42, %v734_v16 }
  0x9c   : > { %v687_v11 = vsel %vm680_vm11, %v683_v41, %v686_v6  ;;  %v4013_v12 = vsel %vm4006_vm14, %v4009_v0, %v4012_v61  ;;  %v552_v20 = vsel %vm8619_vm9, 0, %v8618_v7  ;;  %v727_v21 = vsel %vm723_vm2, %v711_v26, %v726_v29 }
  0x9d   : > { %v688_v19 = vsel %vm677_vm15, nan, %v687_v11  ;;  %v10096_v36 = vsel %vm677_vm15, nan, %v4013_v12  ;;  %v736_v23 = vsel %vm722_vm5, %v733_v13, %v735_v10  ;;  %v553_v56 = vsub.s32 32, %v552_v20 }
  0x9e   : > { %v8931_v4 = vpack.c.bf16 %v688_v19, %v9802_v1  ;;  %v554_v60 = vshll.u32 %v10036_v15, %v552_v20  ;;  %v557_v38 = vsub.s32 4294967266, %v552_v20  ;;  %v10113_v14 = vmul.f32 2.0, %v9802_v1  ;;  %v9338_v40 = vpop.eup %9337 }
  0x9f   : > { %v10116_v25 = vmul.u32.u64.low %v10051_v52, %v736_v23  ;;  %v10117_v42 = vmul.u32.u64.high %v10051_v52, %v736_v23, %v10116_v25  ;;  %v10120_v3 = vmul.u32.u64.low %v10051_v52, %v732_v9  ;;  %v10121_v44 = vmul.u32.u64.high %v10051_v52, %v732_v9, %v10120_v3  ;;  %v9340_v26 = vpop.eup %9339 }
  0xa0   : > { %8932 = vmatprep.subr.bf16.mxu0 %v8931_v4  ;;  %v893_v46 = vxor.u32 2147483648, %v9338_v40  ;;  %v555_v48 = vshrl.u32 %v537_v49, %v553_v56  ;;  %v558_v34 = vadd.s32 127, %v557_v38  ;;  %v728_v15 = vsel %vm722_vm5, %v725_v18, %v727_v21 }
  0xa1   : > { %vm888_vm11 = vcmp.lt.s32.totalorder %v10032_v32, 2  ;;  %v890_v17 = vxor.u32 2147483648, %v9340_v26  ;;  %v568_v50 = vsel %vm483_vm8, %v567_v59, %v10014_v28  ;;  %v1420_v53 = vand.u32 2139095040, %v10113_v14 }
  0xa2   : > { %v894_v45 = vsel %vm892_vm3, %v893_v46, %v9340_v26  ;;  %vm14017_vm12 = vcmp.eq.s32.totalorder %v10028_v30, 2  ;;  %v556_v49 = vor.u32 %v555_v48, %v554_v60  ;;  %v559_v54 = vshll.u32 %v558_v34, 23 }
  0xa3   : > { %v4218_v51 = vsel %vm14017_vm12, %v893_v46, %v9340_v26  ;;  %v891_v22 = vsel %vm889_vm6, %v9338_v40, %v890_v17  ;;  %vm14018_vm13 = vcmp.eq.s32.totalorder %v10028_v30, 0  ;;  %v744_v57 = vmul.u32 %v10051_v52, %v728_v15 }
  0xa4   : > { %v4215_v55 = vsel %vm14018_vm13, %v9338_v40, %v890_v17  ;;  %vm746_vm14 = vc.u32 %v10117_v42, %v10120_v3  ;;  %v895_v28 = vsel %vm888_vm11, %v891_v22, %v894_v45  ;;  %v560_v43 = vor.u32 4788187, %v559_v54 }
  0xa5   : > { %v4219_v27 = vsel %vm4212_vm4, %v4215_v55, %v4218_v51  ;;  %v563_v24 = vcvt.s32.f32 %v556_v49  ;;  %v896_v59 = vsel %vm885_vm7, nan, %v895_v28  ;;  %v747_v18 = vadd.s32 1, %v10121_v44 }
  0xa6   : > { %v10148_v32 = vsel %vm885_vm7, nan, %v4219_v27  ;;  %v10152_v52 = vmul.f32 4.0, %v9802_v1  ;;  %v8963_v6 = vpack.c.bf16 %v896_v59, %v9805_v2  ;;  %v561_v61 = vand.u32 2147483647, %v560_v43 }
  0xa7   : > { %v570_v30 = vsel %vm10103_vm10, 0, %v568_v50  ;;  %v1421_v29 = vshrl.u32 %v1420_v53, 23  ;;  %v748_v63 = vsel %vm746_vm14, %v747_v18, %v10121_v44  ;;  %v1417_v7 = vand.u32 2147483647, %v10113_v14 }
  0xa8   : > { %8964 = vmatprep.subr.bf16.mxu1 %v8963_v6  ;;  %v564_v41 = vmul.f32 %v563_v24, %v561_v61  ;;  %v749_v0 = vadd.s32 %v748_v63, %v744_v57  ;;  %v574_v11 = vadd.s32 3, %v570_v30  ;;  %v2252_v12 = vand.u32 2139095040, %v10152_v52 }
  0xa9   : > { %v8652_v9 = vadd.s32 4294967169, %v1421_v29  ;;  %v10160_v19 = vand.u32 3, %v570_v30  ;;  %v1424_v20 = vand.u32 8388607, %v1417_v7  ;;  %v2249_v26 = vand.u32 2147483647, %v10152_v52 }
  0xaa   : > { %v565_v1 = vxor.u32 2147483648, %v564_v41  ;;  %v750_v13 = vadd.s32 536870912, %v749_v0  ;;  %v10171_v23 = vand.u32 3, %v574_v11  ;;  %v2253_v60 = vshrl.u32 %v2252_v12, 23 }
  0xab   : > { %v1427_v16 = vadd.s32 1, %v8652_v9  ;;  %vm3907_vm0 = vcmp.eq.s32.totalorder %v10160_v19, 2  ;;  %v1425_v44 = vor.u32 8388608, %v1424_v20  ;;  %vm3904_vm3 = vcmp.eq.s32.totalorder %v10160_v19, 0 }
  0xac   : > { %v566_v10 = vsel %vm483_vm8, %v565_v1, %v564_v41  ;;  %v10164_v4 = vshrl.u32 %v750_v13, 30  ;;  %vm577_vm1 = vcmp.eq.s32.totalorder %v10171_v23, 0  ;;  %vm580_vm2 = vcmp.eq.s32.totalorder %v10171_v23, 2 }
  0xad   : > { %vm1428_vm15 = vcmp.gt.s32.totalorder %v1427_v16, 0  ;;  %v569_v21 = vsel %vm10103_vm10, %v9810_v5, %v566_v10  ;;  %v8684_v48 = vadd.s32 4294967169, %v2253_v60  ;;  %vm576_vm4 = vcmp.lt.s32.totalorder %v10171_v23, 2 }
  0xae   : > { %v1429_v56 = vsel %vm1428_vm15, %v1427_v16, 0  ;;  %9341 = vcosq.f32 %v569_v21  ;;  %v752_v38 = vshll.u32 %v10164_v4, 30  ;;  %vm3903_vm5 = vcmp.lt.s32.totalorder %v10160_v19, 2 }
  0xaf   : > { %9343 = vsinq.f32 %v569_v21  ;;  %v1431_v40 = vand.u32 31, %v1429_v56  ;;  %v10181_v62 = vshrl.u32 %v1429_v56, 5  ;;  %vm573_vm6 = vweird.f32 %v9810_v5 }
  0xb0   : > { %v10175_v25 = vsub.s32 %v749_v0, %v752_v38  ;;  %v745_v53 = vadd.s32 %v10120_v3, %v10117_v42  ;;  %v10196_v22 = vshll.u32 %v1425_v44, 8  ;;  %v10200_v55 = vand.u32 8388607, %v2249_v26 }
  0xb1   : > { %v1432_v46 = vsub.s32 32, %v1431_v40  ;;  %v1434_v15 = vshll.u32 %v13884_v31, %v1431_v40  ;;  %v1437_v17 = vshll.u32 %v13882_v33, %v1431_v40  ;;  %v1440_v50 = vshll.u32 %v13886_v35, %v1431_v40 }
  0xb2   : > { %v755_v34 = vsub.s32 0, %v10175_v25  ;;  %v10203_v57 = vmul.f32 2.0, %v9805_v2  ;;  %v775_v28 = vsub.s32 4, %v10164_v4  ;;  %vm1449_vm7 = vcmp.lt.s32.totalorder %v10181_v62, 1 }
  0xb3   : > { %v1435_v45 = vshrl.u32 %v13882_v33, %v1432_v46  ;;  %v1438_v51 = vshrl.u32 %v13886_v35, %v1432_v46  ;;  %v1441_v49 = vshrl.u32 %v13880_v37, %v1432_v46  ;;  %v1433_v42 = vshrl.u32 %v13884_v31, %v1432_v46 }
  0xb4   : > { %v8625_v54 = vmin.u32 %v755_v34, %v10175_v25  ;;  %14019 = vst [vmem:[#allocation7_spill] sm:$0xff] %v10203_v57  ;;  %v2259_v3 = vadd.s32 1, %v8684_v48  ;;  %v1443_v18 = vshll.u32 %v13880_v37, %v1431_v40  ;;  %v1444_v6 = vshrl.u32 %v13896_v39, %v1432_v46 }
  0xb5   : > { %v1436_v43 = vor.u32 %v1435_v45, %v1434_v15  ;;  %v1439_v24 = vor.u32 %v1438_v51, %v1437_v17  ;;  %v1442_v59 = vor.u32 %v1441_v49, %v1440_v50  ;;  %v1446_v61 = vshll.u32 %v13896_v39, %v1431_v40 }
  0xb6   : > { %v757_v27 = vclz %v8625_v54  ;;  %v1447_v2 = vshrl.u32 %v13894_v47, %v1432_v46  ;;  %vm691_vm8 = vcmp.lt.s32.totalorder %v9890_v58, 0  ;;  %vm1450_vm9 = vcmp.lt.s32.totalorder %v10181_v62, 2 }
  0xb7   : > { %vm1451_vm10 = vcmp.lt.s32.totalorder %v10181_v62, 3  ;;  %vm1452_vm11 = vcmp.lt.s32.totalorder %v10181_v62, 4  ;;  %v1445_v0 = vor.u32 %v1444_v6, %v1443_v18  ;;  %v1453_v9 = vsel %vm1449_vm7, %v1433_v42, %v1436_v43 }
  0xb8   : > { %v9342_v30 = vpop.eup %9341  ;;  %v8626_v29 = vadd.s32 4294967294, %v757_v27  ;;  %v1454_v11 = vsel %vm1452_vm11, %v1442_v59, 2102212464  ;;  %v1448_v1 = vor.u32 %v1447_v2, %v1446_v61  ;;  %vm10228_vm13 = vcmp.le.f32.partialorder %v689_v8, 0.7853982 }
  0xb9   : > { %v9344_v63 = vpop.eup %9343  ;;  %v581_v41 = vxor.u32 2147483648, %v9342_v30  ;;  %v1455_v13 = vsel %vm1451_vm10, %v1439_v24, %v1454_v11  ;;  %v1457_v56 = vsel %vm1449_vm7, %v1436_v43, %v1439_v24  ;;  %v1458_v34 = vsel %vm1452_vm11, %v1445_v0, 920167782 }
  0xba   : > { %v578_v12 = vxor.u32 2147483648, %v9344_v63  ;;  %vm8627_vm12 = vcmp.lt.s32.totalorder %v8626_v29, 0  ;;  %v1461_v51 = vsel %vm1449_vm7, %v1439_v24, %v1442_v59  ;;  %v1462_v54 = vsel %vm1452_vm11, %v1448_v1, 1326507024 }
  0xbb   : > { %v582_v16 = vsel %vm580_vm2, %v581_v41, %v9344_v63  ;;  %v3909_v10 = vsel %vm3907_vm0, %v581_v41, %v9344_v63  ;;  %v760_v21 = vsel %vm8627_vm12, 0, %v8626_v29  ;;  %v1463_v43 = vsel %vm1451_vm10, %v1445_v0, %v1462_v54 }
  0xbc   : > { %v579_v60 = vsel %vm577_vm1, %v9342_v30, %v578_v12  ;;  %v3906_v38 = vsel %vm3904_vm3, %v9342_v30, %v578_v12  ;;  %v761_v40 = vsub.s32 32, %v760_v21  ;;  %v762_v44 = vshll.u32 %v10175_v25, %v760_v21 }
  0xbd   : > { %v583_v46 = vsel %vm576_vm4, %v579_v60, %v582_v16  ;;  %v3910_v8 = vsel %vm3903_vm5, %v3906_v38, %v3909_v10  ;;  %v765_v48 = vsub.s32 4294967266, %v760_v21  ;;  %v1459_v25 = vsel %vm1451_vm10, %v1442_v59, %v1458_v34 }
  0xbe   : > { %v584_v15 = vsel %vm573_vm6, nan, %v583_v46  ;;  %v10249_v17 = vsel %vm573_vm6, nan, %v3910_v8  ;;  %v763_v50 = vshrl.u32 %v745_v53, %v761_v40  ;;  %v1460_v19 = vsel %vm1450_vm9, %v1457_v56, %v1459_v25 }
  0xbf   : > { %14022 = vst [vmem:[#allocation8_spill] sm:$0xff] %v10249_v17  ;;  %v8933_v23 = vpack.c.bf16 %v584_v15, %v9810_v5  ;;  %v766_v45 = vadd.s32 127, %v765_v48  ;;  %v10261_v42 = vmul.u32.u64.low %v10196_v22, %v1460_v19  ;;  %v10262_v27 = vmul.u32.u64.high %v10196_v22, %v1460_v19, %v10261_v42 }
  0xc0   : > { %v764_v49 = vor.u32 %v763_v50, %v762_v44  ;;  %v776_v5 = vsel %vm691_vm8, %v775_v28, %v10164_v4  ;;  %vm2260_vm14 = vcmp.gt.s32.totalorder %v2259_v3, 0  ;;  %v1456_v59 = vsel %vm1450_vm9, %v1453_v9, %v1455_v13 }
  0xc1   : > { %8934 = vmatpush1.bf16.msra.mxu0 %v8933_v23  ;;  %v767_v53 = vshll.u32 %v766_v45, 23  ;;  %v1464_v18 = vsel %vm1450_vm9, %v1461_v51, %v1463_v43  ;;  %v2261_v6 = vsel %vm2260_vm14, %v2259_v3, 0  ;;  %v778_v4 = vsel %vm10228_vm13, 0, %v776_v5 }
  0xc2   : > { %v771_v24 = vcvt.s32.f32 %v764_v49  ;;  %v10275_v2 = vmul.u32.u64.low %v10196_v22, %v1464_v18  ;;  %v10276_v30 = vmul.u32.u64.high %v10196_v22, %v1464_v18, %v10275_v2  ;;  %v10278_v29 = vshrl.u32 %v2261_v6, 5 }
  0xc3   : > { %v768_v61 = vor.u32 4788187, %v767_v53  ;;  %v1475_v28 = vadd.s32 1, %v10262_v27  ;;  %v2257_v63 = vor.u32 8388608, %v10200_v55  ;;  %v2263_v41 = vand.u32 31, %v2261_v6 }
  0xc4   : > { %v1472_v62 = vmul.u32 %v10196_v22, %v1456_v59  ;;  %vm2281_vm15 = vcmp.lt.s32.totalorder %v10278_v29, 1  ;;  %v1628_v3 = vand.u32 2139095040, %v10203_v57  ;;  %vm2282_vm0 = vcmp.lt.s32.totalorder %v10278_v29, 2 }
  0xc5   : > { %v769_v0 = vand.u32 2147483647, %v768_v61  ;;  %v2264_v9 = vsub.s32 32, %v2263_v41  ;;  %v2266_v11 = vshll.u32 %v13884_v31, %v2263_v41  ;;  %v2269_v12 = vshll.u32 %v13882_v33, %v2263_v41 }
  0xc6   : > { %vm1474_vm1 = vc.u32 %v10276_v30, %v10261_v42  ;;  %v2272_v55 = vshll.u32 %v13886_v35, %v2263_v41  ;;  %v2275_v13 = vshll.u32 %v13880_v37, %v2263_v41  ;;  %v2278_v8 = vshll.u32 %v13896_v39, %v2263_v41 }
  0xc7   : > { %v772_v1 = vmul.f32 %v771_v24, %v769_v0  ;;  %v1476_v22 = vsel %vm1474_vm1, %v1475_v28, %v10262_v27  ;;  %v2265_v16 = vshrl.u32 %v13884_v31, %v2264_v9  ;;  %v2267_v10 = vshrl.u32 %v13882_v33, %v2264_v9 }
  0xc8   : > { %v2270_v21 = vshrl.u32 %v13886_v35, %v2264_v9  ;;  %v1477_v60 = vadd.s32 %v1476_v22, %v1472_v62  ;;  %v2273_v38 = vshrl.u32 %v13880_v37, %v2264_v9  ;;  %v2276_v40 = vshrl.u32 %v13896_v39, %v2264_v9 }
  0xc9   : > { %v773_v56 = vxor.u32 2147483648, %v772_v1  ;;  %v2268_v44 = vor.u32 %v2267_v10, %v2266_v11  ;;  %v2279_v48 = vshrl.u32 %v13894_v47, %v2264_v9  ;;  %vm2283_vm2 = vcmp.lt.s32.totalorder %v10278_v29, 3 }
  0xca   : > { %v2271_v46 = vor.u32 %v2270_v21, %v2269_v12  ;;  %v1478_v15 = vadd.s32 536870912, %v1477_v60  ;;  %v2274_v50 = vor.u32 %v2273_v38, %v2272_v55  ;;  %v2277_v25 = vor.u32 %v2276_v40, %v2275_v13  ;;  %v9461_v55 = vld [vmem:[%s9799_s25 + $0x18] sm:$0xff] }
  0xcb   : > { %v774_v34 = vsel %vm691_vm8, %v773_v56, %v772_v1  ;;  %v2280_v45 = vor.u32 %v2279_v48, %v2278_v8  ;;  %vm2284_vm3 = vcmp.lt.s32.totalorder %v10278_v29, 4  ;;  %v782_v54 = vadd.s32 3, %v778_v4 }
  0xcc   : > { %v777_v23 = vsel %vm10228_vm13, %v9890_v58, %v774_v34  ;;  %v1479_v19 = vshrl.u32 %v1478_v15, 30  ;;  %v2286_v51 = vsel %vm2284_vm3, %v2274_v50, 2102212464  ;;  %v2289_v49 = vsel %vm2281_vm15, %v2268_v44, %v2271_v46 }
  0xcd   : > { %9345 = vcosq.f32 %v777_v23  ;;  %v2290_v27 = vsel %vm2284_vm3, %v2277_v25, 920167782  ;;  %v2297_v53 = vshll.u32 %v2257_v63, 8  ;;  %v2285_v20 = vsel %vm2281_vm15, %v2265_v16, %v2268_v44 }
  0xce   : > { %9347 = vsinq.f32 %v777_v23  ;;  %v1480_v5 = vshll.u32 %v1479_v19, 30  ;;  %v2291_v43 = vsel %vm2283_vm2, %v2274_v50, %v2290_v27  ;;  %v2293_v24 = vsel %vm2281_vm15, %v2271_v46, %v2274_v50 }
  0xcf   : > { %v2287_v59 = vsel %vm2283_vm2, %v2271_v46, %v2286_v51  ;;  %v2292_v18 = vsel %vm2282_vm0, %v2289_v49, %v2291_v43  ;;  %v2294_v6 = vsel %vm2284_vm3, %v2280_v45, 1326507024  ;;  %v1629_v61 = vshrl.u32 %v1628_v3, 23 }
  0xd0   : > { %v4108_v2 = vand.u32 3, %v778_v4  ;;  %vm1419_vm4 = vcmp.lt.s32.totalorder %v10113_v14, 0  ;;  %v10322_v28 = vsub.s32 %v1477_v60, %v1480_v5  ;;  %v2295_v63 = vsel %vm2283_vm2, %v2277_v25, %v2294_v6 }
  0xd1   : > { %vm781_vm5 = vweird.f32 %v9890_v58  ;;  %v783_v41 = vand.u32 3, %v782_v54  ;;  %v2296_v0 = vsel %vm2282_vm0, %v2293_v24, %v2295_v63  ;;  %v2288_v4 = vsel %vm2282_vm0, %v2285_v20, %v2287_v59 }
  0xd2   : > { %v10329_v62 = vmul.u32.u64.low %v2297_v53, %v2292_v18  ;;  %v10330_v9 = vmul.u32.u64.high %v2297_v53, %v2292_v18, %v10329_v62  ;;  %v1483_v3 = vsub.s32 0, %v10322_v28  ;;  %v1503_v1 = vsub.s32 4, %v1479_v19 }
  0xd3   : > { %v10336_v11 = vmul.u32.u64.low %v2297_v53, %v2296_v0  ;;  %v10337_v12 = vmul.u32.u64.high %v2297_v53, %v2296_v0, %v10336_v11  ;;  %v10340_v13 = vmul.f32 4.0, %v9461_v55  ;;  %v1625_v22 = vand.u32 2147483647, %v10203_v57 }
  0xd4   : > { %v8660_v16 = vadd.s32 4294967169, %v1629_v61  ;;  %vm4109_vm6 = vcmp.lt.s32.totalorder %v4108_v2, 2  ;;  %vm4110_vm7 = vcmp.eq.s32.totalorder %v4108_v2, 0  ;;  %vm4113_vm8 = vcmp.eq.s32.totalorder %v4108_v2, 2 }
  0xd5   : > { %14023 = vst [vmem:[#allocation9_spill] sm:$0xff] %v10340_v13  ;;  %v8653_v10 = vmin.u32 %v1483_v3, %v10322_v28  ;;  %vm784_vm9 = vcmp.lt.s32.totalorder %v783_v41, 2  ;;  %vm10346_vm10 = vcmp.le.f32.partialorder %v1417_v7, 0.7853982  ;;  %v2304_v21 = vmul.u32 %v2297_v53, %v2288_v4 }
  0xd6   : > { %v2307_v56 = vadd.s32 1, %v10330_v9  ;;  %v1635_v60 = vadd.s32 1, %v8660_v16  ;;  %vm785_vm11 = vcmp.eq.s32.totalorder %v783_v41, 0  ;;  %vm788_vm12 = vcmp.eq.s32.totalorder %v783_v41, 2 }
  0xd7   : > { %v9346_v38 = vpop.eup %9345  ;;  %v1473_v40 = vadd.s32 %v10261_v42, %v10276_v30  ;;  %v1485_v44 = vclz %v8653_v10  ;;  %v1504_v48 = vsel %vm1419_vm4, %v1503_v1, %v1479_v19  ;;  %vm2306_vm13 = vc.u32 %v10337_v12, %v10329_v62 }
  0xd8   : > { %v9348_v46 = vpop.eup %9347  ;;  %v789_v8 = vxor.u32 2147483648, %v9346_v38  ;;  %vm1636_vm14 = vcmp.gt.s32.totalorder %v1635_v60, 0  ;;  %v2308_v15 = vsel %vm2306_vm13, %v2307_v56, %v10330_v9  ;;  %v1632_v42 = vand.u32 8388607, %v1625_v22 }
  0xd9   : > { %v786_v7 = vxor.u32 2147483648, %v9348_v46  ;;  %v8654_v34 = vadd.s32 4294967294, %v1485_v44  ;;  %v1637_v50 = vsel %vm1636_vm14, %v1635_v60, 0  ;;  %v2309_v45 = vadd.s32 %v2308_v15, %v2304_v21 }
  0xda   : > { %v790_v25 = vsel %vm788_vm12, %v789_v8, %v9348_v46  ;;  %v4115_v23 = vsel %vm4113_vm8, %v789_v8, %v9348_v46  ;;  %v1639_v51 = vand.u32 31, %v1637_v50  ;;  %v10375_v2 = vsel %vm10346_vm10, 0, %v1504_v48 }
  0xdb   : > { %v787_v30 = vsel %vm785_vm11, %v9346_v38, %v786_v7  ;;  %v4112_v19 = vsel %vm4110_vm7, %v9346_v38, %v786_v7  ;;  %vm8655_vm15 = vcmp.lt.s32.totalorder %v8654_v34, 0  ;;  %v2310_v53 = vadd.s32 536870912, %v2309_v45 }
  0xdc   : > { %v791_v49 = vsel %vm784_vm9, %v787_v30, %v790_v25  ;;  %v4116_v54 = vsel %vm4109_vm6, %v4112_v19, %v4115_v23  ;;  %v1488_v27 = vsel %vm8655_vm15, 0, %v8654_v34  ;;  %v1640_v61 = vsub.s32 32, %v1639_v51 }
  0xdd   : > { %v792_v5 = vsel %vm781_vm5, nan, %v791_v49  ;;  %v10369_v20 = vsel %vm781_vm5, nan, %v4116_v54  ;;  %v1489_v43 = vsub.s32 32, %v1488_v27  ;;  %v1490_v24 = vshll.u32 %v10322_v28, %v1488_v27 }
  0xde   : > { %14026 = vst [vmem:[#allocation10_spill] sm:$0xff] %v10369_v20  ;;  %v8965_v59 = vpack.c.bf16 %v792_v5, %v9890_v58  ;;  %v1493_v18 = vsub.s32 4294967266, %v1488_v27  ;;  %v2311_v6 = vshrl.u32 %v2310_v53, 30  ;;  %v1633_v41 = vor.u32 8388608, %v1632_v42 }
  0xdf   : > { %v1491_v63 = vshrl.u32 %v1473_v40, %v1489_v43  ;;  %v1642_v3 = vshll.u32 %v13884_v31, %v1639_v51  ;;  %v2457_v4 = vand.u32 2147483647, %v10340_v13  ;;  %v1643_v28 = vshrl.u32 %v13882_v33, %v1640_v61 }
  0xe0   : > { %8966 = vmatpush1.bf16.msra.mxu1 %v8965_v59  ;;  %v1494_v0 = vadd.s32 127, %v1493_v18  ;;  %v2312_v9 = vshll.u32 %v2311_v6, 30  ;;  %v1645_v58 = vshll.u32 %v13882_v33, %v1639_v51  ;;  %v1648_v1 = vshll.u32 %v13886_v35, %v1639_v51 }
  0xe1   : > { %v1492_v11 = vor.u32 %v1491_v63, %v1490_v24  ;;  %v1646_v10 = vshrl.u32 %v13886_v35, %v1640_v61  ;;  %v1649_v21 = vshrl.u32 %v13880_v37, %v1640_v61  ;;  %vm2251_vm0 = vcmp.lt.s32.totalorder %v10152_v52, 0 }
  0xe2   : > { %v1495_v55 = vshll.u32 %v1494_v0, 23  ;;  %v10382_v16 = vsub.s32 %v2309_v45, %v2312_v9  ;;  %v1638_v56 = vshrl.u32 %v1637_v50, 5  ;;  %v1651_v60 = vshll.u32 %v13880_v37, %v1639_v51 }
  0xe3   : > { %v10388_v38 = vshll.u32 %v1633_v41, 8  ;;  %v2460_v40 = vand.u32 2139095040, %v10340_v13  ;;  %v1499_v46 = vcvt.s32.f32 %v1492_v11  ;;  %v1641_v48 = vshrl.u32 %v13884_v31, %v1640_v61 }
  0xe4   : > { %v1496_v44 = vor.u32 4788187, %v1495_v55  ;;  %v2315_v8 = vsub.s32 0, %v10382_v16  ;;  %v1644_v7 = vor.u32 %v1643_v28, %v1642_v3  ;;  %v1652_v34 = vshrl.u32 %v13896_v39, %v1640_v61 }
  0xe5   : > { %v1654_v15 = vshll.u32 %v13896_v39, %v1639_v51  ;;  %v1655_v25 = vshrl.u32 %v13894_v47, %v1640_v61  ;;  %v1647_v45 = vor.u32 %v1646_v10, %v1645_v58  ;;  %v1650_v42 = vor.u32 %v1649_v21, %v1648_v1 }
  0xe6   : > { %v1497_v50 = vand.u32 2147483647, %v1496_v44  ;;  %v8685_v23 = vmin.u32 %v2315_v8, %v10382_v16  ;;  %v1653_v30 = vor.u32 %v1652_v34, %v1651_v60  ;;  %vm1657_vm1 = vcmp.lt.s32.totalorder %v1638_v56, 1 }
  0xe7   : > { %v1656_v19 = vor.u32 %v1655_v25, %v1654_v15  ;;  %vm1660_vm2 = vcmp.lt.s32.totalorder %v1638_v56, 4  ;;  %v2335_v27 = vsub.s32 4, %v2311_v6  ;;  %vm1659_vm3 = vcmp.lt.s32.totalorder %v1638_v56, 3 }
  0xe8   : > { %v1500_v49 = vmul.f32 %v1499_v46, %v1497_v50  ;;  %v2317_v54 = vclz %v8685_v23  ;;  %v2305_v53 = vadd.s32 %v10329_v62, %v10337_v12  ;;  %vm1658_vm5 = vcmp.lt.s32.totalorder %v1638_v56, 2 }
  0xe9   : > { %v1661_v51 = vsel %vm1657_vm1, %v1641_v48, %v1644_v7  ;;  %v1662_v5 = vsel %vm1660_vm2, %v1650_v42, 2102212464  ;;  %v1665_v59 = vsel %vm1657_vm1, %v1644_v7, %v1647_v45  ;;  %v1666_v18 = vsel %vm1660_vm2, %v1653_v30, 920167782 }
  0xea   : > { %v1501_v43 = vxor.u32 2147483648, %v1500_v49  ;;  %v8686_v24 = vadd.s32 4294967294, %v2317_v54  ;;  %v1663_v61 = vsel %vm1659_vm3, %v1647_v45, %v1662_v5  ;;  %v1667_v63 = vsel %vm1659_vm3, %v1650_v42, %v1666_v18 }
  0xeb   : > { %v1669_v41 = vsel %vm1657_vm1, %v1647_v45, %v1650_v42  ;;  %v1670_v0 = vsel %vm1660_vm2, %v1656_v19, 1326507024  ;;  %v2336_v12 = vsel %vm2251_vm0, %v2335_v27, %v2311_v6  ;;  %v1668_v28 = vsel %vm1658_vm5, %v1665_v59, %v1667_v63 }
  0xec   : > { %v1502_v62 = vsel %vm1419_vm4, %v1501_v43, %v1500_v49  ;;  %vm8687_vm6 = vcmp.lt.s32.totalorder %v8686_v24, 0  ;;  %v1671_v9 = vsel %vm1659_vm3, %v1653_v30, %v1670_v0  ;;  %v1664_v21 = vsel %vm1658_vm5, %v1661_v51, %v1663_v61  ;;  %v10450_v43 = vld [vmem:[%s9799_s25] sm:$0xff] }
  0xed   : > { %v1505_v3 = vsel %vm10346_vm10, %v10113_v14, %v1502_v62  ;;  %v2320_v11 = vsel %vm8687_vm6, 0, %v8686_v24  ;;  %v1672_v58 = vsel %vm1658_vm5, %v1669_v41, %v1671_v9  ;;  %v2461_v44 = vshrl.u32 %v2460_v40, 23 }
  0xee   : > { %v2321_v1 = vsub.s32 32, %v2320_v11  ;;  %v2322_v55 = vshll.u32 %v10382_v16, %v2320_v11  ;;  %v2325_v10 = vsub.s32 4294967266, %v2320_v11  ;;  %9349 = vcosq.f32 %v1505_v3 }
  0xef   : > { %v10420_v6 = vmul.u32.u64.low %v10388_v38, %v1672_v58  ;;  %v10421_v60 = vmul.u32.u64.high %v10388_v38, %v1672_v58, %v10420_v6  ;;  %v10424_v8 = vmul.u32.u64.low %v10388_v38, %v1668_v28  ;;  %v10425_v48 = vmul.u32.u64.high %v10388_v38, %v1668_v28, %v10424_v8 }
  0xf0   : > { %v2323_v46 = vshrl.u32 %v2305_v53, %v2321_v1  ;;  %v2326_v29 = vadd.s32 127, %v2325_v10  ;;  %9351 = vsinq.f32 %v1505_v3  ;;  %v1510_v7 = vadd.s32 3, %v10375_v2 }
  0xf1   : > { %vm10431_vm4 = vcmp.le.f32.partialorder %v2249_v26, 0.7853982  ;;  %v8692_v56 = vadd.s32 4294967169, %v2461_v44  ;;  %v1680_v25 = vmul.u32 %v10388_v38, %v1664_v21  ;;  %vm1682_vm7 = vc.u32 %v10421_v60, %v10424_v8 }
  0xf2   : > { %v2324_v34 = vor.u32 %v2323_v46, %v2322_v55  ;;  %v2327_v15 = vshll.u32 %v2326_v29, 23  ;;  %v10437_v40 = vsel %vm10431_vm4, 0, %v2336_v12  ;;  %v2464_v50 = vand.u32 8388607, %v2457_v4 }
  0xf3   : > { %v2467_v26 = vadd.s32 1, %v8692_v56  ;;  %v1683_v42 = vadd.s32 1, %v10425_v48  ;;  %v10445_v30 = vand.u32 3, %v1510_v7  ;;  %v2342_v49 = vadd.s32 3, %v10437_v40 }
  0xf4   : > { %v2328_v23 = vor.u32 4788187, %v2327_v15  ;;  %v2331_v45 = vcvt.s32.f32 %v2324_v34  ;;  %v2465_v53 = vor.u32 8388608, %v2464_v50  ;;  %v10453_v24 = vmul.f32 2.0, %v10450_v43 }
  0xf5   : > { %vm2468_vm8 = vcmp.gt.s32.totalorder %v2467_v26, 0  ;;  %v1684_v38 = vsel %vm1682_vm7, %v1683_v42, %v10425_v48  ;;  %vm1513_vm9 = vcmp.eq.s32.totalorder %v10445_v30, 0  ;;  %vm1516_vm10 = vcmp.eq.s32.totalorder %v10445_v30, 2 }
  0xf6   : > { %v2329_v19 = vand.u32 2147483647, %v2328_v23  ;;  %v2469_v54 = vsel %vm2468_vm8, %v2467_v26, 0  ;;  %v1685_v27 = vadd.s32 %v1684_v38, %v1680_v25  ;;  %14029 = vst [vmem:[#allocation11_spill] sm:$0xff] %v10453_v24  ;;  %v10459_v41 = vand.u32 3, %v2342_v49 }
  0xf7   : > { %v2471_v51 = vand.u32 31, %v2469_v54  ;;  %v1313_v0 = vand.u32 2147483647, %v10453_v24  ;;  %v10468_v11 = vshll.u32 %v2465_v53, 8  ;;  %vm1512_vm11 = vcmp.lt.s32.totalorder %v10445_v30, 2 }
  0xf8   : > { %v2332_v5 = vmul.f32 %v2331_v45, %v2329_v19  ;;  %v10455_v59 = vpop.eup %9349  ;;  %v1686_v18 = vadd.s32 536870912, %v1685_v27  ;;  %v2470_v58 = vshrl.u32 %v2469_v54, 5  ;;  %v1316_v48 = vand.u32 2139095040, %v10453_v24 }
  0xf9   : > { %v2472_v61 = vsub.s32 32, %v2471_v51  ;;  %v2474_v9 = vshll.u32 %v13884_v31, %v2471_v51  ;;  %v2477_v1 = vshll.u32 %v13882_v33, %v2471_v51  ;;  %v2480_v6 = vshll.u32 %v13886_v35, %v2471_v51 }
  0xfa   : > { %v2333_v63 = vxor.u32 2147483648, %v2332_v5  ;;  %v10462_v62 = vpop.eup %9351  ;;  %v10464_v12 = vshrl.u32 %v1686_v18, 30  ;;  %v13876_v29 = vxor.u32 2147483648, %v10455_v59  ;;  %vm1509_vm12 = vweird.f32 %v10113_v14 }
  0xfb   : > { %v2475_v3 = vshrl.u32 %v13882_v33, %v2472_v61  ;;  %v2478_v55 = vshrl.u32 %v13886_v35, %v2472_v61  ;;  %v2481_v44 = vshrl.u32 %v13880_v37, %v2472_v61  ;;  %v13877_v46 = vxor.u32 2147483648, %v10462_v62 }
  0xfc   : > { %v2334_v28 = vsel %vm2251_vm0, %v2333_v63, %v2332_v5  ;;  %v1688_v21 = vshll.u32 %v10464_v12, 30  ;;  %v2473_v16 = vshrl.u32 %v13884_v31, %v2472_v61  ;;  %vm2348_vm13 = vcmp.eq.s32.totalorder %v10459_v41, 2 }
  0xfd   : > { %v2337_v10 = vsel %vm10431_vm4, %v10152_v52, %v2334_v28  ;;  %v2476_v56 = vor.u32 %v2475_v3, %v2474_v9  ;;  %v2479_v34 = vor.u32 %v2478_v55, %v2477_v1  ;;  %v2483_v15 = vshll.u32 %v13880_v37, %v2471_v51 }
  0xfe   : > { %9353 = vcosq.f32 %v2337_v10  ;;  %v10485_v7 = vsub.s32 %v1685_v27, %v1688_v21  ;;  %v2484_v25 = vshrl.u32 %v13896_v39, %v2472_v61  ;;  %v2486_v50 = vshll.u32 %v13896_v39, %v2471_v51 }
  0xff   : > { %9355 = vsinq.f32 %v2337_v10  ;;  %vm2345_vm14 = vcmp.eq.s32.totalorder %v10459_v41, 0  ;;  %v2482_v23 = vor.u32 %v2481_v44, %v2480_v6  ;;  %v2487_v45 = vshrl.u32 %v13894_v47, %v2472_v61 }
 0x100   : > { %v1691_v26 = vsub.s32 0, %v10485_v7  ;;  %vm2489_vm15 = vcmp.lt.s32.totalorder %v2470_v58, 1  ;;  %v1518_v42 = vsel %vm1516_vm10, %v13876_v29, %v10462_v62  ;;  %vm2344_vm0 = vcmp.lt.s32.totalorder %v10459_v41, 2 }
 0x101   : > { %v2485_v19 = vor.u32 %v2484_v25, %v2483_v15  ;;  %vm2492_vm1 = vcmp.lt.s32.totalorder %v2470_v58, 4  ;;  %v1317_v49 = vshrl.u32 %v1316_v48, 23  ;;  %v1515_v38 = vsel %vm1513_vm9, %v10455_v59, %v13877_v46 }
 0x102   : > { %vm2341_vm2 = vweird.f32 %v10152_v52  ;;  %v8661_v54 = vmin.u32 %v1691_v26, %v10485_v7  ;;  %v2488_v27 = vor.u32 %v2487_v45, %v2486_v50  ;;  %vm2491_vm3 = vcmp.lt.s32.totalorder %v2470_v58, 3 }
 0x103   : > { %vm2490_vm5 = vcmp.lt.s32.totalorder %v2470_v58, 2  ;;  %v2494_v53 = vsel %vm2492_vm1, %v2482_v23, 2102212464  ;;  %v2497_v51 = vsel %vm2489_vm15, %v2476_v56, %v2479_v34  ;;  %v2498_v5 = vsel %vm2492_vm1, %v2485_v19, 920167782 }
 0x104   : > { %v1681_v18 = vadd.s32 %v10424_v8, %v10421_v60  ;;  %v1693_v61 = vclz %v8661_v54  ;;  %v2493_v63 = vsel %vm2489_vm15, %v2473_v16, %v2476_v56  ;;  %v2501_v9 = vsel %vm2489_vm15, %v2479_v34, %v2482_v23 }
 0x105   : > { %v2495_v3 = vsel %vm2491_vm3, %v2479_v34, %v2494_v53  ;;  %v2499_v28 = vsel %vm2491_vm3, %v2482_v23, %v2498_v5  ;;  %v2502_v1 = vsel %vm2492_vm1, %v2488_v27, 1326507024  ;;  %v8648_v55 = vadd.s32 4294967169, %v1317_v49 }
 0x106   : > { %v1519_v10 = vsel %vm1512_vm11, %v1515_v38, %v1518_v42  ;;  %v8662_v21 = vadd.s32 4294967294, %v1693_v61  ;;  %v2500_v6 = vsel %vm2490_vm5, %v2497_v51, %v2499_v28  ;;  %v2503_v60 = vsel %vm2491_vm3, %v2485_v19, %v2502_v1 }
 0x107   : > { %v2496_v44 = vsel %vm2490_vm5, %v2493_v63, %v2495_v3  ;;  %v2504_v48 = vsel %vm2490_vm5, %v2501_v9, %v2503_v60  ;;  %v10527_v16 = vmul.u32.u64.low %v10468_v11, %v2500_v6  ;;  %v10528_v56 = vmul.u32.u64.high %v10468_v11, %v2500_v6, %v10527_v16 }
 0x108   : > { %v10522_v8 = vpop.eup %9353  ;;  %vm8663_vm6 = vcmp.lt.s32.totalorder %v8662_v21, 0  ;;  %v10535_v15 = vmul.u32.u64.low %v10468_v11, %v2504_v48  ;;  %v10536_v25 = vmul.u32.u64.high %v10468_v11, %v2504_v48, %v10535_v15  ;;  %v1520_v50 = vsel %vm1509_vm12, nan, %v1519_v10 }
 0x109   : > { %v10531_v34 = vpop.eup %9355  ;;  %v13870_v30 = vxor.u32 2147483648, %v10522_v8  ;;  %v1696_v26 = vsel %vm8663_vm6, 0, %v8662_v21  ;;  %v1323_v23 = vadd.s32 1, %v8648_v55  ;;  %v2512_v54 = vmul.u32 %v10468_v11, %v2496_v44 }
 0x10a   : > { %v13871_v58 = vxor.u32 2147483648, %v10531_v34  ;;  %v1697_v42 = vsub.s32 32, %v1696_v26  ;;  %v1698_v19 = vshll.u32 %v10485_v7, %v1696_v26  ;;  %v1701_v49 = vsub.s32 4294967266, %v1696_v26 }
 0x10b   : > { %v2350_v45 = vsel %vm2348_vm13, %v13870_v30, %v10531_v34  ;;  %v2515_v27 = vadd.s32 1, %v10528_v56  ;;  %vm1324_vm4 = vcmp.gt.s32.totalorder %v1323_v23, 0  ;;  %v1320_v7 = vand.u32 8388607, %v1313_v0 }
 0x10c   : > { %v2347_v38 = vsel %vm2345_vm14, %v10522_v8, %v13871_v58  ;;  %v1699_v51 = vshrl.u32 %v1681_v18, %v1697_v42  ;;  %v1702_v5 = vadd.s32 127, %v1701_v49  ;;  %vm2514_vm7 = vc.u32 %v10536_v25, %v10527_v16 }
 0x10d   : > { %v2351_v53 = vsel %vm2344_vm0, %v2347_v38, %v2350_v45  ;;  %v1325_v63 = vsel %vm1324_vm4, %v1323_v23, 0  ;;  %v2516_v28 = vsel %vm2514_vm7, %v2515_v27, %v10528_v56  ;;  %v10564_v41 = vmul.f32 4.0, %v10450_v43 }
 0x10e   : > { %v2352_v61 = vsel %vm2341_vm2, nan, %v2351_v53  ;;  %v1700_v11 = vor.u32 %v1699_v51, %v1698_v19  ;;  %v1703_v3 = vshll.u32 %v1702_v5, 23  ;;  %v2517_v1 = vadd.s32 %v2516_v28, %v2512_v54 }
 0x10f   : > { %v8935_v9 = vpack.c.bf16 %v2352_v61, %v1520_v50  ;;  %14030 = vst [vmem:[#allocation12_spill] sm:$0xff] %v10564_v41  ;;  %v1327_v18 = vand.u32 31, %v1325_v63  ;;  %v1711_v21 = vsub.s32 4, %v10464_v12  ;;  %v1321_v6 = vor.u32 8388608, %v1320_v7 }
 0x110   : > { %v1704_v55 = vor.u32 4788187, %v1703_v3  ;;  %v1707_v10 = vcvt.s32.f32 %v1700_v11  ;;  %v2518_v60 = vadd.s32 536870912, %v2517_v1  ;;  %v1326_v44 = vshrl.u32 %v1325_v63, 5 }
 0x111   : > { %8936 = vmatprep.subr.bf16.mxu0 %v8935_v9  ;;  %v1328_v48 = vsub.s32 32, %v1327_v18  ;;  %v1330_v15 = vshll.u32 %v13884_v31, %v1327_v18  ;;  %vm10570_vm8 = vcmp.le.f32.partialorder %v1625_v22, 0.7853982  ;;  %v1333_v50 = vshll.u32 %v13882_v33, %v1327_v18 }
 0x112   : > { %v1705_v43 = vand.u32 2147483647, %v1704_v55  ;;  %v1336_v26 = vshll.u32 %v13886_v35, %v1327_v18  ;;  %v1339_v23 = vshll.u32 %v13880_v37, %v1327_v18  ;;  %v2519_v45 = vshrl.u32 %v2518_v60, 30 }
 0x113   : > { %v1331_v42 = vshrl.u32 %v13882_v33, %v1328_v48  ;;  %v1334_v19 = vshrl.u32 %v13886_v35, %v1328_v48  ;;  %v1342_v49 = vshll.u32 %v13896_v39, %v1327_v18  ;;  %v1337_v22 = vshrl.u32 %v13880_v37, %v1328_v48 }
 0x114   : > { %v1708_v38 = vmul.f32 %v1707_v10, %v1705_v43  ;;  %v1340_v54 = vshrl.u32 %v13896_v39, %v1328_v48  ;;  %v1343_v27 = vshrl.u32 %v13894_v47, %v1328_v48  ;;  %vm1627_vm9 = vcmp.lt.s32.totalorder %v10203_v57, 0 }
 0x115   : > { %vm2459_vm10 = vcmp.lt.s32.totalorder %v10340_v13, 0  ;;  %v2520_v53 = vshll.u32 %v2519_v45, 30  ;;  %v2148_v51 = vand.u32 2139095040, %v10564_v41  ;;  %v1712_v7 = vsel %vm1627_vm9, %v1711_v21, %v10464_v12 }
 0x116   : > { %v1709_v5 = vxor.u32 2147483648, %v1708_v38  ;;  %v1341_v61 = vor.u32 %v1340_v54, %v1339_v23  ;;  %v1361_v63 = vshll.u32 %v1321_v6, 8  ;;  %v1329_v11 = vshrl.u32 %v13884_v31, %v1328_v48 }
 0x117   : > { %v10589_v9 = vsub.s32 %v2517_v1, %v2520_v53  ;;  %v1332_v3 = vor.u32 %v1331_v42, %v1330_v15  ;;  %v1335_v28 = vor.u32 %v1334_v19, %v1333_v50  ;;  %vm10594_vm11 = vcmp.le.f32.partialorder %v2457_v4, 0.7853982 }
 0x118   : > { %v1338_v55 = vor.u32 %v1337_v22, %v1336_v26  ;;  %v1344_v10 = vor.u32 %v1343_v27, %v1342_v49  ;;  %vm1345_vm13 = vcmp.lt.s32.totalorder %v1326_v44, 1  ;;  %vm1348_vm14 = vcmp.lt.s32.totalorder %v1326_v44, 4 }
 0x119   : > { %v2523_v12 = vsub.s32 0, %v10589_v9  ;;  %v2543_v21 = vsub.s32 4, %v2519_v45  ;;  %vm1347_vm15 = vcmp.lt.s32.totalorder %v1326_v44, 3  ;;  %v2149_v1 = vshrl.u32 %v2148_v51, 23 }
 0x11a   : > { %v1710_v6 = vsel %vm1627_vm9, %v1709_v5, %v1708_v38  ;;  %vm1346_vm0 = vcmp.lt.s32.totalorder %v1326_v44, 2  ;;  %v1350_v60 = vsel %vm1348_vm14, %v1338_v55, 2102212464  ;;  %v1354_v48 = vsel %vm1348_vm14, %v1341_v61, 920167782 }
 0x11b   : > { %v8693_v4 = vmin.u32 %v2523_v12, %v10589_v9  ;;  %v1349_v15 = vsel %vm1345_vm13, %v1329_v11, %v1332_v3  ;;  %v1351_v43 = vsel %vm1347_vm15, %v1335_v28, %v1350_v60  ;;  %v1353_v50 = vsel %vm1345_vm13, %v1332_v3, %v1335_v28 }
 0x11c   : > { %v1355_v26 = vsel %vm1347_vm15, %v1338_v55, %v1354_v48  ;;  %v1357_v23 = vsel %vm1345_vm13, %v1335_v28, %v1338_v55  ;;  %v1358_v42 = vsel %vm1348_vm14, %v1344_v10, 1326507024  ;;  %v2145_v19 = vand.u32 2147483647, %v10564_v41 }
 0x11d   : > { %v1713_v49 = vsel %vm10570_vm8, %v10203_v57, %v1710_v6  ;;  %v10610_v38 = vsel %vm10570_vm8, 0, %v1712_v7  ;;  %v2525_v22 = vclz %v8693_v4  ;;  %v2544_v54 = vsel %vm2459_vm10, %v2543_v21, %v2519_v45 }
 0x11e   : > { %v1352_v27 = vsel %vm1346_vm0, %v1349_v15, %v1351_v43  ;;  %v1356_v53 = vsel %vm1346_vm0, %v1353_v50, %v1355_v26  ;;  %v1359_v51 = vsel %vm1347_vm15, %v1341_v61, %v1358_v42  ;;  %v8680_v5 = vadd.s32 4294967169, %v2149_v1 }
 0x11f   : > { %v8694_v11 = vadd.s32 4294967294, %v2525_v22  ;;  %v1360_v3 = vsel %vm1346_vm0, %v1357_v23, %v1359_v51  ;;  %v10618_v28 = vmul.u32.u64.low %v1361_v63, %v1356_v53  ;;  %v10619_v55 = vmul.u32.u64.high %v1361_v63, %v1356_v53, %v10618_v28 }
 0x120   : > { %v1718_v56 = vadd.s32 3, %v10610_v38  ;;  %v10623_v7 = vmul.u32.u64.low %v1361_v63, %v1360_v3  ;;  %v10624_v10 = vmul.u32.u64.high %v1361_v63, %v1360_v3, %v10623_v7  ;;  %v2155_v45 = vadd.s32 1, %v8680_v5 }
 0x121   : > { %9357 = vcosq.f32 %v1713_v49  ;;  %v2513_v12 = vadd.s32 %v10527_v16, %v10536_v25  ;;  %vm8695_vm1 = vcmp.lt.s32.totalorder %v8694_v11, 0  ;;  %v10630_v61 = vsel %vm10594_vm11, 0, %v2544_v54 }
 0x122   : > { %9359 = vsinq.f32 %v1713_v49  ;;  %v2528_v44 = vsel %vm8695_vm1, 0, %v8694_v11  ;;  %v1368_v21 = vmul.u32 %v1361_v63, %v1352_v27  ;;  %vm2156_vm3 = vcmp.gt.s32.totalorder %v2155_v45, 0 }
 0x123   : > { %v2529_v1 = vsub.s32 32, %v2528_v44  ;;  %v2530_v6 = vshll.u32 %v10589_v9, %v2528_v44  ;;  %v2533_v60 = vsub.s32 4294967266, %v2528_v44  ;;  %v1371_v48 = vadd.s32 1, %v10619_v55 }
 0x124   : > { %vm1370_vm5 = vc.u32 %v10624_v10, %v10618_v28  ;;  %v2157_v4 = vsel %vm2156_vm3, %v2155_v45, 0  ;;  %v2152_v43 = vand.u32 8388607, %v2145_v19  ;;  %v2550_v63 = vadd.s32 3, %v10630_v61 }
 0x125   : > { %v2531_v16 = vshrl.u32 %v2513_v12, %v2529_v1  ;;  %v2534_v25 = vadd.s32 127, %v2533_v60  ;;  %v1372_v15 = vsel %vm1370_vm5, %v1371_v48, %v10619_v55  ;;  %v2159_v26 = vand.u32 31, %v2157_v4 }
 0x126   : > { %v1373_v50 = vadd.s32 %v1372_v15, %v1368_v21  ;;  %v10640_v23 = vand.u32 3, %v1718_v56  ;;  %v2153_v53 = vor.u32 8388608, %v2152_v43  ;;  %v10642_v51 = vand.u32 3, %v2550_v63 }
 0x127   : > { %v2532_v9 = vor.u32 %v2531_v16, %v2530_v6  ;;  %v2535_v42 = vshll.u32 %v2534_v25, 23  ;;  %v2160_v22 = vsub.s32 32, %v2159_v26  ;;  %v10646_v11 = vshrl.u32 %v2157_v4, 5  ;;  %v10666_v25 = vld [vmem:[%s9799_s25 + $0x10] sm:$0xff] }
 0x128   : > { %v1374_v49 = vadd.s32 536870912, %v1373_v50  ;;  %v2162_v3 = vshll.u32 %v13884_v31, %v2159_v26  ;;  %vm1724_vm6 = vcmp.eq.s32.totalorder %v10640_v23, 2  ;;  %v2165_v45 = vshll.u32 %v13882_v33, %v2159_v26 }
 0x129   : > { %v2536_v54 = vor.u32 4788187, %v2535_v42  ;;  %v2539_v27 = vcvt.s32.f32 %v2532_v9  ;;  %v2163_v7 = vshrl.u32 %v13882_v33, %v2160_v22  ;;  %v2166_v12 = vshrl.u32 %v13886_v35, %v2160_v22 }
 0x12a   : > { %v10644_v5 = vshrl.u32 %v1374_v49, 30  ;;  %vm1721_vm4 = vcmp.eq.s32.totalorder %v10640_v23, 0  ;;  %v2168_v1 = vshll.u32 %v13886_v35, %v2159_v26  ;;  %v2169_v6 = vshrl.u32 %v13880_v37, %v2160_v22 }
 0x12b   : > { %v10649_v55 = vpop.eup %9357  ;;  %v2537_v56 = vand.u32 2147483647, %v2536_v54  ;;  %v2171_v60 = vshll.u32 %v13880_v37, %v2159_v26  ;;  %v2172_v4 = vshrl.u32 %v13896_v39, %v2160_v22  ;;  %v10663_v16 = vshll.u32 %v2153_v53, 8 }
 0x12c   : > { %v10655_v44 = vpop.eup %9359  ;;  %v1376_v21 = vshll.u32 %v10644_v5, 30  ;;  %v10669_v15 = vmul.f32 2.0, %v10666_v25  ;;  %v13874_v43 = vxor.u32 2147483648, %v10649_v55  ;;  %v2174_v9 = vshll.u32 %v13896_v39, %v2159_v26 }
 0x12d   : > { %v2540_v48 = vmul.f32 %v2539_v27, %v2537_v56  ;;  %v2175_v42 = vshrl.u32 %v13894_v47, %v2160_v22  ;;  %v2164_v54 = vor.u32 %v2163_v7, %v2162_v3  ;;  %v2167_v27 = vor.u32 %v2166_v12, %v2165_v45 }
 0x12e   : > { %14035 = vst [vmem:[#allocation13_spill] sm:$0xff] %v10669_v15  ;;  %v10672_v63 = vsub.s32 %v1373_v50, %v1376_v21  ;;  %v2173_v56 = vor.u32 %v2172_v4, %v2171_v60  ;;  %v13875_v53 = vxor.u32 2147483648, %v10655_v44  ;;  %v2170_v58 = vor.u32 %v2169_v6, %v2168_v1 }
 0x12f   : > { %v2541_v49 = vxor.u32 2147483648, %v2540_v48  ;;  %vm2177_vm7 = vcmp.lt.s32.totalorder %v10646_v11, 1  ;;  %vm1720_vm8 = vcmp.lt.s32.totalorder %v10640_v23, 2  ;;  %v2161_v26 = vshrl.u32 %v13884_v31, %v2160_v22 }
 0x130   : > { %v1379_v30 = vsub.s32 0, %v10672_v63  ;;  %v2176_v21 = vor.u32 %v2175_v42, %v2174_v9  ;;  %vm2180_vm9 = vcmp.lt.s32.totalorder %v10646_v11, 4  ;;  %vm2179_vm13 = vcmp.lt.s32.totalorder %v10646_v11, 3 }
 0x131   : > { %v2542_v50 = vsel %vm2459_vm10, %v2541_v49, %v2540_v48  ;;  %v2182_v45 = vsel %vm2180_vm9, %v2170_v58, 2102212464  ;;  %vm2178_vm14 = vcmp.lt.s32.totalorder %v10646_v11, 2  ;;  %v2185_v22 = vsel %vm2177_vm7, %v2164_v54, %v2167_v27 }
 0x132   : > { %v2545_v3 = vsel %vm10594_vm11, %v10340_v13, %v2542_v50  ;;  %v8649_v7 = vmin.u32 %v1379_v30, %v10672_v63  ;;  %v2186_v12 = vsel %vm2180_vm9, %v2173_v56, 920167782  ;;  %vm13925_vm10 = vweird.f32 %v10203_v57 }
 0x133   : > { %9361 = vcosq.f32 %v2545_v3  ;;  %vm1315_vm11 = vcmp.lt.s32.totalorder %v10453_v24, 0  ;;  %v1369_v30 = vadd.s32 %v10618_v28, %v10624_v10  ;;  %v10701_v1 = vmul.f32 4.0, %v10666_v25 }
 0x134   : > { %9363 = vsinq.f32 %v2545_v3  ;;  %v1381_v18 = vclz %v8649_v7  ;;  %v2181_v6 = vsel %vm2177_vm7, %v2161_v26, %v2164_v54  ;;  %v2183_v60 = vsel %vm2179_vm13, %v2167_v27, %v2182_v45 }
 0x135   : > { %14036 = vst [vmem:[#allocation14_spill] sm:$0xff] %v10701_v1  ;;  %v2187_v48 = vsel %vm2179_vm13, %v2170_v58, %v2186_v12  ;;  %v2189_v4 = vsel %vm2177_vm7, %v2167_v27, %v2170_v58  ;;  %v1726_v28 = vsel %vm1724_vm6, %v13874_v43, %v10655_v44  ;;  %v2190_v42 = vsel %vm2180_vm9, %v2176_v21, 1326507024 }
 0x136   : > { %v8650_v10 = vadd.s32 4294967294, %v1381_v18  ;;  %v2188_v9 = vsel %vm2178_vm14, %v2185_v22, %v2187_v48  ;;  %v1723_v49 = vsel %vm1721_vm4, %v10649_v55, %v13875_v53  ;;  %vm2552_vm15 = vcmp.lt.s32.totalorder %v10642_v51, 2 }
 0x137   : > { %v2191_v58 = vsel %vm2179_vm13, %v2173_v56, %v2190_v42  ;;  %v10729_v54 = vmul.u32.u64.low %v10663_v16, %v2188_v9  ;;  %v10730_v27 = vmul.u32.u64.high %v10663_v16, %v2188_v9, %v10729_v54  ;;  %vm13924_vm0 = vweird.f32 %v10340_v13 }
 0x138   : > { %vm10735_vm1 = vcmp.le.f32.partialorder %v1313_v0, 0.7853982  ;;  %vm8651_vm3 = vcmp.lt.s32.totalorder %v8650_v10, 0  ;;  %v2184_v26 = vsel %vm2178_vm14, %v2181_v6, %v2183_v60  ;;  %v2192_v21 = vsel %vm2178_vm14, %v2189_v4, %v2191_v58 }
 0x139   : > { %v1524_v56 = vand.u32 2139095040, %v10669_v15  ;;  %v1384_v3 = vsel %vm8651_vm3, 0, %v8650_v10  ;;  %v1399_v7 = vsub.s32 4, %v10644_v5  ;;  %vm2553_vm5 = vcmp.eq.s32.totalorder %v10642_v51, 0 }
 0x13a   : > { %v10746_v45 = vmul.u32.u64.low %v10663_v16, %v2192_v21  ;;  %v10747_v22 = vmul.u32.u64.high %v10663_v16, %v2192_v21, %v10746_v45  ;;  %v1385_v0 = vsub.s32 32, %v1384_v3  ;;  %v1386_v12 = vshll.u32 %v10672_v63, %v1384_v3 }
 0x13b   : > { %v1389_v18 = vsub.s32 4294967266, %v1384_v3  ;;  %v1525_v48 = vshrl.u32 %v1524_v56, 23  ;;  %v2200_v6 = vmul.u32 %v10663_v16, %v2184_v26  ;;  %v2203_v11 = vadd.s32 1, %v10730_v27 }
 0x13c   : > { %v13879_v60 = vand.u32 2147483647, %v10669_v15  ;;  %v1727_v4 = vsel %vm1720_vm8, %v1723_v49, %v1726_v28  ;;  %v1387_v10 = vshrl.u32 %v1369_v30, %v1385_v0  ;;  %vm2556_vm6 = vcmp.eq.s32.totalorder %v10642_v51, 2 }
 0x13d   : > { %v1390_v9 = vadd.s32 127, %v1389_v18  ;;  %v8656_v42 = vadd.s32 4294967169, %v1525_v48  ;;  %v10756_v58 = vpop.eup %9361  ;;  %v1400_v63 = vsel %vm1315_vm11, %v1399_v7, %v10644_v5  ;;  %vm2202_vm4 = vc.u32 %v10747_v22, %v10729_v54 }
 0x13e   : > { %v2356_v16 = vand.u32 2139095040, %v10701_v1  ;;  %v10764_v26 = vpop.eup %9363  ;;  %v13872_v23 = vxor.u32 2147483648, %v10756_v58  ;;  %v1388_v28 = vor.u32 %v1387_v10, %v1386_v12  ;;  %v2204_v49 = vsel %vm2202_vm4, %v2203_v11, %v10730_v27 }
 0x13f   : > { %v1391_v30 = vshll.u32 %v1390_v9, 23  ;;  %v1728_v21 = vsel %vm13925_vm10, nan, %v1727_v4  ;;  %v13873_v56 = vxor.u32 2147483648, %v10764_v26  ;;  %v2205_v3 = vadd.s32 %v2204_v49, %v2200_v6 }
 0x140   : > { %v1531_v45 = vadd.s32 1, %v8656_v42  ;;  %v2558_v5 = vsel %vm2556_vm6, %v13872_v23, %v10764_v26  ;;  %v1395_v0 = vcvt.s32.f32 %v1388_v28  ;;  %v1528_v18 = vand.u32 8388607, %v13879_v60 }
 0x141   : > { %v1392_v7 = vor.u32 4788187, %v1391_v30  ;;  %v2555_v27 = vsel %vm2553_vm5, %v10756_v58, %v13873_v56  ;;  %v10783_v12 = vsel %vm10735_vm1, 0, %v1400_v63  ;;  %v2206_v48 = vadd.s32 536870912, %v2205_v3 }
 0x142   : > { %vm1532_vm7 = vcmp.gt.s32.totalorder %v1531_v45, 0  ;;  %v2559_v6 = vsel %vm2552_vm15, %v2555_v27, %v2558_v5  ;;  %v2357_v10 = vshrl.u32 %v2356_v16, 23  ;;  %v10790_v23 = vadd.s32 3, %v10783_v12 }
 0x143   : > { %v1393_v11 = vand.u32 2147483647, %v1392_v7  ;;  %v1533_v4 = vsel %vm1532_vm7, %v1531_v45, 0  ;;  %v2560_v9 = vsel %vm13924_vm0, nan, %v2559_v6  ;;  %v2207_v42 = vshrl.u32 %v2206_v48, 30 }
 0x144   : > { %v1535_v28 = vand.u32 31, %v1533_v4  ;;  %v8967_v30 = vpack.c.bf16 %v2560_v9, %v1728_v21  ;;  %vm2147_vm8 = vcmp.lt.s32.totalorder %v10564_v41, 0  ;;  %v1529_v63 = vor.u32 8388608, %v1528_v18 }
 0x145   : > { %v1396_v49 = vmul.f32 %v1395_v0, %v1393_v11  ;;  %v10794_v56 = vadd.s32 %v10729_v54, %v10747_v22  ;;  %v2208_v51 = vshll.u32 %v2207_v42, 30  ;;  %v13878_v16 = vand.u32 2147483647, %v10701_v1 }
 0x146   : > { %v1536_v5 = vsub.s32 32, %v1535_v28  ;;  %8968 = vmatprep.subr.bf16.mxu1 %v8967_v30  ;;  %v1534_v7 = vshrl.u32 %v1533_v4, 5  ;;  %v1538_v27 = vshll.u32 %v13884_v31, %v1535_v28  ;;  %v8688_v21 = vadd.s32 4294967169, %v2357_v10 }
 0x147   : > { %v1397_v45 = vxor.u32 2147483648, %v1396_v49  ;;  %v10798_v0 = vsub.s32 %v2205_v3, %v2208_v51  ;;  %v1541_v6 = vshll.u32 %v13882_v33, %v1535_v28  ;;  %v1544_v18 = vshll.u32 %v13886_v35, %v1535_v28 }
 0x148   : > { %v1539_v48 = vshrl.u32 %v13882_v33, %v1536_v5  ;;  %v1542_v22 = vshrl.u32 %v13886_v35, %v1536_v5  ;;  %v1545_v11 = vshrl.u32 %v13880_v37, %v1536_v5  ;;  %v1547_v4 = vshll.u32 %v13880_v37, %v1535_v28 }
 0x149   : > { %v1398_v54 = vsel %vm1315_vm11, %v1397_v45, %v1396_v49  ;;  %v2211_v9 = vsub.s32 0, %v10798_v0  ;;  %v2231_v10 = vsub.s32 4, %v2207_v42  ;;  %v10809_v3 = vshll.u32 %v1529_v63, 8 }
 0x14a   : > { %v10813_v30 = vand.u32 8388607, %v13878_v16  ;;  %v1401_v51 = vsel %vm10735_vm1, %v10453_v24, %v1398_v54  ;;  %v1537_v49 = vshrl.u32 %v13884_v31, %v1536_v5  ;;  %v1548_v45 = vshrl.u32 %v13896_v39, %v1536_v5 }
 0x14b   : > { %v2363_v43 = vadd.s32 1, %v8688_v21  ;;  %v8681_v53 = vmin.u32 %v2211_v9, %v10798_v0  ;;  %v1540_v29 = vor.u32 %v1539_v48, %v1538_v27  ;;  %v1543_v46 = vor.u32 %v1542_v22, %v1541_v6 }
 0x14c   : > { %v1550_v63 = vshll.u32 %v13896_v39, %v1535_v28  ;;  %vm10824_vm9 = vcmp.le.f32.partialorder %v2145_v19, 0.7853982  ;;  %v1546_v60 = vor.u32 %v1545_v11, %v1544_v18  ;;  %v1549_v50 = vor.u32 %v1548_v45, %v1547_v4 }
 0x14d   : > { %v1551_v54 = vshrl.u32 %v13894_v47, %v1536_v5  ;;  %vm1553_vm13 = vcmp.lt.s32.totalorder %v1534_v7, 1  ;;  %9365 = vcosq.f32 %v1401_v51  ;;  %v2213_v37 = vclz %v8681_v53 }
 0x14e   : > { %v2232_v21 = vsel %vm2147_vm8, %v2231_v10, %v2207_v42  ;;  %vm1554_vm14 = vcmp.lt.s32.totalorder %v1534_v7, 2  ;;  %vm1555_vm11 = vcmp.lt.s32.totalorder %v1534_v7, 3  ;;  %vm1556_vm15 = vcmp.lt.s32.totalorder %v1534_v7, 4 }
 0x14f   : > { %v1552_v27 = vor.u32 %v1551_v54, %v1550_v63  ;;  %v1557_v28 = vsel %vm1553_vm13, %v1537_v49, %v1540_v29  ;;  %v8682_v48 = vadd.s32 4294967294, %v2213_v37  ;;  %v1558_v19 = vsel %vm1556_vm15, %v1546_v60, 2102212464 }
 0x150   : > { %v1561_v6 = vsel %vm1553_vm13, %v1540_v29, %v1543_v46  ;;  %v1562_v22 = vsel %vm1556_vm15, %v1549_v50, 920167782  ;;  %v1559_v9 = vsel %vm1555_vm11, %v1543_v46, %v1558_v19  ;;  %v1565_v11 = vsel %vm1553_vm13, %v1543_v46, %v1546_v60 }
 0x151   : > { %v1563_v18 = vsel %vm1555_vm11, %v1546_v60, %v1562_v22  ;;  %v1566_v4 = vsel %vm1556_vm15, %v1552_v27, 1326507024  ;;  %9367 = vsinq.f32 %v1401_v51  ;;  %vm8683_vm1 = vcmp.lt.s32.totalorder %v8682_v48, 0 }
 0x152   : > { %v1564_v53 = vsel %vm1554_vm14, %v1561_v6, %v1563_v18  ;;  %v1567_v5 = vsel %vm1555_vm11, %v1549_v50, %v1566_v4  ;;  %v2216_v45 = vsel %vm8683_vm1, 0, %v8682_v48  ;;  %v1560_v46 = vsel %vm1554_vm14, %v1557_v28, %v1559_v9 }
 0x153   : > { %v1568_v42 = vsel %vm1554_vm14, %v1565_v11, %v1567_v5  ;;  %v10834_v10 = vmul.u32.u64.low %v10809_v3, %v1564_v53  ;;  %v10835_v63 = vmul.u32.u64.high %v10809_v3, %v1564_v53, %v10834_v10  ;;  %v2217_v37 = vsub.s32 32, %v2216_v45 }
 0x154   : > { %v2218_v29 = vshll.u32 %v10798_v0, %v2216_v45  ;;  %v2221_v49 = vsub.s32 4294967266, %v2216_v45  ;;  %v10841_v60 = vand.u32 3, %v10790_v23  ;;  %vm2364_vm3 = vcmp.gt.s32.totalorder %v2363_v43, 0 }
 0x155   : > { %v10844_v51 = vmul.u32.u64.low %v10809_v3, %v1568_v42  ;;  %v10845_v50 = vmul.u32.u64.high %v10809_v3, %v1568_v42, %v10844_v51  ;;  %v2219_v54 = vshrl.u32 %v10794_v56, %v2217_v37  ;;  %v10850_v48 = vsel %vm10824_vm9, 0, %v2232_v21  ;;  %v9464_v21 = vld [vmem:[%s9799_s25 + $0x8] sm:$0xff] }
 0x156   : > { %v2222_v27 = vadd.s32 127, %v2221_v49  ;;  %v2365_v0 = vsel %vm2364_vm3, %v2363_v43, 0  ;;  %v1576_v7 = vmul.u32 %v10809_v3, %v1560_v46  ;;  %v1579_v28 = vadd.s32 1, %v10835_v63 }
 0x157   : > { %v2361_v23 = vor.u32 8388608, %v10813_v30  ;;  %v2367_v19 = vand.u32 31, %v2365_v0  ;;  %v10855_v6 = vpop.eup %9365  ;;  %v2220_v22 = vor.u32 %v2219_v54, %v2218_v29  ;;  %v2238_v18 = vadd.s32 3, %v10850_v48 }
 0x158   : > { %14041 = vst [vmem:[#allocation15_spill] sm:$0xff] %v10855_v6  ;;  %v2223_v9 = vshll.u32 %v2222_v27, 23  ;;  %vm1578_vm5 = vc.u32 %v10845_v50, %v10834_v10  ;;  %v10861_v11 = vmul.f32 8.0, %v9464_v21  ;;  %vm1409_vm6 = vcmp.eq.s32.totalorder %v10841_v60, 0 }
 0x159   : > { %v2368_v56 = vsub.s32 32, %v2367_v19  ;;  %v2227_v3 = vcvt.s32.f32 %v2220_v22  ;;  %v1580_v30 = vsel %vm1578_vm5, %v1579_v28, %v10835_v63  ;;  %vm1412_vm4 = vcmp.eq.s32.totalorder %v10841_v60, 2 }
 0x15a   : > { %v2224_v43 = vor.u32 4788187, %v2223_v9  ;;  %v1581_v4 = vadd.s32 %v1580_v30, %v1576_v7  ;;  %v2370_v53 = vshll.u32 %v13884_v31, %v2367_v19  ;;  %v10867_v5 = vshll.u32 %v2361_v23, 8 }
 0x15b   : > { %v10869_v45 = vpop.eup %9367  ;;  %v2371_v37 = vshrl.u32 %v13882_v33, %v2368_v56  ;;  %v2373_v29 = vshll.u32 %v13882_v33, %v2367_v19  ;;  %v2374_v49 = vshrl.u32 %v13886_v35, %v2368_v56  ;;  %v10874_v46 = vand.u32 3, %v2238_v18 }
 0x15c   : > { %14042 = vst [vmem:[#allocation16_spill] sm:$0xff] %v10869_v45  ;;  %v2225_v42 = vand.u32 2147483647, %v2224_v43  ;;  %v1582_v51 = vadd.s32 536870912, %v1581_v4  ;;  %v2366_v63 = vshrl.u32 %v2365_v0, 5  ;;  %vm1408_vm7 = vcmp.lt.s32.totalorder %v10841_v60, 2 }
 0x15d   : > { %v14043_v54 = vmov 2102212464   ;;  %v2376_v28 = vshll.u32 %v13886_v35, %v2367_v19  ;;  %v2380_v22 = vshrl.u32 %v13896_v39, %v2368_v56  ;;  %v2382_v43 = vshll.u32 %v13896_v39, %v2367_v19 }
 0x15e   : > { %v2379_v27 = vshll.u32 %v14043_v54, %v2367_v19  ;;  %v2228_v7 = vmul.f32 %v2227_v3, %v2225_v42  ;;  %v2377_v23 = vshrl.u32 %v14043_v54, %v2368_v56  ;;  %v1583_v21 = vshrl.u32 %v1582_v51, 30 }
 0x15f   : > { %v2383_v18 = vshrl.u32 %v13894_v47, %v2368_v56  ;;  %v2372_v0 = vor.u32 %v2371_v37, %v2370_v53  ;;  %v2375_v33 = vor.u32 %v2374_v49, %v2373_v29  ;;  %v13891_v20 = vxor.u32 2147483648, %v10869_v45 }
 0x160   : > { %v2229_v30 = vxor.u32 2147483648, %v2228_v7  ;;  %v2381_v31 = vor.u32 %v2380_v22, %v2379_v27  ;;  %v1584_v3 = vshll.u32 %v1583_v21, 30  ;;  %v14044_v42 = vmov 683565275  }
 0x161   : > { %v2369_v35 = vshrl.u32 %v14044_v42, %v2368_v56  ;;  %vm2385_vm13 = vcmp.lt.s32.totalorder %v2366_v63, 1  ;;  %vm1405_vm14 = vweird.f32 %v10453_v24  ;;  %v2378_v51 = vor.u32 %v2377_v23, %v2376_v28 }
 0x162   : > { %v2230_v9 = vsel %vm2147_vm8, %v2229_v30, %v2228_v7  ;;  %v2384_v13 = vor.u32 %v2383_v18, %v2382_v43  ;;  %vm2388_vm11 = vcmp.lt.s32.totalorder %v2366_v63, 4  ;;  %v10892_v53 = vsub.s32 %v1581_v4, %v1584_v3 }
 0x163   : > { %v2233_v19 = vsel %vm10824_vm9, %v10564_v41, %v2230_v9  ;;  %vm2386_vm15 = vcmp.lt.s32.totalorder %v2366_v63, 2  ;;  %vm2387_vm1 = vcmp.lt.s32.totalorder %v2366_v63, 3  ;;  %v2390_v56 = vsel %vm2388_vm11, %v2378_v51, 2102212464 }
 0x164   : > { %9369 = vcosq.f32 %v2233_v19  ;;  %v2393_v37 = vsel %vm2385_vm13, %v2372_v0, %v2375_v33  ;;  %v2394_v29 = vsel %vm2388_vm11, %v2381_v31, 920167782  ;;  %v1411_v49 = vsel %vm1409_vm6, %v10855_v6, %v13891_v20 }
 0x165   : > { %v14045_v16 = vxor.u32 2147483648, %v10855_v6  ;;  %9371 = vsinq.f32 %v2233_v19  ;;  %v1587_v27 = vsub.s32 0, %v10892_v53  ;;  %v2389_v7 = vsel %vm2385_vm13, %v2369_v35, %v2372_v0  ;;  %v9465_v35 = vld [vmem:[%s9799_s25 + $0x18] sm:$0xff] }
 0x166   : > { %v2395_v28 = vsel %vm2387_vm1, %v2378_v51, %v2394_v29  ;;  %v2397_v23 = vsel %vm2385_vm13, %v2375_v33, %v2378_v51  ;;  %v2398_v22 = vsel %vm2388_vm11, %v2384_v13, 1326507024  ;;  %v2391_v43 = vsel %vm2387_vm1, %v2375_v33, %v2390_v56 }
 0x167   : > { %v1414_v4 = vsel %vm1412_vm4, %v14045_v16, %v10869_v45  ;;  %v8657_v9 = vmin.u32 %v1587_v27, %v10892_v53  ;;  %v2396_v18 = vsel %vm2386_vm15, %v2393_v37, %v2395_v28  ;;  %v2399_v30 = vsel %vm2387_vm1, %v2381_v31, %v2398_v22 }
 0x168   : > { %v2400_v3 = vsel %vm2386_vm15, %v2397_v23, %v2399_v30  ;;  %v10918_v19 = vmul.u32.u64.low %v10867_v5, %v2396_v18  ;;  %v10919_v16 = vmul.u32.u64.high %v10867_v5, %v2396_v18, %v10918_v19  ;;  %v10923_v0 = vmul.f32 8.0, %v9465_v35 }
 0x169   : > { %v1415_v13 = vsel %vm1408_vm7, %v1411_v49, %v1414_v4  ;;  %vm13927_vm8 = vweird.f32 %v10564_v41  ;;  %v14046_v33 = vand.u32 2147483647, %v10669_v15  ;;  %v1589_v31 = vclz %v8657_v9 }
 0x16a   : > { %v1607_v56 = vsub.s32 4, %v1583_v21  ;;  %v13892_v37 = vand.u32 2147483647, %v10861_v11  ;;  %v2392_v29 = vsel %vm2386_vm15, %v2389_v7, %v2391_v43  ;;  %v3084_v60 = vand.u32 2139095040, %v10861_v11 }
 0x16b   : > { %vm10930_vm9 = vcmp.le.f32.partialorder %v14046_v33, 0.7853982  ;;  %v10937_v27 = vmul.u32.u64.low %v10867_v5, %v2400_v3  ;;  %v10938_v28 = vmul.u32.u64.high %v10867_v5, %v2400_v3, %v10937_v27  ;;  %vm2240_vm3 = vcmp.lt.s32.totalorder %v10874_v46, 2 }
 0x16c   : > { %vm2241_vm5 = vcmp.eq.s32.totalorder %v10874_v46, 0  ;;  %vm1523_vm6 = vcmp.lt.s32.totalorder %v10669_v15, 0  ;;  %v8658_v49 = vadd.s32 4294967294, %v1589_v31  ;;  %vm2244_vm4 = vcmp.eq.s32.totalorder %v10874_v46, 2 }
 0x16d   : > { %v1577_v4 = vadd.s32 %v10834_v10, %v10845_v50  ;;  %v2411_v63 = vadd.s32 1, %v10919_v16  ;;  %v3085_v7 = vshrl.u32 %v3084_v60, 23  ;;  %v1416_v23 = vsel %vm1405_vm14, nan, %v1415_v13 }
 0x16e   : > { %vm8659_vm7 = vcmp.lt.s32.totalorder %v8658_v49, 0  ;;  %v1608_v22 = vsel %vm1523_vm6, %v1607_v56, %v1583_v21  ;;  %v2408_v9 = vmul.u32 %v10867_v5, %v2392_v29  ;;  %v10953_v43 = vpop.eup %9369  ;;  %vm2410_vm13 = vc.u32 %v10938_v28, %v10918_v19 }
 0x16f   : > { %14049 = vst [vmem:[#allocation17_spill] sm:$0xff] %v10953_v43  ;;  %v1592_v18 = vsel %vm8659_vm7, 0, %v8658_v49  ;;  %v8716_v30 = vadd.s32 4294967169, %v3085_v7  ;;  %v3088_v10 = vand.u32 8388607, %v13892_v37  ;;  %v10959_v50 = vpop.eup %9371  ;;  %v13889_v3 = vxor.u32 2147483648, %v10953_v43 }
 0x170   : > { %14050 = vst [vmem:[#allocation18_spill] sm:$0xff] %v10959_v50  ;;  %v1593_v35 = vsub.s32 32, %v1592_v18  ;;  %v1594_v13 = vshll.u32 %v10892_v53, %v1592_v18  ;;  %v1597_v21 = vsub.s32 4294967266, %v1592_v18  ;;  %v13890_v5 = vxor.u32 2147483648, %v10959_v50 }
 0x171   : > { %v2412_v33 = vsel %vm2410_vm13, %v2411_v63, %v10919_v16  ;;  %v3091_v31 = vadd.s32 1, %v8716_v30  ;;  %v3292_v56 = vand.u32 2139095040, %v10923_v0  ;;  %v2246_v29 = vsel %vm2244_vm4, %v13889_v3, %v10959_v50 }
 0x172   : > { %v1595_v27 = vshrl.u32 %v1577_v4, %v1593_v35  ;;  %v1598_v60 = vadd.s32 127, %v1597_v21  ;;  %v2413_v49 = vadd.s32 %v2412_v33, %v2408_v9  ;;  %v2243_v53 = vsel %vm2241_vm5, %v10953_v43, %v13890_v5 }
 0x173   : > { %v10978_v16 = vsel %vm10930_vm9, 0, %v1608_v22  ;;  %vm3092_vm11 = vcmp.gt.s32.totalorder %v3091_v31, 0  ;;  %v13893_v63 = vand.u32 2147483647, %v10923_v0  ;;  %v2247_v7 = vsel %vm2240_vm3, %v2243_v53, %v2246_v29 }
 0x174   : > { %14051 = vst [vmem:[#allocation19_spill] sm:$0xff] %v10978_v16  ;;  %v1596_v18 = vor.u32 %v1595_v27, %v1594_v13  ;;  %v1599_v4 = vshll.u32 %v1598_v60, 23  ;;  %v2414_v30 = vadd.s32 536870912, %v2413_v49  ;;  %v2248_v9 = vsel %vm13927_vm8, nan, %v2247_v7 }
 0x175   : > { %v3089_v35 = vor.u32 8388608, %v3088_v10  ;;  %v3093_v21 = vsel %vm3092_vm11, %v3091_v31, 0  ;;  %v3293_v33 = vshrl.u32 %v3292_v56, 23  ;;  %v8937_v3 = vpack.c.bf16 %v2248_v9, %v1416_v23 }
 0x176   : > { %v1600_v5 = vor.u32 4788187, %v1599_v4  ;;  %v1603_v20 = vcvt.s32.f32 %v1596_v18  ;;  %v2415_v22 = vshrl.u32 %v2414_v30, 30  ;;  %v10986_v37 = vadd.s32 3, %v10978_v16 }
 0x177   : > { %vm2355_vm15 = vcmp.lt.s32.totalorder %v10701_v1, 0  ;;  %v3095_v46 = vand.u32 31, %v3093_v21  ;;  %8938 = vmatpush1.bf16.msra.mxu0 %v8937_v3  ;;  %v14052_v29 = vand.u32 2147483647, %v10701_v1  ;;  %v2409_v23 = vadd.s32 %v10918_v19, %v10938_v28 }
 0x178   : > { %v1601_v13 = vand.u32 2147483647, %v1600_v5  ;;  %v2416_v10 = vshll.u32 %v2415_v22, 30  ;;  %v10999_v31 = vand.u32 8388607, %v13893_v63  ;;  %v2439_v56 = vsub.s32 4, %v2415_v22 }
 0x179   : > { %vm10991_vm1 = vcmp.le.f32.partialorder %v14052_v29, 0.7853982  ;;  %v3096_v60 = vsub.s32 32, %v3095_v46  ;;  %v11001_v53 = vshll.u32 %v3089_v35, 8  ;;  %v8724_v3 = vadd.s32 4294967169, %v3293_v33 }
 0x17a   : > { %v1604_v5 = vmul.f32 %v1603_v20, %v1601_v13  ;;  %v11003_v7 = vsub.s32 %v2413_v49, %v2416_v10  ;;  %v3098_v18 = vshll.u32 %v14044_v42, %v3095_v46  ;;  %v14055_v4 = vmov 2475754826  }
 0x17b   : > { %v3101_v30 = vshll.u32 %v14055_v4, %v3095_v46  ;;  %v3099_v9 = vshrl.u32 %v14055_v4, %v3096_v60  ;;  %v14056_v19 = vmov 2131351028   ;;  %v3107_v63 = vshll.u32 %v14043_v54, %v3095_v46 }
 0x17c   : > { %v3102_v28 = vshrl.u32 %v14056_v19, %v3096_v60  ;;  %v3104_v29 = vshll.u32 %v14056_v19, %v3095_v46  ;;  %v1605_v47 = vxor.u32 2147483648, %v1604_v5  ;;  %v2419_v35 = vsub.s32 0, %v11003_v7 }
 0x17d   : > { %v3094_v39 = vshrl.u32 %v3093_v21, 5  ;;  %v3105_v20 = vshrl.u32 %v14043_v54, %v3096_v60  ;;  %v2440_v49 = vsel %vm2355_vm15, %v2439_v56, %v2415_v22  ;;  %v3097_v33 = vshrl.u32 %v14044_v42, %v3096_v60 }
 0x17e   : > { %v14057_v13 = vmov 920167782   ;;  %v1606_v17 = vsel %vm1523_vm6, %v1605_v47, %v1604_v5  ;;  %v8689_v41 = vmin.u32 %v2419_v35, %v11003_v7  ;;  %v3100_v24 = vor.u32 %v3099_v9, %v3098_v18 }
 0x17f   : > { %v3108_v10 = vshrl.u32 %v14057_v13, %v3096_v60  ;;  %v3110_v57 = vshll.u32 %v14057_v13, %v3095_v46  ;;  %v3103_v43 = vor.u32 %v3102_v28, %v3101_v30  ;;  %v1609_v21 = vsel %vm10930_vm9, %v10669_v15, %v1606_v17 }
 0x180   : > { %v3106_v50 = vor.u32 %v3105_v20, %v3104_v29  ;;  %v14058_v22 = vmov 1326507024   ;;  %9373 = vcosq.f32 %v1609_v21  ;;  %v2421_v6 = vclz %v8689_v41 }
 0x181   : > { %v3109_v16 = vor.u32 %v3108_v10, %v3107_v63  ;;  %v3111_v56 = vshrl.u32 %v14058_v22, %v3096_v60  ;;  %vm3113_vm3 = vcmp.lt.s32.totalorder %v3094_v39, 1  ;;  %v3299_v45 = vadd.s32 1, %v8724_v3 }
 0x182   : > { %9375 = vsinq.f32 %v1609_v21  ;;  %v11027_v47 = vsel %vm10991_vm1, 0, %v2440_v49  ;;  %vm3114_vm5 = vcmp.lt.s32.totalorder %v3094_v39, 2  ;;  %v8690_v5 = vadd.s32 4294967294, %v2421_v6 }
 0x183   : > { %v3112_v46 = vor.u32 %v3111_v56, %v3110_v57  ;;  %vm3115_vm6 = vcmp.lt.s32.totalorder %v3094_v39, 3  ;;  %vm3116_vm4 = vcmp.lt.s32.totalorder %v3094_v39, 4  ;;  %v3117_v51 = vsel %vm3113_vm3, %v3097_v33, %v3100_v24 }
 0x184   : > { %v3118_v17 = vsel %vm3116_vm4, %v3106_v50, 2102212464  ;;  %v3121_v18 = vsel %vm3113_vm3, %v3100_v24, %v3103_v43  ;;  %v3122_v63 = vsel %vm3116_vm4, %v3109_v16, 920167782  ;;  %v3125_v30 = vsel %vm3113_vm3, %v3103_v43, %v3106_v50 }
 0x185   : > { %vm8691_vm9 = vcmp.lt.s32.totalorder %v8690_v5, 0  ;;  %v3119_v60 = vsel %vm3115_vm6, %v3103_v43, %v3118_v17  ;;  %v3123_v41 = vsel %vm3115_vm6, %v3106_v50, %v3122_v63  ;;  %v3126_v9 = vsel %vm3116_vm4, %v3112_v46, 1326507024  ;;  %v9466_v46 = vld [vmem:[%s9799_s25] sm:$0xff] }
 0x186   : > { %v2424_v3 = vsel %vm8691_vm9, 0, %v8690_v5  ;;  %v3120_v28 = vsel %vm3114_vm5, %v3117_v51, %v3119_v60  ;;  %v3124_v29 = vsel %vm3114_vm5, %v3121_v18, %v3123_v41  ;;  %v3127_v57 = vsel %vm3115_vm6, %v3109_v16, %v3126_v9 }
 0x187   : > { %v2425_v35 = vsub.s32 32, %v2424_v3  ;;  %v2426_v6 = vshll.u32 %v11003_v7, %v2424_v3  ;;  %v2429_v20 = vsub.s32 4294967266, %v2424_v3  ;;  %v3128_v49 = vsel %vm3114_vm5, %v3125_v30, %v3127_v57 }
 0x188   : > { %v11034_v24 = vmul.u32.u64.low %v11001_v53, %v3128_v49  ;;  %v11035_v33 = vmul.u32.u64.high %v11001_v53, %v3128_v49, %v11034_v24  ;;  %v11038_v43 = vmul.u32.u64.low %v11001_v53, %v3124_v29  ;;  %v11039_v50 = vmul.u32.u64.high %v11001_v53, %v3124_v29, %v11038_v43 }
 0x189   : > { %v11043_v10 = vand.u32 3, %v10986_v37  ;;  %v2427_v21 = vshrl.u32 %v2409_v23, %v2425_v35  ;;  %v2430_v16 = vadd.s32 127, %v2429_v20  ;;  %vm3300_vm7 = vcmp.gt.s32.totalorder %v3299_v45, 0 }
 0x18a   : > { %v2446_v7 = vadd.s32 3, %v11027_v47  ;;  %v3297_v39 = vor.u32 8388608, %v10999_v31  ;;  %v3301_v56 = vsel %vm3300_vm7, %v3299_v45, 0  ;;  %v11048_v5 = vmul.f32 8.0, %v9466_v46  ;;  %v11050_v51 = vpop.eup %9373 }
 0x18b   : > { %v2428_v17 = vor.u32 %v2427_v21, %v2426_v6  ;;  %v2431_v18 = vshll.u32 %v2430_v16, 23  ;;  %v3136_v63 = vmul.u32 %v11001_v53, %v3120_v28  ;;  %v3303_v30 = vand.u32 31, %v3301_v56 }
 0x18c   : > { %v11053_v37 = vpop.eup %9375  ;;  %vm3138_vm13 = vc.u32 %v11035_v33, %v11038_v43  ;;  %v3139_v23 = vadd.s32 1, %v11039_v50  ;;  %vm1617_vm11 = vcmp.eq.s32.totalorder %v11043_v10, 0  ;;  %vm1620_vm3 = vcmp.eq.s32.totalorder %v11043_v10, 2 }
 0x18d   : > { %v2432_v60 = vor.u32 4788187, %v2431_v18  ;;  %v2435_v31 = vcvt.s32.f32 %v2428_v17  ;;  %v3304_v45 = vsub.s32 32, %v3303_v30  ;;  %v11061_v9 = vshll.u32 %v3297_v39, 8 }
 0x18e   : > { %v3140_v41 = vsel %vm3138_vm13, %v3139_v23, %v11039_v50  ;;  %v11063_v3 = vand.u32 3, %v2446_v7  ;;  %v3306_v57 = vshll.u32 %v14044_v42, %v3303_v30  ;;  %v3309_v6 = vshll.u32 %v14055_v4, %v3303_v30 }
 0x18f   : > { %v2433_v53 = vand.u32 2147483647, %v2432_v60  ;;  %v3141_v28 = vadd.s32 %v3140_v41, %v3136_v63  ;;  %v3307_v35 = vshrl.u32 %v14055_v4, %v3304_v45  ;;  %v3310_v20 = vshrl.u32 %v14056_v19, %v3304_v45 }
 0x190   : > { %v3302_v21 = vshrl.u32 %v3301_v56, 5  ;;  %vm1616_vm5 = vcmp.lt.s32.totalorder %v11043_v10, 2  ;;  %v3312_v16 = vshll.u32 %v14056_v19, %v3303_v30  ;;  %v3313_v7 = vshrl.u32 %v14043_v54, %v3304_v45 }
 0x191   : > { %v2436_v24 = vmul.f32 %v2435_v31, %v2433_v53  ;;  %v3142_v50 = vadd.s32 536870912, %v3141_v28  ;;  %v3315_v39 = vshll.u32 %v14043_v54, %v3303_v30  ;;  %v3316_v46 = vshrl.u32 %v14057_v13, %v3304_v45 }
 0x192   : > { %v3318_v23 = vshll.u32 %v14057_v13, %v3303_v30  ;;  %v3305_v60 = vshrl.u32 %v14044_v42, %v3304_v45  ;;  %v3308_v31 = vor.u32 %v3307_v35, %v3306_v57  ;;  %v3311_v56 = vor.u32 %v3310_v20, %v3309_v6 }
 0x193   : > { %v2437_v18 = vxor.u32 2147483648, %v2436_v24  ;;  %v3143_v63 = vshrl.u32 %v3142_v50, 30  ;;  %v3319_v41 = vshrl.u32 %v14058_v22, %v3304_v45  ;;  %v3317_v49 = vor.u32 %v3316_v46, %v3315_v39 }
 0x194   : > { %vm3321_vm6 = vcmp.lt.s32.totalorder %v3302_v21, 1  ;;  %vm13923_vm4 = vweird.f32 %v10669_v15  ;;  %v3314_v17 = vor.u32 %v3313_v7, %v3312_v16  ;;  %vm3324_vm9 = vcmp.lt.s32.totalorder %v3302_v21, 4 }
 0x195   : > { %v2438_v53 = vsel %vm2355_vm15, %v2437_v18, %v2436_v24  ;;  %v3144_v29 = vshll.u32 %v3143_v63, 30  ;;  %v3320_v30 = vor.u32 %v3319_v41, %v3318_v23  ;;  %v14059_v57 = vxor.u32 2147483648, %v11050_v51 }
 0x196   : > { %v2441_v50 = vsel %vm10991_vm1, %v10701_v1, %v2438_v53  ;;  %vm3323_vm15 = vcmp.lt.s32.totalorder %v3302_v21, 3  ;;  %vm3322_vm7 = vcmp.lt.s32.totalorder %v3302_v21, 2  ;;  %v3326_v6 = vsel %vm3324_vm9, %v3314_v17, 2102212464 }
 0x197   : > { %v1622_v45 = vsel %vm1620_vm3, %v14059_v57, %v11053_v37  ;;  %9377 = vcosq.f32 %v2441_v50  ;;  %v11091_v35 = vsub.s32 %v3141_v28, %v3144_v29  ;;  %v3329_v27 = vsel %vm3321_vm6, %v3308_v31, %v3311_v56 }
 0x198   : > { %9379 = vsinq.f32 %v2441_v50  ;;  %v14060_v20 = vxor.u32 2147483648, %v11053_v37  ;;  %v3167_v7 = vsub.s32 4, %v3143_v63  ;;  %v3330_v39 = vsel %vm3324_vm9, %v3317_v49, 920167782 }
 0x199   : > { %v3147_v16 = vsub.s32 0, %v11091_v35  ;;  %v3325_v28 = vsel %vm3321_vm6, %v3305_v60, %v3308_v31  ;;  %v3331_v29 = vsel %vm3323_vm15, %v3314_v17, %v3330_v39  ;;  %v3333_v46 = vsel %vm3321_vm6, %v3311_v56, %v3314_v17 }
 0x19a   : > { %v1619_v24 = vsel %vm1617_vm11, %v11050_v51, %v14060_v20  ;;  %v3334_v18 = vsel %vm3324_vm9, %v3320_v30, 1326507024  ;;  %v3327_v41 = vsel %vm3323_vm15, %v3311_v56, %v3326_v6  ;;  %v3332_v53 = vsel %vm3322_vm7, %v3329_v27, %v3331_v29 }
 0x19b   : > { %v8717_v23 = vmin.u32 %v3147_v16, %v11091_v35  ;;  %v3335_v50 = vsel %vm3323_vm15, %v3317_v49, %v3334_v18  ;;  %vm13919_vm1 = vweird.f32 %v10701_v1  ;;  %vm3083_vm13 = vcmp.lt.s32.totalorder %v10861_v11, 0 }
 0x19c   : > { %v3336_v60 = vsel %vm3322_vm7, %v3333_v46, %v3335_v50  ;;  %v11114_v31 = vmul.u32.u64.low %v11061_v9, %v3332_v53  ;;  %v11115_v57 = vmul.u32.u64.high %v11061_v9, %v3332_v53, %v11114_v31  ;;  %v1623_v17 = vsel %vm1616_vm5, %v1619_v24, %v1622_v45 }
 0x19d   : > { %v14061_v30 = vand.u32 2147483647, %v10861_v11  ;;  %v3149_v49 = vclz %v8717_v23  ;;  %v3168_v6 = vsel %vm3083_vm13, %v3167_v7, %v3143_v63  ;;  %v3328_v27 = vsel %vm3322_vm7, %v3325_v28, %v3327_v41 }
 0x19e   : > { %v11129_v20 = vmul.u32.u64.low %v11061_v9, %v3336_v60  ;;  %v11130_v16 = vmul.u32.u64.high %v11061_v9, %v3336_v60, %v11129_v20  ;;  %v14064_v39 = vand.u32 2139095040, %v11048_v5  ;;  %vm2448_vm3 = vcmp.lt.s32.totalorder %v11063_v3, 2 }
 0x19f   : > { %vm11121_vm11 = vcmp.le.f32.partialorder %v14061_v30, 0.7853982  ;;  %vm2449_vm5 = vcmp.eq.s32.totalorder %v11063_v3, 0  ;;  %vm2452_vm6 = vcmp.eq.s32.totalorder %v11063_v3, 2  ;;  %v8718_v45 = vadd.s32 4294967294, %v3149_v49 }
 0x1a0   : > { %v2981_v10 = vshrl.u32 %v14064_v39, 23  ;;  %v3137_v24 = vadd.s32 %v11038_v43, %v11035_v33  ;;  %v3347_v21 = vadd.s32 1, %v11115_v57  ;;  %v13911_v63 = vand.u32 2147483647, %v11048_v5 }
 0x1a1   : > { %v11141_v28 = vpop.eup %9377  ;;  %v1624_v29 = vsel %vm13923_vm4, nan, %v1623_v17  ;;  %vm8719_vm9 = vcmp.lt.s32.totalorder %v8718_v45, 0  ;;  %v11147_v46 = vsel %vm11121_vm11, 0, %v3168_v6  ;;  %v3344_v18 = vmul.u32 %v11061_v9, %v3328_v27 }
 0x1a2   : > { %v8712_v7 = vadd.s32 4294967169, %v2981_v10  ;;  %14065 = vst [vmem:[#allocation20_spill] sm:$0xff] %v11141_v28  ;;  %v11150_v23 = vpop.eup %9379  ;;  %v13910_v33 = vxor.u32 2147483648, %v11141_v28  ;;  %v3152_v43 = vsel %vm8719_vm9, 0, %v8718_v45  ;;  %vm3346_vm15 = vc.u32 %v11130_v16, %v11114_v31 }
 0x1a3   : > { %14066 = vst [vmem:[#allocation21_spill] sm:$0xff] %v11150_v23  ;;  %v11155_v41 = vmul.f32 8.0, %v10666_v25  ;;  %v13912_v53 = vxor.u32 2147483648, %v11150_v23  ;;  %v3153_v50 = vsub.s32 32, %v3152_v43  ;;  %v3154_v60 = vshll.u32 %v11091_v35, %v3152_v43 }
 0x1a4   : > { %v3157_v17 = vsub.s32 4294967266, %v3152_v43  ;;  %v2454_v9 = vsel %vm2452_vm6, %v13910_v33, %v11150_v23  ;;  %v3348_v30 = vsel %vm3346_vm15, %v3347_v21, %v11115_v57  ;;  %v2984_v49 = vand.u32 8388607, %v13911_v63 }
 0x1a5   : > { %v2987_v6 = vadd.s32 1, %v8712_v7  ;;  %v2451_v25 = vsel %vm2449_vm5, %v11141_v28, %v13912_v53  ;;  %v3155_v35 = vshrl.u32 %v3137_v24, %v3153_v50  ;;  %v3349_v20 = vadd.s32 %v3348_v30, %v3344_v18 }
 0x1a6   : > { %v3158_v27 = vadd.s32 127, %v3157_v17  ;;  %v2455_v39 = vsel %vm2448_vm3, %v2451_v25, %v2454_v9  ;;  %v3174_v10 = vadd.s32 3, %v11147_v46  ;;  %v3188_v57 = vand.u32 2139095040, %v11155_v41 }
 0x1a7   : > { %vm2988_vm7 = vcmp.gt.s32.totalorder %v2987_v6, 0  ;;  %v2456_v45 = vsel %vm13919_vm1, nan, %v2455_v39  ;;  %v3156_v21 = vor.u32 %v3155_v35, %v3154_v60  ;;  %v3350_v43 = vadd.s32 536870912, %v3349_v20 }
 0x1a8   : > { %v3159_v7 = vshll.u32 %v3158_v27, 23  ;;  %v8969_v33 = vpack.c.bf16 %v2456_v45, %v1624_v29  ;;  %v2985_v63 = vor.u32 8388608, %v2984_v49  ;;  %v2989_v53 = vsel %vm2988_vm7, %v2987_v6, 0 }
 0x1a9   : > { %v3163_v50 = vcvt.s32.f32 %v3156_v21  ;;  %v3351_v18 = vshrl.u32 %v3350_v43, 30  ;;  %v11178_v3 = vand.u32 3, %v3174_v10  ;;  %v2991_v17 = vand.u32 31, %v2989_v53 }
 0x1aa   : > { %v3160_v24 = vor.u32 4788187, %v3159_v7  ;;  %8970 = vmatpush1.bf16.msra.mxu1 %v8969_v33  ;;  %v3189_v15 = vshrl.u32 %v3188_v57, 23  ;;  %v11182_v39 = vadd.s32 %v11114_v31, %v11130_v16  ;;  %v2990_v60 = vshrl.u32 %v2989_v53, 5 }
 0x1ab   : > { %v3352_v30 = vshll.u32 %v3351_v18, 30  ;;  %v2992_v35 = vsub.s32 32, %v2991_v17  ;;  %v11184_v29 = vshll.u32 %v2985_v63, 8  ;;  %v2994_v33 = vshll.u32 %v14044_v42, %v2991_v17 }
 0x1ac   : > { %v3161_v9 = vand.u32 2147483647, %v3160_v24  ;;  %v2997_v27 = vshll.u32 %v14055_v4, %v2991_v17  ;;  %v3000_v57 = vshll.u32 %v14056_v19, %v2991_v17  ;;  %v3003_v31 = vshll.u32 %v14043_v54, %v2991_v17 }
 0x1ad   : > { %v11186_v6 = vsub.s32 %v3349_v20, %v3352_v30  ;;  %v2995_v10 = vshrl.u32 %v14055_v4, %v2992_v35  ;;  %v2998_v45 = vshrl.u32 %v14056_v19, %v2992_v35  ;;  %vm3291_vm3 = vcmp.lt.s32.totalorder %v10923_v0, 0 }
 0x1ae   : > { %v3164_v49 = vmul.f32 %v3163_v50, %v3161_v9  ;;  %v3001_v53 = vshrl.u32 %v14043_v54, %v2992_v35  ;;  %v8720_v20 = vadd.s32 4294967169, %v3189_v15  ;;  %v2993_v21 = vshrl.u32 %v14044_v42, %v2992_v35 }
 0x1af   : > { %v3355_v63 = vsub.s32 0, %v11186_v6  ;;  %v3004_v7 = vshrl.u32 %v14057_v13, %v2992_v35  ;;  %v3006_v43 = vshll.u32 %v14057_v13, %v2991_v17  ;;  %vm3009_vm5 = vcmp.lt.s32.totalorder %v2990_v60, 1 }
 0x1b0   : > { %v3165_v16 = vxor.u32 2147483648, %v3164_v49  ;;  %v2996_v9 = vor.u32 %v2995_v10, %v2994_v33  ;;  %v2999_v30 = vor.u32 %v2998_v45, %v2997_v27  ;;  %v3002_v1 = vor.u32 %v3001_v53, %v3000_v57 }
 0x1b1   : > { %v8725_v50 = vmin.u32 %v3355_v63, %v11186_v6  ;;  %v3005_v15 = vor.u32 %v3004_v7, %v3003_v31  ;;  %v3007_v28 = vshrl.u32 %v14058_v22, %v2992_v35  ;;  %v14067_v23 = vand.u32 2147483647, %v10923_v0 }
 0x1b2   : > { %v3166_v24 = vsel %vm3083_vm13, %v3165_v16, %v3164_v49  ;;  %v3375_v16 = vsub.s32 4, %v3351_v18  ;;  %v3195_v63 = vadd.s32 1, %v8720_v20  ;;  %vm3010_vm13 = vcmp.lt.s32.totalorder %v2990_v60, 2 }
 0x1b3   : > { %v3169_v25 = vsel %vm11121_vm11, %v10861_v11, %v3166_v24  ;;  %vm11209_vm6 = vcmp.le.f32.partialorder %v14067_v23, 0.7853982  ;;  %v3357_v49 = vclz %v8725_v50  ;;  %v3008_v33 = vor.u32 %v3007_v28, %v3006_v43 }
 0x1b4   : > { %9381 = vcosq.f32 %v3169_v25  ;;  %vm3011_vm9 = vcmp.lt.s32.totalorder %v2990_v60, 3  ;;  %vm3012_vm11 = vcmp.lt.s32.totalorder %v2990_v60, 4  ;;  %v3013_v27 = vsel %vm3009_vm5, %v2993_v21, %v2996_v9 }
 0x1b5   : > { %9383 = vsinq.f32 %v3169_v25  ;;  %v8726_v56 = vadd.s32 4294967294, %v3357_v49  ;;  %v3017_v35 = vsel %vm3009_vm5, %v2996_v9, %v2999_v30  ;;  %v3014_v10 = vsel %vm3012_vm11, %v3002_v1, 2102212464 }
 0x1b6   : > { %v3018_v45 = vsel %vm3012_vm11, %v3005_v15, 920167782  ;;  %v3021_v23 = vsel %vm3009_vm5, %v2999_v30, %v3002_v1  ;;  %v3022_v57 = vsel %vm3012_vm11, %v3008_v33, 1326507024  ;;  %vm3176_vm15 = vcmp.lt.s32.totalorder %v11178_v3, 2 }
 0x1b7   : > { %vm8727_vm7 = vcmp.lt.s32.totalorder %v8726_v56, 0  ;;  %v3015_v31 = vsel %vm3011_vm9, %v2999_v30, %v3014_v10  ;;  %v3019_v53 = vsel %vm3011_vm9, %v3002_v1, %v3018_v45  ;;  %v3023_v25 = vsel %vm3011_vm9, %v3005_v15, %v3022_v57 }
 0x1b8   : > { %vm13926_vm1 = vweird.f32 %v10861_v11  ;;  %v3360_v28 = vsel %vm8727_vm7, 0, %v8726_v56  ;;  %v3376_v20 = vsel %vm3291_vm3, %v3375_v16, %v3351_v18  ;;  %v3020_v21 = vsel %vm3010_vm13, %v3017_v35, %v3019_v53 }
 0x1b9   : > { %v3024_v7 = vsel %vm3010_vm13, %v3021_v23, %v3023_v25  ;;  %v3361_v43 = vsub.s32 32, %v3360_v28  ;;  %v3362_v24 = vshll.u32 %v11186_v6, %v3360_v28  ;;  %v3365_v50 = vsub.s32 4294967266, %v3360_v28 }
 0x1ba   : > { %v3016_v9 = vsel %vm3010_vm13, %v3013_v27, %v3015_v31  ;;  %v11225_v30 = vmul.u32.u64.low %v11184_v29, %v3024_v7  ;;  %v11226_v1 = vmul.u32.u64.high %v11184_v29, %v3024_v7, %v11225_v30  ;;  %vm3177_vm5 = vcmp.eq.s32.totalorder %v11178_v3, 0 }
 0x1bb   : > { %v11229_v15 = vmul.u32.u64.low %v11184_v29, %v3020_v21  ;;  %v11230_v49 = vmul.u32.u64.high %v11184_v29, %v3020_v21, %v11229_v15  ;;  %v3363_v18 = vshrl.u32 %v11182_v39, %v3361_v43  ;;  %v3366_v16 = vadd.s32 127, %v3365_v50 }
 0x1bc   : > { %vm3196_vm9 = vcmp.gt.s32.totalorder %v3195_v63, 0  ;;  %vm3180_vm11 = vcmp.eq.s32.totalorder %v11178_v3, 2  ;;  %v11238_v60 = vsel %vm11209_vm6, 0, %v3376_v20  ;;  %v14070_v6 = vand.u32 2147483647, %v11155_v41 }
 0x1bd   : > { %v3197_v56 = vsel %vm3196_vm9, %v3195_v63, 0  ;;  %v3364_v35 = vor.u32 %v3363_v18, %v3362_v24  ;;  %v3367_v10 = vshll.u32 %v3366_v16, 23  ;;  %v3032_v45 = vmul.u32 %v11184_v29, %v3016_v9 }
 0x1be   : > { %v3192_v33 = vand.u32 8388607, %v14070_v6  ;;  %v11242_v27 = vpop.eup %9381  ;;  %v3199_v23 = vand.u32 31, %v3197_v56  ;;  %vm3034_vm13 = vc.u32 %v11226_v1, %v11229_v15  ;;  %v3035_v31 = vadd.s32 1, %v11230_v49 }
 0x1bf   : > { %v11245_v39 = vpop.eup %9383  ;;  %v13920_v57 = vxor.u32 2147483648, %v11242_v27  ;;  %v11252_v53 = vand.u32 3, %v10375_v2  ;;  %v3368_v25 = vor.u32 4788187, %v3367_v10  ;;  %v3371_v28 = vcvt.s32.f32 %v3364_v35 }
 0x1c0   : > { %v13921_v63 = vxor.u32 2147483648, %v11245_v39  ;;  %v3200_v20 = vsub.s32 32, %v3199_v23  ;;  %v3382_v21 = vadd.s32 3, %v11238_v60  ;;  %v3036_v7 = vsel %vm3034_vm13, %v3035_v31, %v11230_v49 }
 0x1c1   : > { %v3182_v29 = vsel %vm3180_vm11, %v13920_v57, %v11245_v39  ;;  %v3193_v43 = vor.u32 8388608, %v3192_v33  ;;  %v3369_v24 = vand.u32 2147483647, %v3368_v25  ;;  %v3037_v50 = vadd.s32 %v3036_v7, %v3032_v45 }
 0x1c2   : > { %v3179_v2 = vsel %vm3177_vm5, %v11242_v27, %v13921_v63  ;;  %v3202_v9 = vshll.u32 %v14044_v42, %v3199_v23  ;;  %v3203_v18 = vshrl.u32 %v14055_v4, %v3200_v20  ;;  %v3205_v16 = vshll.u32 %v14055_v4, %v3199_v23 }
 0x1c3   : > { %v3183_v30 = vsel %vm3176_vm15, %v3179_v2, %v3182_v29  ;;  %v3206_v49 = vshrl.u32 %v14056_v19, %v3200_v20  ;;  %v3372_v33 = vmul.f32 %v3371_v28, %v3369_v24  ;;  %v3038_v35 = vadd.s32 536870912, %v3037_v50 }
 0x1c4   : > { %v3184_v6 = vsel %vm13926_vm1, nan, %v3183_v30  ;;  %v3198_v10 = vshrl.u32 %v3197_v56, 5  ;;  %v3208_v45 = vshll.u32 %v14056_v19, %v3199_v23  ;;  %v3209_v25 = vshrl.u32 %v14043_v54, %v3200_v20 }
 0x1c5   : > { %v8939_v31 = vpack.c.bf16 %v10096_v36, %v3184_v6  ;;  %v3211_v3 = vshll.u32 %v14043_v54, %v3199_v23  ;;  %v3373_v29 = vxor.u32 2147483648, %v3372_v33  ;;  %v3039_v7 = vshrl.u32 %v3038_v35, 30 }
 0x1c6   : > { %v3201_v2 = vshrl.u32 %v14044_v42, %v3200_v20  ;;  %v3212_v57 = vshrl.u32 %v14057_v13, %v3200_v20  ;;  %vm2979_vm15 = vcmp.lt.s32.totalorder %v11048_v5, 0  ;;  %v3204_v28 = vor.u32 %v3203_v18, %v3202_v9 }
 0x1c7   : > { %8940 = vmatprep.subr.bf16.mxu0 %v8939_v31  ;;  %v3207_v24 = vor.u32 %v3206_v49, %v3205_v16  ;;  %v3214_v56 = vshll.u32 %v14057_v13, %v3199_v23  ;;  %v3215_v36 = vshrl.u32 %v14058_v22, %v3200_v20  ;;  %v3374_v30 = vsel %vm3291_vm3, %v3373_v29, %v3372_v33 }
 0x1c8   : > { %v3040_v6 = vshll.u32 %v3039_v7, 30  ;;  %v3213_v63 = vor.u32 %v3212_v57, %v3211_v3  ;;  %vm3217_vm7 = vcmp.lt.s32.totalorder %v3198_v10, 1  ;;  %v3377_v35 = vsel %vm11209_vm6, %v10923_v0, %v3374_v30 }
 0x1c9   : > { %v3210_v54 = vor.u32 %v3209_v25, %v3208_v45  ;;  %v3216_v31 = vor.u32 %v3215_v36, %v3214_v56  ;;  %vm3220_vm5 = vcmp.lt.s32.totalorder %v3198_v10, 4  ;;  %9385 = vcosq.f32 %v3377_v35 }
 0x1ca   : > { %v11289_v9 = vsub.s32 %v3037_v50, %v3040_v6  ;;  %vm3219_vm9 = vcmp.lt.s32.totalorder %v3198_v10, 3  ;;  %v3233_v23 = vshll.u32 %v3193_v43, 8  ;;  %9387 = vsinq.f32 %v3377_v35 }
 0x1cb   : > { %vm3218_vm11 = vcmp.lt.s32.totalorder %v3198_v10, 2  ;;  %v3222_v20 = vsel %vm3220_vm5, %v3210_v54, 2102212464  ;;  %v3225_v18 = vsel %vm3217_vm7, %v3204_v28, %v3207_v24  ;;  %v3383_v57 = vand.u32 3, %v3382_v21 }
 0x1cc   : > { %v3043_v16 = vsub.s32 0, %v11289_v9  ;;  %v3063_v49 = vsub.s32 4, %v3039_v7  ;;  %v3226_v17 = vsel %vm3220_vm5, %v3213_v63, 920167782  ;;  %v3221_v33 = vsel %vm3217_vm7, %v3201_v2, %v3204_v28  ;;  %v14090_v2 = vld [vmem:[#allocation18_spill] sm:$0xff] }
 0x1cd   : > { %v3227_v45 = vsel %vm3219_vm9, %v3210_v54, %v3226_v17  ;;  %v3229_v50 = vsel %vm3217_vm7, %v3207_v24, %v3210_v54  ;;  %v3230_v43 = vsel %vm3220_vm5, %v3216_v31, 1326507024  ;;  %v3223_v3 = vsel %vm3219_vm9, %v3207_v24, %v3222_v20 }
 0x1ce   : > { %v8713_v25 = vmin.u32 %v3043_v16, %v11289_v9  ;;  %v3228_v29 = vsel %vm3218_vm11, %v3225_v18, %v3227_v45  ;;  %v3231_v21 = vsel %vm3219_vm9, %v3213_v63, %v3230_v43  ;;  %vm3381_vm3 = vweird.f32 %v10923_v0 }
 0x1cf   : > { %v14071_v56 = vand.u32 2147483647, %v11048_v5  ;;  %v3232_v54 = vsel %vm3218_vm11, %v3229_v50, %v3231_v21  ;;  %v11311_v28 = vmul.u32.u64.low %v3233_v23, %v3228_v29  ;;  %v11312_v36 = vmul.u32.u64.high %v3233_v23, %v3228_v29, %v11311_v28 }
 0x1d0   : > { %vm3384_vm13 = vcmp.lt.s32.totalorder %v3383_v57, 2  ;;  %v3045_v24 = vclz %v8713_v25  ;;  %v3064_v30 = vsel %vm2979_vm15, %v3063_v49, %v3039_v7  ;;  %v5653_v63 = vand.u32 3, %v10437_v40 }
 0x1d1   : > { %vm11306_vm6 = vcmp.le.f32.partialorder %v14071_v56, 0.7853982  ;;  %v3224_v6 = vsel %vm3218_vm11, %v3221_v33, %v3223_v3  ;;  %v11319_v35 = vmul.u32.u64.low %v3233_v23, %v3232_v54  ;;  %v11320_v31 = vmul.u32.u64.high %v3233_v23, %v3232_v54, %v11319_v35 }
 0x1d2   : > { %vm4831_vm7 = vcmp.eq.s32.totalorder %v11252_v53, 0  ;;  %vm3385_vm5 = vcmp.eq.s32.totalorder %v3383_v57, 0  ;;  %vm3388_vm9 = vcmp.eq.s32.totalorder %v3383_v57, 2  ;;  %v8714_v20 = vadd.s32 4294967294, %v3045_v24 }
 0x1d3   : > { %vm4830_vm4 = vcmp.lt.s32.totalorder %v11252_v53, 2  ;;  %v3033_v18 = vadd.s32 %v11229_v15, %v11226_v1  ;;  %v11328_v7 = vsel %vm11306_vm6, 0, %v3064_v30  ;;  %v3243_v40 = vadd.s32 1, %v11312_v36  ;;  %v11332_v10 = vpop.eup %9385 }
 0x1d4   : > { %vm4834_vm11 = vcmp.eq.s32.totalorder %v11252_v53, 2  ;;  %vm8715_vm0 = vcmp.lt.s32.totalorder %v8714_v20, 0  ;;  %v3240_v16 = vmul.u32 %v3233_v23, %v3224_v6  ;;  %v14074_v49 = vxor.u32 2147483648, %v10462_v62  ;;  %v11337_v33 = vpop.eup %9387 }
 0x1d5   : > { %vm5655_vm10 = vcmp.eq.s32.totalorder %v5653_v63, 0  ;;  %v3389_v1 = vxor.u32 2147483648, %v11332_v10  ;;  %v3048_v15 = vsel %vm8715_vm0, 0, %v8714_v20  ;;  %vm3242_vm1 = vc.u32 %v11320_v31, %v11311_v28 }
 0x1d6   : > { %v4833_v17 = vsel %vm4831_vm7, %v10455_v59, %v14074_v49  ;;  %vm5658_vm8 = vcmp.eq.s32.totalorder %v5653_v63, 2  ;;  %v3386_v45 = vxor.u32 2147483648, %v11337_v33  ;;  %v3049_v50 = vsub.s32 32, %v3048_v15 }
 0x1d7   : > { %v3050_v43 = vshll.u32 %v11289_v9, %v3048_v15  ;;  %v3053_v23 = vsub.s32 4294967266, %v3048_v15  ;;  %v3390_v25 = vsel %vm3388_vm9, %v3389_v1, %v11337_v33  ;;  %v3244_v3 = vsel %vm3242_vm1, %v3243_v40, %v11312_v36 }
 0x1d8   : > { %v14075_v29 = vxor.u32 2147483648, %v10455_v59  ;;  %vm5654_vm0 = vcmp.lt.s32.totalorder %v5653_v63, 2  ;;  %v3387_v9 = vsel %vm3385_vm5, %v11332_v10, %v3386_v45  ;;  %v3051_v56 = vshrl.u32 %v3033_v18, %v3049_v50 }
 0x1d9   : > { %v3054_v54 = vadd.s32 127, %v3053_v23  ;;  %v3245_v24 = vadd.s32 %v3244_v3, %v3240_v16  ;;  %v3391_v30 = vsel %vm3384_vm13, %v3387_v9, %v3390_v25  ;;  %v14076_v6 = vxor.u32 2147483648, %v10531_v34 }
 0x1da   : > { %v4836_v21 = vsel %vm4834_vm11, %v14075_v29, %v10462_v62  ;;  %v14077_v59 = vxor.u32 2147483648, %v10522_v8  ;;  %v11367_v35 = vand.u32 3, %v10610_v38  ;;  %v3392_v20 = vsel %vm3381_vm3, nan, %v3391_v30 }
 0x1db   : > { %v5657_v36 = vsel %vm5655_vm10, %v10522_v8, %v14076_v6  ;;  %v3052_v18 = vor.u32 %v3051_v56, %v3050_v43  ;;  %v3055_v40 = vshll.u32 %v3054_v54, 23  ;;  %v3246_v16 = vadd.s32 536870912, %v3245_v24 }
 0x1dc   : > { %v5660_v62 = vsel %vm5658_vm8, %v14077_v59, %v10531_v34  ;;  %v8971_v57 = vpack.c.bf16 %v10148_v32, %v3392_v20  ;;  %v3070_v49 = vadd.s32 3, %v11328_v7  ;;  %v4837_v15 = vsel %vm4830_vm4, %v4833_v17, %v4836_v21  ;;  %v11579_v17 = vld [vmem:[%s11517_s10 + $0x40] sm:$0xff] }
 0x1dd   : > { %v3056_v50 = vor.u32 4788187, %v3055_v40  ;;  %v3059_v23 = vcvt.s32.f32 %v3052_v18  ;;  %v3247_v8 = vshrl.u32 %v3246_v16, 30  ;;  %v5859_v34 = vand.u32 3, %v10630_v61  ;;  %v14086_v18 = vld [vmem:[#allocation15_spill] sm:$0xff] }
 0x1de   : > { %8972 = vmatprep.subr.bf16.mxu1 %v8971_v57  ;;  %vm3187_vm10 = vcmp.lt.s32.totalorder %v11155_v41, 0  ;;  %v5661_v38 = vsel %vm5654_vm0, %v5657_v36, %v5660_v62  ;;  %vm5037_vm8 = vcmp.eq.s32.totalorder %v11367_v35, 0  ;;  %vm5040_vm1 = vcmp.eq.s32.totalorder %v11367_v35, 2  ;;  %v14084_v62 = vld [vmem:[#allocation16_spill] sm:$0xff] }
 0x1df   : > { %v3057_v43 = vand.u32 2147483647, %v3056_v50  ;;  %v3248_v25 = vshll.u32 %v3247_v8, 30  ;;  %v11380_v32 = vand.u32 3, %v3070_v49  ;;  %v14078_v53 = vand.u32 2147483647, %v11155_v41 }
 0x1e0   : > { %v3271_v61 = vsub.s32 4, %v3247_v8  ;;  %v11390_v3 = vsel %vm1509_vm12, nan, %v4837_v15  ;;  %v4726_v63 = vand.u32 3, %v10783_v12  ;;  %vm5861_vm13 = vcmp.eq.s32.totalorder %v5859_v34, 0 }
 0x1e1   : > { %vm11384_vm4 = vcmp.le.f32.partialorder %v14078_v53, 0.7853982  ;;  %v3060_v29 = vmul.f32 %v3059_v23, %v3057_v43  ;;  %v11393_v21 = vsub.s32 %v3245_v24, %v3248_v25  ;;  %v5550_v9 = vand.u32 3, %v10850_v48  ;;  %v14089_v23 = vld [vmem:[#allocation19_spill] sm:$0xff]  ;;  %v14092_v43 = vld [vmem:[#allocation17_spill] sm:$0xff] }
 0x1e2   : > { %v11398_v56 = vsel %vm2341_vm2, nan, %v5661_v38  ;;  %vm5036_vm7 = vcmp.lt.s32.totalorder %v11367_v35, 2  ;;  %v14081_v54 = vxor.u32 2147483648, %v10655_v44  ;;  %v14082_v30 = vxor.u32 2147483648, %v10649_v55 }
 0x1e3   : > { %v3061_v6 = vxor.u32 2147483648, %v3060_v29  ;;  %v3251_v24 = vsub.s32 0, %v11393_v21  ;;  %vm5860_vm12 = vcmp.lt.s32.totalorder %v5859_v34, 2  ;;  %vm4728_vm5 = vcmp.eq.s32.totalorder %v4726_v63, 0 }
 0x1e4   : > { %v5039_v14 = vsel %vm5037_vm8, %v10649_v55, %v14081_v54  ;;  %v5042_v12 = vsel %vm5040_vm1, %v14082_v30, %v10655_v44  ;;  %v3272_v52 = vsel %vm3187_vm10, %v3271_v61, %v3247_v8  ;;  %v14083_v48 = vxor.u32 2147483648, %v10764_v26 }
 0x1e5   : > { %vm5864_vm2 = vcmp.eq.s32.totalorder %v5859_v34, 2  ;;  %vm4731_vm9 = vcmp.eq.s32.totalorder %v4726_v63, 2  ;;  %v3062_v59 = vsel %vm2979_vm15, %v3061_v6, %v3060_v29  ;;  %v8721_v55 = vmin.u32 %v3251_v24, %v11393_v21 }
 0x1e6   : > { %v5863_v36 = vsel %vm5861_vm13, %v10756_v58, %v14083_v48  ;;  %vm4727_vm11 = vcmp.lt.s32.totalorder %v4726_v63, 2  ;;  %vm5552_vm0 = vcmp.eq.s32.totalorder %v5550_v9, 0  ;;  %v3065_v44 = vsel %vm11306_vm6, %v11048_v5, %v3062_v59  ;;  %v14095_v48 = vld [vmem:[#allocation12_spill] sm:$0xff] }
 0x1e7   : > { %v14085_v20 = vxor.u32 2147483648, %v14084_v62  ;;  %v14087_v16 = vxor.u32 2147483648, %v14086_v18  ;;  %vm5555_vm8 = vcmp.eq.s32.totalorder %v5550_v9, 2  ;;  %9389 = vcosq.f32 %v3065_v44 }
 0x1e8   : > { %v3253_v49 = vclz %v8721_v55  ;;  %v14088_v15 = vxor.u32 2147483648, %v10756_v58  ;;  %v11429_v8 = vand.u32 3, %v14089_v23  ;;  %9391 = vsinq.f32 %v3065_v44 }
 0x1e9   : > { %v4730_v40 = vsel %vm4728_vm5, %v14086_v18, %v14085_v20  ;;  %v4733_v57 = vsel %vm4731_vm9, %v14087_v16, %v14084_v62  ;;  %vm5551_vm15 = vcmp.lt.s32.totalorder %v5550_v9, 2  ;;  %v14091_v38 = vxor.u32 2147483648, %v14090_v2 }
 0x1ea   : > { %v5866_v50 = vsel %vm5864_vm2, %v14088_v15, %v10764_v26  ;;  %v14093_v53 = vxor.u32 2147483648, %v14092_v43  ;;  %vm3076_vm6 = vcmp.eq.s32.totalorder %v11380_v32, 2  ;;  %v3241_v29 = vadd.s32 %v11311_v28, %v11320_v31 }
 0x1eb   : > { %v5554_v25 = vsel %vm5552_vm0, %v14092_v43, %v14091_v38  ;;  %v8722_v58 = vadd.s32 4294967294, %v3253_v49  ;;  %v11442_v26 = vsel %vm11384_vm4, 0, %v3272_v52  ;;  %v4734_v9 = vsel %vm4727_vm11, %v4730_v40, %v4733_v57  ;;  %v14101_v38 = vld [vmem:[#allocation21_spill] sm:$0xff] }
 0x1ec   : > { %v5557_v61 = vsel %vm5555_vm8, %v14093_v53, %v14090_v2  ;;  %vm3073_vm1 = vcmp.eq.s32.totalorder %v11380_v32, 0  ;;  %v8943_v54 = vpack.c.bf16 %v11398_v56, %v11390_v3  ;;  %v11450_v30 = vsel %vm5036_vm7, %v5039_v14, %v5042_v12  ;;  %v7114_v56 = vld [vmem:[%s11517_s10 + $0x48] sm:$0xff] }
 0x1ed   : > { %v11453_v6 = vsel %vm5860_vm12, %v5863_v36, %v5866_v50  ;;  %v5756_v28 = vand.u32 3, %v11027_v47  ;;  %vm3072_vm13 = vcmp.lt.s32.totalorder %v11380_v32, 2  ;;  %vm8723_vm5 = vcmp.lt.s32.totalorder %v8722_v58, 0 }
 0x1ee   : > { %v5558_v31 = vsel %vm5551_vm15, %v5554_v25, %v5557_v61  ;;  %vm4934_vm2 = vcmp.eq.s32.totalorder %v11429_v8, 0  ;;  %v6477_v63 = vand.u32 3, %v11147_v46  ;;  %vm3069_vm9 = vweird.f32 %v11048_v5  ;;  %v14103_v25 = vld [vmem:[#allocation20_spill] sm:$0xff] }
 0x1ef   : > { %v3256_v24 = vsel %vm8723_vm5, 0, %v8722_v58  ;;  %v3278_v35 = vadd.s32 3, %v11442_v26  ;;  %v11463_v34 = vsel %vm1405_vm14, nan, %v4734_v9  ;;  %vm4933_vm7 = vcmp.lt.s32.totalorder %v11429_v8, 2 }
 0x1f0   : > { %v3257_v47 = vsub.s32 32, %v3256_v24  ;;  %v3258_v12 = vshll.u32 %v11393_v21, %v3256_v24  ;;  %v3261_v52 = vsub.s32 4294967266, %v3256_v24  ;;  %vm4937_vm12 = vcmp.eq.s32.totalorder %v11429_v8, 2  ;;  %v14107_v8 = vld [vmem:[#allocation7_spill] sm:$0xff] }
 0x1f1   : > { %vm14096_vm11 = vweird.f32 %v14095_v48  ;;  %v14097_v36 = vxor.u32 2147483648, %v11053_v37  ;;  %vm5758_vm0 = vcmp.eq.s32.totalorder %v5756_v28, 0  ;;  %vm6479_vm8 = vcmp.eq.s32.totalorder %v6477_v63, 0  ;;  %v9390_v16 = vpop.eup %9389 }
 0x1f2   : > { %v11470_v46 = vsel %vm14096_vm11, nan, %v5558_v31  ;;  %v3259_v55 = vshrl.u32 %v3241_v29, %v3257_v47  ;;  %v3262_v44 = vadd.s32 127, %v3261_v52  ;;  %vm6478_vm14 = vcmp.lt.s32.totalorder %v6477_v63, 2  ;;  %v9392_v23 = vpop.eup %9391 }
 0x1f3   : > { %v4936_v59 = vsel %vm4934_vm2, %v11050_v51, %v14097_v36  ;;  %v14098_v21 = vxor.u32 2147483648, %v11245_v39  ;;  %v14099_v20 = vxor.u32 2147483648, %v11050_v51  ;;  %vm5757_vm15 = vcmp.lt.s32.totalorder %v5756_v28, 2  ;;  %v14105_v36 = vld [vmem:[#allocation8_spill] sm:$0xff] }
 0x1f4   : > { %vm6482_vm5 = vcmp.eq.s32.totalorder %v6477_v63, 2  ;;  %v6683_v40 = vand.u32 3, %v11238_v60  ;;  %v3260_v57 = vor.u32 %v3259_v55, %v3258_v12  ;;  %v3263_v49 = vshll.u32 %v3262_v44, 23  ;;  %v14109_v55 = vld [vmem:[#allocation9_spill] sm:$0xff] }
 0x1f5   : > { %v6481_v62 = vsel %vm6479_vm8, %v11242_v27, %v14098_v21  ;;  %v4939_v18 = vsel %vm4937_vm12, %v14099_v20, %v11053_v37  ;;  %vm5761_vm2 = vcmp.eq.s32.totalorder %v5756_v28, 2  ;;  %v14100_v15 = vxor.u32 2147483648, %v11242_v27 }
 0x1f6   : > { %v3077_v2 = vxor.u32 2147483648, %v9390_v16  ;;  %v14102_v43 = vxor.u32 2147483648, %v14101_v38  ;;  %v6374_v53 = vand.u32 3, %v11328_v7  ;;  %v3074_v60 = vxor.u32 2147483648, %v9392_v23 }
 0x1f7   : > { %v6484_v50 = vsel %vm6482_vm5, %v14100_v15, %v11245_v39  ;;  %v3264_v61 = vor.u32 4788187, %v3263_v49  ;;  %v3267_v29 = vcvt.s32.f32 %v3260_v57  ;;  %vm6684_vm12 = vcmp.lt.s32.totalorder %v6683_v40, 2  ;;  %v7105_v57 = vld [vmem:[%s11517_s10] sm:$0xff]  ;;  %v11558_v49 = vld [vmem:[%s9799_s25 + $0x38] sm:$0xff] }
 0x1f8   : > { %v5760_v51 = vsel %vm5758_vm0, %v14103_v25, %v14102_v43  ;;  %v6485_v37 = vsel %vm6478_vm14, %v6481_v62, %v6484_v50  ;;  %v3078_v58 = vsel %vm3076_vm6, %v3077_v2, %v9392_v23  ;;  %v14104_v27 = vxor.u32 2147483648, %v14103_v25  ;;  %v14111_v62 = vld [vmem:[#allocation13_spill] sm:$0xff]  ;;  %v11566_v15 = vld [vmem:[%s11517_s10 + $0x58] sm:$0xff]  ;;  %v7130_v25 = vld [vmem:[%s11517_s10 + $0xc8] sm:$0xff] }
 0x1f9   : > { %vm6685_vm11 = vcmp.eq.s32.totalorder %v6683_v40, 0  ;;  %vm6688_vm8 = vcmp.eq.s32.totalorder %v6683_v40, 2  ;;  %v3075_v9 = vsel %vm3073_vm1, %v9390_v16, %v3074_v60  ;;  %v3265_v31 = vand.u32 2147483647, %v3264_v61  ;;  %v11552_v40 = vld [vmem:[%s11517_s10 + $0x18] sm:$0xff]  ;;  %v7121_v43 = vld [vmem:[%s11517_s10 + $0x80] sm:$0xff] }
 0x1fa   : > { %v5763_v39 = vsel %vm5761_vm2, %v14104_v27, %v14101_v38  ;;  %v6687_v7 = vsel %vm6685_vm11, %v11332_v10, %v3386_v45  ;;  %v6690_v63 = vsel %vm6688_vm8, %v3389_v1, %v11337_v33  ;;  %v3079_v24 = vsel %vm3072_vm13, %v3075_v9, %v3078_v58  ;;  %v7106_v1 = vld [vmem:[%s11517_s10 + $0x8] sm:$0xff]  ;;  %v11599_v61 = vld [vmem:[%s11517_s10 + $0x90] sm:$0xff]  ;;  %v11605_v58 = vld [vmem:[%s11517_s10 + $0x118] sm:$0xff] }
 0x1fb   : > { %v4940_v14 = vsel %vm4933_vm7, %v4936_v59, %v4939_v18  ;;  %v6691_v47 = vsel %vm6684_vm12, %v6687_v7, %v6690_v63  ;;  %vm6376_vm6 = vcmp.eq.s32.totalorder %v6374_v53, 0  ;;  %v3080_v12 = vsel %vm3069_vm9, nan, %v3079_v24  ;;  %v11540_v18 = vld [vmem:[%s9799_s25 + $0x28] sm:$0xff]  ;;  %v11619_v24 = vld [vmem:[%s11517_s10 + $0xd0] sm:$0xff] }
 0x1fc   : > { %v3268_v52 = vmul.f32 %v3267_v29, %v3265_v31  ;;  %vm6375_vm1 = vcmp.lt.s32.totalorder %v6374_v53, 2  ;;  %v6378_v48 = vsel %vm6376_vm6, %v9390_v16, %v3074_v60  ;;  %v8941_v45 = vpack.c.bf16 %v14105_v36, %v3080_v12  ;;  %v11596_v60 = vld [vmem:[%s11517_s10 + $0x50] sm:$0xff]  ;;  %v11602_v29 = vld [vmem:[%s11517_s10 + $0xd8] sm:$0xff]  ;;  %v11615_v7 = vld [vmem:[%s11517_s10 + $0xc0] sm:$0xff] }
 0x1fd   : > { %v5764_v10 = vsel %vm5757_vm15, %v5760_v51, %v5763_v39  ;;  %vm14106_vm0 = vweird.f32 %v10861_v11  ;;  %vm6379_vm13 = vcmp.eq.s32.totalorder %v6374_v53, 2  ;;  %vm14108_vm7 = vweird.f32 %v14107_v8  ;;  %v7138_v51 = vld [vmem:[%s11517_s10 + $0x108] sm:$0xff]  ;;  %v7137_v63 = vld [vmem:[%s11517_s10 + $0x100] sm:$0xff]  ;;  %v11638_v36 = vld [vmem:[%s11517_s10 + $0x158] sm:$0xff] }
 0x1fe   : > { %v6486_v33 = vsel %vm14106_vm0, nan, %v6485_v37  ;;  %v3269_v32 = vxor.u32 2147483648, %v3268_v52  ;;  %v11523_v59 = vsel %vm14108_vm7, nan, %v11450_v30  ;;  %vm14110_vm14 = vweird.f32 %v14109_v55  ;;  %8942 = vmatpush1.bf16.msra.mxu0 %v8941_v45  ;;  %v11592_v37 = vld [vmem:[%s9799_s25 + $0x20] sm:$0xff]  ;;  %v11628_v12 = vld [vmem:[%s11517_s10 + $0x188] sm:$0xff] }
 0x1ff   : > { %v11528_v28 = vsel %vm14110_vm14, nan, %v11453_v6  ;;  %v6381_v11 = vsel %vm6379_vm13, %v3077_v2, %v9392_v23  ;;  %v11530_v44 = vand.u32 3, %v3278_v35  ;;  %v8945_v21 = vpack.c.bf16 %v11470_v46, %v11463_v34  ;;  %8944 = vmatprep.subr.bf16.mxu0 %v8943_v54  ;;  %v14113_v35 = vld [vmem:[#allocation14_spill] sm:$0xff]  ;;  %v11576_v23 = vld [vmem:[%s11517_s10 + $0x98] sm:$0xff]  ;;  %14115 = vst [vmem:[#allocation16_spill] sm:$0xff] %v11592_v37 }
 0x200   : > { %vm14112_vm15 = vweird.f32 %v14111_v62  ;;  %v6382_v20 = vsel %vm6375_vm1, %v6378_v48, %v6381_v11  ;;  %v3270_v6 = vsel %vm3187_vm10, %v3269_v32, %v3268_v52  ;;  %vm14114_vm5 = vweird.f32 %v14113_v35  ;;  %v7122_v54 = vld [vmem:[%s11517_s10 + $0x88] sm:$0xff]  ;;  %v7145_v32 = vld [vmem:[%s11517_s10 + $0x140] sm:$0xff]  ;;  %v11653_v62 = vld [vmem:[%s11517_s10 + $0x150] sm:$0xff] }
 0x201   : > { %v11536_v30 = vsel %vm14112_vm15, nan, %v4940_v14  ;;  %v11549_v34 = vsel %vm14114_vm5, nan, %v5764_v10  ;;  %v8947_v46 = vpack.c.bf16 %v7106_v1, %v6486_v33  ;;  %v6383_v16 = vsel %vm3069_vm9, nan, %v6382_v20  ;;  %v7170_v2 = vld [vmem:[%s13864_s2 + $0x8] sm:$0xff]  ;;  %v11622_v14 = vld [vmem:[%s11517_s10 + $0x110] sm:$0xff]  ;;  %v11646_v1 = vld [vmem:[%s11517_s10 + $0x198] sm:$0xff] }
 0x202   : > { %v3273_v3 = vsel %vm11384_vm4, %v11155_v41, %v3270_v6  ;;  %v11570_v5 = vsel %vm3381_vm3, nan, %v6691_v47  ;;  %v11573_v50 = vand.u32 3, %v11442_v26  ;;  %v8975_v0 = vpack.c.bf16 %v11528_v28, %v11523_v59  ;;  %8946 = vmatpush1.bf16.msra.mxu0 %v8945_v21  ;;  %v11625_v47 = vld [vmem:[%s11517_s10 + $0x148] sm:$0xff]  ;;  %v7153_v21 = vld [vmem:[%s11517_s10 + $0x180] sm:$0xff]  ;;  %v11656_v20 = vld [vmem:[%s11517_s10 + $0x190] sm:$0xff] }
 0x203   : > { %9393 = vcosq.f32 %v3273_v3  ;;  %v8977_v26 = vpack.c.bf16 %v11549_v34, %v11536_v30  ;;  %v8949_v38 = vpack.c.bf16 %v7105_v57, %v6383_v16  ;;  %vm3284_vm3 = vcmp.eq.s32.totalorder %v11530_v44, 2  ;;  %8948 = vmatprep.subr.bf16.mxu0 %v8947_v46 }
 0x204   : > { %9395 = vsinq.f32 %v3273_v3  ;;  %v8951_v53 = vpack.c.bf16 %v7122_v54, %v7114_v56  ;;  %vm14007_vm10 = vcmask 64512   ;;  %v13929_v27 = vand.u32 2147483647, %v11540_v18 }
 0x205   : > { %v1004_v39 = vand.u32 2139095040, %v11540_v18  ;;  %vm3281_vm4 = vcmp.eq.s32.totalorder %v11530_v44, 0  ;;  %v8979_v9 = vpack.c.bf16 %v11552_v40, %v11570_v5  ;;  %v8983_v31 = vpack.c.bf16 %v11576_v23, %v11566_v15  ;;  %8872 = vmatprep.mubr.msk.f32.mxu0 %vm14007_vm10, %v7170_v2  ;;  %8880 = vmatprep.mubr.msk.f32.mxu1 %vm14007_vm10, %v7170_v2 }
 0x206   : > { %v13928_v52 = vand.u32 2147483647, %v11558_v49  ;;  %v1212_v48 = vand.u32 2139095040, %v11558_v49  ;;  %vm3280_vm9 = vcmp.lt.s32.totalorder %v11530_v44, 2  ;;  %vm6581_vm2 = vcmp.lt.s32.totalorder %v11573_v50, 2  ;;  %8950 = vmatpush1.bf16.msra.mxu0 %v8949_v38 }
 0x207   : > { %vm6582_vm12 = vcmp.eq.s32.totalorder %v11573_v50, 0  ;;  %v1005_v45 = vshrl.u32 %v1004_v39, 23  ;;  %v1008_v10 = vand.u32 8388607, %v13929_v27  ;;  %vm3277_vm11 = vweird.f32 %v11155_v41  ;;  %8952 = vmatprep.subr.bf16.mxu0 %v8951_v53  ;;  %v7161_v27 = vld [vmem:[%s11517_s10 + $0x1c0] sm:$0xff] }
 0x208   : > { %vm6585_vm8 = vcmp.eq.s32.totalorder %v11573_v50, 2  ;;  %v8953_v33 = vpack.c.bf16 %v7121_v43, %v11579_v17  ;;  %v1213_v8 = vshrl.u32 %v1212_v48, 23  ;;  %v1216_v55 = vand.u32 8388607, %v13928_v52  ;;  %v14116_v52 = vld [vmem:[#allocation10_spill] sm:$0xff] }
 0x209   : > { %v8955_v11 = vpack.c.bf16 %v7138_v51, %v7130_v25  ;;  %v8636_v6 = vadd.s32 4294967169, %v1005_v45  ;;  %v1009_v35 = vor.u32 8388608, %v1008_v10  ;;  %v900_v46 = vand.u32 2139095040, %v11592_v37 }
 0x20a   : > { %v8985_v16 = vpack.c.bf16 %v11599_v61, %v11596_v60  ;;  %v8987_v57 = vpack.c.bf16 %v11605_v58, %v11602_v29  ;;  %v8644_v3 = vadd.s32 4294967169, %v1213_v8  ;;  %v1217_v56 = vor.u32 8388608, %v1216_v55  ;;  %8954 = vmatpush1.bf16.msra.mxu0 %v8953_v33 }
 0x20b   : > { %v8957_v54 = vpack.c.bf16 %v7137_v63, %v11615_v7  ;;  %v8989_v17 = vpack.c.bf16 %v11622_v14, %v11619_v24  ;;  %v8959_v2 = vpack.c.bf16 %v11628_v12, %v11625_v47  ;;  %v1011_v38 = vadd.s32 1, %v8636_v6  ;;  %8956 = vmatprep.subr.bf16.mxu0 %v8955_v11 }
 0x20c   : > { %v8991_v43 = vpack.c.bf16 %v11646_v1, %v11638_v36  ;;  %v8961_v25 = vpack.c.bf16 %v7153_v21, %v7145_v32  ;;  %v1219_v53 = vadd.s32 1, %v8644_v3  ;;  %v11672_v7 = vshll.u32 %v1009_v35, 8 }
 0x20d   : > { %v9394_v39 = vpop.eup %9393  ;;  %vm1012_vm6 = vcmp.gt.s32.totalorder %v1011_v38, 0  ;;  %v897_v63 = vand.u32 2147483647, %v11592_v37  ;;  %v11675_v48 = vshrl.u32 %v900_v46, 23  ;;  %v11677_v10 = vshll.u32 %v1217_v56, 8  ;;  %v11694_v56 = vld [vmem:[%s11517_s10 + $0x10] sm:$0xff] }
 0x20e   : > { %v9396_v47 = vpop.eup %9395  ;;  %v3285_v12 = vxor.u32 2147483648, %v9394_v39  ;;  %v1013_v45 = vsel %vm1012_vm6, %v1011_v38, 0  ;;  %vm1220_vm1 = vcmp.gt.s32.totalorder %v1219_v53, 0  ;;  %8958 = vmatpush1.bf16.msra.mxu0 %v8957_v54 }
 0x20f   : > { %v3282_v33 = vxor.u32 2147483648, %v9396_v47  ;;  %v11679_v32 = vshrl.u32 %v1013_v45, 5  ;;  %v1015_v8 = vand.u32 31, %v1013_v45  ;;  %v1221_v55 = vsel %vm1220_vm1, %v1219_v53, 0  ;;  %8960 = vmatprep.subr.bf16.mxu0 %v8959_v2 }
 0x210   : > { %v3286_v11 = vsel %vm3284_vm3, %v3285_v12, %v9396_v47  ;;  %v6587_v21 = vsel %vm6585_vm8, %v3285_v12, %v9396_v47  ;;  %v11685_v6 = vshrl.u32 %v1221_v55, 5  ;;  %v11687_v35 = vand.u32 31, %v1221_v55  ;;  %v7162_v12 = vld [vmem:[%s11517_s10 + $0x1c8] sm:$0xff] }
 0x211   : > { %v3283_v46 = vsel %vm3281_vm4, %v9394_v39, %v3282_v33  ;;  %v6584_v3 = vsel %vm6582_vm12, %v9394_v39, %v3282_v33  ;;  %v1016_v38 = vsub.s32 32, %v1015_v8  ;;  %v1018_v53 = vshll.u32 %v14044_v42, %v1015_v8 }
 0x212   : > { %v3287_v54 = vsel %vm3280_vm9, %v3283_v46, %v3286_v11  ;;  %v6588_v47 = vsel %vm6581_vm2, %v6584_v3, %v6587_v21  ;;  %v1021_v45 = vshll.u32 %v14055_v4, %v1015_v8  ;;  %v1024_v55 = vshll.u32 %v14056_v19, %v1015_v8  ;;  %8962 = vmatpush1.bf16.msra.mxu0 %v8961_v25 }
 0x213   : > { %v3288_v39 = vsel %vm3277_vm11, nan, %v3287_v54  ;;  %v6589_v2 = vsel %vm3277_vm11, nan, %v6588_v47  ;;  %v1017_v33 = vshrl.u32 %v14044_v42, %v1016_v38  ;;  %v1019_v44 = vshrl.u32 %v14055_v4, %v1016_v38  ;;  %7242 = vmatprep.subr.mxu0 %v7162_v12 }
 0x214   : > { %v8973_v11 = vpack.c.bf16 %v14116_v52, %v3288_v39  ;;  %v8981_v50 = vpack.c.bf16 %v11694_v56, %v6589_v2  ;;  %v1022_v21 = vshrl.u32 %v14056_v19, %v1016_v38  ;;  %v14117_v46 = vmov 2102212464   ;;  %v11721_v52 = vld [vmem:[%s13864_s2] sm:$0xff] }
 0x215   : > { %v1025_v3 = vshrl.u32 %v14117_v46, %v1016_v38  ;;  %v1020_v51 = vor.u32 %v1019_v44, %v1018_v53  ;;  %v1027_v54 = vshll.u32 %v14117_v46, %v1015_v8  ;;  %v1028_v41 = vshrl.u32 %v14057_v13, %v1016_v38 }
 0x216   : > { %v1030_v47 = vshll.u32 %v14057_v13, %v1015_v8  ;;  %8974 = vmatpush1.bf16.msra.mxu1 %v8973_v11  ;;  %v1023_v25 = vor.u32 %v1022_v21, %v1021_v45  ;;  %v1031_v39 = vshrl.u32 %v14058_v22, %v1016_v38  ;;  %vm1033_vm0 = vcmp.lt.s32.totalorder %v11679_v32, 1  ;;  %v11734_v8 = vld [vmem:[%s13864_s2 + $0x18] sm:$0xff]  ;;  %7243 = vmatpush1.msra.mxu0 %v7161_v27  ;;  %v11754_v11 = vld [vmem:[%s13864_s2 + $0x10] sm:$0xff] }
 0x217   : > { %v1026_v56 = vor.u32 %v1025_v3, %v1024_v55  ;;  %8976 = vmatprep.subr.bf16.mxu1 %v8975_v0  ;;  %v1029_v53 = vor.u32 %v1028_v41, %v1027_v54  ;;  %vm1034_vm13 = vcmp.lt.s32.totalorder %v11679_v32, 2  ;;  %vm1035_vm7 = vcmp.lt.s32.totalorder %v11679_v32, 3  ;;  %7275 = vmatmul.mubr.f32.vlgmr.msra.gmra.mrb[0].mxu0 %v11721_v52 }
 0x218   : > { %vm1036_vm14 = vcmp.lt.s32.totalorder %v11679_v32, 4  ;;  %v1032_v38 = vor.u32 %v1031_v39, %v1030_v47  ;;  %v1037_v12 = vsel %vm1033_vm0, %v1017_v33, %v1020_v51  ;;  %v1041_v55 = vsel %vm1033_vm0, %v1020_v51, %v1023_v25  ;;  %8873 = vmatprep.mubr.msk.f32.mxu0 %vm14007_vm10, %v11734_v8 }
 0x219   : > { %v1038_v45 = vsel %vm1036_vm14, %v1026_v56, 2102212464  ;;  %v1042_v28 = vsel %vm1036_vm14, %v1029_v53, 920167782  ;;  %v1045_v0 = vsel %vm1033_vm0, %v1023_v25, %v1026_v56  ;;  %v1224_v2 = vsub.s32 32, %v11687_v35 }
 0x21a   : > { %v1039_v59 = vsel %vm1035_vm7, %v1023_v25, %v1038_v45  ;;  %8978 = vmatpush1.bf16.msra.mxu1 %v8977_v26  ;;  %v1043_v33 = vsel %vm1035_vm7, %v1026_v56, %v1042_v28  ;;  %v1046_v51 = vsel %vm1036_vm14, %v1032_v38, 1326507024  ;;  %v1226_v44 = vshll.u32 %v14044_v42, %v11687_v35 }
 0x21b   : > { %v1040_v27 = vsel %vm1034_vm13, %v1037_v12, %v1039_v59  ;;  %8980 = vmatprep.subr.bf16.mxu1 %v8979_v9  ;;  %v1044_v30 = vsel %vm1034_vm13, %v1041_v55, %v1043_v33  ;;  %v1047_v34 = vsel %vm1035_vm7, %v1029_v53, %v1046_v51  ;;  %v1225_v21 = vshrl.u32 %v14044_v42, %v1224_v2 }
 0x21c   : > { %v1056_v26 = vmul.u32 %v11672_v7, %v1040_v27  ;;  %v1048_v3 = vsel %vm1034_vm13, %v1045_v0, %v1047_v34  ;;  %v11768_v54 = vmul.u32.u64.low %v11672_v7, %v1044_v30  ;;  %v11769_v41 = vmul.u32.u64.high %v11672_v7, %v1044_v30, %v11768_v54  ;;  %7281 = vmatmul.mubr.f32.gmra.mrb[2].mxu0 %v11754_v11 }
 0x21d   : > { %v1227_v40 = vshrl.u32 %v14055_v4, %v1224_v2  ;;  %v11774_v5 = vmul.u32.u64.low %v11672_v7, %v1048_v3  ;;  %v11775_v9 = vmul.u32.u64.high %v11672_v7, %v1048_v3, %v11774_v5  ;;  %v1229_v47 = vshll.u32 %v14055_v4, %v11687_v35  ;;  %v7164_v3 = vld [vmem:[%s11517_s10 + $0x1d8] sm:$0xff] }
 0x21e   : > { %v1230_v25 = vshrl.u32 %v14056_v19, %v1224_v2  ;;  %8982 = vmatpush1.bf16.msra.mxu1 %v8981_v50  ;;  %v1232_v56 = vshll.u32 %v14056_v19, %v11687_v35  ;;  %v1233_v39 = vshrl.u32 %v14117_v46, %v1224_v2  ;;  %v1235_v53 = vshll.u32 %v14117_v46, %v11687_v35 }
 0x21f   : > { %v1228_v32 = vor.u32 %v1227_v40, %v1226_v44  ;;  %8984 = vmatprep.subr.bf16.mxu1 %v8983_v31  ;;  %v1236_v38 = vshrl.u32 %v14057_v13, %v1224_v2  ;;  %v1238_v12 = vshll.u32 %v14057_v13, %v11687_v35  ;;  %v1239_v50 = vshrl.u32 %v14058_v22, %v1224_v2 }
 0x220   : > { %v1231_v7 = vor.u32 %v1230_v25, %v1229_v47  ;;  %v1059_v45 = vadd.s32 1, %v11769_v41  ;;  %v1234_v55 = vor.u32 %v1233_v39, %v1232_v56  ;;  %vm1241_vm15 = vcmp.lt.s32.totalorder %v11685_v6, 1  ;;  %v7163_v47 = vld [vmem:[%s11517_s10 + $0x1d0] sm:$0xff] }
 0x221   : > { %v8632_v59 = vadd.s32 4294967169, %v11675_v48  ;;  %vm1058_vm5 = vc.u32 %v11775_v9, %v11768_v54  ;;  %v1237_v15 = vor.u32 %v1236_v38, %v1235_v53  ;;  %v1240_v23 = vor.u32 %v1239_v50, %v1238_v12 }
 0x222   : > { %vm1242_vm3 = vcmp.lt.s32.totalorder %v11685_v6, 2  ;;  %8986 = vmatpush1.bf16.msra.mxu1 %v8985_v16  ;;  %v1060_v31 = vsel %vm1058_vm5, %v1059_v45, %v11769_v41  ;;  %vm1243_vm4 = vcmp.lt.s32.totalorder %v11685_v6, 3  ;;  %vm1244_vm9 = vcmp.lt.s32.totalorder %v11685_v6, 4 }
 0x223   : > { %v1245_v48 = vsel %vm1241_vm15, %v1225_v21, %v1228_v32  ;;  %8988 = vmatprep.subr.bf16.mxu1 %v8987_v57  ;;  %v1061_v35 = vadd.s32 %v1060_v31, %v1056_v26  ;;  %v1246_v28 = vsel %vm1244_vm9, %v1234_v55, 2102212464  ;;  %v1249_v0 = vsel %vm1241_vm15, %v1228_v32, %v1231_v7 }
 0x224   : > { %v1250_v60 = vsel %vm1244_vm9, %v1237_v15, 920167782  ;;  %v1247_v61 = vsel %vm1243_vm4, %v1231_v7, %v1246_v28  ;;  %v1253_v2 = vsel %vm1241_vm15, %v1231_v7, %v1234_v55  ;;  %v1254_v27 = vsel %vm1244_vm9, %v1240_v23, 1326507024 }
 0x225   : > { %v1251_v16 = vsel %vm1243_vm4, %v1234_v55, %v1250_v60  ;;  %v1062_v33 = vadd.s32 536870912, %v1061_v35  ;;  %v1255_v29 = vsel %vm1243_vm4, %v1237_v15, %v1254_v27  ;;  %v904_v58 = vand.u32 8388607, %v897_v63 }
 0x226   : > { %v1252_v51 = vsel %vm1242_vm3, %v1249_v0, %v1251_v16  ;;  %8990 = vmatpush1.bf16.msra.mxu1 %v8989_v17  ;;  %v1248_v57 = vsel %vm1242_vm3, %v1245_v48, %v1247_v61  ;;  %v1256_v44 = vsel %vm1242_vm3, %v1253_v2, %v1255_v29  ;;  %v907_v14 = vadd.s32 1, %v8632_v59  ;;  %v11837_v17 = vld [vmem:[%s9799_s25 + $0x30] sm:$0xff] }
 0x227   : > { %v11826_v30 = vmul.u32.u64.low %v11677_v10, %v1252_v51  ;;  %v11827_v34 = vmul.u32.u64.high %v11677_v10, %v1252_v51, %v11826_v30  ;;  %8992 = vmatprep.subr.bf16.mxu1 %v8991_v43  ;;  %v1063_v26 = vshrl.u32 %v1062_v33, 30  ;;  %14118 = vst [vmem:[#allocation15_spill] sm:$0xff] %v11837_v17  ;;  %v1264_v41 = vmul.u32 %v11677_v10, %v1248_v57 }
 0x228   : > { %v11833_v21 = vmul.u32.u64.low %v11677_v10, %v1256_v44  ;;  %v11834_v24 = vmul.u32.u64.high %v11677_v10, %v1256_v44, %v11833_v21  ;;  %vm908_vm2 = vcmp.gt.s32.totalorder %v907_v14, 0  ;;  %v14119_v40 = vpack.c.bf16 %v11656_v20, %v11653_v62 }
 0x229   : > { %v1064_v6 = vshll.u32 %v1063_v26, 30  ;;  %v1267_v36 = vadd.s32 1, %v11827_v34  ;;  %v905_v1 = vor.u32 8388608, %v904_v58  ;;  %v909_v43 = vsel %vm908_vm2, %v907_v14, 0 }
 0x22a   : > { %8994 = vmatpush1.bf16.msra.mxu1 %v14119_v40  ;;  %v1108_v5 = vand.u32 2139095040, %v11837_v17  ;;  %vm1266_vm12 = vc.u32 %v11834_v24, %v11826_v30  ;;  %v1105_v32 = vand.u32 2147483647, %v11837_v17  ;;  %v1087_v10 = vsub.s32 4, %v1063_v26 }
 0x22b   : > { %7355 = vmatprep.subr.mxu1 %v7164_v3  ;;  %v11847_v25 = vsub.s32 %v1061_v35, %v1064_v6  ;;  %v1268_v56 = vsel %vm1266_vm12, %v1267_v36, %v11827_v34  ;;  %v911_v39 = vand.u32 31, %v909_v43  ;;  %v14120_v62 = vand.u32 2147483647, %v11540_v18 }
 0x22c   : > { %vm1003_vm8 = vcmp.lt.s32.totalorder %v11540_v18, 0  ;;  %v1269_v7 = vadd.s32 %v1268_v56, %v1264_v41  ;;  %v1057_v38 = vadd.s32 %v11768_v54, %v11775_v9  ;;  %v11862_v50 = vshll.u32 %v905_v1, 8 }
 0x22d   : > { %vm11854_vm11 = vcmp.le.f32.partialorder %v14120_v62, 0.7853982  ;;  %v1067_v53 = vsub.s32 0, %v11847_v25  ;;  %v912_v12 = vsub.s32 32, %v911_v39  ;;  %v1109_v45 = vshrl.u32 %v1108_v5, 23 }
 0x22e   : > { %7356 = vmatpush1.msra.mxu1 %v7163_v47  ;;  %v1270_v59 = vadd.s32 536870912, %v1269_v7  ;;  %v11868_v15 = vand.u32 8388607, %v1105_v32  ;;  %v11871_v23 = vmul.f32 2.0, %v11540_v18  ;;  %v1088_v31 = vsel %vm1003_vm8, %v1087_v10, %v1063_v26 }
 0x22f   : > { %7388 = vmatmul.mubr.f32.vlgmr.msra.gmra.mrb[0].mxu1 %v11721_v52  ;;  %v8637_v55 = vmin.u32 %v1067_v53, %v11847_v25  ;;  %v914_v54 = vshll.u32 %v14044_v42, %v911_v39  ;;  %v917_v9 = vshll.u32 %v14055_v4, %v911_v39  ;;  %v920_v48 = vshll.u32 %v14056_v19, %v911_v39 }
 0x230   : > { %14123 = vst [vmem:[#allocation19_spill] sm:$0xff] %v11871_v23  ;;  %8881 = vmatprep.mubr.msk.f32.mxu1 %vm14007_vm10, %v11734_v8  ;;  %v915_v35 = vshrl.u32 %v14055_v4, %v912_v12  ;;  %v918_v28 = vshrl.u32 %v14056_v19, %v912_v12  ;;  %v921_v0 = vshrl.u32 %v14117_v46, %v912_v12  ;;  %v11883_v60 = vshrl.u32 %v1270_v59, 30 }
 0x231   : > { %v1069_v52 = vclz %v8637_v55  ;;  %v910_v61 = vshrl.u32 %v909_v43, 5  ;;  %v923_v16 = vshll.u32 %v14117_v46, %v911_v39  ;;  %v8640_v2 = vadd.s32 4294967169, %v1109_v45 }
 0x232   : > { %v11888_v33 = vsel %vm11854_vm11, 0, %v1088_v31  ;;  %v11891_v8 = vadd.s32 %v11826_v30, %v11834_v24  ;;  %v924_v51 = vshrl.u32 %v14057_v13, %v912_v12  ;;  %v1272_v29 = vshll.u32 %v11883_v60, 30 }
 0x233   : > { %v8638_v27 = vadd.s32 4294967294, %v1069_v52  ;;  %7394 = vmatmul.mubr.f32.gmra.mrb[2].mxu1 %v11754_v11  ;;  %v913_v58 = vshrl.u32 %v14044_v42, %v912_v12  ;;  %v926_v57 = vshll.u32 %v14057_v13, %v911_v39  ;;  %v927_v44 = vshrl.u32 %v14058_v22, %v912_v12 }
 0x234   : > { %v916_v34 = vor.u32 %v915_v35, %v914_v54  ;;  %v919_v26 = vor.u32 %v918_v28, %v917_v9  ;;  %v922_v21 = vor.u32 %v921_v0, %v920_v48  ;;  %v11899_v3 = vsub.s32 %v1269_v7, %v1272_v29 }
 0x235   : > { %vm8639_vm6 = vcmp.lt.s32.totalorder %v8638_v27, 0  ;;  %v925_v30 = vor.u32 %v924_v51, %v923_v16  ;;  %vm929_vm1 = vcmp.lt.s32.totalorder %v910_v61, 1  ;;  %vm932_vm0 = vcmp.lt.s32.totalorder %v910_v61, 4 }
 0x236   : > { %v1072_v14 = vsel %vm8639_vm6, 0, %v8638_v27  ;;  %v1275_v41 = vsub.s32 0, %v11899_v3  ;;  %v928_v40 = vor.u32 %v927_v44, %v926_v57  ;;  %vm931_vm13 = vcmp.lt.s32.totalorder %v910_v61, 3 }
 0x237   : > { %v1073_v24 = vsub.s32 32, %v1072_v14  ;;  %v1074_v11 = vshll.u32 %v11847_v25, %v1072_v14  ;;  %v1077_v6 = vsub.s32 4294967266, %v1072_v14  ;;  %v934_v36 = vsel %vm932_vm0, %v922_v21, 2102212464 }
 0x238   : > { %v933_v5 = vsel %vm929_vm1, %v913_v58, %v916_v34  ;;  %v935_v47 = vsel %vm931_vm13, %v919_v26, %v934_v36  ;;  %v8645_v10 = vmin.u32 %v1275_v41, %v11899_v3  ;;  %vm930_vm7 = vcmp.lt.s32.totalorder %v910_v61, 2 }
 0x239   : > { %v1075_v1 = vshrl.u32 %v1057_v38, %v1073_v24  ;;  %v1078_v43 = vadd.s32 127, %v1077_v6  ;;  %v937_v56 = vsel %vm929_vm1, %v916_v34, %v919_v26  ;;  %v938_v25 = vsel %vm932_vm0, %v925_v30, 920167782 }
 0x23a   : > { %vm1211_vm14 = vcmp.lt.s32.totalorder %v11558_v49, 0  ;;  %v939_v53 = vsel %vm931_vm13, %v922_v21, %v938_v25  ;;  %v1115_v7 = vadd.s32 1, %v8640_v2  ;;  %v1094_v38 = vadd.s32 3, %v11888_v33 }
 0x23b   : > { %v1076_v39 = vor.u32 %v1075_v1, %v1074_v11  ;;  %v1079_v62 = vshll.u32 %v1078_v43, 23  ;;  %v1277_v12 = vclz %v8645_v10  ;;  %v936_v45 = vsel %vm930_vm7, %v933_v5, %v935_v47 }
 0x23c   : > { %v941_v55 = vsel %vm929_vm1, %v919_v26, %v922_v21  ;;  %v940_v54 = vsel %vm930_vm7, %v937_v56, %v939_v53  ;;  %v942_v9 = vsel %vm932_vm0, %v928_v40, 1326507024  ;;  %v1295_v16 = vsub.s32 4, %v11883_v60 }
 0x23d   : > { %v1080_v59 = vor.u32 4788187, %v1079_v62  ;;  %v1083_v31 = vcvt.s32.f32 %v1076_v39  ;;  %v8646_v48 = vadd.s32 4294967294, %v1277_v12  ;;  %v943_v52 = vsel %vm931_vm13, %v925_v30, %v942_v9 }
 0x23e   : > { %v11918_v35 = vmul.u32.u64.low %v11862_v50, %v940_v54  ;;  %v11919_v28 = vmul.u32.u64.high %v11862_v50, %v940_v54, %v11918_v35  ;;  %v944_v2 = vsel %vm930_vm7, %v941_v55, %v943_v52  ;;  %vm1116_vm15 = vcmp.gt.s32.totalorder %v1115_v7, 0 }
 0x23f   : > { %v1081_v0 = vand.u32 2147483647, %v1080_v59  ;;  %vm8647_vm5 = vcmp.lt.s32.totalorder %v8646_v48, 0  ;;  %v11925_v27 = vmul.u32.u64.low %v11862_v50, %v944_v2  ;;  %v11926_v51 = vmul.u32.u64.high %v11862_v50, %v944_v2, %v11925_v27 }
 0x240   : > { %v1117_v29 = vsel %vm1116_vm15, %v1115_v7, 0  ;;  %v1280_v57 = vsel %vm8647_vm5, 0, %v8646_v48  ;;  %v952_v44 = vmul.u32 %v11862_v50, %v936_v45  ;;  %v14124_v26 = vand.u32 2147483647, %v11558_v49 }
 0x241   : > { %v1084_v58 = vmul.f32 %v1083_v31, %v1081_v0  ;;  %v1119_v34 = vand.u32 31, %v1117_v29  ;;  %v1281_v61 = vsub.s32 32, %v1280_v57  ;;  %v1282_v14 = vshll.u32 %v11899_v3, %v1280_v57 }
 0x242   : > { %vm11931_vm3 = vcmp.le.f32.partialorder %v14124_v26, 0.7853982  ;;  %v1285_v30 = vsub.s32 4294967266, %v1280_v57  ;;  %v955_v24 = vadd.s32 1, %v11919_v28  ;;  %v11937_v6 = vand.u32 3, %v1094_v38 }
 0x243   : > { %v1085_v11 = vxor.u32 2147483648, %v1084_v58  ;;  %v1113_v41 = vor.u32 8388608, %v11868_v15  ;;  %v1120_v40 = vsub.s32 32, %v1119_v34  ;;  %v1283_v50 = vshrl.u32 %v11891_v8, %v1281_v61 }
 0x244   : > { %v1286_v36 = vadd.s32 127, %v1285_v30  ;;  %v1296_v1 = vsel %vm1211_vm14, %v1295_v16, %v11883_v60  ;;  %vm954_vm4 = vc.u32 %v11926_v51, %v11918_v35  ;;  %v11949_v5 = vshrl.u32 %v1117_v29, 5 }
 0x245   : > { %v1086_v3 = vsel %vm1003_vm8, %v1085_v11, %v1084_v58  ;;  %v956_v43 = vsel %vm954_vm4, %v955_v24, %v11919_v28  ;;  %v1122_v47 = vshll.u32 %v14044_v42, %v1119_v34  ;;  %v1284_v10 = vor.u32 %v1283_v50, %v1282_v14 }
 0x246   : > { %v1089_v8 = vsel %vm11854_vm11, %v11540_v18, %v1086_v3  ;;  %v1287_v56 = vshll.u32 %v1286_v36, 23  ;;  %v957_v25 = vadd.s32 %v956_v43, %v952_v44  ;;  %v1123_v60 = vshrl.u32 %v14055_v4, %v1120_v40 }
 0x247   : > { %9397 = vcosq.f32 %v1089_v8  ;;  %v1125_v39 = vshll.u32 %v14055_v4, %v1119_v34  ;;  %v1126_v62 = vshrl.u32 %v14056_v19, %v1120_v40  ;;  %v1291_v7 = vcvt.s32.f32 %v1284_v10 }
 0x248   : > { %9399 = vsinq.f32 %v1089_v8  ;;  %v1288_v53 = vor.u32 4788187, %v1287_v56  ;;  %v958_v38 = vadd.s32 536870912, %v957_v25  ;;  %v1128_v12 = vshll.u32 %v14056_v19, %v1119_v34 }
 0x249   : > { %v1129_v45 = vshrl.u32 %v14117_v46, %v1120_v40  ;;  %v1131_v20 = vshll.u32 %v14117_v46, %v1119_v34  ;;  %v1132_v55 = vshrl.u32 %v14057_v13, %v1120_v40  ;;  %v1134_v54 = vshll.u32 %v14057_v13, %v1119_v34 }
 0x24a   : > { %v1289_v59 = vand.u32 2147483647, %v1288_v53  ;;  %v11962_v31 = vshrl.u32 %v958_v38, 30  ;;  %v1135_v9 = vshrl.u32 %v14058_v22, %v1120_v40  ;;  %vm1096_vm9 = vcmp.lt.s32.totalorder %v11937_v6, 2 }
 0x24b   : > { %vm1097_vm2 = vcmp.eq.s32.totalorder %v11937_v6, 0  ;;  %v11970_v48 = vsel %vm11931_vm3, 0, %v1296_v1  ;;  %v1133_v52 = vor.u32 %v1132_v55, %v1131_v20  ;;  %vm1093_vm12 = vweird.f32 %v11540_v18 }
 0x24c   : > { %v1292_v28 = vmul.f32 %v1291_v7, %v1289_v59  ;;  %v960_v0 = vshll.u32 %v11962_v31, 30  ;;  %v1124_v16 = vor.u32 %v1123_v60, %v1122_v47  ;;  %v1127_v2 = vor.u32 %v1126_v62, %v1125_v39 }
 0x24d   : > { %v1130_v27 = vor.u32 %v1129_v45, %v1128_v12  ;;  %v1136_v29 = vor.u32 %v1135_v9, %v1134_v54  ;;  %vm1137_vm11 = vcmp.lt.s32.totalorder %v11949_v5, 1  ;;  %vm1140_vm8 = vcmp.lt.s32.totalorder %v11949_v5, 4 }
 0x24e   : > { %vm1100_vm6 = vcmp.eq.s32.totalorder %v11937_v6, 2  ;;  %v1293_v58 = vxor.u32 2147483648, %v1292_v28  ;;  %v11977_v57 = vsub.s32 %v957_v25, %v960_v0  ;;  %vm1139_vm1 = vcmp.lt.s32.totalorder %v11949_v5, 3 }
 0x24f   : > { %v1302_v44 = vadd.s32 3, %v11970_v48  ;;  %v1121_v34 = vshrl.u32 %v14044_v42, %v1120_v40  ;;  %vm1138_vm0 = vcmp.lt.s32.totalorder %v11949_v5, 2  ;;  %v1146_v26 = vsel %vm1140_vm8, %v1133_v52, 920167782 }
 0x250   : > { %v1294_v61 = vsel %vm1211_vm14, %v1293_v58, %v1292_v28  ;;  %vm899_vm13 = vcmp.lt.s32.totalorder %v11592_v37, 0  ;;  %v963_v14 = vsub.s32 0, %v11977_v57  ;;  %v1142_v30 = vsel %vm1140_vm8, %v1130_v27, 2102212464 }
 0x251   : > { %v1145_v24 = vsel %vm1137_vm11, %v1124_v16, %v1127_v2  ;;  %v11993_v11 = vpop.eup %9397  ;;  %v1297_v40 = vsel %vm11931_vm3, %v11558_v49, %v1294_v61  ;;  %v1147_v50 = vsel %vm1139_vm1, %v1130_v27, %v1146_v26  ;;  %v1149_v36 = vsel %vm1137_vm11, %v1127_v2, %v1130_v27 }
 0x252   : > { %v1150_v1 = vsel %vm1140_vm8, %v1136_v29, 1326507024  ;;  %v12004_v3 = vpop.eup %9399  ;;  %v13936_v43 = vxor.u32 2147483648, %v11993_v11  ;;  %9401 = vcosq.f32 %v1297_v40  ;;  %v8633_v47 = vmin.u32 %v963_v14, %v11977_v57 }
 0x253   : > { %v1153_v21 = vshll.u32 %v1113_v41, 8  ;;  %v13937_v8 = vxor.u32 2147483648, %v12004_v3  ;;  %9403 = vsinq.f32 %v1297_v40  ;;  %v1141_v10 = vsel %vm1137_vm11, %v1121_v34, %v1124_v16 }
 0x254   : > { %v1151_v56 = vsel %vm1139_vm1, %v1133_v52, %v1150_v1  ;;  %v1102_v25 = vsel %vm1100_vm6, %v13936_v43, %v12004_v3  ;;  %v965_v60 = vclz %v8633_v47  ;;  %v1143_v15 = vsel %vm1139_vm1, %v1127_v2, %v1142_v30 }
 0x255   : > { %v1148_v41 = vsel %vm1138_vm0, %v1145_v24, %v1147_v50  ;;  %v1099_v39 = vsel %vm1097_vm2, %v11993_v11, %v13937_v8  ;;  %v1303_v62 = vand.u32 3, %v1302_v44  ;;  %v983_v53 = vsub.s32 4, %v11962_v31 }
 0x256   : > { %v1152_v7 = vsel %vm1138_vm0, %v1149_v36, %v1151_v56  ;;  %v1103_v38 = vsel %vm1096_vm9, %v1099_v39, %v1102_v25  ;;  %v8634_v12 = vadd.s32 4294967294, %v965_v60  ;;  %v1144_v59 = vsel %vm1138_vm0, %v1141_v10, %v1143_v15 }
 0x257   : > { %v12034_v45 = vmul.u32.u64.low %v1153_v21, %v1152_v7  ;;  %v12035_v20 = vmul.u32.u64.high %v1153_v21, %v1152_v7, %v12034_v45  ;;  %v1104_v55 = vsel %vm1093_vm12, nan, %v1103_v38  ;;  %vm12048_vm7 = vcmp.le.f32.partialorder %v897_v63, 0.7853982 }
 0x258   : > { %v12041_v54 = vmul.u32.u64.low %v1153_v21, %v1148_v41  ;;  %v12042_v9 = vmul.u32.u64.high %v1153_v21, %v1148_v41, %v12041_v54  ;;  %v8995_v52 = vpack.c.bf16 %v1104_v55, %v11540_v18  ;;  %v953_v28 = vadd.s32 %v11918_v35, %v11926_v51 }
 0x259   : > { %vm8635_vm14 = vcmp.lt.s32.totalorder %v8634_v12, 0  ;;  %vm1304_vm15 = vcmp.lt.s32.totalorder %v1303_v62, 2  ;;  %v984_v5 = vsel %vm899_vm13, %v983_v53, %v11962_v31  ;;  %v1836_v16 = vand.u32 2139095040, %v11871_v23 }
 0x25a   : > { %v968_v0 = vsel %vm8635_vm14, 0, %v8634_v12  ;;  %8996 = vmatprep.subr.bf16.mxu0 %v8995_v52  ;;  %v1160_v29 = vmul.u32 %v1153_v21, %v1144_v59  ;;  %vm1305_vm5 = vcmp.eq.s32.totalorder %v1303_v62, 0  ;;  %vm1162_vm3 = vc.u32 %v12035_v20, %v12041_v54 }
 0x25b   : > { %v969_v2 = vsub.s32 32, %v968_v0  ;;  %v970_v27 = vshll.u32 %v11977_v57, %v968_v0  ;;  %v973_v63 = vsub.s32 4294967266, %v968_v0  ;;  %v1163_v35 = vadd.s32 1, %v12042_v9 }
 0x25c   : > { %v1837_v51 = vshrl.u32 %v1836_v16, 23  ;;  %v12062_v58 = vpop.eup %9401  ;;  %vm1308_vm4 = vcmp.eq.s32.totalorder %v1303_v62, 2  ;;  %v12066_v34 = vsel %vm12048_vm7, 0, %v984_v5  ;;  %v1833_v14 = vand.u32 2147483647, %v11871_v23 }
 0x25d   : > { %v971_v44 = vshrl.u32 %v953_v28, %v969_v2  ;;  %v974_v31 = vadd.s32 127, %v973_v63  ;;  %v12068_v26 = vpop.eup %9403  ;;  %v13934_v57 = vxor.u32 2147483648, %v12062_v58  ;;  %v1164_v61 = vsel %vm1162_vm3, %v1163_v35, %v12042_v9 }
 0x25e   : > { %v8668_v30 = vadd.s32 4294967169, %v1837_v51  ;;  %v13935_v24 = vxor.u32 2147483648, %v12068_v26  ;;  %v1165_v36 = vadd.s32 %v1164_v61, %v1160_v29  ;;  %vm1301_vm9 = vweird.f32 %v11558_v49 }
 0x25f   : > { %v972_v40 = vor.u32 %v971_v44, %v970_v27  ;;  %v975_v50 = vshll.u32 %v974_v31, 23  ;;  %v1310_v1 = vsel %vm1308_vm4, %v13934_v57, %v12068_v26  ;;  %v12079_v47 = vmul.f32 4.0, %v11540_v18 }
 0x260   : > { %v1843_v21 = vadd.s32 1, %v8668_v30  ;;  %v1307_v10 = vsel %vm1305_vm5, %v12062_v58, %v13935_v24  ;;  %v1166_v60 = vadd.s32 536870912, %v1165_v36  ;;  %v990_v41 = vadd.s32 3, %v12066_v34 }
 0x261   : > { %14129 = vst [vmem:[#allocation18_spill] sm:$0xff] %v12079_v47  ;;  %v976_v56 = vor.u32 4788187, %v975_v50  ;;  %v979_v25 = vcvt.s32.f32 %v972_v40  ;;  %v1311_v15 = vsel %vm1304_vm15, %v1307_v10, %v1310_v1  ;;  %v1840_v39 = vand.u32 8388607, %v1833_v14 }
 0x262   : > { %vm1844_vm2 = vcmp.gt.s32.totalorder %v1843_v21, 0  ;;  %v1312_v53 = vsel %vm1301_vm9, nan, %v1311_v15  ;;  %v12091_v38 = vshrl.u32 %v1166_v60, 30  ;;  %v2668_v59 = vand.u32 2139095040, %v12079_v47 }
 0x263   : > { %v977_v7 = vand.u32 2147483647, %v976_v56  ;;  %v1845_v12 = vsel %vm1844_vm2, %v1843_v21, 0  ;;  %v9027_v45 = vpack.c.bf16 %v1312_v53, %v11558_v49  ;;  %v12096_v52 = vand.u32 3, %v990_v41 }
 0x264   : > { %v1847_v55 = vand.u32 31, %v1845_v12  ;;  %v1168_v9 = vshll.u32 %v12091_v38, 30  ;;  %v1841_v28 = vor.u32 8388608, %v1840_v39  ;;  %v2669_v44 = vshrl.u32 %v2668_v59, 23 }
 0x265   : > { %v980_v62 = vmul.f32 %v979_v25, %v977_v7  ;;  %9028 = vmatprep.subr.bf16.mxu1 %v9027_v45  ;;  %v1846_v30 = vshrl.u32 %v1845_v12, 5  ;;  %v1161_v6 = vadd.s32 %v12041_v54, %v12035_v20  ;;  %vm992_vm1 = vcmp.lt.s32.totalorder %v12096_v52, 2 }
 0x266   : > { %v1848_v0 = vsub.s32 32, %v1847_v55  ;;  %v1850_v5 = vshll.u32 %v14044_v42, %v1847_v55  ;;  %v12099_v2 = vsub.s32 %v1165_v36, %v1168_v9  ;;  %v1853_v27 = vshll.u32 %v14055_v4, %v1847_v55 }
 0x267   : > { %v981_v16 = vxor.u32 2147483648, %v980_v62  ;;  %v1856_v63 = vshll.u32 %v14056_v19, %v1847_v55  ;;  %v1859_v51 = vshll.u32 %v14117_v46, %v1847_v55  ;;  %v1862_v15 = vshll.u32 %v14057_v13, %v1847_v55 }
 0x268   : > { %v1851_v29 = vshrl.u32 %v14055_v4, %v1848_v0  ;;  %v1854_v35 = vshrl.u32 %v14056_v19, %v1848_v0  ;;  %v1171_v61 = vsub.s32 0, %v12099_v2  ;;  %v1857_v40 = vshrl.u32 %v14117_v46, %v1848_v0 }
 0x269   : > { %v982_v31 = vsel %vm899_vm13, %v981_v16, %v980_v62  ;;  %v1849_v36 = vshrl.u32 %v14044_v42, %v1848_v0  ;;  %v1860_v21 = vshrl.u32 %v14057_v13, %v1848_v0  ;;  %v1863_v41 = vshrl.u32 %v14058_v22, %v1848_v0 }
 0x26a   : > { %v985_v50 = vsel %vm12048_vm7, %v11592_v37, %v982_v31  ;;  %v1852_v1 = vor.u32 %v1851_v29, %v1850_v5  ;;  %v8641_v10 = vmin.u32 %v1171_v61, %v12099_v2  ;;  %v1855_v56 = vor.u32 %v1854_v35, %v1853_v27 }
 0x26b   : > { %9405 = vcosq.f32 %v985_v50  ;;  %v1858_v25 = vor.u32 %v1857_v40, %v1856_v63  ;;  %v1861_v60 = vor.u32 %v1860_v21, %v1859_v51  ;;  %v12120_v53 = vshll.u32 %v1841_v28, 8 }
 0x26c   : > { %9407 = vsinq.f32 %v985_v50  ;;  %v1173_v39 = vclz %v8641_v10  ;;  %v8700_v7 = vadd.s32 4294967169, %v2669_v44  ;;  %v1864_v12 = vor.u32 %v1863_v41, %v1862_v15 }
 0x26d   : > { %vm1865_vm11 = vcmp.lt.s32.totalorder %v1846_v30, 1  ;;  %vm1866_vm8 = vcmp.lt.s32.totalorder %v1846_v30, 2  ;;  %vm1867_vm6 = vcmp.lt.s32.totalorder %v1846_v30, 3  ;;  %vm1868_vm0 = vcmp.lt.s32.totalorder %v1846_v30, 4 }
 0x26e   : > { %v8642_v45 = vadd.s32 4294967294, %v1173_v39  ;;  %v1869_v59 = vsel %vm1865_vm11, %v1849_v36, %v1852_v1  ;;  %v1873_v62 = vsel %vm1865_vm11, %v1852_v1, %v1855_v56  ;;  %vm13956_vm13 = vweird.f32 %v11592_v37 }
 0x26f   : > { %v1870_v55 = vsel %vm1868_vm0, %v1858_v25, 2102212464  ;;  %v1874_v9 = vsel %vm1868_vm0, %v1861_v60, 920167782  ;;  %v1877_v0 = vsel %vm1865_vm11, %v1855_v56, %v1858_v25  ;;  %v1878_v20 = vsel %vm1868_vm0, %v1864_v12, 1326507024 }
 0x270   : > { %vm8643_vm7 = vcmp.lt.s32.totalorder %v8642_v45, 0  ;;  %v1871_v54 = vsel %vm1867_vm6, %v1855_v56, %v1870_v55  ;;  %v1875_v28 = vsel %vm1867_vm6, %v1858_v25, %v1874_v9  ;;  %v1879_v5 = vsel %vm1867_vm6, %v1861_v60, %v1878_v20 }
 0x271   : > { %vm993_vm14 = vcmp.eq.s32.totalorder %v12096_v52, 0  ;;  %v1176_v16 = vsel %vm8643_vm7, 0, %v8642_v45  ;;  %v1876_v27 = vsel %vm1866_vm8, %v1873_v62, %v1875_v28  ;;  %v1880_v63 = vsel %vm1866_vm8, %v1877_v0, %v1879_v5 }
 0x272   : > { %v1177_v29 = vsub.s32 32, %v1176_v16  ;;  %v1178_v35 = vshll.u32 %v12099_v2, %v1176_v16  ;;  %v1181_v51 = vsub.s32 4294967266, %v1176_v16  ;;  %v1872_v44 = vsel %vm1866_vm8, %v1869_v59, %v1871_v54  ;;  %v12179_v16 = vld [vmem:[%s9799_s25 + $0x20] sm:$0xff] }
 0x273   : > { %v12130_v31 = vmul.u32.u64.low %v12120_v53, %v1880_v63  ;;  %v12131_v61 = vmul.u32.u64.high %v12120_v53, %v1880_v63, %v12130_v31  ;;  %v12134_v40 = vmul.u32.u64.low %v12120_v53, %v1876_v27  ;;  %v12135_v50 = vmul.u32.u64.high %v12120_v53, %v1876_v27, %v12134_v40 }
 0x274   : > { %vm996_vm15 = vcmp.eq.s32.totalorder %v12096_v52, 2  ;;  %v1179_v1 = vshrl.u32 %v1161_v6, %v1177_v29  ;;  %v1182_v21 = vadd.s32 127, %v1181_v51  ;;  %v2675_v10 = vadd.s32 1, %v8700_v7 }
 0x275   : > { %v12138_v36 = vpop.eup %9405  ;;  %v1191_v56 = vsub.s32 4, %v12091_v38  ;;  %v1888_v25 = vmul.u32 %v12120_v53, %v1872_v44  ;;  %v2665_v60 = vand.u32 2147483647, %v12079_v47  ;;  %vm12150_vm5 = vcmp.le.f32.partialorder %v1105_v32, 0.7853982 }
 0x276   : > { %v12141_v2 = vpop.eup %9407  ;;  %v13932_v30 = vxor.u32 2147483648, %v12138_v36  ;;  %v1180_v6 = vor.u32 %v1179_v1, %v1178_v35  ;;  %v1183_v39 = vshll.u32 %v1182_v21, 23  ;;  %vm2676_vm3 = vcmp.gt.s32.totalorder %v2675_v10, 0 }
 0x277   : > { %v13933_v15 = vxor.u32 2147483648, %v12141_v2  ;;  %vm1107_vm4 = vcmp.lt.s32.totalorder %v11837_v17, 0  ;;  %vm1890_vm2 = vc.u32 %v12131_v61, %v12134_v40  ;;  %v1891_v32 = vadd.s32 1, %v12135_v50 }
 0x278   : > { %v998_v7 = vsel %vm996_vm15, %v13932_v30, %v12141_v2  ;;  %v1184_v12 = vor.u32 4788187, %v1183_v39  ;;  %v1187_v45 = vcvt.s32.f32 %v1180_v6  ;;  %v2677_v59 = vsel %vm2676_vm3, %v2675_v10, 0 }
 0x279   : > { %v995_v53 = vsel %vm993_vm14, %v12138_v36, %v13933_v15  ;;  %v1892_v55 = vsel %vm1890_vm2, %v1891_v32, %v12135_v50  ;;  %v2672_v9 = vand.u32 8388607, %v2665_v60  ;;  %v2679_v0 = vand.u32 31, %v2677_v59 }
 0x27a   : > { %v999_v62 = vsel %vm992_vm1, %v995_v53, %v998_v7  ;;  %v1185_v54 = vand.u32 2147483647, %v1184_v12  ;;  %v1192_v28 = vsel %vm1107_vm4, %v1191_v56, %v12091_v38  ;;  %v1893_v5 = vadd.s32 %v1892_v55, %v1888_v25 }
 0x27b   : > { %v1000_v20 = vsel %vm13956_vm13, nan, %v999_v62  ;;  %v2678_v27 = vshrl.u32 %v2677_v59, 5  ;;  %v2680_v63 = vsub.s32 32, %v2679_v0  ;;  %v2682_v29 = vshll.u32 %v14044_v42, %v2679_v0 }
 0x27c   : > { %v8997_v52 = vpack.c.bf16 %v1000_v20, %v12179_v16  ;;  %v1188_v35 = vmul.f32 %v1187_v45, %v1185_v54  ;;  %v1894_v51 = vadd.s32 536870912, %v1893_v5  ;;  %v2685_v44 = vshll.u32 %v14055_v4, %v2679_v0 }
 0x27d   : > { %v2688_v31 = vshll.u32 %v14056_v19, %v2679_v0  ;;  %v2683_v50 = vshrl.u32 %v14055_v4, %v2680_v63  ;;  %v2686_v38 = vshrl.u32 %v14056_v19, %v2680_v63  ;;  %v2689_v1 = vshrl.u32 %v14117_v46, %v2680_v63 }
 0x27e   : > { %8998 = vmatpush1.bf16.msra.mxu0 %v8997_v52  ;;  %v2691_v21 = vshll.u32 %v14117_v46, %v2679_v0  ;;  %v1189_v10 = vxor.u32 2147483648, %v1188_v35  ;;  %v12189_v56 = vshrl.u32 %v1894_v51, 30  ;;  %v2692_v25 = vshrl.u32 %v14057_v13, %v2680_v63 }
 0x27f   : > { %v2694_v6 = vshll.u32 %v14057_v13, %v2679_v0  ;;  %v12195_v39 = vsel %vm12150_vm5, 0, %v1192_v28  ;;  %v2673_v7 = vor.u32 8388608, %v2672_v9  ;;  %v2681_v32 = vshrl.u32 %v14044_v42, %v2680_v63 }
 0x280   : > { %14132 = vst [vmem:[#allocation17_spill] sm:$0xff] %v12195_v39  ;;  %v2695_v53 = vshrl.u32 %v14058_v22, %v2680_v63  ;;  %v1190_v12 = vsel %vm1107_vm4, %v1189_v10, %v1188_v35  ;;  %v1896_v45 = vshll.u32 %v12189_v56, 30  ;;  %v2684_v59 = vor.u32 %v2683_v50, %v2682_v29 }
 0x281   : > { %v2687_v62 = vor.u32 %v2686_v38, %v2685_v44  ;;  %v1193_v55 = vsel %vm12150_vm5, %v11837_v17, %v1190_v12  ;;  %v2693_v0 = vor.u32 %v2692_v25, %v2691_v21  ;;  %vm2697_vm11 = vcmp.lt.s32.totalorder %v2678_v27, 1  ;;  %v9468_v25 = vld [vmem:[%s9799_s25 + $0x38] sm:$0xff] }
 0x282   : > { %v2696_v20 = vor.u32 %v2695_v53, %v2694_v6  ;;  %9409 = vcosq.f32 %v1193_v55  ;;  %v12205_v9 = vsub.s32 %v1893_v5, %v1896_v45  ;;  %v2690_v54 = vor.u32 %v2689_v1, %v2688_v31 }
 0x283   : > { %9411 = vsinq.f32 %v1193_v55  ;;  %v1198_v28 = vadd.s32 3, %v12195_v39  ;;  %vm2699_vm8 = vcmp.lt.s32.totalorder %v2678_v27, 3  ;;  %vm2700_vm6 = vcmp.lt.s32.totalorder %v2678_v27, 4 }
 0x284   : > { %v1899_v52 = vsub.s32 0, %v12205_v9  ;;  %vm2698_vm1 = vcmp.lt.s32.totalorder %v2678_v27, 2  ;;  %v2702_v63 = vsel %vm2700_vm6, %v2690_v54, 2102212464  ;;  %v2705_v41 = vsel %vm2697_vm11, %v2684_v59, %v2687_v62 }
 0x285   : > { %v2701_v29 = vsel %vm2697_vm11, %v2681_v32, %v2684_v59  ;;  %v2706_v35 = vsel %vm2700_vm6, %v2693_v0, 920167782  ;;  %v2710_v51 = vsel %vm2700_vm6, %v2696_v20, 1326507024  ;;  %v2713_v44 = vshll.u32 %v2673_v7, 8 }
 0x286   : > { %v8669_v5 = vmin.u32 %v1899_v52, %v12205_v9  ;;  %v2703_v31 = vsel %vm2699_vm8, %v2687_v62, %v2702_v63  ;;  %v2707_v50 = vsel %vm2699_vm8, %v2690_v54, %v2706_v35  ;;  %v2709_v38 = vsel %vm2697_vm11, %v2687_v62, %v2690_v54 }
 0x287   : > { %v1199_v1 = vand.u32 3, %v1198_v28  ;;  %v2708_v21 = vsel %vm2698_vm1, %v2705_v41, %v2707_v50  ;;  %v2711_v10 = vsel %vm2699_vm8, %v2693_v0, %v2710_v51  ;;  %v12218_v6 = vmul.f32 2.0, %v9468_v25 }
 0x288   : > { %v1901_v32 = vclz %v8669_v5  ;;  %v2704_v53 = vsel %vm2698_vm1, %v2701_v29, %v2703_v31  ;;  %v2712_v7 = vsel %vm2698_vm1, %v2709_v38, %v2711_v10  ;;  %vm13955_vm0 = vweird.f32 %v11837_v17 }
 0x289   : > { %14133 = vst [vmem:[#allocation11_spill] sm:$0xff] %v12218_v6  ;;  %v12222_v12 = vmul.u32.u64.low %v2713_v44, %v2708_v21  ;;  %v12223_v45 = vmul.u32.u64.high %v2713_v44, %v2708_v21, %v12222_v12  ;;  %v12226_v55 = vmul.u32.u64.low %v2713_v44, %v2712_v7  ;;  %v12227_v62 = vmul.u32.u64.high %v2713_v44, %v2712_v7, %v12226_v55 }
 0x28a   : > { %v8670_v59 = vadd.s32 4294967294, %v1901_v32  ;;  %vm1200_vm7 = vcmp.lt.s32.totalorder %v1199_v1, 2  ;;  %vm1201_vm14 = vcmp.eq.s32.totalorder %v1199_v1, 0  ;;  %v2044_v0 = vand.u32 2139095040, %v12218_v6 }
 0x28b   : > { %vm1204_vm15 = vcmp.eq.s32.totalorder %v1199_v1, 2  ;;  %v1889_v27 = vadd.s32 %v12134_v40, %v12131_v61  ;;  %v2720_v54 = vmul.u32 %v2713_v44, %v2704_v53  ;;  %v2723_v41 = vadd.s32 1, %v12223_v45 }
 0x28c   : > { %v12231_v20 = vpop.eup %9409  ;;  %vm8671_vm5 = vcmp.lt.s32.totalorder %v8670_v59, 0  ;;  %v2045_v29 = vshrl.u32 %v2044_v0, 23  ;;  %vm2722_vm3 = vc.u32 %v12227_v62, %v12222_v12  ;;  %v13938_v40 = vand.u32 2147483647, %v12218_v6 }
 0x28d   : > { %14134 = vst [vmem:[#allocation12_spill] sm:$0xff] %v12231_v20  ;;  %v12235_v28 = vpop.eup %9411  ;;  %v13930_v52 = vxor.u32 2147483648, %v12231_v20  ;;  %v1904_v63 = vsel %vm8671_vm5, 0, %v8670_v59  ;;  %v1919_v32 = vsub.s32 4, %v12189_v56  ;;  %vm1835_vm4 = vcmp.lt.s32.totalorder %v11871_v23, 0 }
 0x28e   : > { %14135 = vst [vmem:[#allocation21_spill] sm:$0xff] %v12235_v28  ;;  %v13931_v35 = vxor.u32 2147483648, %v12235_v28  ;;  %v1905_v51 = vsub.s32 32, %v1904_v63  ;;  %v1906_v5 = vshll.u32 %v12205_v9, %v1904_v63  ;;  %v1909_v31 = vsub.s32 4294967266, %v1904_v63 }
 0x28f   : > { %v1206_v61 = vsel %vm1204_vm15, %v13930_v52, %v12235_v28  ;;  %v8676_v44 = vadd.s32 4294967169, %v2045_v29  ;;  %v2724_v9 = vsel %vm2722_vm3, %v2723_v41, %v12223_v45  ;;  %v2048_v41 = vand.u32 8388607, %v13938_v40 }
 0x290   : > { %v1203_v50 = vsel %vm1201_vm14, %v12231_v20, %v13931_v35  ;;  %v1907_v38 = vshrl.u32 %v1889_v27, %v1905_v51  ;;  %v1910_v21 = vadd.s32 127, %v1909_v31  ;;  %v2725_v53 = vadd.s32 %v2724_v9, %v2720_v54 }
 0x291   : > { %v1207_v10 = vsel %vm1200_vm7, %v1203_v50, %v1206_v61  ;;  %v2051_v7 = vadd.s32 1, %v8676_v44  ;;  %v12258_v27 = vmul.f32 4.0, %v9468_v25  ;;  %v1920_v51 = vsel %vm1835_vm4, %v1919_v32, %v12189_v56 }
 0x292   : > { %v1208_v59 = vsel %vm13955_vm0, nan, %v1207_v10  ;;  %v1908_v55 = vor.u32 %v1907_v38, %v1906_v5  ;;  %v1911_v0 = vshll.u32 %v1910_v21, 23  ;;  %v2726_v29 = vadd.s32 536870912, %v2725_v53 }
 0x293   : > { %v9029_v63 = vpack.c.bf16 %v1208_v59, %v11837_v17  ;;  %14136 = vst [vmem:[#allocation20_spill] sm:$0xff] %v12258_v27  ;;  %vm2052_vm2 = vcmp.gt.s32.totalorder %v2051_v7, 0  ;;  %vm12267_vm11 = vcmp.le.f32.partialorder %v1833_v14, 0.7853982  ;;  %v2876_v38 = vand.u32 2139095040, %v12258_v27 }
 0x294   : > { %v1912_v45 = vor.u32 4788187, %v1911_v0  ;;  %v1915_v1 = vcvt.s32.f32 %v1908_v55  ;;  %v2053_v54 = vsel %vm2052_vm2, %v2051_v7, 0  ;;  %v2727_v31 = vshrl.u32 %v2726_v29, 30 }
 0x295   : > { %9030 = vmatpush1.bf16.msra.mxu1 %v9029_v63  ;;  %v2055_v5 = vand.u32 31, %v2053_v54  ;;  %v12274_v9 = vsel %vm12267_vm11, 0, %v1920_v51  ;;  %v2049_v10 = vor.u32 8388608, %v2048_v41  ;;  %v2054_v56 = vshrl.u32 %v2053_v54, 5 }
 0x296   : > { %v1913_v61 = vand.u32 2147483647, %v1912_v45  ;;  %v2728_v44 = vshll.u32 %v2727_v31, 30  ;;  %vm2667_vm8 = vcmp.lt.s32.totalorder %v12079_v47, 0  ;;  %v2877_v41 = vshrl.u32 %v2876_v38, 23 }
 0x297   : > { %v2056_v50 = vsub.s32 32, %v2055_v5  ;;  %v2058_v7 = vshll.u32 %v14044_v42, %v2055_v5  ;;  %v2061_v59 = vshll.u32 %v14055_v4, %v2055_v5  ;;  %v2064_v0 = vshll.u32 %v14056_v19, %v2055_v5 }
 0x298   : > { %v1916_v21 = vmul.f32 %v1915_v1, %v1913_v61  ;;  %v12276_v32 = vsub.s32 %v2725_v53, %v2728_v44  ;;  %v2067_v29 = vshll.u32 %v14117_v46, %v2055_v5  ;;  %v2721_v54 = vadd.s32 %v12222_v12, %v12227_v62 }
 0x299   : > { %v2059_v14 = vshrl.u32 %v14055_v4, %v2056_v50  ;;  %v2062_v55 = vshrl.u32 %v14056_v19, %v2056_v50  ;;  %v2065_v63 = vshrl.u32 %v14117_v46, %v2056_v50  ;;  %v2068_v1 = vshrl.u32 %v14057_v13, %v2056_v50 }
 0x29a   : > { %v1917_v45 = vxor.u32 2147483648, %v1916_v21  ;;  %v2731_v53 = vsub.s32 0, %v12276_v32  ;;  %v2070_v51 = vshll.u32 %v14057_v13, %v2055_v5  ;;  %v12291_v61 = vshll.u32 %v2049_v10, 8 }
 0x29b   : > { %v13939_v44 = vand.u32 2147483647, %v12258_v27  ;;  %v2057_v35 = vshrl.u32 %v14044_v42, %v2056_v50  ;;  %v2060_v30 = vor.u32 %v2059_v14, %v2058_v7  ;;  %v2063_v15 = vor.u32 %v2062_v55, %v2061_v59 }
 0x29c   : > { %v8701_v52 = vmin.u32 %v2731_v53, %v12276_v32  ;;  %v2066_v57 = vor.u32 %v2065_v63, %v2064_v0  ;;  %v2069_v24 = vor.u32 %v2068_v1, %v2067_v29  ;;  %v2071_v43 = vshrl.u32 %v14058_v22, %v2056_v50 }
 0x29d   : > { %vm2073_vm6 = vcmp.lt.s32.totalorder %v2054_v56, 1  ;;  %v1918_v12 = vsel %vm1835_vm4, %v1917_v45, %v1916_v21  ;;  %v2751_v5 = vsub.s32 4, %v2727_v31  ;;  %v8708_v38 = vadd.s32 4294967169, %v2877_v41 }
 0x29e   : > { %v2733_v62 = vclz %v8701_v52  ;;  %v2072_v10 = vor.u32 %v2071_v43, %v2070_v51  ;;  %vm2074_vm1 = vcmp.lt.s32.totalorder %v2054_v56, 2  ;;  %vm2075_vm7 = vcmp.lt.s32.totalorder %v2054_v56, 3 }
 0x29f   : > { %vm2076_vm14 = vcmp.lt.s32.totalorder %v2054_v56, 4  ;;  %v2077_v8 = vsel %vm2073_vm6, %v2057_v35, %v2060_v30  ;;  %v2081_v7 = vsel %vm2073_vm6, %v2060_v30, %v2063_v15  ;;  %v2085_v55 = vsel %vm2073_vm6, %v2063_v15, %v2066_v57 }
 0x2a0   : > { %v8702_v53 = vadd.s32 4294967294, %v2733_v62  ;;  %v2078_v40 = vsel %vm2076_vm14, %v2066_v57, 2102212464  ;;  %v2082_v59 = vsel %vm2076_vm14, %v2069_v24, 920167782  ;;  %v2752_v50 = vsel %vm2667_vm8, %v2751_v5, %v2727_v31 }
 0x2a1   : > { %v2079_v14 = vsel %vm2075_vm7, %v2063_v15, %v2078_v40  ;;  %v2086_v0 = vsel %vm2076_vm14, %v2072_v10, 1326507024  ;;  %v2083_v21 = vsel %vm2075_vm7, %v2066_v57, %v2082_v59  ;;  %v1921_v43 = vsel %vm12267_vm11, %v11871_v23, %v1918_v12 }
 0x2a2   : > { %vm8703_vm15 = vcmp.lt.s32.totalorder %v8702_v53, 0  ;;  %v2087_v52 = vsel %vm2075_vm7, %v2069_v24, %v2086_v0  ;;  %v2084_v29 = vsel %vm2074_vm1, %v2081_v7, %v2083_v21  ;;  %v2080_v45 = vsel %vm2074_vm1, %v2077_v8, %v2079_v14 }
 0x2a3   : > { %v2736_v63 = vsel %vm8703_vm15, 0, %v8702_v53  ;;  %v2088_v35 = vsel %vm2074_vm1, %v2085_v55, %v2087_v52  ;;  %v12313_v57 = vmul.u32.u64.low %v12291_v61, %v2084_v29  ;;  %v12314_v24 = vmul.u32.u64.high %v12291_v61, %v2084_v29, %v12313_v57 }
 0x2a4   : > { %v2737_v30 = vsub.s32 32, %v2736_v63  ;;  %v2738_v40 = vshll.u32 %v12276_v32, %v2736_v63  ;;  %v2741_v15 = vsub.s32 4294967266, %v2736_v63  ;;  %9413 = vcosq.f32 %v1921_v43 }
 0x2a5   : > { %v12309_v1 = vmul.u32.u64.low %v12291_v61, %v2088_v35  ;;  %v12310_v31 = vmul.u32.u64.high %v12291_v61, %v2088_v35, %v12309_v1  ;;  %v2883_v51 = vadd.s32 1, %v8708_v38  ;;  %9415 = vsinq.f32 %v1921_v43 }
 0x2a6   : > { %v2739_v25 = vshrl.u32 %v2721_v54, %v2737_v30  ;;  %v2742_v41 = vadd.s32 127, %v2741_v15  ;;  %v1926_v12 = vadd.s32 3, %v12274_v9  ;;  %vm12320_vm5 = vcmp.le.f32.partialorder %v2665_v60, 0.7853982 }
 0x2a7   : > { %v2096_v62 = vmul.u32 %v12291_v61, %v2080_v45  ;;  %vm2884_vm3 = vcmp.gt.s32.totalorder %v2883_v51, 0  ;;  %v12327_v5 = vsel %vm12320_vm5, 0, %v2752_v50  ;;  %vm2098_vm4 = vc.u32 %v12310_v31, %v12313_v57 }
 0x2a8   : > { %v2740_v56 = vor.u32 %v2739_v25, %v2738_v40  ;;  %v2743_v32 = vshll.u32 %v2742_v41, 23  ;;  %v2099_v54 = vadd.s32 1, %v12314_v24  ;;  %v2880_v60 = vand.u32 8388607, %v13939_v44 }
 0x2a9   : > { %v2885_v53 = vsel %vm2884_vm3, %v2883_v51, 0  ;;  %v12334_v7 = vand.u32 3, %v1926_v12  ;;  %v2758_v55 = vadd.s32 3, %v12327_v5  ;;  %v12339_v50 = vmul.f32 2.0, %v12179_v16 }
 0x2aa   : > { %v2744_v38 = vor.u32 4788187, %v2743_v32  ;;  %v2747_v10 = vcvt.s32.f32 %v2740_v56  ;;  %v2100_v61 = vsel %vm2098_vm4, %v2099_v54, %v12314_v24  ;;  %v2887_v14 = vand.u32 31, %v2885_v53 }
 0x2ab   : > { %v2101_v0 = vadd.s32 %v2100_v61, %v2096_v62  ;;  %14141 = vst [vmem:[#allocation8_spill] sm:$0xff] %v12339_v50  ;;  %v2881_v21 = vor.u32 8388608, %v2880_v60  ;;  %v12341_v52 = vshrl.u32 %v2885_v53, 5  ;;  %vm1929_vm2 = vcmp.eq.s32.totalorder %v12334_v7, 0 }
 0x2ac   : > { %v2745_v59 = vand.u32 2147483647, %v2744_v38  ;;  %v2888_v43 = vsub.s32 32, %v2887_v14  ;;  %v2890_v63 = vshll.u32 %v14044_v42, %v2887_v14  ;;  %v2893_v30 = vshll.u32 %v14055_v4, %v2887_v14 }
 0x2ad   : > { %v2102_v35 = vadd.s32 536870912, %v2101_v0  ;;  %v2896_v40 = vshll.u32 %v14056_v19, %v2887_v14  ;;  %vm1932_vm11 = vcmp.eq.s32.totalorder %v12334_v7, 2  ;;  %v2899_v24 = vshll.u32 %v14117_v46, %v2887_v14 }
 0x2ae   : > { %v2748_v29 = vmul.f32 %v2747_v10, %v2745_v59  ;;  %v2891_v15 = vshrl.u32 %v14055_v4, %v2888_v43  ;;  %v2894_v45 = vshrl.u32 %v14056_v19, %v2888_v43  ;;  %v2897_v1 = vshrl.u32 %v14117_v46, %v2888_v43  ;;  %v12352_v25 = vpop.eup %9413 }
 0x2af   : > { %v12354_v51 = vshrl.u32 %v2102_v35, 30  ;;  %v2900_v12 = vshrl.u32 %v14057_v13, %v2888_v43  ;;  %v2902_v56 = vshll.u32 %v14057_v13, %v2887_v14  ;;  %v12358_v32 = vpop.eup %9415  ;;  %v2889_v62 = vshrl.u32 %v14044_v42, %v2888_v43 }
 0x2b0   : > { %v2749_v41 = vxor.u32 2147483648, %v2748_v29  ;;  %v2903_v54 = vshrl.u32 %v14058_v22, %v2888_v43  ;;  %v12362_v60 = vshll.u32 %v2881_v21, 8  ;;  %v1732_v38 = vand.u32 2139095040, %v12339_v50 }
 0x2b1   : > { %v2104_v53 = vshll.u32 %v12354_v51, 30  ;;  %v2892_v61 = vor.u32 %v2891_v15, %v2890_v63  ;;  %v2895_v59 = vor.u32 %v2894_v45, %v2893_v30  ;;  %v2901_v35 = vor.u32 %v2900_v12, %v2899_v24 }
 0x2b2   : > { %v2750_v10 = vsel %vm2667_vm8, %v2749_v41, %v2748_v29  ;;  %v2904_v44 = vor.u32 %v2903_v54, %v2902_v56  ;;  %vm2905_vm6 = vcmp.lt.s32.totalorder %v12341_v52, 1  ;;  %v13942_v21 = vxor.u32 2147483648, %v12352_v25 }
 0x2b3   : > { %v2753_v14 = vsel %vm12320_vm5, %v12079_v47, %v2750_v10  ;;  %v12373_v43 = vsub.s32 %v2101_v0, %v2104_v53  ;;  %v2898_v17 = vor.u32 %v2897_v1, %v2896_v40  ;;  %v13944_v29 = vxor.u32 2147483648, %v12358_v32 }
 0x2b4   : > { %9417 = vcosq.f32 %v2753_v14  ;;  %vm2907_vm8 = vcmp.lt.s32.totalorder %v12341_v52, 3  ;;  %vm2908_vm1 = vcmp.lt.s32.totalorder %v12341_v52, 4  ;;  %vm1925_vm7 = vweird.f32 %v11871_v23 }
 0x2b5   : > { %9419 = vsinq.f32 %v2753_v14  ;;  %v2107_v8 = vsub.s32 0, %v12373_v43  ;;  %vm2906_vm14 = vcmp.lt.s32.totalorder %v12341_v52, 2  ;;  %v2910_v63 = vsel %vm2908_vm1, %v2898_v17, 2102212464 }
 0x2b6   : > { %v2913_v30 = vsel %vm2905_vm6, %v2892_v61, %v2895_v59  ;;  %v2909_v0 = vsel %vm2905_vm6, %v2889_v62, %v2892_v61  ;;  %v2911_v40 = vsel %vm2907_vm8, %v2895_v59, %v2910_v63  ;;  %v2914_v15 = vsel %vm2908_vm1, %v2901_v35, 920167782 }
 0x2b7   : > { %v2918_v45 = vsel %vm2908_vm1, %v2904_v44, 1326507024  ;;  %v2759_v1 = vand.u32 3, %v2758_v55  ;;  %v8677_v24 = vmin.u32 %v2107_v8, %v12373_v43  ;;  %v2915_v41 = vsel %vm2907_vm8, %v2898_v17, %v2914_v15 }
 0x2b8   : > { %v2917_v12 = vsel %vm2905_vm6, %v2895_v59, %v2898_v17  ;;  %vm1928_vm15 = vcmp.lt.s32.totalorder %v12334_v7, 2  ;;  %vm2757_vm5 = vweird.f32 %v12079_v47  ;;  %v2916_v56 = vsel %vm2906_vm14, %v2913_v30, %v2915_v41 }
 0x2b9   : > { %v2919_v62 = vsel %vm2907_vm8, %v2901_v35, %v2918_v45  ;;  %v1733_v44 = vshrl.u32 %v1732_v38, 23  ;;  %v1931_v55 = vsel %vm1929_vm2, %v12352_v25, %v13944_v29  ;;  %v1934_v17 = vsel %vm1932_vm11, %v13942_v21, %v12358_v32 }
 0x2ba   : > { %v2109_v54 = vclz %v8677_v24  ;;  %v2912_v10 = vsel %vm2906_vm14, %v2909_v0, %v2911_v40  ;;  %v2920_v53 = vsel %vm2906_vm14, %v2917_v12, %v2919_v62  ;;  %vm2760_vm3 = vcmp.lt.s32.totalorder %v2759_v1, 2 }
 0x2bb   : > { %v12413_v38 = vmul.u32.u64.low %v12362_v60, %v2916_v56  ;;  %v12414_v61 = vmul.u32.u64.high %v12362_v60, %v2916_v56, %v12413_v38  ;;  %v8664_v59 = vadd.s32 4294967169, %v1733_v44  ;;  %vm2761_vm4 = vcmp.eq.s32.totalorder %v2759_v1, 0 }
 0x2bc   : > { %v8678_v14 = vadd.s32 4294967294, %v2109_v54  ;;  %v12418_v35 = vmul.u32.u64.low %v12362_v60, %v2920_v53  ;;  %v12419_v8 = vmul.u32.u64.high %v12362_v60, %v2920_v53, %v12418_v35  ;;  %vm2764_vm2 = vcmp.eq.s32.totalorder %v2759_v1, 2 }
 0x2bd   : > { %v13945_v63 = vand.u32 2147483647, %v12339_v50  ;;  %v1739_v30 = vadd.s32 1, %v8664_v59  ;;  %v1935_v52 = vsel %vm1928_vm15, %v1931_v55, %v1934_v17  ;;  %v2097_v40 = vadd.s32 %v12313_v57, %v12310_v31 }
 0x2be   : > { %v12422_v0 = vpop.eup %9417  ;;  %vm8679_vm11 = vcmp.lt.s32.totalorder %v8678_v14, 0  ;;  %v2928_v15 = vmul.u32 %v12362_v60, %v2912_v10  ;;  %v2931_v12 = vadd.s32 1, %v12414_v61  ;;  %v1936_v31 = vsel %vm1925_vm7, nan, %v1935_v52 }
 0x2bf   : > { %v12429_v45 = vpop.eup %9419  ;;  %v13941_v24 = vxor.u32 2147483648, %v12422_v0  ;;  %v2112_v41 = vsel %vm8679_vm11, 0, %v8678_v14  ;;  %vm1740_vm6 = vcmp.gt.s32.totalorder %v1739_v30, 0  ;;  %vm2930_vm8 = vc.u32 %v12419_v8, %v12413_v38 }
 0x2c0   : > { %v13943_v56 = vxor.u32 2147483648, %v12429_v45  ;;  %v2113_v62 = vsub.s32 32, %v2112_v41  ;;  %v2114_v7 = vshll.u32 %v12373_v43, %v2112_v41  ;;  %v2117_v44 = vsub.s32 4294967266, %v2112_v41 }
 0x2c1   : > { %v2766_v57 = vsel %vm2764_vm2, %v13941_v24, %v12429_v45  ;;  %v1741_v60 = vsel %vm1740_vm6, %v1739_v30, 0  ;;  %v2932_v54 = vsel %vm2930_vm8, %v2931_v12, %v12414_v61  ;;  %v1736_v24 = vand.u32 8388607, %v13945_v63 }
 0x2c2   : > { %v2763_v55 = vsel %vm2761_vm4, %v12422_v0, %v13943_v56  ;;  %v2115_v17 = vshrl.u32 %v2097_v40, %v2113_v62  ;;  %v2118_v43 = vadd.s32 127, %v2117_v44  ;;  %v2933_v53 = vadd.s32 %v2932_v54, %v2928_v15 }
 0x2c3   : > { %v2767_v10 = vsel %vm2760_vm3, %v2763_v55, %v2766_v57  ;;  %v1743_v59 = vand.u32 31, %v1741_v60  ;;  %v14142_v61 = vand.u32 2147483647, %v12218_v6  ;;  %vm2043_vm14 = vcmp.lt.s32.totalorder %v12218_v6, 0 }
 0x2c4   : > { %v2768_v14 = vsel %vm2757_vm5, nan, %v2767_v10  ;;  %v2116_v35 = vor.u32 %v2115_v17, %v2114_v7  ;;  %v2119_v52 = vshll.u32 %v2118_v43, 23  ;;  %v2934_v30 = vadd.s32 536870912, %v2933_v53 }
 0x2c5   : > { %v8999_v41 = vpack.c.bf16 %v2768_v14, %v1936_v31  ;;  %v1744_v21 = vsub.s32 32, %v1743_v59  ;;  %v1746_v62 = vshll.u32 %v14044_v42, %v1743_v59  ;;  %v1749_v1 = vshll.u32 %v14055_v4, %v1743_v59 }
 0x2c6   : > { %v2120_v56 = vor.u32 4788187, %v2119_v52  ;;  %v2123_v40 = vcvt.s32.f32 %v2116_v35  ;;  %vm12457_vm1 = vcmp.le.f32.partialorder %v14142_v61, 0.7853982  ;;  %v2935_v12 = vshrl.u32 %v2934_v30, 30 }
 0x2c7   : > { %9000 = vmatprep.subr.bf16.mxu0 %v8999_v41  ;;  %v1747_v7 = vshrl.u32 %v14055_v4, %v1744_v21  ;;  %v1750_v44 = vshrl.u32 %v14056_v19, %v1744_v21  ;;  %v1752_v31 = vshll.u32 %v14056_v19, %v1743_v59  ;;  %v1753_v55 = vshrl.u32 %v14117_v46, %v1744_v21 }
 0x2c8   : > { %v2121_v57 = vand.u32 2147483647, %v2120_v56  ;;  %v1755_v17 = vshll.u32 %v14117_v46, %v1743_v59  ;;  %v1756_v43 = vshrl.u32 %v14057_v13, %v1744_v21  ;;  %v2127_v54 = vsub.s32 4, %v12354_v51 }
 0x2c9   : > { %v2936_v10 = vshll.u32 %v2935_v12, 30  ;;  %v1742_v14 = vshrl.u32 %v1741_v60, 5  ;;  %v12470_v52 = vmul.f32 4.0, %v12179_v16  ;;  %v1737_v41 = vor.u32 8388608, %v1736_v24 }
 0x2ca   : > { %v2124_v35 = vmul.f32 %v2123_v40, %v2121_v57  ;;  %v1758_v30 = vshll.u32 %v14057_v13, %v1743_v59  ;;  %v1745_v61 = vshrl.u32 %v14044_v42, %v1744_v21  ;;  %v1748_v29 = vor.u32 %v1747_v7, %v1746_v62 }
 0x2cb   : > { %14145 = vst [vmem:[#allocation7_spill] sm:$0xff] %v12470_v52  ;;  %v12473_v56 = vsub.s32 %v2933_v53, %v2936_v10  ;;  %v1759_v63 = vshrl.u32 %v14058_v22, %v1744_v21  ;;  %vm2875_vm15 = vcmp.lt.s32.totalorder %v12258_v27, 0  ;;  %v1751_v28 = vor.u32 %v1750_v44, %v1749_v1 }
 0x2cc   : > { %v2125_v20 = vxor.u32 2147483648, %v2124_v35  ;;  %v1754_v39 = vor.u32 %v1753_v55, %v1752_v31  ;;  %v1757_v60 = vor.u32 %v1756_v43, %v1755_v17  ;;  %v2128_v16 = vsel %vm2043_vm14, %v2127_v54, %v12354_v51 }
 0x2cd   : > { %v2939_v24 = vsub.s32 0, %v12473_v56  ;;  %vm1761_vm3 = vcmp.lt.s32.totalorder %v1742_v14, 1  ;;  %vm1764_vm4 = vcmp.lt.s32.totalorder %v1742_v14, 4  ;;  %v1760_v53 = vor.u32 %v1759_v63, %v1758_v30 }
 0x2ce   : > { %v1766_v59 = vsel %vm1764_vm4, %v1754_v39, 2102212464  ;;  %v1777_v40 = vshll.u32 %v1737_v41, 8  ;;  %v2564_v21 = vand.u32 2139095040, %v12470_v52  ;;  %v2126_v62 = vsel %vm2043_vm14, %v2125_v20, %v2124_v35 }
 0x2cf   : > { %v14146_v1 = vand.u32 2147483647, %v12258_v27  ;;  %v8709_v51 = vmin.u32 %v2939_v24, %v12473_v56  ;;  %vm1762_vm11 = vcmp.lt.s32.totalorder %v1742_v14, 2  ;;  %vm1763_vm6 = vcmp.lt.s32.totalorder %v1742_v14, 3 }
 0x2d0   : > { %v1765_v63 = vsel %vm1761_vm3, %v1745_v61, %v1748_v29  ;;  %v1767_v44 = vsel %vm1763_vm6, %v1751_v28, %v1766_v59  ;;  %v1769_v31 = vsel %vm1761_vm3, %v1748_v29, %v1751_v28  ;;  %v1770_v57 = vsel %vm1764_vm4, %v1757_v60, 920167782 }
 0x2d1   : > { %vm12488_vm2 = vcmp.le.f32.partialorder %v14146_v1, 0.7853982  ;;  %v12499_v20 = vsel %vm12457_vm1, 0, %v2128_v16  ;;  %v2941_v55 = vclz %v8709_v51  ;;  %v2959_v17 = vsub.s32 4, %v2935_v12 }
 0x2d2   : > { %14149 = vst [vmem:[#allocation9_spill] sm:$0xff] %v12499_v20  ;;  %v1773_v43 = vsel %vm1761_vm3, %v1751_v28, %v1754_v39  ;;  %v2129_v54 = vsel %vm12457_vm1, %v12218_v6, %v2126_v62  ;;  %v2929_v10 = vadd.s32 %v12413_v38, %v12419_v8  ;;  %v1771_v35 = vsel %vm1763_vm6, %v1754_v39, %v1770_v57 }
 0x2d3   : > { %v1774_v29 = vsel %vm1764_vm4, %v1760_v53, 1326507024  ;;  %v8710_v41 = vadd.s32 4294967294, %v2941_v55  ;;  %v1768_v30 = vsel %vm1762_vm11, %v1765_v63, %v1767_v44  ;;  %v1772_v61 = vsel %vm1762_vm11, %v1769_v31, %v1771_v35 }
 0x2d4   : > { %v1775_v16 = vsel %vm1763_vm6, %v1757_v60, %v1774_v29  ;;  %v12513_v24 = vmul.u32.u64.low %v1777_v40, %v1772_v61  ;;  %v12514_v59 = vmul.u32.u64.high %v1777_v40, %v1772_v61, %v12513_v24  ;;  %v2565_v15 = vshrl.u32 %v2564_v21, 23  ;;  %v12537_v61 = vld [vmem:[%s9799_s25 + $0x30] sm:$0xff] }
 0x2d5   : > { %v1776_v28 = vsel %vm1762_vm11, %v1773_v43, %v1775_v16  ;;  %vm8711_vm8 = vcmp.lt.s32.totalorder %v8710_v41, 0  ;;  %v2960_v38 = vsel %vm2875_vm15, %v2959_v17, %v2935_v12  ;;  %9421 = vcosq.f32 %v2129_v54 }
 0x2d6   : > { %v12518_v39 = vmul.u32.u64.low %v1777_v40, %v1776_v28  ;;  %v12519_v8 = vmul.u32.u64.high %v1777_v40, %v1776_v28, %v12518_v39  ;;  %v2134_v53 = vadd.s32 3, %v12499_v20  ;;  %v2944_v62 = vsel %vm8711_vm8, 0, %v8710_v41 }
 0x2d7   : > { %v8696_v1 = vadd.s32 4294967169, %v2565_v15  ;;  %v2945_v51 = vsub.s32 32, %v2944_v62  ;;  %v2946_v14 = vshll.u32 %v12473_v56, %v2944_v62  ;;  %v2949_v60 = vsub.s32 4294967266, %v2944_v62  ;;  %v7173_v62 = vld [vmem:[%s13864_s2 + $0x20] sm:$0xff] }
 0x2d8   : > { %v1784_v63 = vmul.u32 %v1777_v40, %v1768_v30  ;;  %v12525_v21 = vsel %vm12488_vm2, 0, %v2960_v38  ;;  %v1787_v44 = vadd.s32 1, %v12514_v59  ;;  %v13951_v12 = vand.u32 2147483647, %v12470_v52 }
 0x2d9   : > { %14150 = vst [vmem:[#allocation13_spill] sm:$0xff] %v12525_v21  ;;  %v2571_v31 = vadd.s32 1, %v8696_v1  ;;  %v2947_v57 = vshrl.u32 %v2929_v10, %v2945_v51  ;;  %v2950_v55 = vadd.s32 127, %v2949_v60  ;;  %vm1786_vm1 = vc.u32 %v12519_v8, %v12513_v24 }
 0x2da   : > { %v12530_v17 = vand.u32 3, %v2134_v53  ;;  %v1788_v56 = vsel %vm1786_vm1, %v1787_v44, %v12514_v59  ;;  %v2966_v35 = vadd.s32 3, %v12525_v21  ;;  %9423 = vsinq.f32 %v2129_v54  ;;  %v7174_v54 = vld [vmem:[%s13864_s2 + $0x28] sm:$0xff] }
 0x2db   : > { %vm2572_vm14 = vcmp.gt.s32.totalorder %v2571_v31, 0  ;;  %v2948_v40 = vor.u32 %v2947_v57, %v2946_v14  ;;  %v2951_v43 = vshll.u32 %v2950_v55, 23  ;;  %v1789_v29 = vadd.s32 %v1788_v56, %v1784_v63  ;;  %8874 = vmatprep.mubr.msk.f32.mxu0 %vm14007_vm10, %v7174_v54  ;;  %8882 = vmatprep.mubr.msk.f32.mxu1 %vm14007_vm10, %v7174_v54 }
 0x2dc   : > { %v2568_v41 = vand.u32 8388607, %v13951_v12  ;;  %v2573_v30 = vsel %vm2572_vm14, %v2571_v31, 0  ;;  %v12540_v10 = vmul.f32 2.0, %v12537_v61  ;;  %vm2140_vm3 = vcmp.eq.s32.totalorder %v12530_v17, 2  ;;  %7287 = vmatmul.mubr.f32.gmra.mrb[4].mxu0 %v7173_v62  ;;  %7400 = vmatmul.mubr.f32.gmra.mrb[4].mxu1 %v7173_v62 }
 0x2dd   : > { %v2952_v16 = vor.u32 4788187, %v2951_v43  ;;  %v2955_v28 = vcvt.s32.f32 %v2948_v40  ;;  %v1790_v15 = vadd.s32 536870912, %v1789_v29  ;;  %v2575_v59 = vand.u32 31, %v2573_v30 }
 0x2de   : > { %14151 = vst [vmem:[#allocation14_spill] sm:$0xff] %v12540_v10  ;;  %v12543_v39 = vand.u32 3, %v2966_v35  ;;  %v2569_v51 = vor.u32 8388608, %v2568_v41  ;;  %v1940_v63 = vand.u32 2139095040, %v12540_v10  ;;  %v12560_v31 = vadd.s32 %v12513_v24, %v12519_v8 }
 0x2df   : > { %v2953_v38 = vand.u32 2147483647, %v2952_v16  ;;  %v12545_v53 = vshrl.u32 %v1790_v15, 30  ;;  %v12553_v1 = vpop.eup %9421  ;;  %v2576_v14 = vsub.s32 32, %v2575_v59  ;;  %v2578_v60 = vshll.u32 %v14044_v42, %v2575_v59 }
 0x2e0   : > { %14152 = vst [vmem:[#allocation10_spill] sm:$0xff] %v12553_v1  ;;  %v2581_v55 = vshll.u32 %v14055_v4, %v2575_v59  ;;  %vm2137_vm4 = vcmp.eq.s32.totalorder %v12530_v17, 0  ;;  %v2584_v43 = vshll.u32 %v14056_v19, %v2575_v59  ;;  %v2574_v24 = vshrl.u32 %v2573_v30, 5 }
 0x2e1   : > { %v2956_v44 = vmul.f32 %v2955_v28, %v2953_v38  ;;  %v1792_v57 = vshll.u32 %v12545_v53, 30  ;;  %v2579_v56 = vshrl.u32 %v14055_v4, %v2576_v14  ;;  %v2582_v40 = vshrl.u32 %v14056_v19, %v2576_v14 }
 0x2e2   : > { %v2585_v35 = vshrl.u32 %v14117_v46, %v2576_v14  ;;  %v2587_v8 = vshll.u32 %v14117_v46, %v2575_v59  ;;  %v13957_v28 = vxor.u32 2147483648, %v12553_v1  ;;  %v2577_v15 = vshrl.u32 %v14044_v42, %v2576_v14 }
 0x2e3   : > { %v2957_v41 = vxor.u32 2147483648, %v2956_v44  ;;  %v12569_v16 = vsub.s32 %v1789_v29, %v1792_v57  ;;  %v2580_v38 = vor.u32 %v2579_v56, %v2578_v60  ;;  %v1941_v54 = vshrl.u32 %v1940_v63, 23 }
 0x2e4   : > { %v2583_v21 = vor.u32 %v2582_v40, %v2581_v55  ;;  %v2588_v20 = vshrl.u32 %v14057_v13, %v2576_v14  ;;  %v12578_v37 = vpop.eup %9423  ;;  %vm2136_vm11 = vcmp.lt.s32.totalorder %v12530_v17, 2  ;;  %v2586_v30 = vor.u32 %v2585_v35, %v2584_v43 }
 0x2e5   : > { %v2958_v62 = vsel %vm2875_vm15, %v2957_v41, %v2956_v44  ;;  %v1795_v12 = vsub.s32 0, %v12569_v16  ;;  %14153 = vst [vmem:[#allocation22_spill] sm:$0xff] %v12578_v37  ;;  %v2590_v60 = vshll.u32 %v14057_v13, %v2575_v59  ;;  %v2591_v63 = vshrl.u32 %v14058_v22, %v2576_v14 }
 0x2e6   : > { %v2961_v29 = vsel %vm12488_vm2, %v12258_v27, %v2958_v62  ;;  %v2589_v57 = vor.u32 %v2588_v20, %v2587_v8  ;;  %vm2593_vm15 = vcmp.lt.s32.totalorder %v2574_v24, 1  ;;  %v12587_v56 = vshll.u32 %v2569_v51, 8 }
 0x2e7   : > { %9425 = vcosq.f32 %v2961_v29  ;;  %v8665_v44 = vmin.u32 %v1795_v12, %v12569_v16  ;;  %v2592_v55 = vor.u32 %v2591_v63, %v2590_v60  ;;  %v8672_v40 = vadd.s32 4294967169, %v1941_v54 }
 0x2e8   : > { %9427 = vsinq.f32 %v2961_v29  ;;  %vm13993_vm6 = vweird.f32 %v12218_v6  ;;  %v13960_v7 = vxor.u32 2147483648, %v12578_v37  ;;  %v2142_v59 = vsel %vm2140_vm3, %v13957_v28, %v12578_v37 }
 0x2e9   : > { %vm2972_vm2 = vcmp.eq.s32.totalorder %v12543_v39, 2  ;;  %v1797_v12 = vclz %v8665_v44  ;;  %vm2595_vm8 = vcmp.lt.s32.totalorder %v2574_v24, 3  ;;  %vm2969_vm1 = vcmp.eq.s32.totalorder %v12543_v39, 0 }
 0x2ea   : > { %vm2594_vm14 = vcmp.lt.s32.totalorder %v2574_v24, 2  ;;  %vm2596_vm0 = vcmp.lt.s32.totalorder %v2574_v24, 4  ;;  %v2597_v20 = vsel %vm2593_vm15, %v2577_v15, %v2580_v38  ;;  %v2601_v51 = vsel %vm2593_vm15, %v2580_v38, %v2583_v21 }
 0x2eb   : > { %v8666_v14 = vadd.s32 4294967294, %v1797_v12  ;;  %v2598_v43 = vsel %vm2596_vm0, %v2586_v30, 2102212464  ;;  %v2602_v35 = vsel %vm2596_vm0, %v2589_v57, 920167782  ;;  %v2605_v41 = vsel %vm2593_vm15, %v2583_v21, %v2586_v30 }
 0x2ec   : > { %vm13992_vm13 = vweird.f32 %v12258_v27  ;;  %v2599_v8 = vsel %vm2595_vm8, %v2583_v21, %v2598_v43  ;;  %v2603_v54 = vsel %vm2595_vm8, %v2586_v30, %v2602_v35  ;;  %v2606_v62 = vsel %vm2596_vm0, %v2592_v55, 1326507024 }
 0x2ed   : > { %v1947_v29 = vadd.s32 1, %v8672_v40  ;;  %v2139_v15 = vsel %vm2137_vm4, %v12553_v1, %v13960_v7  ;;  %vm8667_vm3 = vcmp.lt.s32.totalorder %v8666_v14, 0  ;;  %v2604_v38 = vsel %vm2594_vm14, %v2601_v51, %v2603_v54 }
 0x2ee   : > { %v2607_v60 = vsel %vm2595_vm8, %v2589_v57, %v2606_v62  ;;  %v1800_v63 = vsel %vm8667_vm3, 0, %v8666_v14  ;;  %v12613_v21 = vmul.u32.u64.low %v12587_v56, %v2604_v38  ;;  %v12614_v12 = vmul.u32.u64.high %v12587_v56, %v2604_v38, %v12613_v21 }
 0x2ef   : > { %v2608_v44 = vsel %vm2594_vm14, %v2605_v41, %v2607_v60  ;;  %v1801_v30 = vsub.s32 32, %v1800_v63  ;;  %v1802_v55 = vshll.u32 %v12569_v16, %v1800_v63  ;;  %v1805_v40 = vsub.s32 4294967266, %v1800_v63 }
 0x2f0   : > { %v2600_v43 = vsel %vm2594_vm14, %v2597_v20, %v2599_v8  ;;  %v12620_v35 = vmul.u32.u64.low %v12587_v56, %v2608_v44  ;;  %v12621_v28 = vmul.u32.u64.high %v12587_v56, %v2608_v44, %v12620_v35  ;;  %v13961_v57 = vand.u32 2147483647, %v12540_v10 }
 0x2f1   : > { %vm1948_vm0 = vcmp.gt.s32.totalorder %v1947_v29, 0  ;;  %v12624_v51 = vpop.eup %9425  ;;  %v2143_v14 = vsel %vm2136_vm11, %v2139_v15, %v2142_v59  ;;  %v1803_v41 = vshrl.u32 %v12560_v31, %v1801_v30  ;;  %v1806_v54 = vadd.s32 127, %v1805_v40 }
 0x2f2   : > { %14154 = vst [vmem:[#allocation23_spill] sm:$0xff] %v12624_v51  ;;  %v1949_v62 = vsel %vm1948_vm0, %v1947_v29, 0  ;;  %v12629_v16 = vpop.eup %9427  ;;  %v13958_v24 = vxor.u32 2147483648, %v12624_v51  ;;  %vm1731_vm4 = vcmp.lt.s32.totalorder %v12339_v50, 0  ;;  %v2616_v20 = vmul.u32 %v12587_v56, %v2600_v43 }
 0x2f3   : > { %14155 = vst [vmem:[#allocation24_spill] sm:$0xff] %v12629_v16  ;;  %v2619_v8 = vadd.s32 1, %v12614_v12  ;;  %v1951_v38 = vand.u32 31, %v1949_v62  ;;  %vm2968_vm15 = vcmp.lt.s32.totalorder %v12543_v39, 2  ;;  %v13959_v17 = vxor.u32 2147483648, %v12629_v16 }
 0x2f4   : > { %v1804_v59 = vor.u32 %v1803_v41, %v1802_v55  ;;  %v1807_v15 = vshll.u32 %v1806_v54, 23  ;;  %v2144_v31 = vsel %vm13993_vm6, nan, %v2143_v14  ;;  %v2974_v29 = vsel %vm2972_vm2, %v13958_v24, %v12629_v16 }
 0x2f5   : > { %vm2618_vm11 = vc.u32 %v12621_v28, %v12613_v21  ;;  %v1952_v56 = vsub.s32 32, %v1951_v38  ;;  %v2971_v60 = vsel %vm2969_vm1, %v12624_v51, %v13959_v17  ;;  %v1944_v43 = vand.u32 8388607, %v13961_v57 }
 0x2f6   : > { %v1808_v63 = vor.u32 4788187, %v1807_v15  ;;  %v1811_v44 = vcvt.s32.f32 %v1804_v59  ;;  %v2620_v30 = vsel %vm2618_vm11, %v2619_v8, %v12614_v12  ;;  %v2975_v55 = vsel %vm2968_vm15, %v2971_v60, %v2974_v29 }
 0x2f7   : > { %v2621_v40 = vadd.s32 %v2620_v30, %v2616_v20  ;;  %v1954_v35 = vshll.u32 %v14044_v42, %v1951_v38  ;;  %v2976_v14 = vsel %vm13992_vm13, nan, %v2975_v55  ;;  %v1955_v54 = vshrl.u32 %v14055_v4, %v1952_v56 }
 0x2f8   : > { %v1809_v41 = vand.u32 2147483647, %v1808_v63  ;;  %v1957_v39 = vshll.u32 %v14055_v4, %v1951_v38  ;;  %v9031_v24 = vpack.c.bf16 %v2976_v14, %v2144_v31  ;;  %v1958_v59 = vshrl.u32 %v14056_v19, %v1952_v56 }
 0x2f9   : > { %v2622_v15 = vadd.s32 536870912, %v2621_v40  ;;  %v1960_v12 = vshll.u32 %v14056_v19, %v1951_v38  ;;  %v1950_v8 = vshrl.u32 %v1949_v62, 5  ;;  %v1961_v29 = vshrl.u32 %v14117_v46, %v1952_v56 }
 0x2fa   : > { %v1812_v20 = vmul.f32 %v1811_v44, %v1809_v41  ;;  %v1963_v60 = vshll.u32 %v14117_v46, %v1951_v38  ;;  %9032 = vmatprep.subr.bf16.mxu1 %v9031_v24  ;;  %v14156_v30 = vand.u32 2147483647, %v12339_v50  ;;  %v1964_v31 = vshrl.u32 %v14057_v13, %v1952_v56 }
 0x2fb   : > { %v2623_v55 = vshrl.u32 %v2622_v15, 30  ;;  %v1966_v14 = vshll.u32 %v14057_v13, %v1951_v38  ;;  %v1945_v7 = vor.u32 8388608, %v1944_v43  ;;  %v1953_v62 = vshrl.u32 %v14044_v42, %v1952_v56 }
 0x2fc   : > { %vm12665_vm2 = vcmp.le.f32.partialorder %v14156_v30, 0.7853982  ;;  %v1813_v17 = vxor.u32 2147483648, %v1812_v20  ;;  %v1967_v44 = vshrl.u32 %v14058_v22, %v1952_v56  ;;  %v1956_v57 = vor.u32 %v1955_v54, %v1954_v35 }
 0x2fd   : > { %v2624_v41 = vshll.u32 %v2623_v55, 30  ;;  %v1959_v24 = vor.u32 %v1958_v59, %v1957_v39  ;;  %v1962_v27 = vor.u32 %v1961_v29, %v1960_v12  ;;  %v1965_v6 = vor.u32 %v1964_v31, %v1963_v60 }
 0x2fe   : > { %v1814_v30 = vsel %vm1731_vm4, %v1813_v17, %v1812_v20  ;;  %v1968_v51 = vor.u32 %v1967_v44, %v1966_v14  ;;  %vm1969_vm8 = vcmp.lt.s32.totalorder %v1950_v8, 1  ;;  %v1815_v15 = vsub.s32 4, %v12545_v53 }
 0x2ff   : > { %v2625_v16 = vsub.s32 %v2621_v40, %v2624_v41  ;;  %vm1972_vm1 = vcmp.lt.s32.totalorder %v1950_v8, 4  ;;  %vm1970_vm14 = vcmp.lt.s32.totalorder %v1950_v8, 2  ;;  %vm1971_vm3 = vcmp.lt.s32.totalorder %v1950_v8, 3 }
 0x300   : > { %v1974_v38 = vsel %vm1972_vm1, %v1962_v27, 2102212464  ;;  %v1985_v43 = vshll.u32 %v1945_v7, 8  ;;  %v1817_v56 = vsel %vm12665_vm2, %v12339_v50, %v1814_v30  ;;  %v1973_v54 = vsel %vm1969_vm8, %v1953_v62, %v1956_v57 }
 0x301   : > { %v2627_v35 = vsub.s32 0, %v2625_v16  ;;  %v1977_v39 = vsel %vm1969_vm8, %v1956_v57, %v1959_v24  ;;  %v1975_v59 = vsel %vm1971_vm3, %v1959_v24, %v1974_v38  ;;  %v1978_v17 = vsel %vm1972_vm1, %v1965_v6, 920167782 }
 0x302   : > { %v1981_v12 = vsel %vm1969_vm8, %v1959_v24, %v1962_v27  ;;  %v1982_v20 = vsel %vm1972_vm1, %v1968_v51, 1326507024  ;;  %v12680_v60 = vmul.f32 4.0, %v12537_v61  ;;  %v1979_v40 = vsel %vm1971_vm3, %v1962_v27, %v1978_v17 }
 0x303   : > { %v8697_v29 = vmin.u32 %v2627_v35, %v2625_v16  ;;  %v1983_v31 = vsel %vm1971_vm3, %v1965_v6, %v1982_v20  ;;  %v1816_v7 = vsel %vm1731_vm4, %v1815_v15, %v12545_v53  ;;  %v2647_v14 = vsub.s32 4, %v2623_v55 }
 0x304   : > { %14159 = vst [vmem:[#allocation25_spill] sm:$0xff] %v12680_v60  ;;  %v1980_v44 = vsel %vm1970_vm14, %v1977_v39, %v1979_v40  ;;  %v1984_v62 = vsel %vm1970_vm14, %v1981_v12, %v1983_v31  ;;  %9429 = vcosq.f32 %v1817_v56  ;;  %vm2563_vm0 = vcmp.lt.s32.totalorder %v12470_v52, 0 }
 0x305   : > { %v2629_v57 = vclz %v8697_v29  ;;  %v1976_v51 = vsel %vm1970_vm14, %v1973_v54, %v1975_v59  ;;  %v12689_v41 = vmul.u32.u64.low %v1985_v43, %v1984_v62  ;;  %v12690_v24 = vmul.u32.u64.high %v1985_v43, %v1984_v62, %v12689_v41 }
 0x306   : > { %v12692_v27 = vmul.u32.u64.low %v1985_v43, %v1980_v44  ;;  %v12693_v6 = vmul.u32.u64.high %v1985_v43, %v1980_v44, %v12692_v27  ;;  %v12697_v53 = vsel %vm12665_vm2, 0, %v1816_v7  ;;  %9431 = vsinq.f32 %v1817_v56 }
 0x307   : > { %v8698_v30 = vadd.s32 4294967294, %v2629_v57  ;;  %v2772_v15 = vand.u32 2139095040, %v12680_v60  ;;  %v14160_v38 = vand.u32 2147483647, %v12470_v52  ;;  %v2648_v8 = vsel %vm2563_vm0, %v2647_v14, %v2623_v55 }
 0x308   : > { %v13968_v54 = vand.u32 2147483647, %v12680_v60  ;;  %v2617_v63 = vadd.s32 %v12613_v21, %v12621_v28  ;;  %v1992_v39 = vmul.u32 %v1985_v43, %v1976_v51  ;;  %v1822_v59 = vadd.s32 3, %v12697_v53 }
 0x309   : > { %vm12702_vm4 = vcmp.le.f32.partialorder %v14160_v38, 0.7853982  ;;  %vm8699_vm15 = vcmp.lt.s32.totalorder %v8698_v30, 0  ;;  %v2773_v56 = vshrl.u32 %v2772_v15, 23  ;;  %vm1994_vm11 = vc.u32 %v12690_v24, %v12692_v27 }
 0x30a   : > { %v2632_v17 = vsel %vm8699_vm15, 0, %v8698_v30  ;;  %v1995_v12 = vadd.s32 1, %v12693_v6  ;;  %v12716_v55 = vsel %vm12702_vm4, 0, %v2648_v8  ;;  %v2776_v21 = vand.u32 8388607, %v13968_v54 }
 0x30b   : > { %v2633_v20 = vsub.s32 32, %v2632_v17  ;;  %v2634_v29 = vshll.u32 %v2625_v16, %v2632_v17  ;;  %v2637_v40 = vsub.s32 4294967266, %v2632_v17  ;;  %14163 = vst [vmem:[#allocation26_spill] sm:$0xff] %v12716_v55  ;;  %v8704_v28 = vadd.s32 4294967169, %v2773_v56 }
 0x30c   : > { %v1996_v31 = vsel %vm1994_vm11, %v1995_v12, %v12693_v6  ;;  %v12721_v44 = vand.u32 3, %v1822_v59  ;;  %v2654_v62 = vadd.s32 3, %v12716_v55  ;;  %v2777_v15 = vor.u32 8388608, %v2776_v21 }
 0x30d   : > { %v2635_v43 = vshrl.u32 %v2617_v63, %v2633_v20  ;;  %v2638_v7 = vadd.s32 127, %v2637_v40  ;;  %v1997_v14 = vadd.s32 %v1996_v31, %v1992_v39  ;;  %v2779_v57 = vadd.s32 1, %v8704_v28 }
 0x30e   : > { %v12724_v16 = vpop.eup %9429  ;;  %vm1828_vm8 = vcmp.eq.s32.totalorder %v12721_v44, 2  ;;  %v12731_v56 = vand.u32 3, %v2654_v62  ;;  %v12734_v12 = vadd.s32 %v12692_v27, %v12690_v24  ;;  %vm1825_vm1 = vcmp.eq.s32.totalorder %v12721_v44, 0 }
 0x30f   : > { %v2636_v51 = vor.u32 %v2635_v43, %v2634_v29  ;;  %v2639_v41 = vshll.u32 %v2638_v7, 23  ;;  %v1998_v30 = vadd.s32 536870912, %v1997_v14  ;;  %vm2780_vm2 = vcmp.gt.s32.totalorder %v2779_v57, 0  ;;  %v9470_v29 = vld [vmem:[%s9799_s25 + $0x28] sm:$0xff] }
 0x310   : > { %v12726_v6 = vpop.eup %9431  ;;  %v2781_v39 = vsel %vm2780_vm2, %v2779_v57, 0  ;;  %v12738_v40 = vmul.f32 8.0, %v9470_v29  ;;  %v12742_v43 = vshll.u32 %v2777_v15, 8  ;;  %vm1824_vm14 = vcmp.lt.s32.totalorder %v12721_v44, 2 }
 0x311   : > { %v2640_v38 = vor.u32 4788187, %v2639_v41  ;;  %v2643_v8 = vcvt.s32.f32 %v2636_v51  ;;  %v12728_v63 = vshrl.u32 %v1998_v30, 30  ;;  %v2783_v59 = vand.u32 31, %v2781_v39 }
 0x312   : > { %v2782_v15 = vshrl.u32 %v2781_v39, 5  ;;  %v3500_v54 = vand.u32 2139095040, %v12738_v40  ;;  %vm13995_vm11 = vweird.f32 %v12339_v50  ;;  %v14166_v44 = vand.u32 2147483647, %v12540_v10 }
 0x313   : > { %v2641_v17 = vand.u32 2147483647, %v2640_v38  ;;  %v2000_v20 = vshll.u32 %v12728_v63, 30  ;;  %v2784_v21 = vsub.s32 32, %v2783_v59  ;;  %v2786_v57 = vshll.u32 %v14044_v42, %v2783_v59 }
 0x314   : > { %v2789_v24 = vshll.u32 %v14055_v4, %v2783_v59  ;;  %v2792_v41 = vshll.u32 %v14056_v19, %v2783_v59  ;;  %v2795_v30 = vshll.u32 %v14117_v46, %v2783_v59  ;;  %vm2801_vm3 = vcmp.lt.s32.totalorder %v2782_v15, 1 }
 0x315   : > { %v2644_v7 = vmul.f32 %v2643_v8, %v2641_v17  ;;  %v12744_v62 = vsub.s32 %v1997_v14, %v2000_v20  ;;  %v2787_v27 = vshrl.u32 %v14055_v4, %v2784_v21  ;;  %v2790_v51 = vshrl.u32 %v14056_v19, %v2784_v21 }
 0x316   : > { %v2793_v8 = vshrl.u32 %v14117_v46, %v2784_v21  ;;  %v2785_v14 = vshrl.u32 %v14044_v42, %v2784_v21  ;;  %v2796_v17 = vshrl.u32 %v14057_v13, %v2784_v21  ;;  %v2798_v20 = vshll.u32 %v14057_v13, %v2783_v59 }
 0x317   : > { %v2645_v38 = vxor.u32 2147483648, %v2644_v7  ;;  %v2003_v29 = vsub.s32 0, %v12744_v62  ;;  %v2788_v1 = vor.u32 %v2787_v27, %v2786_v57  ;;  %v2791_v37 = vor.u32 %v2790_v51, %v2789_v24 }
 0x318   : > { %v2794_v47 = vor.u32 %v2793_v8, %v2792_v41  ;;  %v2797_v23 = vor.u32 %v2796_v17, %v2795_v30  ;;  %v2799_v55 = vshrl.u32 %v14058_v22, %v2784_v21  ;;  %v14164_v59 = vxor.u32 2147483648, %v12724_v16 }
 0x319   : > { %v2646_v31 = vsel %vm2563_vm0, %v2645_v38, %v2644_v7  ;;  %v8673_v28 = vmin.u32 %v2003_v29, %v12744_v62  ;;  %vm2802_vm0 = vcmp.lt.s32.totalorder %v2782_v15, 2  ;;  %v3501_v35 = vshrl.u32 %v3500_v54, 23 }
 0x31a   : > { %v2649_v39 = vsel %vm12702_vm4, %v12470_v52, %v2646_v31  ;;  %v1830_v7 = vsel %vm1828_vm8, %v14164_v59, %v12726_v6  ;;  %v2800_v57 = vor.u32 %v2799_v55, %v2798_v20  ;;  %vm2803_vm4 = vcmp.lt.s32.totalorder %v2782_v15, 3 }
 0x31b   : > { %9433 = vcosq.f32 %v2649_v39  ;;  %v2005_v38 = vclz %v8673_v28  ;;  %vm2804_vm15 = vcmp.lt.s32.totalorder %v2782_v15, 4  ;;  %v2805_v24 = vsel %vm2801_vm3, %v2785_v14, %v2788_v1 }
 0x31c   : > { %9435 = vsinq.f32 %v2649_v39  ;;  %v2806_v21 = vsel %vm2804_vm15, %v2794_v47, 2102212464  ;;  %v2809_v27 = vsel %vm2801_vm3, %v2788_v1, %v2791_v37  ;;  %v2810_v51 = vsel %vm2804_vm15, %v2797_v23, 920167782 }
 0x31d   : > { %v8674_v31 = vadd.s32 4294967294, %v2005_v38  ;;  %v2813_v41 = vsel %vm2801_vm3, %v2791_v37, %v2794_v47  ;;  %v2807_v30 = vsel %vm2803_vm4, %v2791_v37, %v2806_v21  ;;  %v2811_v28 = vsel %vm2803_vm4, %v2794_v47, %v2810_v51 }
 0x31e   : > { %v2814_v29 = vsel %vm2804_vm15, %v2800_v57, 1326507024  ;;  %vm13994_vm8 = vweird.f32 %v12470_v52  ;;  %v2808_v54 = vsel %vm2802_vm0, %v2805_v24, %v2807_v30  ;;  %v2812_v8 = vsel %vm2802_vm0, %v2809_v27, %v2811_v28 }
 0x31f   : > { %vm8675_vm2 = vcmp.lt.s32.totalorder %v8674_v31, 0  ;;  %v2815_v14 = vsel %vm2803_vm4, %v2797_v23, %v2814_v29  ;;  %v12786_v47 = vmul.u32.u64.low %v12742_v43, %v2812_v8  ;;  %v12787_v38 = vmul.u32.u64.high %v12742_v43, %v2812_v8, %v12786_v47 }
 0x320   : > { %v2008_v55 = vsel %vm8675_vm2, 0, %v8674_v31  ;;  %v2816_v39 = vsel %vm2802_vm0, %v2813_v41, %v2815_v14  ;;  %v14165_v57 = vxor.u32 2147483648, %v12726_v6  ;;  %v8732_v15 = vadd.s32 4294967169, %v3501_v35 }
 0x321   : > { %v2009_v17 = vsub.s32 32, %v2008_v55  ;;  %v2010_v1 = vshll.u32 %v12744_v62, %v2008_v55  ;;  %v2013_v20 = vsub.s32 4294967266, %v2008_v55  ;;  %vm2656_vm3 = vcmp.lt.s32.totalorder %v12731_v56, 2 }
 0x322   : > { %v12782_v37 = vmul.u32.u64.low %v12742_v43, %v2816_v39  ;;  %v12783_v59 = vmul.u32.u64.high %v12742_v43, %v2816_v39, %v12782_v37  ;;  %v1827_v23 = vsel %vm1825_vm1, %v12724_v16, %v14165_v57  ;;  %vm2657_vm0 = vcmp.eq.s32.totalorder %v12731_v56, 0 }
 0x323   : > { %v2011_v62 = vshrl.u32 %v12734_v12, %v2009_v17  ;;  %v2014_v31 = vadd.s32 127, %v2013_v20  ;;  %vm2660_vm4 = vcmp.eq.s32.totalorder %v12731_v56, 2  ;;  %v13978_v24 = vand.u32 2147483647, %v12738_v40 }
 0x324   : > { %v2824_v41 = vmul.u32 %v12742_v43, %v2808_v54  ;;  %v3507_v30 = vadd.s32 1, %v8732_v15  ;;  %v1831_v12 = vsel %vm1824_vm14, %v1827_v23, %v1830_v7  ;;  %vm2826_vm1 = vc.u32 %v12783_v59, %v12786_v47 }
 0x325   : > { %v12800_v21 = vpop.eup %9433  ;;  %v2012_v27 = vor.u32 %v2011_v62, %v2010_v1  ;;  %v2015_v51 = vshll.u32 %v2014_v31, 23  ;;  %v2827_v29 = vadd.s32 1, %v12787_v38  ;;  %vm12819_vm14 = vcmp.le.f32.partialorder %v14166_v44, 0.7853982 }
 0x326   : > { %v12803_v28 = vpop.eup %9435  ;;  %v13976_v35 = vxor.u32 2147483648, %v12800_v21  ;;  %vm3508_vm15 = vcmp.gt.s32.totalorder %v3507_v30, 0  ;;  %v1832_v1 = vsel %vm13995_vm11, nan, %v1831_v12  ;;  %vm1939_vm2 = vcmp.lt.s32.totalorder %v12540_v10, 0 }
 0x327   : > { %v13977_v55 = vxor.u32 2147483648, %v12803_v28  ;;  %v2016_v8 = vor.u32 4788187, %v2015_v51  ;;  %v2019_v14 = vcvt.s32.f32 %v2012_v27  ;;  %v2828_v54 = vsel %vm2826_vm1, %v2827_v29, %v12787_v38 }
 0x328   : > { %v2662_v43 = vsel %vm2660_vm4, %v13976_v35, %v12803_v28  ;;  %v3509_v17 = vsel %vm3508_vm15, %v3507_v30, 0  ;;  %v2829_v37 = vadd.s32 %v2828_v54, %v2824_v41  ;;  %v3504_v38 = vand.u32 8388607, %v13978_v24 }
 0x329   : > { %v2659_v20 = vsel %vm2657_vm0, %v12800_v21, %v13977_v55  ;;  %v2017_v39 = vand.u32 2147483647, %v2016_v8  ;;  %v3511_v23 = vand.u32 31, %v3509_v17  ;;  %v2023_v15 = vsub.s32 4, %v12728_v63 }
 0x32a   : > { %v2663_v57 = vsel %vm2656_vm3, %v2659_v20, %v2662_v43  ;;  %v2830_v27 = vadd.s32 536870912, %v2829_v37  ;;  %v3510_v30 = vshrl.u32 %v3509_v17, 5  ;;  %vm2771_vm15 = vcmp.lt.s32.totalorder %v12680_v60, 0 }
 0x32b   : > { %v2664_v62 = vsel %vm13994_vm8, nan, %v2663_v57  ;;  %v2020_v31 = vmul.f32 %v2019_v14, %v2017_v39  ;;  %v3512_v12 = vsub.s32 32, %v3511_v23  ;;  %v3514_v41 = vshll.u32 %v14044_v42, %v3511_v23 }
 0x32c   : > { %v9001_v51 = vpack.c.bf16 %v2664_v62, %v1832_v1  ;;  %v12840_v29 = vshrl.u32 %v2830_v27, 30  ;;  %v3517_v8 = vshll.u32 %v14055_v4, %v3511_v23  ;;  %v3523_v43 = vshll.u32 %v14117_v46, %v3511_v23 }
 0x32d   : > { %v2021_v56 = vxor.u32 2147483648, %v2020_v31  ;;  %v3515_v44 = vshrl.u32 %v14055_v4, %v3512_v12  ;;  %v3518_v14 = vshrl.u32 %v14056_v19, %v3512_v12  ;;  %v3520_v54 = vshll.u32 %v14056_v19, %v3511_v23 }
 0x32e   : > { %9002 = vmatpush1.bf16.msra.mxu0 %v9001_v51  ;;  %v3521_v1 = vshrl.u32 %v14117_v46, %v3512_v12  ;;  %v2024_v20 = vsel %vm1939_vm2, %v2023_v15, %v12728_v63  ;;  %v2832_v39 = vshll.u32 %v12840_v29, 30  ;;  %v3524_v57 = vshrl.u32 %v14057_v13, %v3512_v12 }
 0x32f   : > { %v2022_v17 = vsel %vm1939_vm2, %v2021_v56, %v2020_v31  ;;  %v3505_v27 = vor.u32 8388608, %v3504_v38  ;;  %v3516_v51 = vor.u32 %v3515_v44, %v3514_v41  ;;  %vm3529_vm3 = vcmp.lt.s32.totalorder %v3510_v30, 1 }
 0x330   : > { %v2025_v62 = vsel %vm12819_vm14, %v12540_v10, %v2022_v17  ;;  %v12858_v35 = vsub.s32 %v2829_v37, %v2832_v39  ;;  %v3519_v55 = vor.u32 %v3518_v14, %v3517_v8  ;;  %v3525_v31 = vor.u32 %v3524_v57, %v3523_v43  ;;  %v9471_v57 = vld [vmem:[%s9799_s25 + $0x38] sm:$0xff] }
 0x331   : > { %9437 = vcosq.f32 %v2025_v62  ;;  %v3522_v56 = vor.u32 %v3521_v1, %v3520_v54  ;;  %v3526_v63 = vshll.u32 %v14057_v13, %v3511_v23  ;;  %v3527_v15 = vshrl.u32 %v14058_v22, %v3512_v12 }
 0x332   : > { %9439 = vsinq.f32 %v2025_v62  ;;  %v12864_v24 = vsel %vm12819_vm14, 0, %v2024_v20  ;;  %v2835_v17 = vsub.s32 0, %v12858_v35  ;;  %v3513_v38 = vshrl.u32 %v14044_v42, %v3512_v12 }
 0x333   : > { %14169 = vst [vmem:[#allocation27_spill] sm:$0xff] %v12864_v24  ;;  %vm3531_vm0 = vcmp.lt.s32.totalorder %v3510_v30, 3  ;;  %v3528_v37 = vor.u32 %v3527_v15, %v3526_v63  ;;  %vm3530_vm4 = vcmp.lt.s32.totalorder %v3510_v30, 2  ;;  %vm3532_vm1 = vcmp.lt.s32.totalorder %v3510_v30, 4 }
 0x334   : > { %v3545_v41 = vshll.u32 %v3505_v27, 8  ;;  %v8705_v8 = vmin.u32 %v2835_v17, %v12858_v35  ;;  %v3534_v43 = vsel %vm3532_vm1, %v3522_v56, 2102212464  ;;  %v3537_v23 = vsel %vm3529_vm3, %v3516_v51, %v3519_v55 }
 0x335   : > { %v3538_v44 = vsel %vm3532_vm1, %v3525_v31, 920167782  ;;  %v2030_v7 = vadd.s32 3, %v12864_v24  ;;  %v3541_v54 = vsel %vm3529_vm3, %v3519_v55, %v3522_v56  ;;  %v3542_v1 = vsel %vm3532_vm1, %v3528_v37, 1326507024 }
 0x336   : > { %v3539_v14 = vsel %vm3531_vm0, %v3522_v56, %v3538_v44  ;;  %v2837_v12 = vclz %v8705_v8  ;;  %v3533_v20 = vsel %vm3529_vm3, %v3513_v38, %v3516_v51  ;;  %v3535_v39 = vsel %vm3531_vm0, %v3519_v55, %v3534_v43 }
 0x337   : > { %v12876_v62 = vmul.f32 8.0, %v9471_v57  ;;  %v2855_v27 = vsub.s32 4, %v12840_v29  ;;  %v3540_v63 = vsel %vm3530_vm4, %v3537_v23, %v3539_v14  ;;  %v3543_v15 = vsel %vm3531_vm0, %v3525_v31, %v3542_v1 }
 0x338   : > { %v8706_v17 = vadd.s32 4294967294, %v2837_v12  ;;  %v3544_v44 = vsel %vm3530_vm4, %v3541_v54, %v3543_v15  ;;  %v12882_v24 = vmul.u32.u64.low %v3545_v41, %v3540_v63  ;;  %v12883_v56 = vmul.u32.u64.high %v3545_v41, %v3540_v63, %v12882_v24 }
 0x339   : > { %v2031_v37 = vand.u32 3, %v2030_v7  ;;  %v3536_v51 = vsel %vm3530_vm4, %v3533_v20, %v3535_v39  ;;  %v12886_v38 = vmul.u32.u64.low %v3545_v41, %v3544_v44  ;;  %v12887_v55 = vmul.u32.u64.high %v3545_v41, %v3544_v44, %v12886_v38 }
 0x33a   : > { %v2825_v43 = vadd.s32 %v12786_v47, %v12783_v59  ;;  %vm8707_vm14 = vcmp.lt.s32.totalorder %v8706_v17, 0  ;;  %v3708_v31 = vand.u32 2139095040, %v12876_v62  ;;  %v14172_v14 = vand.u32 2147483647, %v12680_v60 }
 0x33b   : > { %v12889_v8 = vpop.eup %9437  ;;  %v2840_v7 = vsel %vm8707_vm14, 0, %v8706_v17  ;;  %v2856_v54 = vsel %vm2771_vm15, %v2855_v27, %v12840_v29  ;;  %v13983_v1 = vand.u32 2147483647, %v12876_v62  ;;  %v3552_v20 = vmul.u32 %v3545_v41, %v3536_v51 }
 0x33c   : > { %14170 = vst [vmem:[#allocation28_spill] sm:$0xff] %v12889_v8  ;;  %v12895_v23 = vpop.eup %9439  ;;  %vm12899_vm2 = vcmp.le.f32.partialorder %v14172_v14, 0.7853982  ;;  %v2841_v12 = vsub.s32 32, %v2840_v7  ;;  %v2842_v59 = vshll.u32 %v12858_v35, %v2840_v7  ;;  %v2845_v47 = vsub.s32 4294967266, %v2840_v7 }
 0x33d   : > { %14171 = vst [vmem:[#allocation29_spill] sm:$0xff] %v12895_v23  ;;  %vm2036_vm3 = vcmp.eq.s32.totalorder %v2031_v37, 2  ;;  %v13980_v39 = vxor.u32 2147483648, %v12889_v8  ;;  %vm3554_vm0 = vc.u32 %v12887_v55, %v12882_v24  ;;  %v3555_v57 = vadd.s32 1, %v12883_v56 }
 0x33e   : > { %v13981_v63 = vxor.u32 2147483648, %v12895_v23  ;;  %v2843_v15 = vshrl.u32 %v2825_v43, %v2841_v12  ;;  %v2846_v17 = vadd.s32 127, %v2845_v47  ;;  %v3709_v44 = vshrl.u32 %v3708_v31, 23  ;;  %v9472_v47 = vld [vmem:[%s9799_s25 + $0x20] sm:$0xff] }
 0x33f   : > { %vm2033_vm4 = vcmp.eq.s32.totalorder %v2031_v37, 0  ;;  %v12914_v29 = vsel %vm12899_vm2, 0, %v2856_v54  ;;  %v3556_v35 = vsel %vm3554_vm0, %v3555_v57, %v12883_v56  ;;  %v3712_v38 = vand.u32 8388607, %v13983_v1 }
 0x340   : > { %14175 = vst [vmem:[#allocation30_spill] sm:$0xff] %v12914_v29  ;;  %v2844_v41 = vor.u32 %v2843_v15, %v2842_v59  ;;  %v2847_v27 = vshll.u32 %v2846_v17, 23  ;;  %v3557_v51 = vadd.s32 %v3556_v35, %v3552_v20  ;;  %vm2032_vm1 = vcmp.lt.s32.totalorder %v2031_v37, 2 }
 0x341   : > { %v2038_v43 = vsel %vm2036_vm3, %v13980_v39, %v12895_v23  ;;  %v8740_v31 = vadd.s32 4294967169, %v3709_v44  ;;  %v2035_v14 = vsel %vm2033_vm4, %v12889_v8, %v13981_v63  ;;  %vm13991_vm14 = vweird.f32 %v12540_v10 }
 0x342   : > { %v2848_v7 = vor.u32 4788187, %v2847_v27  ;;  %v2851_v54 = vcvt.s32.f32 %v2844_v41  ;;  %v3558_v56 = vadd.s32 536870912, %v3557_v51  ;;  %v2862_v12 = vadd.s32 3, %v12914_v29 }
 0x343   : > { %v3715_v59 = vadd.s32 1, %v8740_v31  ;;  %v12929_v20 = vmul.f32 8.0, %v9472_v47  ;;  %v12932_v17 = vand.u32 3, %v11888_v33  ;;  %v3713_v44 = vor.u32 8388608, %v3712_v38 }
 0x344   : > { %v2849_v57 = vand.u32 2147483647, %v2848_v7  ;;  %v3559_v15 = vshrl.u32 %v3558_v56, 30  ;;  %v2039_v35 = vsel %vm2032_vm1, %v2035_v14, %v2038_v43  ;;  %v12937_v27 = vmul.f32 8.0, %v12537_v61 }
 0x345   : > { %vm3716_vm3 = vcmp.gt.s32.totalorder %v3715_v59, 0  ;;  %v13982_v41 = vand.u32 2147483647, %v12929_v20  ;;  %vm3499_vm0 = vcmp.lt.s32.totalorder %v12738_v40, 0  ;;  %v12940_v63 = vand.u32 3, %v2862_v12 }
 0x346   : > { %v2852_v39 = vmul.f32 %v2851_v54, %v2849_v57  ;;  %v3560_v31 = vshll.u32 %v3559_v15, 30  ;;  %v3717_v47 = vsel %vm3716_vm3, %v3715_v59, 0  ;;  %v14176_v7 = vand.u32 2147483647, %v12738_v40 }
 0x347   : > { %v12949_v37 = vadd.s32 %v12882_v24, %v12887_v55  ;;  %v3719_v38 = vand.u32 31, %v3717_v47  ;;  %v12953_v61 = vsel %vm13991_vm14, nan, %v2039_v35  ;;  %v12957_v54 = vshll.u32 %v3713_v44, 8  ;;  %v7176_v44 = vld [vmem:[%s13864_s2 + $0x38] sm:$0xff] }
 0x348   : > { %vm12944_vm4 = vcmp.le.f32.partialorder %v14176_v7, 0.7853982  ;;  %v2853_v43 = vxor.u32 2147483648, %v2852_v39  ;;  %v12955_v14 = vsub.s32 %v3557_v51, %v3560_v31  ;;  %v3583_v56 = vsub.s32 4, %v3559_v15  ;;  %v7175_v31 = vld [vmem:[%s13864_s2 + $0x30] sm:$0xff]  ;;  %8875 = vmatprep.mubr.msk.f32.mxu0 %vm14007_vm10, %v7176_v44  ;;  %8883 = vmatprep.mubr.msk.f32.mxu1 %vm14007_vm10, %v7176_v44  ;;  %v7178_v44 = vld [vmem:[%s13864_s2 + $0x48] sm:$0xff] }
 0x349   : > { %v3720_v12 = vsub.s32 32, %v3719_v38  ;;  %v3396_v59 = vand.u32 2139095040, %v12929_v20  ;;  %v12962_v57 = vand.u32 8388607, %v13982_v41  ;;  %v3722_v35 = vshll.u32 %v14044_v42, %v3719_v38  ;;  %7293 = vmatmul.mubr.f32.gmra.mrb[6].mxu0 %v7175_v31  ;;  %7406 = vmatmul.mubr.f32.gmra.mrb[6].mxu1 %v7175_v31 }
 0x34a   : > { %v2854_v24 = vsel %vm2771_vm15, %v2853_v43, %v2852_v39  ;;  %v3563_v55 = vsub.s32 0, %v12955_v14  ;;  %v3725_v51 = vshll.u32 %v14055_v4, %v3719_v38  ;;  %v3728_v41 = vshll.u32 %v14056_v19, %v3719_v38  ;;  %8876 = vmatprep.mubr.msk.f32.mxu0 %vm14007_vm10, %v7178_v44  ;;  %8884 = vmatprep.mubr.msk.f32.mxu1 %vm14007_vm10, %v7178_v44 }
 0x34b   : > { %v2857_v7 = vsel %vm12899_vm2, %v12680_v60, %v2854_v24  ;;  %v3723_v39 = vshrl.u32 %v14055_v4, %v3720_v12  ;;  %v3726_v43 = vshrl.u32 %v14056_v19, %v3720_v12  ;;  %v12983_v10 = vshrl.u32 %v3717_v47, 5 }
 0x34c   : > { %9441 = vcosq.f32 %v2857_v7  ;;  %v8733_v1 = vmin.u32 %v3563_v55, %v12955_v14  ;;  %v3729_v8 = vshrl.u32 %v14117_v46, %v3720_v12  ;;  %v3584_v30 = vsel %vm3499_vm0, %v3583_v56, %v3559_v15 }
 0x34d   : > { %9443 = vsinq.f32 %v2857_v7  ;;  %v3731_v24 = vshll.u32 %v14117_v46, %v3719_v38  ;;  %v3397_v23 = vshrl.u32 %v3396_v59, 23  ;;  %vm2868_vm15 = vcmp.eq.s32.totalorder %v12940_v63, 2  ;;  %v7177_v7 = vld [vmem:[%s13864_s2 + $0x40] sm:$0xff] }
 0x34e   : > { %v3565_v29 = vclz %v8733_v1  ;;  %v3724_v52 = vor.u32 %v3723_v39, %v3722_v35  ;;  %v3727_v55 = vor.u32 %v3726_v43, %v3725_v51  ;;  %vm2865_vm2 = vcmp.eq.s32.totalorder %v12940_v63, 0  ;;  %7299 = vmatmul.mubr.f32.gmra.mrb[8].mxu0 %v7177_v7  ;;  %7412 = vmatmul.mubr.f32.gmra.mrb[8].mxu1 %v7177_v7  ;;  %v7179_v39 = vld [vmem:[%s13864_s2 + $0x50] sm:$0xff] }
 0x34f   : > { %v3730_v15 = vor.u32 %v3729_v8, %v3728_v41  ;;  %v3732_v56 = vshrl.u32 %v14057_v13, %v3720_v12  ;;  %v3734_v59 = vshll.u32 %v14057_v13, %v3719_v38  ;;  %v3735_v1 = vshrl.u32 %v14058_v22, %v3720_v12 }
 0x350   : > { %vm2864_vm1 = vcmp.lt.s32.totalorder %v12940_v63, 2  ;;  %v8734_v35 = vadd.s32 4294967294, %v3565_v29  ;;  %v13006_v51 = vsel %vm12944_vm4, 0, %v3584_v30  ;;  %v3721_v31 = vshrl.u32 %v14044_v42, %v3720_v12  ;;  %v7180_v12 = vld [vmem:[%s13864_s2 + $0x58] sm:$0xff] }
 0x351   : > { %vm3737_vm3 = vcmp.lt.s32.totalorder %v12983_v10, 1  ;;  %vm2861_vm14 = vweird.f32 %v12680_v60  ;;  %v3733_v8 = vor.u32 %v3732_v56, %v3731_v24  ;;  %v3736_v41 = vor.u32 %v3735_v1, %v3734_v59  ;;  %8877 = vmatprep.mubr.msk.f32.mxu0 %vm14007_vm10, %v7180_v12  ;;  %8885 = vmatprep.mubr.msk.f32.mxu1 %vm14007_vm10, %v7180_v12 }
 0x352   : > { %vm3738_vm13 = vcmp.lt.s32.totalorder %v12983_v10, 2  ;;  %vm3740_vm6 = vcmp.lt.s32.totalorder %v12983_v10, 4  ;;  %vm8735_vm8 = vcmp.lt.s32.totalorder %v8734_v35, 0  ;;  %vm3739_vm11 = vcmp.lt.s32.totalorder %v12983_v10, 3  ;;  %7305 = vmatmul.mubr.f32.gmra.mrb[10].mxu0 %v7179_v39  ;;  %7418 = vmatmul.mubr.f32.gmra.mrb[10].mxu1 %v7179_v39 }
 0x353   : > { %v3742_v29 = vsel %vm3740_vm6, %v3730_v15, 2102212464  ;;  %v3745_v38 = vsel %vm3737_vm3, %v3724_v52, %v3727_v55  ;;  %v3568_v43 = vsel %vm8735_vm8, 0, %v8734_v35  ;;  %v3746_v30 = vsel %vm3740_vm6, %v3733_v8, 920167782 }
 0x354   : > { %v3749_v24 = vsel %vm3737_vm3, %v3727_v55, %v3730_v15  ;;  %v3750_v44 = vsel %vm3740_vm6, %v3736_v41, 1326507024  ;;  %v3569_v7 = vsub.s32 32, %v3568_v43  ;;  %v3570_v56 = vshll.u32 %v12955_v14, %v3568_v43 }
 0x355   : > { %v3573_v59 = vsub.s32 4294967266, %v3568_v43  ;;  %v3741_v1 = vsel %vm3737_vm3, %v3721_v31, %v3724_v52  ;;  %v3743_v35 = vsel %vm3739_vm11, %v3727_v55, %v3742_v29  ;;  %v3747_v47 = vsel %vm3739_vm11, %v3730_v15, %v3746_v30  ;;  %v7182_v55 = vld [vmem:[%s13864_s2 + $0x68] sm:$0xff] }
 0x356   : > { %v3751_v41 = vsel %vm3739_vm11, %v3733_v8, %v3750_v44  ;;  %v8728_v50 = vadd.s32 4294967169, %v3397_v23  ;;  %v13036_v12 = vpop.eup %9441  ;;  %v3571_v14 = vshrl.u32 %v12949_v37, %v3569_v7  ;;  %v3748_v52 = vsel %vm3738_vm13, %v3745_v38, %v3747_v47  ;;  %v7181_v23 = vld [vmem:[%s13864_s2 + $0x60] sm:$0xff]  ;;  %8878 = vmatprep.mubr.msk.f32.mxu0 %vm14007_vm10, %v7182_v55  ;;  %8886 = vmatprep.mubr.msk.f32.mxu1 %vm14007_vm10, %v7182_v55 }
 0x357   : > { %14179 = vst [vmem:[#allocation31_spill] sm:$0xff] %v13036_v12  ;;  %v3574_v43 = vadd.s32 127, %v3573_v59  ;;  %v3752_v31 = vsel %vm3738_vm13, %v3749_v24, %v3751_v41  ;;  %v13049_v15 = vpop.eup %9443  ;;  %v13997_v8 = vxor.u32 2147483648, %v13036_v12  ;;  %v3744_v24 = vsel %vm3738_vm13, %v3741_v1, %v3743_v35  ;;  %7311 = vmatmul.mubr.f32.gmra.mrb[12].mxu0 %v7181_v23  ;;  %7424 = vmatmul.mubr.f32.gmra.mrb[12].mxu1 %v7181_v23  ;;  %v7184_v35 = vld [vmem:[%s13864_s2 + $0x78] sm:$0xff]  ;;  %v7183_v41 = vld [vmem:[%s13864_s2 + $0x70] sm:$0xff] }
 0x358   : > { %14180 = vst [vmem:[#allocation32_spill] sm:$0xff] %v13049_v15  ;;  %v13053_v37 = vmul.u32.u64.low %v12957_v54, %v3752_v31  ;;  %v13054_v29 = vmul.u32.u64.high %v12957_v54, %v3752_v31, %v13053_v37  ;;  %v3403_v47 = vadd.s32 1, %v8728_v50  ;;  %v13998_v38 = vxor.u32 2147483648, %v13049_v15  ;;  %8879 = vmatprep.mubr.msk.f32.mxu0 %vm14007_vm10, %v7184_v35  ;;  %8887 = vmatprep.mubr.msk.f32.mxu1 %vm14007_vm10, %v7184_v35 }
 0x359   : > { %v3572_v39 = vor.u32 %v3571_v14, %v3570_v56  ;;  %v3575_v30 = vshll.u32 %v3574_v43, 23  ;;  %v2870_v44 = vsel %vm2868_vm15, %v13997_v8, %v13049_v15  ;;  %v13085_v43 = vadd.s32 3, %v13006_v51 }
 0x35a   : > { %v13067_v50 = vmul.u32.u64.low %v12957_v54, %v3748_v52  ;;  %v13068_v7 = vmul.u32.u64.high %v12957_v54, %v3748_v52, %v13067_v50  ;;  %vm3404_vm6 = vcmp.gt.s32.totalorder %v3403_v47, 0  ;;  %v2867_v10 = vsel %vm2865_vm2, %v13036_v12, %v13998_v38 }
 0x35b   : > { %v3576_v56 = vor.u32 4788187, %v3575_v30  ;;  %v3579_v59 = vcvt.s32.f32 %v3572_v39  ;;  %v3405_v1 = vsel %vm3404_vm6, %v3403_v47, 0  ;;  %v2871_v14 = vsel %vm2864_vm1, %v2867_v10, %v2870_v44  ;;  %7317 = vmatmul.mubr.f32.gmra.mrb[14].mxu0 %v7183_v41  ;;  %7430 = vmatmul.mubr.f32.gmra.mrb[14].mxu1 %v7183_v41  ;;  %v9473_v30 = vld [vmem:[%s13864_s2 + $0x8] sm:$0xff] }
 0x35c   : > { %vm4419_vm13 = vcmp.eq.s32.totalorder %v12932_v17, 0  ;;  %v3760_v52 = vmul.u32 %v12957_v54, %v3744_v24  ;;  %v13089_v31 = vshrl.u32 %v3405_v1, 5  ;;  %v2872_v55 = vsel %vm2861_vm14, nan, %v2871_v14  ;;  %8888 = vmatprep.mubr.msk.f32.mxu0 %vm14007_vm10, %v9473_v30  ;;  %8896 = vmatprep.mubr.msk.f32.mxu1 %vm14007_vm10, %v9473_v30 }
 0x35d   : > { %v3577_v23 = vand.u32 2147483647, %v3576_v56  ;;  %vm3762_vm11 = vc.u32 %v13054_v29, %v13067_v50  ;;  %v3407_v63 = vand.u32 31, %v3405_v1  ;;  %v9033_v37 = vpack.c.bf16 %v2872_v55, %v12953_v61 }
 0x35e   : > { %vm4422_vm8 = vcmp.eq.s32.totalorder %v12932_v17, 2  ;;  %v3763_v54 = vadd.s32 1, %v13068_v7  ;;  %vm3425_vm15 = vcmp.lt.s32.totalorder %v13089_v31, 1  ;;  %v14181_v47 = vor.u32 8388608, %v12962_v57 }
 0x35f   : > { %v3580_v24 = vmul.f32 %v3579_v59, %v3577_v23  ;;  %v3408_v44 = vsub.s32 32, %v3407_v63  ;;  %v3410_v61 = vshll.u32 %v14044_v42, %v3407_v63  ;;  %v3413_v10 = vshll.u32 %v14055_v4, %v3407_v63  ;;  %9034 = vmatpush1.bf16.msra.mxu1 %v9033_v37 }
 0x360   : > { %v13103_v39 = vshll.u32 %v14181_v47, 8  ;;  %v3764_v57 = vsel %vm3762_vm11, %v3763_v54, %v13068_v7  ;;  %v3416_v56 = vshll.u32 %v14056_v19, %v3407_v63  ;;  %v3419_v1 = vshll.u32 %v14117_v46, %v3407_v63 }
 0x361   : > { %v3422_v35 = vshll.u32 %v14057_v13, %v3407_v63  ;;  %v3581_v59 = vxor.u32 2147483648, %v3580_v24  ;;  %v3765_v41 = vadd.s32 %v3764_v57, %v3760_v52  ;;  %v3409_v14 = vshrl.u32 %v14044_v42, %v3408_v44 }
 0x362   : > { %v3411_v55 = vshrl.u32 %v14055_v4, %v3408_v44  ;;  %vm4418_vm2 = vcmp.lt.s32.totalorder %v12932_v17, 2  ;;  %v3414_v23 = vshrl.u32 %v14056_v19, %v3408_v44  ;;  %v3417_v37 = vshrl.u32 %v14117_v46, %v3408_v44 }
 0x363   : > { %v3420_v7 = vshrl.u32 %v14057_v13, %v3408_v44  ;;  %v3423_v54 = vshrl.u32 %v14058_v22, %v3408_v44  ;;  %v3582_v47 = vsel %vm3499_vm0, %v3581_v59, %v3580_v24  ;;  %v3766_v63 = vadd.s32 536870912, %v3765_v41 }
 0x364   : > { %v3412_v30 = vor.u32 %v3411_v55, %v3410_v61  ;;  %vm3427_vm1 = vcmp.lt.s32.totalorder %v13089_v31, 3  ;;  %v3585_v52 = vsel %vm12944_vm4, %v12738_v40, %v3582_v47  ;;  %v3415_v57 = vor.u32 %v3414_v23, %v3413_v10 }
 0x365   : > { %v3418_v8 = vor.u32 %v3417_v37, %v3416_v56  ;;  %v3421_v38 = vor.u32 %v3420_v7, %v3419_v1  ;;  %9445 = vcosq.f32 %v3585_v52  ;;  %v13132_v60 = vshrl.u32 %v3766_v63, 30 }
 0x366   : > { %v3424_v12 = vor.u32 %v3423_v54, %v3422_v35  ;;  %vm3428_vm3 = vcmp.lt.s32.totalorder %v13089_v31, 4  ;;  %9447 = vsinq.f32 %v3585_v52  ;;  %vm3426_vm0 = vcmp.lt.s32.totalorder %v13089_v31, 2 }
 0x367   : > { %v3430_v24 = vsel %vm3428_vm3, %v3418_v8, 2102212464  ;;  %v3433_v44 = vsel %vm3425_vm15, %v3412_v30, %v3415_v57  ;;  %v14182_v61 = vxor.u32 2147483648, %v12004_v3  ;;  %v3768_v10 = vshll.u32 %v13132_v60, 30 }
 0x368   : > { %v3429_v56 = vsel %vm3425_vm15, %v3409_v14, %v3412_v30  ;;  %v3434_v1 = vsel %vm3428_vm3, %v3421_v38, 920167782  ;;  %v3431_v35 = vsel %vm3427_vm1, %v3415_v57, %v3430_v24  ;;  %v3437_v55 = vsel %vm3425_vm15, %v3415_v57, %v3418_v8 }
 0x369   : > { %v4421_v33 = vsel %vm4419_vm13, %v11993_v11, %v14182_v61  ;;  %v3435_v59 = vsel %vm3427_vm1, %v3418_v8, %v3434_v1  ;;  %v3438_v23 = vsel %vm3428_vm3, %v3424_v12, 1326507024  ;;  %v14183_v37 = vxor.u32 2147483648, %v11993_v11 }
 0x36a   : > { %v3769_v54 = vsub.s32 %v3765_v41, %v3768_v10  ;;  %v3436_v14 = vsel %vm3426_vm0, %v3433_v44, %v3435_v59  ;;  %v3439_v47 = vsel %vm3427_vm1, %v3421_v38, %v3438_v23  ;;  %v3591_v63 = vand.u32 3, %v13085_v43 }
 0x36b   : > { %v4424_v7 = vsel %vm4422_vm8, %v14183_v37, %v12004_v3  ;;  %v3440_v30 = vsel %vm3426_vm0, %v3437_v55, %v3439_v47  ;;  %v13165_v12 = vmul.u32.u64.low %v13103_v39, %v3436_v14  ;;  %v13166_v8 = vmul.u32.u64.high %v13103_v39, %v3436_v14, %v13165_v12 }
 0x36c   : > { %v3771_v11 = vsub.s32 0, %v3769_v54  ;;  %v3432_v3 = vsel %vm3426_vm0, %v3429_v56, %v3431_v35  ;;  %v13172_v41 = vmul.u32.u64.low %v13103_v39, %v3440_v30  ;;  %v13173_v52 = vmul.u32.u64.high %v13103_v39, %v3440_v30, %v13172_v41 }
 0x36d   : > { %v4425_v38 = vsel %vm4418_vm2, %v4421_v33, %v4424_v7  ;;  %v3448_v57 = vmul.u32 %v13103_v39, %v3432_v3  ;;  %v3451_v24 = vadd.s32 1, %v13166_v8  ;;  %vm3589_vm4 = vweird.f32 %v12738_v40 }
 0x36e   : > { %v8741_v43 = vmin.u32 %v3771_v11, %v3769_v54  ;;  %vm3596_vm6 = vcmp.eq.s32.totalorder %v3591_v63, 2  ;;  %v3604_v31 = vand.u32 2139095040, %v12937_v27  ;;  %vm3593_vm13 = vcmp.eq.s32.totalorder %v3591_v63, 0 }
 0x36f   : > { %v13179_v44 = vpop.eup %9445  ;;  %v4426_v17 = vsel %vm1093_vm12, nan, %v4425_v38  ;;  %vm3450_vm11 = vc.u32 %v13173_v52, %v13165_v12  ;;  %vm3592_vm8 = vcmp.lt.s32.totalorder %v3591_v63, 2  ;;  %v3761_v59 = vadd.s32 %v13067_v50, %v13054_v29 }
 0x370   : > { %v3773_v61 = vclz %v8741_v43  ;;  %v13183_v10 = vpop.eup %9447  ;;  %v14003_v56 = vxor.u32 2147483648, %v13179_v44  ;;  %v3452_v1 = vsel %vm3450_vm11, %v3451_v24, %v13166_v8  ;;  %v3791_v55 = vsub.s32 4, %v13132_v60 }
 0x371   : > { %v14004_v39 = vxor.u32 2147483648, %v13183_v10  ;;  %v3453_v18 = vadd.s32 %v3452_v1, %v3448_v57  ;;  %v14002_v37 = vand.u32 2147483647, %v12937_v27  ;;  %v3605_v7 = vshrl.u32 %v3604_v31, 23 }
 0x372   : > { %v8742_v33 = vadd.s32 4294967294, %v3773_v61  ;;  %v3598_v35 = vsel %vm3596_vm6, %v14003_v56, %v13183_v10  ;;  %vm3707_vm15 = vcmp.lt.s32.totalorder %v12876_v62, 0  ;;  %v13206_v3 = vand.u32 3, %v11970_v48 }
 0x373   : > { %v3595_v23 = vsel %vm3593_vm13, %v13179_v44, %v14004_v39  ;;  %v3454_v63 = vadd.s32 536870912, %v3453_v18  ;;  %v8736_v38 = vadd.s32 4294967169, %v3605_v7  ;;  %v3792_v24 = vsel %vm3707_vm15, %v3791_v55, %v13132_v60 }
 0x374   : > { %vm8743_vm12 = vcmp.lt.s32.totalorder %v8742_v33, 0  ;;  %v3599_v14 = vsel %vm3592_vm8, %v3595_v23, %v3598_v35  ;;  %v3608_v61 = vand.u32 8388607, %v14002_v37  ;;  %vm4625_vm1 = vcmp.eq.s32.totalorder %v13206_v3, 0 }
 0x375   : > { %v3776_v47 = vsel %vm8743_vm12, 0, %v8742_v33  ;;  %v3600_v30 = vsel %vm3589_vm4, nan, %v3599_v14  ;;  %v13208_v41 = vshrl.u32 %v3454_v63, 30  ;;  %v3611_v31 = vadd.s32 1, %v8736_v38 }
 0x376   : > { %v3777_v29 = vsub.s32 32, %v3776_v47  ;;  %v3778_v50 = vshll.u32 %v3769_v54, %v3776_v47  ;;  %v3781_v8 = vsub.s32 4294967266, %v3776_v47  ;;  %v9003_v11 = vpack.c.bf16 %v4426_v17, %v3600_v30 }
 0x377   : > { %v3456_v54 = vshll.u32 %v13208_v41, 30  ;;  %v14184_v17 = vand.u32 2147483647, %v12876_v62  ;;  %vm3612_vm3 = vcmp.gt.s32.totalorder %v3611_v31, 0  ;;  %v3609_v23 = vor.u32 8388608, %v3608_v61 }
 0x378   : > { %v3779_v43 = vshrl.u32 %v3761_v59, %v3777_v29  ;;  %v3782_v57 = vadd.s32 127, %v3781_v8  ;;  %9004 = vmatprep.subr.bf16.mxu0 %v9003_v11  ;;  %v3613_v7 = vsel %vm3612_vm3, %v3611_v31, 0  ;;  %v14187_v30 = vxor.u32 2147483648, %v12068_v26 }
 0x379   : > { %vm13218_vm2 = vcmp.le.f32.partialorder %v14184_v17, 0.7853982  ;;  %v13227_v60 = vsub.s32 %v3453_v18, %v3456_v54  ;;  %v3615_v47 = vand.u32 31, %v3613_v7  ;;  %v3449_v18 = vadd.s32 %v13165_v12, %v13173_v52  ;;  %v13250_v12 = vpop.f32.mrb[0].mxu1 }
 0x37a   : > { %v3780_v33 = vor.u32 %v3779_v43, %v3778_v50  ;;  %v3783_v1 = vshll.u32 %v3782_v57, 23  ;;  %v13224_v35 = vsel %vm13218_vm2, 0, %v3792_v24  ;;  %v13233_v29 = vsel %vm4625_vm1, %v12062_v58, %v14187_v30 }
 0x37b   : > { %v3459_v14 = vsub.s32 0, %v13227_v60  ;;  %v13236_v50 = vadd.s32 3, %v13224_v35  ;;  %v3616_v11 = vsub.s32 32, %v3615_v47  ;;  %vm4628_vm0 = vcmp.eq.s32.totalorder %v13206_v3, 2 }
 0x37c   : > { %v3784_v59 = vor.u32 4788187, %v3783_v1  ;;  %v3787_v55 = vcvt.s32.f32 %v3780_v33  ;;  %v3618_v43 = vshll.u32 %v14044_v42, %v3615_v47  ;;  %v3621_v57 = vshll.u32 %v14055_v4, %v3615_v47  ;;  %v13248_v33 = vpop.f32.mrb[0].mxu0 }
 0x37d   : > { %v8729_v8 = vmin.u32 %v3459_v14, %v13227_v60  ;;  %v13244_v24 = vshll.u32 %v3609_v23, 8  ;;  %v3614_v54 = vshrl.u32 %v3613_v7, 5  ;;  %v3624_v31 = vshll.u32 %v14056_v19, %v3615_v47  ;;  %v13255_v14 = vpop.f32.mrb[1].mxu0  ;;  %v13257_v23 = vpop.f32.mrb[1].mxu1 }
 0x37e   : > { %v3785_v63 = vand.u32 2147483647, %v3784_v59  ;;  %v3627_v17 = vshll.u32 %v14117_v46, %v3615_v47  ;;  %v3617_v1 = vshrl.u32 %v14044_v42, %v3616_v11  ;;  %v3619_v59 = vshrl.u32 %v14055_v4, %v3616_v11  ;;  %14188 = vst [vmem:[#allocation33_spill] sm:$0xff] %v13257_v23  ;;  %v13262_v37 = vpop.f32.mrb[2].mxu0  ;;  %v13264_v56 = vpop.f32.mrb[2].mxu1 }
 0x37f   : > { %v3461_v61 = vclz %v8729_v8  ;;  %v3628_v30 = vshrl.u32 %v14057_v13, %v3616_v11  ;;  %v3630_v8 = vshll.u32 %v14057_v13, %v3615_v47  ;;  %v3631_v39 = vshrl.u32 %v14058_v22, %v3616_v11  ;;  %v13269_v15 = vpop.f32.mrb[3].mxu0 }
 0x380   : > { %v3788_v38 = vmul.f32 %v3787_v55, %v3785_v63  ;;  %v3622_v55 = vshrl.u32 %v14056_v19, %v3616_v11  ;;  %v3625_v63 = vshrl.u32 %v14117_v46, %v3616_v11  ;;  %v3620_v4 = vor.u32 %v3619_v59, %v3618_v43 }
 0x381   : > { %v8730_v7 = vadd.s32 4294967294, %v3461_v61  ;;  %v13271_v61 = vpop.f32.mrb[3].mxu1  ;;  %vm4624_vm6 = vcmp.lt.s32.totalorder %v13206_v3, 2  ;;  %v3629_v47 = vor.u32 %v3628_v30, %v3627_v17  ;;  %vm3633_vm11 = vcmp.lt.s32.totalorder %v3614_v54, 1 }
 0x382   : > { %v3789_v52 = vxor.u32 2147483648, %v3788_v38  ;;  %v3623_v19 = vor.u32 %v3622_v55, %v3621_v57  ;;  %v3626_v13 = vor.u32 %v3625_v63, %v3624_v31  ;;  %vm3634_vm8 = vcmp.lt.s32.totalorder %v3614_v54, 2 }
 0x383   : > { %vm8731_vm13 = vcmp.lt.s32.totalorder %v8730_v7, 0  ;;  %vm3635_vm12 = vcmp.lt.s32.totalorder %v3614_v54, 3  ;;  %v3637_v57 = vsel %vm3633_vm11, %v3617_v1, %v3620_v4  ;;  %v3479_v1 = vsub.s32 4, %v13208_v41 }
 0x384   : > { %v3790_v42 = vsel %vm3707_vm15, %v3789_v52, %v3788_v38  ;;  %v3464_v23 = vsel %vm8731_vm13, 0, %v8730_v7  ;;  %v3632_v38 = vor.u32 %v3631_v39, %v3630_v8  ;;  %vm3636_vm15 = vcmp.lt.s32.totalorder %v3614_v54, 4 }
 0x385   : > { %v3793_v46 = vsel %vm13218_vm2, %v12876_v62, %v3790_v42  ;;  %v3465_v43 = vsub.s32 32, %v3464_v23  ;;  %v3466_v22 = vshll.u32 %v13227_v60, %v3464_v23  ;;  %v3469_v11 = vsub.s32 4294967266, %v3464_v23 }
 0x386   : > { %9449 = vcosq.f32 %v3793_v46  ;;  %v3638_v59 = vsel %vm3636_vm15, %v3626_v13, 2102212464  ;;  %v3641_v55 = vsel %vm3633_vm11, %v3620_v4, %v3623_v19  ;;  %v3642_v17 = vsel %vm3636_vm15, %v3629_v47, 920167782 }
 0x387   : > { %9451 = vsinq.f32 %v3793_v46  ;;  %v3467_v48 = vshrl.u32 %v3449_v18, %v3465_v43  ;;  %v3470_v52 = vadd.s32 127, %v3469_v11  ;;  %v3639_v31 = vsel %vm3635_vm12, %v3623_v19, %v3638_v59 }
 0x388   : > { %v3645_v63 = vsel %vm3633_vm11, %v3623_v19, %v3626_v13  ;;  %v3646_v7 = vsel %vm3636_vm15, %v3632_v38, 1326507024  ;;  %v14189_v39 = vxor.u32 2147483648, %v12062_v58  ;;  %v3643_v8 = vsel %vm3635_vm12, %v3626_v13, %v3642_v17 }
 0x389   : > { %v3468_v23 = vor.u32 %v3467_v48, %v3466_v22  ;;  %v3471_v30 = vshll.u32 %v3470_v52, 23  ;;  %v3799_v18 = vand.u32 3, %v13236_v50  ;;  %v3644_v42 = vsel %vm3634_vm8, %v3641_v55, %v3643_v8 }
 0x38a   : > { %v4630_v60 = vsel %vm4628_vm0, %v14189_v39, %v12068_v26  ;;  %v3647_v4 = vsel %vm3635_vm12, %v3629_v47, %v3646_v7  ;;  %v3640_v38 = vsel %vm3634_vm8, %v3637_v57, %v3639_v31  ;;  %vm3395_vm2 = vcmp.lt.s32.totalorder %v12929_v20, 0 }
 0x38b   : > { %v3472_v19 = vor.u32 4788187, %v3471_v30  ;;  %v3475_v46 = vcvt.s32.f32 %v3468_v23  ;;  %v3648_v58 = vsel %vm3634_vm8, %v3645_v63, %v3647_v4  ;;  %vm3804_vm1 = vcmp.eq.s32.totalorder %v3799_v18, 2 }
 0x38c   : > { %v13292_v26 = vmul.u32.u64.low %v13244_v24, %v3648_v58  ;;  %v13293_v43 = vmul.u32.u64.high %v13244_v24, %v3648_v58, %v13292_v26  ;;  %v13296_v13 = vmul.u32.u64.low %v13244_v24, %v3644_v42  ;;  %v13297_v22 = vmul.u32.u64.high %v13244_v24, %v3644_v42, %v13296_v13 }
 0x38d   : > { %v3473_v50 = vand.u32 2147483647, %v3472_v19  ;;  %v4631_v54 = vsel %vm4624_vm6, %v13233_v29, %v4630_v60  ;;  %v14190_v47 = vand.u32 2147483647, %v12929_v20  ;;  %v3480_v48 = vsel %vm3395_vm2, %v3479_v1, %v13208_v41 }
 0x38e   : > { %vm3801_vm0 = vcmp.eq.s32.totalorder %v3799_v18, 0  ;;  %v3656_v31 = vmul.u32 %v13244_v24, %v3640_v38  ;;  %vm3800_vm13 = vcmp.lt.s32.totalorder %v3799_v18, 2  ;;  %vm3658_vm6 = vc.u32 %v13293_v43, %v13296_v13 }
 0x38f   : > { %vm13308_vm3 = vcmp.le.f32.partialorder %v14190_v47, 0.7853982  ;;  %v3476_v55 = vmul.f32 %v3475_v46, %v3473_v50  ;;  %v3659_v29 = vadd.s32 1, %v13297_v22  ;;  %vm14008_vm11 = vweird.f32 %v12876_v62 }
 0x390   : > { %v13301_v11 = vpop.eup %9449  ;;  %v13330_v63 = vsel %vm13308_vm3, 0, %v3480_v48  ;;  %v4632_v7 = vsel %vm1301_vm9, nan, %v4631_v54  ;;  %v5241_v60 = vand.u32 3, %v12274_v9  ;;  %v6065_v18 = vand.u32 3, %v12327_v5 }
 0x391   : > { %v13315_v52 = vpop.eup %9451  ;;  %v3805_v59 = vxor.u32 2147483648, %v13301_v11  ;;  %v3477_v17 = vxor.u32 2147483648, %v3476_v55  ;;  %v3660_v39 = vsel %vm3658_vm6, %v3659_v29, %v13297_v22  ;;  %v3486_v49 = vadd.s32 3, %v13330_v63  ;;  %v14199_v29 = vld [vmem:[#allocation26_spill] sm:$0xff] }
 0x392   : > { %v3802_v3 = vxor.u32 2147483648, %v13315_v52  ;;  %v3661_v8 = vadd.s32 %v3660_v39, %v3656_v31  ;;  %v4314_v4 = vand.u32 3, %v12066_v34  ;;  %vm5243_vm9 = vcmp.eq.s32.totalorder %v5241_v60, 0 }
 0x393   : > { %v3806_v41 = vsel %vm3804_vm1, %v3805_v59, %v13315_v52  ;;  %v3478_v30 = vsel %vm3395_vm2, %v3477_v17, %v3476_v55  ;;  %vm5246_vm8 = vcmp.eq.s32.totalorder %v5241_v60, 2  ;;  %vm6067_vm12 = vcmp.eq.s32.totalorder %v6065_v18, 0 }
 0x394   : > { %v3803_v24 = vsel %vm3801_vm0, %v13301_v11, %v3802_v3  ;;  %v3481_v42 = vsel %vm13308_vm3, %v12929_v20, %v3478_v30  ;;  %v3662_v9 = vadd.s32 536870912, %v3661_v8  ;;  %vm6070_vm15 = vcmp.eq.s32.totalorder %v6065_v18, 2 }
 0x395   : > { %v3807_v23 = vsel %vm3800_vm13, %v3803_v24, %v3806_v41  ;;  %9453 = vcosq.f32 %v3481_v42  ;;  %v5138_v5 = vand.u32 3, %v12697_v53  ;;  %v3487_v38 = vand.u32 3, %v3486_v49 }
 0x396   : > { %v3808_v1 = vsel %vm14008_vm11, nan, %v3807_v23  ;;  %9455 = vsinq.f32 %v3481_v42  ;;  %v13349_v46 = vshrl.u32 %v3662_v9, 30  ;;  %vm4316_vm2 = vcmp.eq.s32.totalorder %v4314_v4, 0 }
 0x397   : > { %v9035_v19 = vpack.c.bf16 %v4632_v7, %v3808_v1  ;;  %vm4319_vm1 = vcmp.eq.s32.totalorder %v4314_v4, 2  ;;  %vm5242_vm3 = vcmp.lt.s32.totalorder %v5241_v60, 2  ;;  %v14193_v34 = vxor.u32 2147483648, %v12358_v32 }
 0x398   : > { %v3664_v58 = vshll.u32 %v13349_v46, 30  ;;  %v14194_v22 = vxor.u32 2147483648, %v12352_v25  ;;  %vm6066_vm0 = vcmp.lt.s32.totalorder %v6065_v18, 2  ;;  %v14195_v54 = vxor.u32 2147483648, %v12429_v45 }
 0x399   : > { %9036 = vmatprep.subr.bf16.mxu1 %v9035_v19  ;;  %v5245_v26 = vsel %vm5243_vm9, %v12352_v25, %v14193_v34  ;;  %v14196_v53 = vxor.u32 2147483648, %v12422_v0  ;;  %vm4315_vm13 = vcmp.lt.s32.totalorder %v4314_v4, 2  ;;  %vm5140_vm6 = vcmp.eq.s32.totalorder %v5138_v5, 0 }
 0x39a   : > { %v5248_v50 = vsel %vm5246_vm8, %v14194_v22, %v12358_v32  ;;  %v6069_v47 = vsel %vm6067_vm12, %v12422_v0, %v14195_v54  ;;  %v3665_v48 = vsub.s32 %v3661_v8, %v3664_v58  ;;  %vm5143_vm10 = vcmp.eq.s32.totalorder %v5138_v5, 2  ;;  %v14206_v22 = vld [vmem:[#allocation16_spill] sm:$0xff] }
 0x39b   : > { %v6072_v57 = vsel %vm6070_vm15, %v14196_v53, %v12429_v45  ;;  %vm3492_vm11 = vcmp.eq.s32.totalorder %v3487_v38, 2  ;;  %v14197_v55 = vxor.u32 2147483648, %v12141_v2  ;;  %v14198_v25 = vxor.u32 2147483648, %v12138_v36 }
 0x39c   : > { %v5962_v41 = vand.u32 3, %v14199_v29  ;;  %v3667_v17 = vsub.s32 0, %v3665_v48  ;;  %v5249_v24 = vsel %vm5242_vm3, %v5245_v26, %v5248_v50  ;;  %v6073_v7 = vsel %vm6066_vm0, %v6069_v47, %v6072_v57 }
 0x39d   : > { %v4318_v31 = vsel %vm4316_vm2, %v12138_v36, %v14197_v55  ;;  %v4321_v32 = vsel %vm4319_vm1, %v14198_v25, %v12141_v2  ;;  %vm5139_vm9 = vcmp.lt.s32.totalorder %v5138_v5, 2  ;;  %v14200_v0 = vxor.u32 2147483648, %v12726_v6 }
 0x39e   : > { %v14201_v39 = vxor.u32 2147483648, %v12724_v16  ;;  %vm5964_vm8 = vcmp.eq.s32.totalorder %v5962_v41, 0  ;;  %vm5967_vm12 = vcmp.eq.s32.totalorder %v5962_v41, 2  ;;  %v8737_v36 = vmin.u32 %v3667_v17, %v3665_v48 }
 0x39f   : > { %v5142_v45 = vsel %vm5140_vm6, %v12724_v16, %v14200_v0  ;;  %v13378_v23 = vpop.eup %9453  ;;  %vm5963_vm15 = vcmp.lt.s32.totalorder %v5962_v41, 2  ;;  %v14202_v2 = vxor.u32 2147483648, %v12803_v28  ;;  %v14203_v8 = vxor.u32 2147483648, %v12800_v21 }
 0x3a0   : > { %v5145_v60 = vsel %vm5143_vm10, %v14201_v39, %v12726_v6  ;;  %v13386_v1 = vpop.eup %9455  ;;  %vm3488_vm2 = vcmp.lt.s32.totalorder %v3487_v38, 2  ;;  %vm3489_vm1 = vcmp.eq.s32.totalorder %v3487_v38, 0  ;;  %v3493_v16 = vxor.u32 2147483648, %v13378_v23  ;;  %v14208_v38 = vld [vmem:[#allocation8_spill] sm:$0xff] }
 0x3a1   : > { %v5966_v30 = vsel %vm5964_vm8, %v12800_v21, %v14202_v2  ;;  %v5969_v18 = vsel %vm5967_vm12, %v14203_v8, %v12803_v28  ;;  %v4322_v6 = vsel %vm4315_vm13, %v4318_v31, %v4321_v32  ;;  %v3490_v42 = vxor.u32 2147483648, %v13386_v1  ;;  %v14210_v31 = vld [vmem:[#allocation7_spill] sm:$0xff] }
 0x3a2   : > { %v3669_v49 = vclz %v8737_v36  ;;  %v5250_v9 = vsel %vm1925_vm7, nan, %v5249_v24  ;;  %v6074_v34 = vsel %vm2757_vm5, nan, %v6073_v7  ;;  %vm3485_vm10 = vweird.f32 %v12929_v20  ;;  %v14212_v36 = vld [vmem:[#allocation17_spill] sm:$0xff] }
 0x3a3   : > { %v3494_v21 = vsel %vm3492_vm11, %v3493_v16, %v13386_v1  ;;  %v5146_v28 = vsel %vm5139_vm9, %v5142_v45, %v5145_v60  ;;  %v5970_v4 = vsel %vm5963_vm15, %v5966_v30, %v5969_v18  ;;  %v3491_v26 = vsel %vm3489_vm1, %v13378_v23, %v3490_v42 }
 0x3a4   : > { %vm14207_vm3 = vweird.f32 %v14206_v22  ;;  %v8738_v54 = vadd.s32 4294967294, %v3669_v49  ;;  %v3495_v47 = vsel %vm3488_vm2, %v3491_v26, %v3494_v21  ;;  %v3657_v53 = vadd.s32 %v13296_v13, %v13293_v43  ;;  %v7118_v26 = vld [vmem:[%s11517_s10 + $0x68] sm:$0xff] }
 0x3a5   : > { %v4323_v50 = vsel %vm14207_vm3, nan, %v4322_v6  ;;  %v9007_v57 = vpack.c.bf16 %v6074_v34, %v5250_v9  ;;  %v3496_v55 = vsel %vm3485_vm10, nan, %v3495_v47  ;;  %vm14209_vm5 = vweird.f32 %v14208_v38  ;;  %v7110_v6 = vld [vmem:[%s11517_s10 + $0x28] sm:$0xff] }
 0x3a6   : > { %vm8739_vm7 = vcmp.lt.s32.totalorder %v8738_v54, 0  ;;  %v5147_v5 = vsel %vm14209_vm5, nan, %v5146_v28  ;;  %vm14211_vm11 = vweird.f32 %v14210_v31  ;;  %v9005_v32 = vpack.c.bf16 %v4323_v50, %v3496_v55  ;;  %v14215_v28 = vld [vmem:[#allocation9_spill] sm:$0xff]  ;;  %v7126_v22 = vld [vmem:[%s11517_s10 + $0xa8] sm:$0xff] }
 0x3a7   : > { %v5971_v25 = vsel %vm14211_vm11, nan, %v5970_v4  ;;  %v3672_v29 = vsel %vm8739_vm7, 0, %v8738_v54  ;;  %v6889_v43 = vand.u32 3, %v13006_v51  ;;  %v7095_v13 = vand.u32 3, %v13224_v35  ;;  %v14220_v31 = vld [vmem:[#allocation21_spill] sm:$0xff]  ;;  %v14231_v54 = vld [vmem:[#allocation24_spill] sm:$0xff] }
 0x3a8   : > { %v3673_v41 = vsub.s32 32, %v3672_v29  ;;  %v3674_v17 = vshll.u32 %v3665_v48, %v3672_v29  ;;  %v3677_v24 = vsub.s32 4294967266, %v3672_v29  ;;  %9006 = vmatpush1.bf16.msra.mxu0 %v9005_v32  ;;  %v9009_v7 = vpack.c.bf16 %v5971_v25, %v5147_v5  ;;  %v14222_v32 = vld [vmem:[#allocation12_spill] sm:$0xff] }
 0x3a9   : > { %vm3603_vm0 = vcmp.lt.s32.totalorder %v12937_v27, 0  ;;  %9008 = vmatprep.subr.bf16.mxu0 %v9007_v57  ;;  %vm6890_vm13 = vcmp.lt.s32.totalorder %v6889_v43, 2  ;;  %vm6891_vm6 = vcmp.eq.s32.totalorder %v6889_v43, 0  ;;  %vm6894_vm9 = vcmp.eq.s32.totalorder %v6889_v43, 2 }
 0x3aa   : > { %v3675_v0 = vshrl.u32 %v3657_v53, %v3673_v41  ;;  %v3678_v45 = vadd.s32 127, %v3677_v24  ;;  %v6786_v39 = vand.u32 3, %v13330_v63  ;;  %v13417_v2 = vand.u32 3, %v14212_v36  ;;  %v7117_v53 = vld [vmem:[%s11517_s10 + $0x60] sm:$0xff] }
 0x3ab   : > { %v14213_v51 = vxor.u32 2147483648, %v13183_v10  ;;  %v3687_v30 = vsub.s32 4, %v13349_v46  ;;  %v14214_v8 = vxor.u32 2147483648, %v13179_v44  ;;  %vm7096_vm8 = vcmp.lt.s32.totalorder %v7095_v13, 2 }
 0x3ac   : > { %v3676_v60 = vor.u32 %v3675_v0, %v3674_v17  ;;  %v3679_v48 = vshll.u32 %v3678_v45, 23  ;;  %9010 = vmatpush1.bf16.msra.mxu0 %v9009_v7  ;;  %vm7097_vm12 = vcmp.eq.s32.totalorder %v7095_v13, 0  ;;  %vm7100_vm15 = vcmp.eq.s32.totalorder %v7095_v13, 2 }
 0x3ad   : > { %v6893_v35 = vsel %vm6891_vm6, %v13179_v44, %v14213_v51  ;;  %v6896_v18 = vsel %vm6894_vm9, %v14214_v8, %v13183_v10  ;;  %v7099_v9 = vsel %vm7097_vm12, %v13301_v11, %v3802_v3  ;;  %vm6787_vm2 = vcmp.lt.s32.totalorder %v6786_v39, 2  ;;  %v7158_v8 = vld [vmem:[%s11517_s10 + $0x1a8] sm:$0xff] }
 0x3ae   : > { %v3680_v63 = vor.u32 4788187, %v3679_v48  ;;  %v3683_v49 = vcvt.s32.f32 %v3676_v60  ;;  %v6897_v19 = vsel %vm6890_vm13, %v6893_v35, %v6896_v18  ;;  %vm6788_vm1 = vcmp.eq.s32.totalorder %v6786_v39, 0  ;;  %v7133_v60 = vld [vmem:[%s11517_s10 + $0xe0] sm:$0xff] }
 0x3af   : > { %v6898_v58 = vsel %vm3589_vm4, nan, %v6897_v19  ;;  %v7102_v34 = vsel %vm7100_vm15, %v3805_v59, %v13315_v52  ;;  %v6790_v21 = vsel %vm6788_vm1, %v13378_v23, %v3490_v42  ;;  %v3688_v3 = vsel %vm3603_vm0, %v3687_v30, %v13349_v46  ;;  %v14216_v52 = vld [vmem:[#allocation13_spill] sm:$0xff]  ;;  %v13479_v20 = vpop.f32.mrb[4].mxu0  ;;  %v13481_v17 = vpop.f32.mrb[4].mxu1  ;;  %v7150_v30 = vld [vmem:[%s11517_s10 + $0x168] sm:$0xff] }
 0x3b0   : > { %v3681_v44 = vand.u32 2147483647, %v3680_v63  ;;  %v9011_v10 = vpack.c.bf16 %v7110_v6, %v6898_v58  ;;  %v13441_v40 = vand.u32 3, %v14215_v28  ;;  %v13444_v4 = vsel %vm7096_vm8, %v7099_v9, %v7102_v34  ;;  %v7109_v42 = vld [vmem:[%s11517_s10 + $0x20] sm:$0xff]  ;;  %v13488_v7 = vpop.f32.mrb[5].mxu0  ;;  %v13490_v43 = vpop.f32.mrb[5].mxu1 }
 0x3b1   : > { %vm6791_vm4 = vcmp.eq.s32.totalorder %v6786_v39, 2  ;;  %vm4522_vm3 = vcmp.eq.s32.totalorder %v13417_v2, 0  ;;  %v13450_v59 = vand.u32 3, %v14216_v52  ;;  %v14217_v50 = vand.u32 2147483647, %v12937_v27  ;;  %v7125_v23 = vld [vmem:[%s11517_s10 + $0xa0] sm:$0xff] }
 0x3b2   : > { %v3684_v11 = vmul.f32 %v3683_v49, %v3681_v44  ;;  %9012 = vmatprep.subr.bf16.mxu0 %v9011_v10  ;;  %v6793_v46 = vsel %vm6791_vm4, %v3493_v16, %v13386_v1  ;;  %v9015_v5 = vpack.c.bf16 %v7126_v22, %v7118_v26  ;;  %v7134_v1 = vld [vmem:[%s11517_s10 + $0xe8] sm:$0xff]  ;;  %vm4521_vm5 = vcmp.lt.s32.totalorder %v13417_v2, 2  ;;  %v7141_v48 = vld [vmem:[%s11517_s10 + $0x120] sm:$0xff]  ;;  %v14223_v49 = vld [vmem:[#allocation27_spill] sm:$0xff] }
 0x3b3   : > { %vm13458_vm7 = vcmp.le.f32.partialorder %v14217_v50, 0.7853982  ;;  %v6794_v47 = vsel %vm6787_vm2, %v6790_v21, %v6793_v46  ;;  %v7142_v16 = vld [vmem:[%s11517_s10 + $0x128] sm:$0xff]  ;;  %v14221_v25 = vxor.u32 2147483648, %v14220_v31  ;;  %vm4525_vm11 = vcmp.eq.s32.totalorder %v13417_v2, 2  ;;  %v7157_v28 = vld [vmem:[%s11517_s10 + $0x1a0] sm:$0xff] }
 0x3b4   : > { %v3685_v57 = vxor.u32 2147483648, %v3684_v11  ;;  %v3690_v55 = vsel %vm13458_vm7, 0, %v3688_v3  ;;  %v6795_v38 = vsel %vm3485_vm10, nan, %v6794_v47  ;;  %vm5449_vm13 = vcmp.eq.s32.totalorder %v13441_v40, 0  ;;  %v14224_v9 = vld [vmem:[#allocation30_spill] sm:$0xff]  ;;  %v7149_v3 = vld [vmem:[%s11517_s10 + $0x160] sm:$0xff] }
 0x3b5   : > { %v4524_v29 = vsel %vm4522_vm3, %v14222_v32, %v14221_v25  ;;  %v9013_v41 = vpack.c.bf16 %v7109_v42, %v6795_v38  ;;  %vm5452_vm10 = vcmp.eq.s32.totalorder %v13441_v40, 2  ;;  %vm6273_vm6 = vcmp.eq.s32.totalorder %v13450_v59, 0  ;;  %v14227_v22 = vld [vmem:[#allocation22_spill] sm:$0xff]  ;;  %v14235_v25 = vld [vmem:[#allocation29_spill] sm:$0xff] }
 0x3b6   : > { %v3686_v24 = vsel %vm3603_vm0, %v3685_v57, %v3684_v11  ;;  %vm6276_vm9 = vcmp.eq.s32.totalorder %v13450_v59, 2  ;;  %v3694_v0 = vadd.s32 3, %v3690_v55  ;;  %v9017_v45 = vpack.c.bf16 %v7125_v23, %v7117_v53  ;;  %v14229_v52 = vld [vmem:[#allocation10_spill] sm:$0xff]  ;;  %v14233_v53 = vld [vmem:[#allocation23_spill] sm:$0xff] }
 0x3b7   : > { %v3689_v13 = vsel %vm13458_vm7, %v12937_v27, %v3686_v24  ;;  %9014 = vmatpush1.bf16.msra.mxu0 %v9013_v41  ;;  %v9019_v39 = vpack.c.bf16 %v7142_v16, %v7134_v1  ;;  %v7662_v36 = vmax.f32 %v13248_v33, 0.0  ;;  %v7664_v51 = vmax.f32 %v13250_v12, 0.0  ;;  %v14225_v33 = vld [vmem:[#allocation33_spill] sm:$0xff]  ;;  %v14237_v41 = vld [vmem:[#allocation28_spill] sm:$0xff] }
 0x3b8   : > { %9457 = vcosq.f32 %v3689_v13  ;;  %9016 = vmatprep.subr.bf16.mxu0 %v9015_v5  ;;  %v7663_v35 = vmax.f32 %v13255_v14, 0.0  ;;  %v7670_v18 = vmax.f32 %v13262_v37, 0.0  ;;  %v7672_v6 = vmax.f32 %v13264_v56, 0.0 }
 0x3b9   : > { %9459 = vsinq.f32 %v3689_v13  ;;  %v7671_v63 = vmax.f32 %v13269_v15, 0.0  ;;  %v5344_v19 = vand.u32 3, %v14223_v49  ;;  %v6168_v58 = vand.u32 3, %v14224_v9  ;;  %v7166_v13 = vld [vmem:[%s11517_s10 + $0x1e8] sm:$0xff]  ;;  %v14247_v9 = vld [vmem:[#allocation20_spill] sm:$0xff] }
 0x3ba   : > { %v7665_v44 = vmax.f32 %v14225_v33, 0.0  ;;  %v7673_v12 = vmax.f32 %v13271_v61, 0.0  ;;  %v9021_v14 = vpack.c.bf16 %v7141_v48, %v7133_v60  ;;  %v13509_v10 = vpack.c.bf16 %v7670_v18, %v7662_v36  ;;  %v14245_v18 = vld [vmem:[#allocation11_spill] sm:$0xff] }
 0x3bb   : > { %9018 = vmatpush1.bf16.msra.mxu0 %v9017_v45  ;;  %v13511_v34 = vpack.c.bf16 %v7672_v6, %v7664_v51  ;;  %v9059_v37 = vpack.c.bf16 %v7671_v63, %v7663_v35  ;;  %v14226_v56 = vxor.u32 2147483648, %v14222_v32  ;;  %vm5448_vm0 = vcmp.lt.s32.totalorder %v13441_v40, 2  ;;  %v14241_v45 = vld [vmem:[#allocation31_spill] sm:$0xff]  ;;  %v7165_v63 = vld [vmem:[%s11517_s10 + $0x1e0] sm:$0xff] }
 0x3bc   : > { %9020 = vmatprep.subr.bf16.mxu0 %v9019_v39  ;;  %v9023_v21 = vpack.c.bf16 %v7158_v8, %v7150_v30  ;;  %v13521_v61 = vpack.c.bf16 %v7673_v12, %v7665_v44  ;;  %v3695_v26 = vand.u32 3, %v3694_v0  ;;  %v14228_v11 = vxor.u32 2147483648, %v14227_v22  ;;  %v14243_v30 = vld [vmem:[#allocation15_spill] sm:$0xff] }
 0x3bd   : > { %v4527_v15 = vsel %vm4525_vm11, %v14226_v56, %v14220_v31  ;;  %v14230_v42 = vxor.u32 2147483648, %v14229_v52  ;;  %vm6272_vm8 = vcmp.lt.s32.totalorder %v13450_v59, 2  ;;  %v14232_v47 = vxor.u32 2147483648, %v14231_v54 }
 0x3be   : > { %v5451_v46 = vsel %vm5449_vm13, %v14229_v52, %v14228_v11  ;;  %v14234_v38 = vxor.u32 2147483648, %v14233_v53  ;;  %vm5346_vm12 = vcmp.eq.s32.totalorder %v5344_v19, 0  ;;  %vm5349_vm15 = vcmp.eq.s32.totalorder %v5344_v19, 2 }
 0x3bf   : > { %v5454_v50 = vsel %vm5452_vm10, %v14230_v42, %v14227_v22  ;;  %v6275_v57 = vsel %vm6273_vm6, %v14233_v53, %v14232_v47  ;;  %vm6170_vm2 = vcmp.eq.s32.totalorder %v6168_v58, 0  ;;  %vm6173_vm1 = vcmp.eq.s32.totalorder %v6168_v58, 2  ;;  %9022 = vmatpush1.bf16.msra.mxu0 %v9021_v14  ;;  %v7112_v42 = vld [vmem:[%s11517_s10 + $0x38] sm:$0xff]  ;;  %v7111_v47 = vld [vmem:[%s11517_s10 + $0x30] sm:$0xff] }
 0x3c0   : > { %v6278_v5 = vsel %vm6276_vm9, %v14234_v38, %v14231_v54  ;;  %v6992_v23 = vand.u32 3, %v3690_v55  ;;  %v9025_v1 = vpack.c.bf16 %v7157_v28, %v7149_v3  ;;  %vm3693_vm4 = vweird.f32 %v12937_v27  ;;  %9024 = vmatprep.subr.bf16.mxu0 %v9023_v21  ;;  %v13594_v54 = vld [vmem:[%s13864_s2 + $0x18] sm:$0xff]  ;;  %v9476_v53 = vld [vmem:[%s13864_s2 + $0x10] sm:$0xff] }
 0x3c1   : > { %v4528_v16 = vsel %vm4521_vm5, %v4524_v29, %v4527_v15  ;;  %v5455_v31 = vsel %vm5448_vm0, %v5451_v46, %v5454_v50  ;;  %vm3700_vm3 = vcmp.eq.s32.totalorder %v3695_v26, 2  ;;  %v6279_v59 = vsel %vm6272_vm8, %v6275_v57, %v6278_v5  ;;  %v14239_v29 = vld [vmem:[#allocation32_spill] sm:$0xff] }
 0x3c2   : > { %vm5345_vm7 = vcmp.lt.s32.totalorder %v5344_v19, 2  ;;  %v14236_v32 = vxor.u32 2147483648, %v14235_v25  ;;  %v9458_v55 = vpop.eup %9457  ;;  %v14238_v0 = vxor.u32 2147483648, %v14237_v41  ;;  %vm6169_vm5 = vcmp.lt.s32.totalorder %v6168_v58, 2  ;;  %v13584_v58 = vld [vmem:[%s13864_s2] sm:$0xff] }
 0x3c3   : > { %v14240_v40 = vxor.u32 2147483648, %v14239_v29  ;;  %v14242_v60 = vxor.u32 2147483648, %v14241_v45  ;;  %v9460_v36 = vpop.eup %9459  ;;  %vm3697_vm11 = vcmp.eq.s32.totalorder %v3695_v26, 0  ;;  %v3701_v51 = vxor.u32 2147483648, %v9458_v55  ;;  %9026 = vmatpush1.bf16.msra.mxu0 %v9025_v1  ;;  %v7120_v57 = vld [vmem:[%s11517_s10 + $0x78] sm:$0xff]  ;;  %v7127_v1 = vld [vmem:[%s11517_s10 + $0xb0] sm:$0xff] }
 0x3c4   : > { %v5348_v24 = vsel %vm5346_vm12, %v14237_v41, %v14236_v32  ;;  %v5351_v2 = vsel %vm5349_vm15, %v14238_v0, %v14235_v25  ;;  %vm6994_vm13 = vcmp.eq.s32.totalorder %v6992_v23, 0  ;;  %vm6997_vm10 = vcmp.eq.s32.totalorder %v6992_v23, 2  ;;  %7468 = vmatprep.subr.mxu0 %v7166_v13  ;;  %v7128_v38 = vld [vmem:[%s11517_s10 + $0xb8] sm:$0xff]  ;;  %v7143_v13 = vld [vmem:[%s11517_s10 + $0x130] sm:$0xff] }
 0x3c5   : > { %v6172_v39 = vsel %vm6170_vm2, %v14241_v45, %v14240_v40  ;;  %v6175_v48 = vsel %vm6173_vm1, %v14242_v60, %v14239_v29  ;;  %vm3696_vm6 = vcmp.lt.s32.totalorder %v3695_v26, 2  ;;  %v3698_v35 = vxor.u32 2147483648, %v9460_v36  ;;  %v14249_v26 = vld [vmem:[#allocation14_spill] sm:$0xff]  ;;  %v9479_v25 = vld [vmem:[%s13864_s2 + $0x38] sm:$0xff] }
 0x3c6   : > { %vm14244_vm9 = vweird.f32 %v14243_v30  ;;  %vm14246_vm0 = vweird.f32 %v14245_v18  ;;  %v3702_v49 = vsel %vm3700_vm3, %v3701_v51, %v9460_v36  ;;  %vm14248_vm8 = vweird.f32 %v14247_v9  ;;  %v7152_v0 = vld [vmem:[%s11517_s10 + $0x178] sm:$0xff]  ;;  %v9481_v29 = vld [vmem:[%s13864_s2 + $0x48] sm:$0xff]  ;;  %v7159_v60 = vld [vmem:[%s11517_s10 + $0x1b0] sm:$0xff] }
 0x3c7   : > { %v4529_v8 = vsel %vm14244_vm9, nan, %v4528_v16  ;;  %v5456_v6 = vsel %vm14246_vm0, nan, %v5455_v31  ;;  %v6280_v33 = vsel %vm14248_vm8, nan, %v6279_v59  ;;  %v5352_v44 = vsel %vm5345_vm7, %v5348_v24, %v5351_v2  ;;  %7469 = vmatpush1.msra.mxu0 %v7165_v63  ;;  %v9478_v16 = vld [vmem:[%s13864_s2 + $0x20] sm:$0xff]  ;;  %v7135_v24 = vld [vmem:[%s11517_s10 + $0xf0] sm:$0xff] }
 0x3c8   : > { %v6176_v12 = vsel %vm6169_vm5, %v6172_v39, %v6175_v48  ;;  %v3699_v14 = vsel %vm3697_vm11, %v9458_v55, %v3698_v35  ;;  %vm6993_vm12 = vcmp.lt.s32.totalorder %v6992_v23, 2  ;;  %v6996_v56 = vsel %vm6994_vm13, %v9458_v55, %v3698_v35  ;;  %7501 = vmatmul.mubr.f32.vlgmr.msra.gmra.mrb[16].mxu0 %v13584_v58  ;;  %9060 = vmatprep.subr.bf16.mxu0 %v9059_v37  ;;  %v7119_v23 = vld [vmem:[%s11517_s10 + $0x70] sm:$0xff]  ;;  %v7136_v31 = vld [vmem:[%s11517_s10 + $0xf8] sm:$0xff] }
 0x3c9   : > { %v6999_v15 = vsel %vm6997_vm10, %v3701_v51, %v9460_v36  ;;  %v3703_v21 = vsel %vm3696_vm6, %v3699_v14, %v3702_v49  ;;  %v9039_v28 = vpack.c.bf16 %v6280_v33, %v5456_v6  ;;  %vm14250_vm15 = vweird.f32 %v14249_v26  ;;  %9062 = vmatpush1.bf16.msra.mxu0 %v13509_v10  ;;  %v9477_v10 = vld [vmem:[%s13864_s2 + $0x28] sm:$0xff]  ;;  %v7144_v59 = vld [vmem:[%s11517_s10 + $0x138] sm:$0xff]  ;;  %v9480_v55 = vld [vmem:[%s13864_s2 + $0x30] sm:$0xff] }
 0x3ca   : > { %v3704_v3 = vsel %vm3693_vm4, nan, %v3703_v21  ;;  %v5353_v22 = vsel %vm14250_vm15, nan, %v5352_v44  ;;  %v6177_v19 = vsel %vm2861_vm14, nan, %v6176_v12  ;;  %vm14252_vm2 = vweird.f32 %v12876_v62  ;;  %v7160_v2 = vld [vmem:[%s11517_s10 + $0x1b8] sm:$0xff]  ;;  %v7151_v39 = vld [vmem:[%s11517_s10 + $0x170] sm:$0xff] }
 0x3cb   : > { %v9037_v52 = vpack.c.bf16 %v4529_v8, %v3704_v3  ;;  %v7104_v46 = vsel %vm14252_vm2, nan, %v13444_v4  ;;  %v7000_v50 = vsel %vm6993_vm12, %v6996_v56, %v6999_v15  ;;  %vm14253_vm14 = vcmask 64512   ;;  %v9482_v48 = vld [vmem:[%s13864_s2 + $0x40] sm:$0xff]  ;;  %v9483_v36 = vld [vmem:[%s13864_s2 + $0x58] sm:$0xff]  ;;  %v9484_v35 = vld [vmem:[%s13864_s2 + $0x50] sm:$0xff] }
 0x3cc   : > { %8889 = vmatprep.mubr.msk.f32.mxu0 %vm14253_vm14, %v13594_v54  ;;  %v9041_v37 = vpack.c.bf16 %v6177_v19, %v5353_v22  ;;  %v9043_v62 = vpack.c.bf16 %v7112_v42, %v7104_v46  ;;  %v7001_v4 = vsel %vm3693_vm4, nan, %v7000_v50  ;;  %vm14254_vm1 = vmmov %vm14253_vm14  ;;  %v9047_v5 = vpack.c.bf16 %v7128_v38, %v7120_v57  ;;  %v7168_v30 = vld [vmem:[%s11517_s10 + $0x1f8] sm:$0xff]  ;;  %v9485_v8 = vld [vmem:[%s13864_s2 + $0x68] sm:$0xff] }
 0x3cd   : > { %9038 = vmatpush1.bf16.msra.mxu1 %v9037_v52  ;;  %7507 = vmatmul.mubr.f32.gmra.mrb[18].mxu0 %v9476_v53  ;;  %v9045_v27 = vpack.c.bf16 %v7111_v47, %v7001_v4  ;;  %vm14255_vm4 = vmmov %vm14254_vm1  ;;  %v9049_v32 = vpack.c.bf16 %v7127_v1, %v7119_v23  ;;  %v9051_v41 = vpack.c.bf16 %v7144_v59, %v7136_v31  ;;  %v7167_v18 = vld [vmem:[%s11517_s10 + $0x1f0] sm:$0xff]  ;;  %v9486_v6 = vld [vmem:[%s13864_s2 + $0x60] sm:$0xff]  ;;  %v7680_v12 = vmax.f32 %v13481_v17, 0.0  ;;  %s9495_s10 = scalar_lea.vmem %s9494_s9, 256 }
 0x3ce   : > { %9040 = vmatprep.subr.bf16.mxu1 %v9039_v28  ;;  %8890 = vmatprep.mubr.msk.f32.mxu0 %vm14254_vm1, %v9477_v10  ;;  %vm14256_vm3 = vmmov %vm14254_vm1  ;;  %v9053_v40 = vpack.c.bf16 %v7143_v13, %v7135_v24  ;;  %v9055_v45 = vpack.c.bf16 %v7160_v2, %v7152_v0  ;;  %v9057_v51 = vpack.c.bf16 %v7159_v60, %v7151_v39  ;;  %v9487_v63 = vld [vmem:[%s13864_s2 + $0x78] sm:$0xff]  ;;  %v9488_v49 = vld [vmem:[%s13864_s2 + $0x70] sm:$0xff]  ;;  %v7679_v14 = vmax.f32 %v13488_v7, 0.0  ;;  %p9497_p4 = scmp.lt.s32.totalorder %s9495_s10, %s9489_s24 }
 0x3cf   : > { %vm14257_vm7 = vmmov %vm14254_vm1  ;;  %v7681_v3 = vmax.f32 %v13490_v43, 0.0  ;;  %vm7754_vm15 = vcmask 523264   ;;  %vm8166_vm2 = vcmask 261120  }
 0x3d0   : > { %vm14258_vm5 = vmmov %vm14254_vm1  ;;  %p9498_p5 = por %p9497_p4, %p9496_p3 }
 0x3d1   : > { %9042 = vmatpush1.bf16.msra.mxu1 %v9041_v37  ;;  %7513 = vmatmul.mubr.f32.gmra.mrb[20].mxu0 %v9478_v16  ;;  %vm14259_vm11 = vmmov %vm14254_vm1 }
 0x3d2   : > { %9044 = vmatprep.subr.bf16.mxu1 %v9043_v62  ;;  %8891 = vmatprep.mubr.msk.f32.mxu0 %vm14255_vm4, %v9479_v25  ;;  %vm14260_vm13 = vmmov %vm14254_vm1  ;;  %p9499_p7 = pnand %p9498_p5, %p9492_p2 }
 0x3d3   : > { %vm14261_vm10 = vmmov %vm14254_vm1 }
 0x3d4   : > { %vm14262_vm6 = vmmov %vm14254_vm1 }
 0x3d5   : > { %9046 = vmatpush1.bf16.msra.mxu1 %v9045_v27  ;;  %7519 = vmatmul.mubr.f32.gmra.mrb[22].mxu0 %v9480_v55  ;;  %vm14263_vm9 = vmmov %vm14254_vm1 }
 0x3d6   : > { %9048 = vmatprep.subr.bf16.mxu1 %v9047_v5  ;;  %8892 = vmatprep.mubr.msk.f32.mxu0 %vm14256_vm3, %v9481_v29  ;;  %vm14264_vm0 = vmmov %vm14254_vm1 }
 0x3d7   : > { %vm14265_vm8 = vmmov %vm14264_vm0 }
 0x3d8   : > { %vm14266_vm12 = vmmov %vm14264_vm0 }
 0x3d9   : > { %9050 = vmatpush1.bf16.msra.mxu1 %v9049_v32  ;;  %7525 = vmatmul.mubr.f32.gmra.mrb[24].mxu0 %v9482_v48 }
 0x3da   : > { %9052 = vmatprep.subr.bf16.mxu1 %v9051_v41  ;;  %8893 = vmatprep.mubr.msk.f32.mxu0 %vm14257_vm7, %v9483_v36 }
 0x3dd   : > { %9054 = vmatpush1.bf16.msra.mxu1 %v9053_v40  ;;  %7531 = vmatmul.mubr.f32.gmra.mrb[26].mxu0 %v9484_v35 }
 0x3de   : > { %9056 = vmatprep.subr.bf16.mxu1 %v9055_v45  ;;  %8894 = vmatprep.mubr.msk.f32.mxu0 %vm14258_vm5, %v9485_v8 }
 0x3e1   : > { %9058 = vmatpush1.bf16.msra.mxu1 %v9057_v51  ;;  %7537 = vmatmul.mubr.f32.gmra.mrb[28].mxu0 %v9486_v6  ;;  %v9559_v51 = vmov 0.0  }
 0x3e2   : > { %7581 = vmatprep.subr.mxu1 %v7168_v30  ;;  %8895 = vmatprep.mubr.msk.f32.mxu0 %vm14259_vm11, %v9487_v63  ;;  %v13692_v30 = vld [vmem:[%s13865_s3 + $0x8] sm:$0xff] }
 0x3e5   : > { %7582 = vmatpush1.msra.mxu1 %v7167_v18  ;;  %7543 = vmatmul.mubr.f32.gmra.mrb[30].mxu0 %v9488_v49  ;;  %v13714_v18 = vld [vmem:[%s13865_s3 + $0x18] sm:$0xff] }
 0x3e6   : > { %7614 = vmatmul.mubr.f32.vlgmr.msra.gmra.mrb[16].mxu1 %v13584_v58  ;;  %9076 = vmatprep.subr.bf16.mxu1 %v13521_v61  ;;  %v7678_v61 = vmax.f32 %v13479_v20, 0.0 }
 0x3e7   : > { %8897 = vmatprep.mubr.msk.f32.mxu1 %vm14260_vm13, %v13594_v54  ;;  %9078 = vmatpush1.bf16.msra.mxu1 %v13511_v34 }
 0x3e8   : > { %7831 = vmatprep.mubr.f32.mxu0 %v9559_v51 }
 0x3ea   : > { %7620 = vmatmul.mubr.f32.gmra.mrb[18].mxu1 %v9476_v53 }
 0x3eb   : > { %8898 = vmatprep.mubr.msk.f32.mxu1 %vm14261_vm10, %v9477_v10 }
 0x3ee   : > { %7626 = vmatmul.mubr.f32.gmra.mrb[20].mxu1 %v9478_v16 }
 0x3ef   : > { %8899 = vmatprep.mubr.msk.f32.mxu1 %vm14262_vm6, %v9479_v25 }
 0x3f2   : > { %7632 = vmatmul.mubr.f32.gmra.mrb[22].mxu1 %v9480_v55 }
 0x3f3   : > { %8900 = vmatprep.mubr.msk.f32.mxu1 %vm14263_vm9, %v9481_v29 }
 0x3f6   : > { %7638 = vmatmul.mubr.f32.gmra.mrb[24].mxu1 %v9482_v48 }
 0x3f7   : > { %8901 = vmatprep.mubr.msk.f32.mxu1 %vm14264_vm0, %v9483_v36 }
 0x3fa   : > { %7644 = vmatmul.mubr.f32.gmra.mrb[26].mxu1 %v9484_v35  ;;  %v13681_v35 = vld [vmem:[%s13865_s3] sm:$0xff] }
 0x3fb   : > { %8902 = vmatprep.mubr.msk.f32.mxu1 %vm14265_vm8, %v9485_v8  ;;  %v13703_v8 = vld [vmem:[%s13865_s3 + $0x10] sm:$0xff] }
 0x3fe   : > { %7650 = vmatmul.mubr.f32.gmra.mrb[28].mxu1 %v9486_v6  ;;  %v7730_v6 = vld [vmem:[%s13866_s4] sm:$0xff] }
 0x3ff   : > { %8903 = vmatprep.mubr.msk.f32.mxu1 %vm14266_vm12, %v9487_v63  ;;  %v7732_v63 = vld [vmem:[%s13866_s4 + $0x10] sm:$0xff] }
 0x402   : > { %7656 = vmatmul.mubr.f32.gmra.mrb[30].mxu1 %v9488_v49  ;;  %v9560_v49 = vmov 0  }
 0x403   : > { %7920 = vmatprep.mubr.f32.mxu1 %v9559_v51  ;;  %9331 = vset.pattern.permute.xlu0 %v9560_v49 }
 0x404   : > { %9332 = vset.pattern.permute.xlu1 %v9560_v49  ;;  %7736 = vperm.xlu0 %9331, %v7730_v6  }
 0x405   : > { %7746 = vperm.xlu1 %9332, %v7732_v63  }
 0x41c   : > { %v7294_v34 = vpop.f32.mrb[6].mxu0  ;;  %v7407_v33 = vpop.f32.mrb[6].mxu1 }
 0x41d   : > { %v7686_v9 = vmax.f32 %v7294_v34, 0.0  ;;  %v7296_v44 = vpop.f32.mrb[7].mxu0  ;;  %v7688_v56 = vmax.f32 %v7407_v33, 0.0  ;;  %v7409_v21 = vpop.f32.mrb[7].mxu1  ;;  %v7731_v34 = vld [vmem:[%s13866_s4 + $0x8] sm:$0xff] }
 0x41e   : > { %v7687_v15 = vmax.f32 %v7296_v44, 0.0  ;;  %v7689_v26 = vmax.f32 %v7409_v21, 0.0  ;;  %7741 = vperm.xlu0 %9331, %v7731_v34  }
 0x41f   : > { %v9065_v28 = vpack.c.bf16 %v7686_v9, %v7678_v61  ;;  %v9081_v22 = vpack.c.bf16 %v7688_v56, %v7680_v12  ;;  %v7733_v61 = vld [vmem:[%s13866_s4 + $0x18] sm:$0xff]  ;;  %v8156_v9 = vld [vmem:[#allocation2] sm:$0x1] }
 0x420   : > { %v9063_v11 = vpack.c.bf16 %v7687_v15, %v7679_v14  ;;  %v9079_v58 = vpack.c.bf16 %v7689_v26, %v7681_v3  ;;  %7751 = vperm.xlu1 %9332, %v7733_v61  }
 0x421   : > { %v7300_v19 = vpop.f32.mrb[8].mxu0  ;;  %v7413_v52 = vpop.f32.mrb[8].mxu1 }
 0x422   : > { %v7302_v20 = vpop.f32.mrb[9].mxu0  ;;  %9064 = vmatprep.subr.bf16.mxu0 %v9063_v11  ;;  %v7415_v46 = vpop.f32.mrb[9].mxu1  ;;  %9080 = vmatprep.subr.bf16.mxu1 %v9079_v58  ;;  %v7694_v7 = vmax.f32 %v7300_v19, 0.0  ;;  %v7696_v37 = vmax.f32 %v7413_v52, 0.0 }
 0x423   : > { %9066 = vmatpush1.bf16.msra.mxu0 %v9065_v28  ;;  %9082 = vmatpush1.bf16.msra.mxu1 %v9081_v22  ;;  %v7695_v43 = vmax.f32 %v7302_v20, 0.0  ;;  %v7697_v53 = vmax.f32 %v7415_v46, 0.0 }
 0x424   : > { %8159 = vperm.xlu0 %9331, %v8156_v9  }
 0x425   : > { %v7306_v17 = vpop.f32.mrb[10].mxu0  ;;  %v7419_v50 = vpop.f32.mrb[10].mxu1 }
 0x426   : > { %v7702_v42 = vmax.f32 %v7306_v17, 0.0  ;;  %v7308_v54 = vpop.f32.mrb[11].mxu0  ;;  %v7704_v62 = vmax.f32 %v7419_v50, 0.0  ;;  %v7421_v47 = vpop.f32.mrb[11].mxu1 }
 0x427   : > { %v7703_v4 = vmax.f32 %v7308_v54, 0.0  ;;  %v7705_v38 = vmax.f32 %v7421_v47, 0.0 }
 0x428   : > { %v9069_v57 = vpack.c.bf16 %v7702_v42, %v7694_v7  ;;  %v9085_v10 = vpack.c.bf16 %v7704_v62, %v7696_v37 }
 0x429   : > { %v9067_v27 = vpack.c.bf16 %v7703_v4, %v7695_v43  ;;  %v9083_v23 = vpack.c.bf16 %v7705_v38, %v7697_v53 }
 0x42a   : > { %v7312_v5 = vpop.f32.mrb[12].mxu0  ;;  %v7425_v1 = vpop.f32.mrb[12].mxu1 }
 0x42b   : > { %v7314_v16 = vpop.f32.mrb[13].mxu0  ;;  %9068 = vmatprep.subr.bf16.mxu0 %v9067_v27  ;;  %v7427_v31 = vpop.f32.mrb[13].mxu1  ;;  %9084 = vmatprep.subr.bf16.mxu1 %v9083_v23  ;;  %v7710_v25 = vmax.f32 %v7312_v5, 0.0  ;;  %v7712_v13 = vmax.f32 %v7425_v1, 0.0 }
 0x42c   : > { %9070 = vmatpush1.bf16.msra.mxu0 %v9069_v57  ;;  %9086 = vmatpush1.bf16.msra.mxu1 %v9085_v10  ;;  %v7711_v55 = vmax.f32 %v7314_v16, 0.0  ;;  %v7713_v40 = vmax.f32 %v7427_v31, 0.0 }
 0x42e   : > { %v7318_v59 = vpop.f32.mrb[14].mxu0  ;;  %v7431_v41 = vpop.f32.mrb[14].mxu1 }
 0x42f   : > { %v7718_v32 = vmax.f32 %v7318_v59, 0.0  ;;  %v7320_v24 = vpop.f32.mrb[15].mxu0  ;;  %v7720_v0 = vmax.f32 %v7431_v41, 0.0  ;;  %v7433_v29 = vpop.f32.mrb[15].mxu1 }
 0x430   : > { %v7719_v2 = vmax.f32 %v7320_v24, 0.0  ;;  %v7721_v39 = vmax.f32 %v7433_v29, 0.0 }
 0x431   : > { %v9073_v45 = vpack.c.bf16 %v7718_v32, %v7710_v25  ;;  %v9089_v60 = vpack.c.bf16 %v7720_v0, %v7712_v13 }
 0x432   : > { %v9071_v48 = vpack.c.bf16 %v7719_v2, %v7711_v55  ;;  %v9087_v36 = vpack.c.bf16 %v7721_v39, %v7713_v40 }
 0x434   : > { %9072 = vmatprep.subr.bf16.mxu0 %v9071_v48  ;;  %9088 = vmatprep.subr.bf16.mxu1 %v9087_v36 }
 0x435   : > { %9074 = vmatpush1.bf16.msra.mxu0 %v9073_v45  ;;  %9090 = vmatpush1.bf16.msra.mxu1 %v9089_v60 }
 0x438   : > { %8904 = vmatmul.mubr.msk.f32.vlgmr.msra.gmra.mrb[32].mxu0 %vm7754_vm15, %v13681_v35  ;;  %8908 = vmatmul.mubr.msk.f32.vlgmr.msra.gmra.mrb[32].mxu1 %vm7754_vm15, %v13681_v35 }
 0x439   : > { %7837 = vmatprep.mubr.f32.mxu0 %v9559_v51  ;;  %7926 = vmatprep.mubr.f32.mxu1 %v9559_v51 }
 0x43c   : > { %8905 = vmatmul.mubr.msk.f32.gmra.mrb[34].mxu0 %vm7754_vm15, %v13692_v30  ;;  %8909 = vmatmul.mubr.msk.f32.gmra.mrb[34].mxu1 %vm7754_vm15, %v13692_v30 }
 0x43d   : > { %7843 = vmatprep.mubr.f32.mxu0 %v9559_v51  ;;  %7932 = vmatprep.mubr.f32.mxu1 %v9559_v51 }
 0x440   : > { %8906 = vmatmul.mubr.msk.f32.gmra.mrb[36].mxu0 %vm7754_vm15, %v13703_v8  ;;  %8910 = vmatmul.mubr.msk.f32.gmra.mrb[36].mxu1 %vm7754_vm15, %v13703_v8 }
 0x441   : > { %7849 = vmatprep.mubr.f32.mxu0 %v9559_v51  ;;  %7938 = vmatprep.mubr.f32.mxu1 %v9559_v51 }
 0x444   : > { %8907 = vmatmul.mubr.msk.f32.gmra.mrb[38].mxu0 %vm7754_vm15, %v13714_v18  ;;  %8911 = vmatmul.mubr.msk.f32.gmra.mrb[38].mxu1 %vm7754_vm15, %v13714_v18 }
 0x445   : > { %8009 = vmatprep.mubr.f32.mxu0 %v9559_v51  ;;  %8098 = vmatprep.mubr.f32.mxu1 %v9559_v51 }
 0x49b   : > { %v7502_v33 = vpop.f32.mrb[16].mxu0 }
 0x49c   : > { %v7504_v44 = vpop.f32.mrb[17].mxu0  ;;  %v7666_v14 = vmax.f32 %v7502_v33, 0.0 }
 0x49d   : > { %v7667_v21 = vmax.f32 %v7504_v44, 0.0 }
 0x4a0   : > { %v7508_v12 = vpop.f32.mrb[18].mxu0 }
 0x4a1   : > { %v7674_v56 = vmax.f32 %v7508_v12, 0.0  ;;  %v7510_v15 = vpop.f32.mrb[19].mxu0 }
 0x4a2   : > { %v7675_v3 = vmax.f32 %v7510_v15, 0.0 }
 0x4a3   : > { %v9093_v28 = vpack.c.bf16 %v7674_v56, %v7666_v14 }
 0x4a4   : > { %v9091_v26 = vpack.c.bf16 %v7675_v3, %v7667_v21  ;;  %v7514_v22 = vpop.f32.mrb[20].mxu0 }
 0x4a5   : > { %v7516_v11 = vpop.f32.mrb[21].mxu0  ;;  %v7682_v58 = vmax.f32 %v7514_v22, 0.0 }
 0x4a6   : > { %9092 = vmatprep.subr.bf16.mxu0 %v9091_v26  ;;  %v7683_v46 = vmax.f32 %v7516_v11, 0.0 }
 0x4a7   : > { %9094 = vmatpush1.bf16.msra.mxu0 %v9093_v28 }
 0x4a8   : > { %v7520_v19 = vpop.f32.mrb[22].mxu0 }
 0x4a9   : > { %v7690_v52 = vmax.f32 %v7520_v19, 0.0  ;;  %v7522_v20 = vpop.f32.mrb[23].mxu0 }
 0x4aa   : > { %v7691_v17 = vmax.f32 %v7522_v20, 0.0 }
 0x4ab   : > { %v9097_v7 = vpack.c.bf16 %v7690_v52, %v7682_v58 }
 0x4ac   : > { %v9095_v42 = vpack.c.bf16 %v7691_v17, %v7683_v46  ;;  %v7526_v50 = vpop.f32.mrb[24].mxu0 }
 0x4ad   : > { %v7528_v54 = vpop.f32.mrb[25].mxu0  ;;  %v7698_v43 = vmax.f32 %v7526_v50, 0.0 }
 0x4ae   : > { %9096 = vmatprep.subr.bf16.mxu0 %v9095_v42  ;;  %v7699_v47 = vmax.f32 %v7528_v54, 0.0  ;;  %v13758_v54 = vpop.permute.xlu0 %7736 }
 0x4af   : > { %9098 = vmatpush1.bf16.msra.mxu0 %v9097_v7 }
 0x4b0   : > { %v7532_v37 = vpop.f32.mrb[26].mxu0 }
 0x4b1   : > { %v7706_v62 = vmax.f32 %v7532_v37, 0.0  ;;  %v7534_v4 = vpop.f32.mrb[27].mxu0 }
 0x4b2   : > { %v7707_v53 = vmax.f32 %v7534_v4, 0.0 }
 0x4b3   : > { %v9101_v57 = vpack.c.bf16 %v7706_v62, %v7698_v43 }
 0x4b4   : > { %v9099_v38 = vpack.c.bf16 %v7707_v53, %v7699_v47  ;;  %v7538_v10 = vpop.f32.mrb[28].mxu0  ;;  %v13764_v53 = vpop.permute.xlu0 %7741 }
 0x4b5   : > { %v7540_v27 = vpop.f32.mrb[29].mxu0  ;;  %v7714_v16 = vmax.f32 %v7538_v10, 0.0 }
 0x4b6   : > { %9100 = vmatprep.subr.bf16.mxu0 %v9099_v38  ;;  %v7715_v25 = vmax.f32 %v7540_v27, 0.0 }
 0x4b7   : > { %9102 = vmatpush1.bf16.msra.mxu0 %v9101_v57  ;;  %v13766_v57 = vpop.permute.xlu1 %7746 }
 0x4b8   : > { %v7544_v23 = vpop.f32.mrb[30].mxu0 }
 0x4b9   : > { %v7615_v5 = vpop.f32.mrb[16].mxu1  ;;  %v7722_v31 = vmax.f32 %v7544_v23, 0.0  ;;  %v7546_v59 = vpop.f32.mrb[31].mxu0 }
 0x4ba   : > { %v7617_v1 = vpop.f32.mrb[17].mxu1  ;;  %v7723_v32 = vmax.f32 %v7546_v59, 0.0  ;;  %v7668_v55 = vmax.f32 %v7615_v5, 0.0 }
 0x4bb   : > { %v9105_v41 = vpack.c.bf16 %v7722_v31, %v7714_v16  ;;  %v7669_v29 = vmax.f32 %v7617_v1, 0.0 }
 0x4bc   : > { %v9103_v13 = vpack.c.bf16 %v7723_v32, %v7715_v25 }
 0x4bd   : > { %v7621_v24 = vpop.f32.mrb[18].mxu1 }
 0x4be   : > { %v7676_v0 = vmax.f32 %v7621_v24, 0.0  ;;  %v7623_v2 = vpop.f32.mrb[19].mxu1  ;;  %9104 = vmatprep.subr.bf16.mxu0 %v9103_v13 }
 0x4bf   : > { %v7677_v40 = vmax.f32 %v7623_v2, 0.0  ;;  %9106 = vmatpush1.bf16.msra.mxu0 %v9105_v41 }
 0x4c0   : > { %v9109_v45 = vpack.c.bf16 %v7676_v0, %v7668_v55 }
 0x4c1   : > { %v9107_v39 = vpack.c.bf16 %v7677_v40, %v7669_v29  ;;  %v7627_v60 = vpop.f32.mrb[20].mxu1 }
 0x4c2   : > { %v7629_v48 = vpop.f32.mrb[21].mxu1  ;;  %8912 = vmatmul.mubr.msk.f32.vlgmr.msra.gmra.mrb[40].mxu0 %vm7754_vm15, %v13681_v35  ;;  %v7684_v6 = vmax.f32 %v7627_v60, 0.0 }
 0x4c3   : > { %9108 = vmatprep.subr.bf16.mxu1 %v9107_v39  ;;  %8015 = vmatprep.mubr.f32.mxu0 %v9559_v51  ;;  %v7685_v34 = vmax.f32 %v7629_v48, 0.0 }
 0x4c4   : > { %9110 = vmatpush1.bf16.msra.mxu1 %v9109_v45 }
 0x4c5   : > { %v7633_v36 = vpop.f32.mrb[22].mxu1 }
 0x4c6   : > { %v7692_v63 = vmax.f32 %v7633_v36, 0.0  ;;  %v7635_v49 = vpop.f32.mrb[23].mxu1  ;;  %8913 = vmatmul.mubr.msk.f32.gmra.mrb[42].mxu0 %vm7754_vm15, %v13692_v30 }
 0x4c7   : > { %v7693_v61 = vmax.f32 %v7635_v49, 0.0  ;;  %8021 = vmatprep.mubr.f32.mxu0 %v9559_v51 }
 0x4c8   : > { %v9113_v9 = vpack.c.bf16 %v7692_v63, %v7684_v6 }
 0x4c9   : > { %v9111_v33 = vpack.c.bf16 %v7693_v61, %v7685_v34  ;;  %v7639_v44 = vpop.f32.mrb[24].mxu1  ;;  %v13776_v34 = vpop.permute.xlu1 %7751 }
 0x4ca   : > { %v7641_v12 = vpop.f32.mrb[25].mxu1  ;;  %8914 = vmatmul.mubr.msk.f32.gmra.mrb[44].mxu0 %vm7754_vm15, %v13703_v8  ;;  %v7700_v56 = vmax.f32 %v7639_v44, 0.0 }
 0x4cb   : > { %9112 = vmatprep.subr.bf16.mxu1 %v9111_v33  ;;  %8027 = vmatprep.mubr.f32.mxu0 %v9559_v51  ;;  %v7701_v3 = vmax.f32 %v7641_v12, 0.0 }
 0x4cc   : > { %9114 = vmatpush1.bf16.msra.mxu1 %v9113_v9 }
 0x4cd   : > { %v7645_v14 = vpop.f32.mrb[26].mxu1 }
 0x4ce   : > { %v7708_v15 = vmax.f32 %v7645_v14, 0.0  ;;  %v7647_v21 = vpop.f32.mrb[27].mxu1  ;;  %8915 = vmatmul.mubr.msk.f32.gmra.mrb[46].mxu0 %vm7754_vm15, %v13714_v18 }
 0x4cf   : > { %v7709_v28 = vmax.f32 %v7647_v21, 0.0  ;;  %8234 = vmatprep.mubr.f32.mxu0 %v9559_v51 }
 0x4d0   : > { %v9117_v26 = vpack.c.bf16 %v7708_v15, %v7700_v56 }
 0x4d1   : > { %v9115_v22 = vpack.c.bf16 %v7709_v28, %v7701_v3  ;;  %v7651_v11 = vpop.f32.mrb[28].mxu1 }
 0x4d2   : > { %v7653_v19 = vpop.f32.mrb[29].mxu1  ;;  %v7716_v52 = vmax.f32 %v7651_v11, 0.0 }
 0x4d3   : > { %9116 = vmatprep.subr.bf16.mxu1 %v9115_v22  ;;  %v7717_v17 = vmax.f32 %v7653_v19, 0.0 }
 0x4d4   : > { %9118 = vmatpush1.bf16.msra.mxu1 %v9117_v26 }
 0x4d5   : > { %v7657_v58 = vpop.f32.mrb[30].mxu1 }
 0x4d6   : > { %v7724_v20 = vmax.f32 %v7657_v58, 0.0  ;;  %v7659_v46 = vpop.f32.mrb[31].mxu1 }
 0x4d7   : > { %v7725_v7 = vmax.f32 %v7659_v46, 0.0 }
 0x4d8   : > { %v9121_v42 = vpack.c.bf16 %v7724_v20, %v7716_v52 }
 0x4d9   : > { %v9119_v50 = vpack.c.bf16 %v7725_v7, %v7717_v17  ;;  %v13785_v7 = vld [vmem:[%s13867_s5] sm:$0x1] }
 0x4db   : > { %9120 = vmatprep.subr.bf16.mxu1 %v9119_v50 }
 0x4dc   : > { %9122 = vmatpush1.bf16.msra.mxu1 %v9121_v42 }
 0x4df   : > { %8916 = vmatmul.mubr.msk.f32.vlgmr.msra.gmra.mrb[40].mxu1 %vm7754_vm15, %v13681_v35 }
 0x4e0   : > { %8104 = vmatprep.mubr.f32.mxu1 %v9559_v51 }
 0x4e3   : > { %8917 = vmatmul.mubr.msk.f32.gmra.mrb[42].mxu1 %vm7754_vm15, %v13692_v30 }
 0x4e4   : > { %8110 = vmatprep.mubr.f32.mxu1 %v9559_v51 }
 0x4e7   : > { %8918 = vmatmul.mubr.msk.f32.gmra.mrb[44].mxu1 %vm7754_vm15, %v13703_v8 }
 0x4e8   : > { %8116 = vmatprep.mubr.f32.mxu1 %v9559_v51 }
 0x4eb   : > { %8919 = vmatmul.mubr.msk.f32.gmra.mrb[46].mxu1 %vm7754_vm15, %v13714_v18 }
 0x4ec   : > { %8305 = vmatprep.mubr.f32.mxu1 %v9559_v51 }
 0x50b   : > { %v7833_v35 = vpop.f32.mrb[32].mxu0  ;;  %v7922_v37 = vpop.f32.mrb[32].mxu1 }
 0x50c   : > { %v7834_v43 = vadd.f32 %v7833_v35, %v13758_v54  ;;  %v7923_v30 = vadd.f32 %v7922_v37, %v13758_v54  ;;  %v7835_v62 = vpop.f32.mrb[33].mxu0  ;;  %v7924_v4 = vpop.f32.mrb[33].mxu1 }
 0x50d   : > { %v7836_v47 = vadd.f32 %v7835_v62, %v13758_v54  ;;  %v7925_v8 = vadd.f32 %v7924_v4, %v13758_v54 }
 0x50e   : > { %v8123_v10 = vmax.f32 %v7834_v43, 0.0  ;;  %v8125_v27 = vmax.f32 %v7923_v30, 0.0 }
 0x50f   : > { %v7839_v18 = vpop.f32.mrb[34].mxu0  ;;  %v7928_v38 = vpop.f32.mrb[34].mxu1  ;;  %v8124_v31 = vmax.f32 %v7836_v47, 0.0  ;;  %v8126_v59 = vmax.f32 %v7925_v8, 0.0 }
 0x510   : > { %v7841_v5 = vpop.f32.mrb[35].mxu0  ;;  %v7930_v23 = vpop.f32.mrb[35].mxu1  ;;  %v7840_v1 = vadd.f32 %v7839_v18, %v13764_v53  ;;  %v7929_v16 = vadd.f32 %v7928_v38, %v13764_v53 }
 0x511   : > { %v7842_v25 = vadd.f32 %v7841_v5, %v13764_v53  ;;  %v7931_v32 = vadd.f32 %v7930_v23, %v13764_v53 }
 0x512   : > { %v8131_v41 = vmax.f32 %v7840_v1, 0.0  ;;  %v8133_v24 = vmax.f32 %v7929_v16, 0.0 }
 0x513   : > { %v8132_v13 = vmax.f32 %v7842_v25, 0.0  ;;  %v8134_v55 = vmax.f32 %v7931_v32, 0.0  ;;  %v7845_v0 = vpop.f32.mrb[36].mxu0  ;;  %v7934_v2 = vpop.f32.mrb[36].mxu1 }
 0x514   : > { %v7846_v29 = vadd.f32 %v7845_v0, %v13766_v57  ;;  %v7935_v40 = vadd.f32 %v7934_v2, %v13766_v57  ;;  %v7847_v45 = vpop.f32.mrb[37].mxu0  ;;  %v7936_v39 = vpop.f32.mrb[37].mxu1  ;;  %v9125_v60 = vpack.c.bf16 %v8131_v41, %v8123_v10  ;;  %v9133_v48 = vpack.c.bf16 %v8133_v24, %v8125_v27 }
 0x515   : > { %v9123_v36 = vpack.c.bf16 %v8132_v13, %v8124_v31  ;;  %v9131_v6 = vpack.c.bf16 %v8134_v55, %v8126_v59  ;;  %v7848_v63 = vadd.f32 %v7847_v45, %v13766_v57  ;;  %v7937_v49 = vadd.f32 %v7936_v39, %v13766_v57 }
 0x516   : > { %v8139_v33 = vmax.f32 %v7846_v29, 0.0  ;;  %v8141_v44 = vmax.f32 %v7935_v40, 0.0 }
 0x517   : > { %v7851_v61 = vpop.f32.mrb[38].mxu0  ;;  %v7940_v9 = vpop.f32.mrb[38].mxu1  ;;  %9124 = vmatprep.subr.bf16.mxu0 %v9123_v36  ;;  %9132 = vmatprep.subr.bf16.mxu1 %v9131_v6  ;;  %v8140_v21 = vmax.f32 %v7848_v63, 0.0  ;;  %v8142_v3 = vmax.f32 %v7937_v49, 0.0 }
 0x518   : > { %v7853_v12 = vpop.f32.mrb[39].mxu0  ;;  %v7942_v14 = vpop.f32.mrb[39].mxu1  ;;  %9126 = vmatpush1.bf16.msra.mxu0 %v9125_v60  ;;  %9134 = vmatpush1.bf16.msra.mxu1 %v9133_v48  ;;  %v7852_v56 = vadd.f32 %v7851_v61, %v13776_v34  ;;  %v7941_v15 = vadd.f32 %v7940_v9, %v13776_v34 }
 0x519   : > { %v7854_v28 = vadd.f32 %v7853_v12, %v13776_v34  ;;  %v7943_v26 = vadd.f32 %v7942_v14, %v13776_v34 }
 0x51a   : > { %v8147_v22 = vmax.f32 %v7852_v56, 0.0  ;;  %v8149_v11 = vmax.f32 %v7941_v15, 0.0 }
 0x51b   : > { %v8148_v19 = vmax.f32 %v7854_v28, 0.0  ;;  %v8150_v58 = vmax.f32 %v7943_v26, 0.0 }
 0x51c   : > { %v9129_v52 = vpack.c.bf16 %v8147_v22, %v8139_v33  ;;  %v9137_v20 = vpack.c.bf16 %v8149_v11, %v8141_v44 }
 0x51d   : > { %v9127_v46 = vpack.c.bf16 %v8148_v19, %v8140_v21  ;;  %v9135_v17 = vpack.c.bf16 %v8150_v58, %v8142_v3 }
 0x51f   : > { %9128 = vmatprep.subr.bf16.mxu0 %v9127_v46  ;;  %9136 = vmatprep.subr.bf16.mxu1 %v9135_v17  ;;  %v8160_v17 = vpop.permute.xlu0 %8159 }
 0x520   : > { %9130 = vmatpush1.bf16.msra.mxu0 %v9129_v52  ;;  %9138 = vmatpush1.bf16.msra.mxu1 %v9137_v20  ;;  %v9561_v52 = vmov 1966171168  }
 0x521   : > { %v8467_v20 = vunpack.c.l.s4 %v9561_v52 }
 0x523   : > { %8920 = vmatmul.mubr.msk.f32.vlgmr.msra.gmra.mrb[48].mxu0 %vm8166_vm2, %v13785_v7  ;;  %8921 = vmatmul.mubr.msk.f32.vlgmr.msra.gmra.mrb[48].mxu1 %vm8166_vm2, %v13785_v7 }
 0x524   : > { %8376 = vmatprep.mubr.f32.mxu0 %v9559_v51  ;;  %8447 = vmatprep.mubr.f32.mxu1 %v9559_v51 }
 0x595   : > { %v8011_v42 = vpop.f32.mrb[40].mxu0 }
 0x596   : > { %v8013_v50 = vpop.f32.mrb[41].mxu0  ;;  %v8012_v35 = vadd.f32 %v8011_v42, %v13758_v54  ;;  %v8468_v42 = vunpack.c.0.s8 %v8467_v20 }
 0x597   : > { %v8014_v37 = vadd.f32 %v8013_v50, %v13758_v54 }
 0x598   : > { %v8127_v47 = vmax.f32 %v8012_v35, 0.0 }
 0x599   : > { %v8017_v43 = vpop.f32.mrb[42].mxu0  ;;  %v8128_v18 = vmax.f32 %v8014_v37, 0.0 }
 0x59a   : > { %v8018_v30 = vadd.f32 %v8017_v43, %v13764_v53  ;;  %v8019_v62 = vpop.f32.mrb[43].mxu0 }
 0x59b   : > { %v8020_v4 = vadd.f32 %v8019_v62, %v13764_v53 }
 0x59c   : > { %v8135_v8 = vmax.f32 %v8018_v30, 0.0 }
 0x59d   : > { %v8136_v38 = vmax.f32 %v8020_v4, 0.0  ;;  %v8023_v10 = vpop.f32.mrb[44].mxu0 }
 0x59e   : > { %v9141_v27 = vpack.c.bf16 %v8135_v8, %v8127_v47  ;;  %v8025_v5 = vpop.f32.mrb[45].mxu0  ;;  %v8024_v23 = vadd.f32 %v8023_v10, %v13766_v57 }
 0x59f   : > { %v9139_v51 = vpack.c.bf16 %v8136_v38, %v8128_v18  ;;  %v8026_v1 = vadd.f32 %v8025_v5, %v13766_v57 }
 0x5a0   : > { %v8143_v32 = vmax.f32 %v8024_v23, 0.0 }
 0x5a1   : > { %v8029_v16 = vpop.f32.mrb[46].mxu0  ;;  %9140 = vmatprep.subr.bf16.mxu0 %v9139_v51  ;;  %v8144_v24 = vmax.f32 %v8026_v1, 0.0 }
 0x5a2   : > { %v8030_v31 = vadd.f32 %v8029_v16, %v13776_v34  ;;  %v8031_v59 = vpop.f32.mrb[47].mxu0  ;;  %9142 = vmatpush1.bf16.msra.mxu0 %v9141_v27 }
 0x5a3   : > { %v8032_v25 = vadd.f32 %v8031_v59, %v13776_v34 }
 0x5a4   : > { %v8151_v41 = vmax.f32 %v8030_v31, 0.0 }
 0x5a5   : > { %v8152_v13 = vmax.f32 %v8032_v25, 0.0 }
 0x5a6   : > { %v9145_v55 = vpack.c.bf16 %v8151_v41, %v8143_v32 }
 0x5a7   : > { %v9143_v0 = vpack.c.bf16 %v8152_v13, %v8144_v24 }
 0x5a9   : > { %9144 = vmatprep.subr.bf16.mxu0 %v9143_v0 }
 0x5aa   : > { %9146 = vmatpush1.bf16.msra.mxu0 %v9145_v55 }
 0x5ad   : > { %8922 = vmatmul.mubr.msk.f32.vlgmr.msra.gmra.mrb[50].mxu0 %vm8166_vm2, %v13785_v7 }
 0x5b2   : > { %v8100_v2 = vpop.f32.mrb[40].mxu1 }
 0x5b3   : > { %v8102_v29 = vpop.f32.mrb[41].mxu1  ;;  %v8101_v40 = vadd.f32 %v8100_v2, %v13758_v54 }
 0x5b4   : > { %v8103_v45 = vadd.f32 %v8102_v29, %v13758_v54 }
 0x5b5   : > { %v8129_v6 = vmax.f32 %v8101_v40, 0.0 }
 0x5b6   : > { %v8106_v39 = vpop.f32.mrb[42].mxu1  ;;  %v8130_v49 = vmax.f32 %v8103_v45, 0.0 }
 0x5b7   : > { %v8107_v60 = vadd.f32 %v8106_v39, %v13764_v53  ;;  %v8108_v48 = vpop.f32.mrb[43].mxu1 }
 0x5b8   : > { %v8109_v36 = vadd.f32 %v8108_v48, %v13764_v53 }
 0x5b9   : > { %v8137_v63 = vmax.f32 %v8107_v60, 0.0 }
 0x5ba   : > { %v8138_v61 = vmax.f32 %v8109_v36, 0.0  ;;  %v8112_v9 = vpop.f32.mrb[44].mxu1 }
 0x5bb   : > { %v9149_v33 = vpack.c.bf16 %v8137_v63, %v8129_v6  ;;  %v8114_v44 = vpop.f32.mrb[45].mxu1  ;;  %v8113_v14 = vadd.f32 %v8112_v9, %v13766_v57 }
 0x5bc   : > { %v9147_v12 = vpack.c.bf16 %v8138_v61, %v8130_v49  ;;  %v8115_v56 = vadd.f32 %v8114_v44, %v13766_v57  ;;  %v8162_v57 = vlaneseq }
 0x5bd   : > { %v8145_v3 = vmax.f32 %v8113_v14, 0.0 }
 0x5be   : > { %v8118_v15 = vpop.f32.mrb[46].mxu1  ;;  %9148 = vmatprep.subr.bf16.mxu1 %v9147_v12  ;;  %v8146_v26 = vmax.f32 %v8115_v56, 0.0  ;;  %v8163_v58 = vshrl.u32 %v8162_v57, 7 }
 0x5bf   : > { %v8119_v54 = vadd.f32 %v8118_v15, %v13776_v34  ;;  %v8120_v21 = vpop.f32.mrb[47].mxu1  ;;  %9150 = vmatpush1.bf16.msra.mxu1 %v9149_v33 }
 0x5c0   : > { %v8121_v53 = vadd.f32 %v8120_v21, %v13776_v34  ;;  %v8164_v46 = vsub.s32 0, %v8163_v58  ;;  %v8471_v4 = vsub.s32 %v8468_v42, %v8163_v58 }
 0x5c1   : > { %v8153_v28 = vmax.f32 %v8119_v54, 0.0 }
 0x5c2   : > { %v8154_v22 = vmax.f32 %v8121_v53, 0.0  ;;  %v8165_v50 = vrot.slane %v8160_v17, %v8164_v46 }
 0x5c3   : > { %v9153_v11 = vpack.c.bf16 %v8153_v28, %v8145_v3 }
 0x5c4   : > { %v9151_v19 = vpack.c.bf16 %v8154_v22, %v8146_v26 }
 0x5c6   : > { %9152 = vmatprep.subr.bf16.mxu1 %v9151_v19 }
 0x5c7   : > { %9154 = vmatpush1.bf16.msra.mxu1 %v9153_v11 }
 0x5ca   : > { %8923 = vmatmul.mubr.msk.f32.vlgmr.msra.gmra.mrb[50].mxu1 %vm8166_vm2, %v13785_v7 }
 0x5f6   : > { %v8236_v34 = vpop.f32.mrb[48].mxu0  ;;  %v8307_v35 = vpop.f32.mrb[48].mxu1 }
 0x5f7   : > { %v8237_v37 = vadd.f32 %v8236_v34, %v8165_v50  ;;  %v8308_v43 = vadd.f32 %v8307_v35, %v8165_v50  ;;  %v8238_v30 = vpop.f32.mrb[49].mxu0  ;;  %v8309_v62 = vpop.f32.mrb[49].mxu1 }
 0x5f8   : > { %v8239_v47 = vadd.f32 %v8238_v30, %v8165_v50  ;;  %v8310_v8 = vadd.f32 %v8309_v62, %v8165_v50 }
 0x5fa   : > { %v8462_v18 = vcombine.low %v8237_v37, %v8239_v47  ;;  %v8463_v7 = vcombine.low %v8308_v43, %v8310_v8 }
 0x5fc   : > { %v8472_v38 = vrot.slane %v8462_v18, %v8471_v4  ;;  %v8479_v10 = vrot.slane %v8463_v7, %v8471_v4 }
 0x5fe   : > { %v8494_v27 = vcombine.low %v8472_v38, %v8479_v10 }
 0x600   : > { %v8502_v0 = vrot.slane %v8494_v27, %v8471_v4 }
 0x680   : > { %v8378_v5 = vpop.f32.mrb[50].mxu0 }
 0x681   : > { %v8379_v51 = vadd.f32 %v8378_v5, %v8165_v50  ;;  %v8380_v23 = vpop.f32.mrb[51].mxu0 }
 0x682   : > { %v8381_v1 = vadd.f32 %v8380_v23, %v8165_v50 }
 0x684   : > { %v8464_v16 = vcombine.low %v8379_v51, %v8381_v1 }
 0x686   : > { %v8486_v41 = vrot.slane %v8464_v16, %v8471_v4 }
 0x69d   : > { %v8449_v31 = vpop.f32.mrb[50].mxu1 }
 0x69e   : > { %v8450_v59 = vadd.f32 %v8449_v31, %v8165_v50  ;;  %v8451_v25 = vpop.f32.mrb[51].mxu1 }
 0x69f   : > { %v8452_v32 = vadd.f32 %v8451_v25, %v8165_v50 }
 0x6a1   : > { %v8465_v24 = vcombine.low %v8450_v59, %v8452_v32 }
 0x6a3   : > { %v8493_v13 = vrot.slane %v8465_v24, %v8471_v4 }
 0x6a5   : > { %v8495_v55 = vcombine.low %v8486_v41, %v8493_v13 }
 0x6a7   : > { %v8509_v2 = vrot.slane %v8495_v55, %v8471_v4 }
 0x6a9   : > { %v8510_v29 = vcombine.low %v8502_v0, %v8509_v2 }
 0x6ab   : > { %8512 = vst [vmem:[%s440_s18] sm:$0xff] %v8510_v29 }
 0x6ac   : > { %9502 = shalt.err (!%p9499_p7)
}
 0x6ad   : > { %s9503_s30 = scalar_lea.hbm %s13818_s22, 128  ;;  %s9507_s15 = scalar_lea.hbm %s13869_s7, 256 }
 0x6ae   : > { %p9504_p10 = scmp.ne.s32.totalorder %s13818_s22, %s9503_s30  ;;  %p9508_p13 = scmp.lt.u32.totalorder %s13818_s22, %s13869_s7 }
 0x6af   : > { %p9509_p0 = scmp.lt.u32.totalorder %s9507_s15, %s9503_s30  ;;  %p9511_p2 = scmp.lt.u32.totalorder %s9503_s30, %s13818_s22 }
 0x6b0   : > { %p9505_p11 = pnand %p9504_p10, %p9645_p6 }
 0x6b1   : > { %p9510_p1 = por %p9509_p0, %p9508_p13 }
 0x6b2   : > { %p9506_p12 = pneg %p9505_p11 }
 0x6b3   : > { %p9512_p3 = por %p9511_p2, %p9510_p1 }
 0x6b5   : > { %p9513_p4 = pnand %p9512_p3, %p9506_p12 }
 0x6b7   : > { %9516 = shalt.err (!%p9513_p4)
}
 0x6b8   : > { %9283 = dma.vmem_to_hbm [thread:$0]  (%p9645_p6), %s13820_s19, 128, %s13818_s22, %s8514_s23  }
 0x6b9 PF: > { %s8540_s18 = sand.u32 1, %s9539_s26   ;;  %p9286_p5 = pnand %p8607_p9, %p9649_p8 }
 0x6ba   : > { %s8541_s20 = scalar_lea.sflag [#allocation5], %s8540_s18 }
 0x6bb   : > { %9534 = dma.done.wait (!%p9286_p5), %s8541_s20, 128  }
 0x6bc   : > { %9536 = vsyncadd (!%p9286_p5), %s8541_s20, 4294967168  ;;  %p19_p7 = scmp.ge.s32.totalorder %s9631_s8, 4   ;;  %s14267_s26 = smov %s9543_s27 }
 0x6bd   : > { %s14268_s27 = smov %s9547_s28  ;;  %s14269_s28 = smov %s9643_s11 }
 0x6be   : > { %s14270_s29 = smov %s9631_s8  ;;  %21 = sbr.rel (!%p19_p7) target bundleno = 6 (0x6), region = 114 }
 0x6c5   :  { %8546 = vsyncpa [#allocation5], 1 }
 0x6c6   :  { %8548 = vsyncpa [#allocation5 + $0x1], 1 }

</bundles_post_ra>
